<compile_context>
chip_gen: v6e
topology: v6e:2x2x1
jax: 0.10.0
libtpu: 0.0.40
codegen_flags: <defaults>
</compile_context>

<pallas_src>
import jax
import jax.numpy as jnp
from jax import lax
from jax.experimental import pallas as pl
from jax.experimental.pallas import tpu as pltpu


def _round_up(x, m):
    return ((x + m - 1) // m) * m


def _make_kernel(offsets, TM, TB, C, Cout_pad, fuse_k, quantized):
    """offsets: static flat-row shifts (kh*Wp + kw) for every conv tap."""

    def conv_body(w_ref, bias_ref, o_ref, xq_ref, lhs_ref):
        if fuse_k:
            # Stage all taps once in bf16 and run ONE MXU matmul with K = KH*KW*C.
            for t, off in enumerate(offsets):           # static python loop
                lhs_ref[:, t * C:(t + 1) * C] = xq_ref[pl.ds(off, TM), :]
            o_ref[...] = jnp.dot(lhs_ref[...], w_ref[...],
                                 preferred_element_type=jnp.float32)
            o_ref[...] += bias_ref[...]
        else:
            # C >= 128: per-tap matmuls, accumulating into the VMEM output block
            # (never a register accumulator).
            o_ref[...] = jnp.broadcast_to(bias_ref[...], o_ref.shape)
            for t, off in enumerate(offsets):
                o_ref[...] += jnp.dot(xq_ref[pl.ds(off, TM), :],
                                      w_ref[pl.ds(t * C, C), :],
                                      preferred_element_type=jnp.float32)

    if quantized:
        def kernel(step_ref, istep_ref, xa_ref, xb_ref, w_ref, bias_ref,
                   o_ref, err_ref, xq_ref, *maybe_lhs):
            lhs_ref = maybe_lhs[0] if fuse_k else None
            xa = xa_ref[...]                     # (TM, C) f32  rows [i*TM, (i+1)*TM)
            xb = xb_ref[...]                     # (TB, C) f32  halo rows after them
            step = step_ref[...]                 # (1, C)  = 2**delta[group(c)]
            istep = istep_ref[...]               # (1, C)  = 2**(-delta)  (exact)
            qa = step * jnp.round(xa * istep)
            qb = step * jnp.round(xb * istep)
            # Per-channel partial error sum for this tile (padding rows contribute 0);
            # spread over the 8 sublanes of the (8, C) output block.  NOTE: C < 128
            # keeps this a masked store, but it is only 8 rows/step (negligible).
            err_ref[...] = jnp.broadcast_to(
                jnp.sum(xa - qa, axis=0, keepdims=True) * 0.125, err_ref.shape)
            # Stage the contiguous quantized rows once, already cast to bf16.
            xq_ref[pl.ds(0, TM), :] = qa.astype(jnp.bfloat16)
            xq_ref[pl.ds(TM, TB), :] = qb.astype(jnp.bfloat16)
            conv_body(w_ref, bias_ref, o_ref, xq_ref, lhs_ref)
    else:
        def kernel(xa_ref, xb_ref, w_ref, bias_ref, o_ref, xq_ref, *maybe_lhs):
            lhs_ref = maybe_lhs[0] if fuse_k else None
            xq_ref[pl.ds(0, TM), :] = xa_ref[...].astype(jnp.bfloat16)
            xq_ref[pl.ds(TM, TB), :] = xb_ref[...].astype(jnp.bfloat16)
            conv_body(w_ref, bias_ref, o_ref, xq_ref, lhs_ref)

    return kernel


def qa_wrapper_forward(x_nchw, weight_oihw, bias, delta, coded, chans_per_group,
                       quantized=True):
    """QAWrapper.forward for a Conv2d layer (stride 1, 'same' padding, odd kernel).

    Returns (conv_output_NCHW, per_channel_mean_quant_error or None).
    """
    # TODO(synk): common.quantize's rate argument (coded / input[0].numel()) has no
    # public definition; modeled as uniform quantization with a power-of-two step.
    # TODO(synk): stateful members (sum_err_a accumulation across calls, count, bca
    # hook) are module state, not forward math; per-call error is returned instead.
    del coded
    N, C, H, W = x_nchw.shape
    Cout, Cin, KH, KW = weight_oihw.shape
    assert Cin == C
    assert KH % 2 == 1 and KW % 2 == 1, "'same' path assumes odd kernels, stride 1"
    ph, pw = KH // 2, KW // 2
    Hp = H + 2 * ph
    Wp = _round_up(W + 2 * pw, 8)        # extra zero cols -> sublane-aligned kh*Wp
    Mv = N * Hp * Wp                     # rows of the flattened padded image

    Cout_pad = _round_up(Cout, 128)      # lane-dense output stores
    KKC = KH * KW * C
    fuse_k = C < 128                     # fuse taps along contraction when K is small

    # ---- tile geometry (VMEM-budget driven) --------------------------------
    max_off = (KH - 1) * Wp + (KW - 1)   # largest tap shift (flat rows)
    TB = _round_up(max_off, 8)           # sublane-aligned halo block
    # Per-step VMEM bytes as a function of TM; weights/bias are charged with two
    # buffers (constant index_map -> DMA'd once, but the default pipeliner still
    # allocates a second buffer).
    const_bytes = (2 * TB * C * 4 + 2 * KKC * Cout_pad * 2
                   + 2 * Cout_pad * 4 + TB * C * 2)
    if quantized:
        const_bytes += 2 * 2 * C * 4 + 2 * 8 * C * 4
    per_row = 2 * C * 4 + 2 * Cout_pad * 4 + C * 2
    if fuse_k:
        per_row += KKC * 2
    budget = 40 * 1024 * 1024            # live-data budget; fits v7x's 64 MiB VMEM
    tm_budget = max(TB, ((budget - const_bytes) // per_row) // TB * TB)
    tm_two = max(TB, _round_up(-(-Mv // 2), TB))   # keep >= 2 grid steps (megacore)
    tm_cap = max(TB, (4096 // TB) * TB)            # amortize ~0.35us/step, cap latency
    TM = max(TB, min(tm_budget, tm_two, tm_cap))
    ntiles = -(-Mv // TM)
    if ntiles > 2 and ntiles % 2:                  # prefer an even split across 2 TCs
        TM = max(TB, min(TM, _round_up(-(-Mv // (ntiles + 1)), TB)))
        ntiles = -(-Mv // TM)
    rows = ntiles * TM + TB                        # main rows + one trailing halo block
    blocks_per_tile = TM // TB
    vmem_limit = int(min(48 * 1024 * 1024,
                         max(32 * 1024 * 1024, (const_bytes + TM * per_row) * 2)))

    # ---- layout plumbing (XLA, done once) ----------------------------------
    # TODO(synk): NCHW<->NHWC transposes and the pad/crop passes could be fused into
    # producer/consumer layers if this wrapper is the end-to-end bottleneck.
    x_nhwc = jnp.transpose(x_nchw.astype(jnp.float32), (0, 2, 3, 1))
    x_pad = jnp.pad(x_nhwc, ((0, 0), (ph, ph), (pw, Wp - W - pw), (0, 0)))
    x_flat = jnp.pad(x_pad.reshape(Mv, C), ((0, rows - Mv), (0, 0)))

    # weight (O,I,KH,KW) -> (KH*KW*C, Cout_pad) bf16, tap-major rows (kh, kw, c)
    # matching the lhs staging order.
    w = jnp.transpose(weight_oihw, (2, 3, 1, 0)).reshape(KKC, Cout)
    w = jnp.pad(w, ((0, 0), (0, Cout_pad - Cout))).astype(jnp.bfloat16)
    b = jnp.pad(bias, (0, Cout_pad - Cout)).reshape(1, Cout_pad).astype(jnp.float32)

    offsets = tuple(kh * Wp + kw for kh in range(KH) for kw in range(KW))
    kernel = _make_kernel(offsets, TM, TB, C, Cout_pad, fuse_k, quantized)

    scratch = [pltpu.VMEM((TM + TB, C), jnp.bfloat16)]     # quantized bf16 rows
    if fuse_k:
        scratch.append(pltpu.VMEM((TM, KKC), jnp.bfloat16))  # K-fused lhs slab

    x_specs = [
        pl.BlockSpec((TM, C), lambda i: (i, 0)),                           # x rows
        pl.BlockSpec((TB, C), lambda i: ((i + 1) * blocks_per_tile, 0)),   # halo
    ]
    wb_specs = [
        pl.BlockSpec((KKC, Cout_pad), lambda i: (0, 0)),                   # weights
        pl.BlockSpec((1, Cout_pad), lambda i: (0, 0)),                     # bias
    ]
    o_spec = pl.BlockSpec((TM, Cout_pad), lambda i: (i, 0))
    o_shape = jax.ShapeDtypeStruct((ntiles * TM, Cout_pad), jnp.float32)

    cost = pl.CostEstimate(
        flops=2 * ntiles * TM * KKC * Cout_pad,
        transcendentals=0,
        bytes_accessed=(rows * C * 4 + ntiles * TB * C * 4 + KKC * Cout_pad * 2
                        + ntiles * TM * Cout_pad * 4))
    params = pltpu.CompilerParams(dimension_semantics=("parallel",),
                                  vmem_limit_bytes=vmem_limit)

    if quantized:
        delta = jnp.asarray(delta, jnp.float32)
        step = jnp.repeat(2.0 ** delta, chans_per_group)[:C].reshape(1, C)
        istep = jnp.repeat(2.0 ** (-delta), chans_per_group)[:C].reshape(1, C)
        out_flat, err_part = pl.pallas_call(
            kernel,
            grid=(ntiles,),
            in_specs=[pl.BlockSpec((1, C), lambda i: (0, 0)),
                      pl.BlockSpec((1, C), lambda i: (0, 0))] + x_specs + wb_specs,
            out_specs=(o_spec, pl.BlockSpec((8, C), lambda i: (i, 0))),
            out_shape=(o_shape, jax.ShapeDtypeStruct((ntiles * 8, C), jnp.float32)),
            scratch_shapes=scratch,
            compiler_params=params,
            cost_estimate=cost,
        )(step, istep, x_flat, x_flat, w, b)
    else:
        out_flat = pl.pallas_call(
            kernel,
            grid=(ntiles,),
            in_specs=x_specs + wb_specs,
            out_specs=o_spec,
            out_shape=o_shape,
            scratch_shapes=scratch,
            compiler_params=params,
            cost_estimate=cost,
        )(x_flat, x_flat, w, b)

    # Valid outputs live at flat rows n*Hp*Wp + i*Wp + j with i < H, j < W.
    out = out_flat[:Mv].reshape(N, Hp, Wp, Cout_pad)[:, :H, :W, :Cout]
    out = jnp.transpose(out, (0, 3, 1, 2))            # back to NCHW

    if not quantized:
        return out, None
    sum_err_a = jnp.sum(err_part, axis=0) / float(N * H * W)
    return out, sum_err_a


if __name__ == "__main__":
    key = jax.random.PRNGKey(0)
    kx, kw_, kb = jax.random.split(key, 3)

    # small shapes consistent with a Conv2d(4 -> 8, 3x3, padding=1) wrapped layer
    N, C, H, W = 2, 4, 16, 16
    Cout, KH, KW = 8, 3, 3
    chans_per_group = 2                     # module default is 64; scaled to C=4
    delta = [-2.0, -3.0]                    # one step exponent per channel group
    coded = [float(C * H * W) * 4.0] * 2    # unused rate argument (see TODO)

    x = jax.random.normal(kx, (N, C, H, W), jnp.float32)
    weight = jax.random.normal(kw_, (Cout, C, KH, KW), jnp.float32) * 0.1
    bias = jax.random.normal(kb, (Cout,), jnp.float32) * 0.01

    out, sum_err_a = qa_wrapper_forward(x, weight, bias, delta, coded,
                                        chans_per_group, quantized=True)
    jax.block_until_ready(out)
    jax.block_until_ready(sum_err_a)

    # reference check (pure XLA) for the same semantics
    step = jnp.repeat(2.0 ** jnp.asarray(delta, jnp.float32), chans_per_group)[:C]
    step4 = step[None, :, None, None]
    xq_ref = step4 * jnp.round(x / step4)
    err_ref = jnp.mean(jnp.transpose(x - xq_ref, (1, 0, 2, 3)).reshape(C, -1), axis=1)
    conv_q_ref = lax.conv_general_dilated(
        xq_ref, weight, window_strides=(1, 1), padding=((1, 1), (1, 1)),
        dimension_numbers=("NCHW", "OIHW", "NCHW")) + bias[None, :, None, None]

    assert out.shape == (N, Cout, H, W)
    assert float(jnp.max(jnp.abs(out - conv_q_ref))) < 2e-2, "conv mismatch"
    assert float(jnp.max(jnp.abs(sum_err_a - err_ref))) < 1e-5, "stats mismatch"

    # non-quantized passthrough path (no err output, no quantize math in-kernel)
    out_nq, err_nq = qa_wrapper_forward(x, weight, bias, delta, coded,
                                        chans_per_group, quantized=False)
    jax.block_until_ready(out_nq)
    conv_ref = lax.conv_general_dilated(
        x, weight, window_strides=(1, 1), padding=((1, 1), (1, 1)),
        dimension_numbers=("NCHW", "OIHW", "NCHW")) + bias[None, :, None, None]
    assert err_nq is None
    assert float(jnp.max(jnp.abs(out_nq - conv_ref))) < 5e-2, "unquantized conv mismatch"

    print("KERNEL_OK")
</pallas_src>

<mosaic_0001>
module attributes {stable_mosaic.version = 11 : i64} {
  func.func @kernel(%arg0: i32, %arg1: memref<1x4xf32, #tpu.memory_space<vmem>>, %arg2: memref<1x4xf32, #tpu.memory_space<vmem>>, %arg3: memref<448x4xf32, #tpu.memory_space<vmem>>, %arg4: memref<56x4xf32, #tpu.memory_space<vmem>>, %arg5: memref<36x128xbf16, #tpu.memory_space<vmem>>, %arg6: memref<1x128xf32, #tpu.memory_space<vmem>>, %arg7: memref<448x128xf32, #tpu.memory_space<vmem>>, %arg8: memref<8x4xf32, #tpu.memory_space<vmem>>, %arg9: memref<504x4xbf16, #tpu.memory_space<vmem>>, %arg10: memref<448x36xbf16, #tpu.memory_space<vmem>>) attributes {dimension_semantics = [#tpu.dimension_semantics<parallel>], iteration_bounds = array<i64: 2>, scalar_prefetch = 0 : i64, scratch_operands = 2 : i64, tpu.core_type = #tpu.core_type<tc>, window_params = [{pipeline_mode = #tpu.pipeline_mode<synchronous>, transform_indices = @transform_0, window_bounds = array<i64: 1, 4>}, {pipeline_mode = #tpu.pipeline_mode<synchronous>, transform_indices = @transform_1, window_bounds = array<i64: 1, 4>}, {transform_indices = @transform_2, window_bounds = array<i64: 448, 4>}, {transform_indices = @transform_3, window_bounds = array<i64: 56, 4>}, {pipeline_mode = #tpu.pipeline_mode<synchronous>, transform_indices = @transform_4, window_bounds = array<i64: 36, 128>}, {pipeline_mode = #tpu.pipeline_mode<synchronous>, transform_indices = @transform_5, window_bounds = array<i64: 1, 128>}, {transform_indices = @transform_6, window_bounds = array<i64: 448, 128>}, {transform_indices = @transform_7, window_bounds = array<i64: 8, 4>}]} {
    %c0 = arith.constant 0 : index
    %c0_0 = arith.constant 0 : index
    %0 = vector.load %arg3[%c0, %c0_0] : memref<448x4xf32, #tpu.memory_space<vmem>>, vector<448x4xf32>
    %c0_1 = arith.constant 0 : index
    %c0_2 = arith.constant 0 : index
    %1 = vector.load %arg4[%c0_1, %c0_2] : memref<56x4xf32, #tpu.memory_space<vmem>>, vector<56x4xf32>
    %c0_3 = arith.constant 0 : index
    %c0_4 = arith.constant 0 : index
    %2 = vector.load %arg1[%c0_3, %c0_4] : memref<1x4xf32, #tpu.memory_space<vmem>>, vector<1x4xf32>
    %c0_5 = arith.constant 0 : index
    %c0_6 = arith.constant 0 : index
    %3 = vector.load %arg2[%c0_5, %c0_6] : memref<1x4xf32, #tpu.memory_space<vmem>>, vector<1x4xf32>
    %4 = vector.broadcast %3 : vector<1x4xf32> to vector<448x4xf32>
    %5 = arith.mulf %0, %4 : vector<448x4xf32>
    %6 = math.roundeven %5 : vector<448x4xf32>
    %7 = vector.broadcast %2 : vector<1x4xf32> to vector<448x4xf32>
    %8 = arith.mulf %7, %6 : vector<448x4xf32>
    %9 = vector.broadcast %3 : vector<1x4xf32> to vector<56x4xf32>
    %10 = arith.mulf %1, %9 : vector<56x4xf32>
    %11 = math.roundeven %10 : vector<56x4xf32>
    %12 = vector.broadcast %2 : vector<1x4xf32> to vector<56x4xf32>
    %13 = arith.mulf %12, %11 : vector<56x4xf32>
    %14 = arith.subf %0, %8 : vector<448x4xf32>
    %cst = arith.constant dense<0.000000e+00> : vector<4xf32>
    %15 = vector.multi_reduction <add>, %14, %cst [0] : vector<448x4xf32> to vector<4xf32>
    %16 = vector.shape_cast %15 : vector<4xf32> to vector<1x4xf32>
    %cst_7 = arith.constant 1.250000e-01 : f32
    %17 = vector.broadcast %cst_7 : f32 to vector<1x4xf32>
    %18 = arith.mulf %16, %17 : vector<1x4xf32>
    %19 = vector.shape_cast %18 : vector<1x4xf32> to vector<1x4xf32>
    %20 = vector.broadcast %19 : vector<1x4xf32> to vector<8x4xf32>
    %c0_8 = arith.constant 0 : index
    %c0_9 = arith.constant 0 : index
    %21 = vector.load %arg8[%c0_8, %c0_9] : memref<8x4xf32, #tpu.memory_space<vmem>>, vector<8x4xf32>
    tpu.vector_store %arg8[%c0_8, %c0_9], %20 {strides = array<i32>} : memref<8x4xf32, #tpu.memory_space<vmem>>, vector<8x4xf32>,
    %22 = arith.truncf %8 : vector<448x4xf32> to vector<448x4xbf16>
    %c0_10 = arith.constant 0 : index
    %c0_11 = arith.constant 0 : index
    %23 = vector.load %arg9[%c0_10, %c0_11] : memref<504x4xbf16, #tpu.memory_space<vmem>>, vector<448x4xbf16>
    tpu.vector_store %arg9[%c0_10, %c0_11], %22 {strides = array<i32>} : memref<504x4xbf16, #tpu.memory_space<vmem>>, vector<448x4xbf16>,
    %24 = arith.truncf %13 : vector<56x4xf32> to vector<56x4xbf16>
    %c448 = arith.constant 448 : index
    %c0_12 = arith.constant 0 : index
    %25 = vector.load %arg9[%c448, %c0_12] : memref<504x4xbf16, #tpu.memory_space<vmem>>, vector<56x4xbf16>
    tpu.vector_store %arg9[%c448, %c0_12], %24 {strides = array<i32>} : memref<504x4xbf16, #tpu.memory_space<vmem>>, vector<56x4xbf16>,
    %c0_13 = arith.constant 0 : index
    %c0_14 = arith.constant 0 : index
    %26 = vector.load %arg9[%c0_13, %c0_14] : memref<504x4xbf16, #tpu.memory_space<vmem>>, vector<448x4xbf16>
    %c0_15 = arith.constant 0 : index
    %c0_16 = arith.constant 0 : index
    %27 = vector.load %arg10[%c0_15, %c0_16] : memref<448x36xbf16, #tpu.memory_space<vmem>>, vector<448x4xbf16>
    tpu.vector_store %arg10[%c0_15, %c0_16], %26 {strides = array<i32>} : memref<448x36xbf16, #tpu.memory_space<vmem>>, vector<448x4xbf16>,
    %c1 = arith.constant 1 : index
    %c0_17 = arith.constant 0 : index
    %28 = vector.load %arg9[%c1, %c0_17] : memref<504x4xbf16, #tpu.memory_space<vmem>>, vector<448x4xbf16>
    %c0_18 = arith.constant 0 : index
    %c4 = arith.constant 4 : index
    %29 = vector.load %arg10[%c0_18, %c4] : memref<448x36xbf16, #tpu.memory_space<vmem>>, vector<448x4xbf16>
    tpu.vector_store %arg10[%c0_18, %c4], %28 {strides = array<i32>} : memref<448x36xbf16, #tpu.memory_space<vmem>>, vector<448x4xbf16>,
    %c2 = arith.constant 2 : index
    %c0_19 = arith.constant 0 : index
    %30 = vector.load %arg9[%c2, %c0_19] : memref<504x4xbf16, #tpu.memory_space<vmem>>, vector<448x4xbf16>
    %c0_20 = arith.constant 0 : index
    %c8 = arith.constant 8 : index
    %31 = vector.load %arg10[%c0_20, %c8] : memref<448x36xbf16, #tpu.memory_space<vmem>>, vector<448x4xbf16>
    tpu.vector_store %arg10[%c0_20, %c8], %30 {strides = array<i32>} : memref<448x36xbf16, #tpu.memory_space<vmem>>, vector<448x4xbf16>,
    %c24 = arith.constant 24 : index
    %c0_21 = arith.constant 0 : index
    %32 = vector.load %arg9[%c24, %c0_21] : memref<504x4xbf16, #tpu.memory_space<vmem>>, vector<448x4xbf16>
    %c0_22 = arith.constant 0 : index
    %c12 = arith.constant 12 : index
    %33 = vector.load %arg10[%c0_22, %c12] : memref<448x36xbf16, #tpu.memory_space<vmem>>, vector<448x4xbf16>
    tpu.vector_store %arg10[%c0_22, %c12], %32 {strides = array<i32>} : memref<448x36xbf16, #tpu.memory_space<vmem>>, vector<448x4xbf16>,
    %c25 = arith.constant 25 : index
    %c0_23 = arith.constant 0 : index
    %34 = vector.load %arg9[%c25, %c0_23] : memref<504x4xbf16, #tpu.memory_space<vmem>>, vector<448x4xbf16>
    %c0_24 = arith.constant 0 : index
    %c16 = arith.constant 16 : index
    %35 = vector.load %arg10[%c0_24, %c16] : memref<448x36xbf16, #tpu.memory_space<vmem>>, vector<448x4xbf16>
    tpu.vector_store %arg10[%c0_24, %c16], %34 {strides = array<i32>} : memref<448x36xbf16, #tpu.memory_space<vmem>>, vector<448x4xbf16>,
    %c26 = arith.constant 26 : index
    %c0_25 = arith.constant 0 : index
    %36 = vector.load %arg9[%c26, %c0_25] : memref<504x4xbf16, #tpu.memory_space<vmem>>, vector<448x4xbf16>
    %c0_26 = arith.constant 0 : index
    %c20 = arith.constant 20 : index
    %37 = vector.load %arg10[%c0_26, %c20] : memref<448x36xbf16, #tpu.memory_space<vmem>>, vector<448x4xbf16>
    tpu.vector_store %arg10[%c0_26, %c20], %36 {strides = array<i32>} : memref<448x36xbf16, #tpu.memory_space<vmem>>, vector<448x4xbf16>,
    %c48 = arith.constant 48 : index
    %c0_27 = arith.constant 0 : index
    %38 = vector.load %arg9[%c48, %c0_27] : memref<504x4xbf16, #tpu.memory_space<vmem>>, vector<448x4xbf16>
    %c0_28 = arith.constant 0 : index
    %c24_29 = arith.constant 24 : index
    %39 = vector.load %arg10[%c0_28, %c24_29] : memref<448x36xbf16, #tpu.memory_space<vmem>>, vector<448x4xbf16>
    tpu.vector_store %arg10[%c0_28, %c24_29], %38 {strides = array<i32>} : memref<448x36xbf16, #tpu.memory_space<vmem>>, vector<448x4xbf16>,
    %c49 = arith.constant 49 : index
    %c0_30 = arith.constant 0 : index
    %40 = vector.load %arg9[%c49, %c0_30] : memref<504x4xbf16, #tpu.memory_space<vmem>>, vector<448x4xbf16>
    %c0_31 = arith.constant 0 : index
    %c28 = arith.constant 28 : index
    %41 = vector.load %arg10[%c0_31, %c28] : memref<448x36xbf16, #tpu.memory_space<vmem>>, vector<448x4xbf16>
    tpu.vector_store %arg10[%c0_31, %c28], %40 {strides = array<i32>} : memref<448x36xbf16, #tpu.memory_space<vmem>>, vector<448x4xbf16>,
    %c50 = arith.constant 50 : index
    %c0_32 = arith.constant 0 : index
    %42 = vector.load %arg9[%c50, %c0_32] : memref<504x4xbf16, #tpu.memory_space<vmem>>, vector<448x4xbf16>
    %c0_33 = arith.constant 0 : index
    %c32 = arith.constant 32 : index
    %43 = vector.load %arg10[%c0_33, %c32] : memref<448x36xbf16, #tpu.memory_space<vmem>>, vector<448x4xbf16>
    tpu.vector_store %arg10[%c0_33, %c32], %42 {strides = array<i32>} : memref<448x36xbf16, #tpu.memory_space<vmem>>, vector<448x4xbf16>,
    %c0_34 = arith.constant 0 : index
    %c0_35 = arith.constant 0 : index
    %44 = vector.load %arg10[%c0_34, %c0_35] : memref<448x36xbf16, #tpu.memory_space<vmem>>, vector<448x36xbf16>
    %c0_36 = arith.constant 0 : index
    %c0_37 = arith.constant 0 : index
    %45 = vector.load %arg5[%c0_36, %c0_37] : memref<36x128xbf16, #tpu.memory_space<vmem>>, vector<36x128xbf16>
    %cst_38 = arith.constant dense<0.000000e+00> : vector<448x128xf32>
    %46 = tpu.matmul %44, %45, %cst_38 {dimension_numbers = #tpu.dot_dimension_numbers<[1], [0], [0], [1], [0, 0, 1, 1], [], []>} : vector<448x36xbf16>, vector<36x128xbf16>, vector<448x128xf32> -> vector<448x128xf32>
    %c0_39 = arith.constant 0 : index
    %c0_40 = arith.constant 0 : index
    %47 = vector.load %arg7[%c0_39, %c0_40] : memref<448x128xf32, #tpu.memory_space<vmem>>, vector<448x128xf32>
    tpu.vector_store %arg7[%c0_39, %c0_40], %46 {strides = array<i32>} : memref<448x128xf32, #tpu.memory_space<vmem>>, vector<448x128xf32>,
    %c0_41 = arith.constant 0 : index
    %c0_42 = arith.constant 0 : index
    %48 = vector.load %arg7[%c0_41, %c0_42] : memref<448x128xf32, #tpu.memory_space<vmem>>, vector<448x128xf32>
    %c0_43 = arith.constant 0 : index
    %c0_44 = arith.constant 0 : index
    %49 = vector.load %arg6[%c0_43, %c0_44] : memref<1x128xf32, #tpu.memory_space<vmem>>, vector<1x128xf32>
    %50 = vector.broadcast %49 : vector<1x128xf32> to vector<448x128xf32>
    %51 = arith.addf %48, %50 : vector<448x128xf32>
    %c0_45 = arith.constant 0 : index
    %c0_46 = arith.constant 0 : index
    %52 = vector.load %arg7[%c0_45, %c0_46] : memref<448x128xf32, #tpu.memory_space<vmem>>, vector<448x128xf32>
    tpu.vector_store %arg7[%c0_45, %c0_46], %51 {strides = array<i32>} : memref<448x128xf32, #tpu.memory_space<vmem>>, vector<448x128xf32>,
    return
  }
  func.func @transform_0(%arg0: i32) -> (i32, i32) {
    %c0_i32 = arith.constant 0 : i32
    %c0_i32_0 = arith.constant 0 : i32
    %c0_i32_1 = arith.constant 0 : i32
    return %c0_i32, %c0_i32_0 : i32, i32
  }
  func.func @transform_1(%arg0: i32) -> (i32, i32) {
    %c0_i32 = arith.constant 0 : i32
    %c0_i32_0 = arith.constant 0 : i32
    %c0_i32_1 = arith.constant 0 : i32
    return %c0_i32, %c0_i32_0 : i32, i32
  }
  func.func @transform_2(%arg0: i32) -> (i32, i32) {
    %c0_i32 = arith.constant 0 : i32
    %c0_i32_0 = arith.constant 0 : i32
    return %arg0, %c0_i32 : i32, i32
  }
  func.func @transform_3(%arg0: i32) -> (i32, i32) {
    %c1_i32 = arith.constant 1 : i32
    %0 = arith.addi %arg0, %c1_i32 : i32
    %c8_i32 = arith.constant 8 : i32
    %1 = arith.muli %0, %c8_i32 : i32
    %c0_i32 = arith.constant 0 : i32
    %c0_i32_0 = arith.constant 0 : i32
    return %1, %c0_i32 : i32, i32
  }
  func.func @transform_4(%arg0: i32) -> (i32, i32) {
    %c0_i32 = arith.constant 0 : i32
    %c0_i32_0 = arith.constant 0 : i32
    %c0_i32_1 = arith.constant 0 : i32
    return %c0_i32, %c0_i32_0 : i32, i32
  }
  func.func @transform_5(%arg0: i32) -> (i32, i32) {
    %c0_i32 = arith.constant 0 : i32
    %c0_i32_0 = arith.constant 0 : i32
    %c0_i32_1 = arith.constant 0 : i32
    return %c0_i32, %c0_i32_0 : i32, i32
  }
  func.func @transform_6(%arg0: i32) -> (i32, i32) {
    %c0_i32 = arith.constant 0 : i32
    %c0_i32_0 = arith.constant 0 : i32
    return %arg0, %c0_i32 : i32, i32
  }
  func.func @transform_7(%arg0: i32) -> (i32, i32) {
    %c0_i32 = arith.constant 0 : i32
    %c0_i32_0 = arith.constant 0 : i32
    return %arg0, %c0_i32 : i32, i32
  }
}

</mosaic_0001>

<bundles_post_ra>
// kernel: tpu_custom_call.1
= control target key start
LH: loop header
LB: loop body
LE: loop exit
PB: predicated region body
PF: predicated region fallthrough
CT: control target
= control target key end

     0   :  { %13 = vsyncpa [#allocation5], 0  ;;  %s11488_s0 = inlined_call_operand.vmem [shape: f32[1,4], index: 0, kind: input, shape index: {}]   ;;  %s11489_s1 = inlined_call_operand.vmem [shape: f32[1,4], index: 1, kind: input, shape index: {}]   ;;  %s11490_s2 = inlined_call_operand.vmem [shape: f32[952,4], index: 2, kind: input, shape index: {}]   ;;  %s11491_s3 = inlined_call_operand.vmem [shape: f32[952,4], index: 3, kind: input, shape index: {}]   ;;  %s11492_s4 = inlined_call_operand.vmem [shape: bf16[36,128], index: 4, kind: input, shape index: {}]   ;;  %s11493_s5 = inlined_call_operand.vmem [shape: f32[1,128], index: 5, kind: input, shape index: {}]   ;;  %s11494_s6 = inlined_call_operand.hbm [shape: f32[896,128], index: 6, kind: output, shape index: {0}]   ;;  %s11495_s7 = inlined_call_operand.vmem [shape: f32[16,4], index: 7, kind: output, shape index: {1}]  }
   0x1   :  { %15 = vsyncpa [#allocation5 + $0x1], 0  ;;  %s7890_s24 = smov 0   ;;  %s7892_s25 = smov 0  }
   0x2   :  { %s7894_s26 = smov 0   ;;  %s7896_s27 = smov 0  }
   0x3 LB: > { %s7911_s28 = sadd.s32 4294967295, %s7838_s27   ;;  %s6873_s29 = sadd.s32 4294967294, %s7838_s27   ;;  %s7838_s27 = sphi %s7896_s27, %s11627_s27   ;;  %s7834_s26 = sphi %s7894_s26, %s11626_s26   ;;  %s7830_s25 = sphi %s7892_s25, %s11625_s25   ;;  %s7826_s24 = sphi %s7890_s24, %s11624_s24  }
   0x4   : > { %s7915_s30 = sadd.s32 1, %s7838_s27   ;;  %s168_s8 = sadd.s32 1, %s7834_s26 }
   0x5   : > { %s165_s9 = ssub.s32 %s7838_s27, %s7915_s30  ;;  %p178_p0 = scmp.ne.s32.totalorder %s7834_s26, %s7830_s25 }
   0x6   : > { %p166_p1 = scmp.eq.s32.totalorder %s165_s9, 0  ;;  %p179_p2 = scmp.eq.s32.totalorder %s7911_s28, 1 }
   0x7   : > { %p184_p3 = scmp.ne.s32.totalorder %s7830_s25, %s7826_s24  ;;  %p185_p4 = scmp.eq.s32.totalorder %s6873_s29, 1 }
   0x8   : > { %s7926_s10 = scalar_select %p166_p1, %s7834_s26, %s168_s8  }
   0x9   : > { %p7928_p5 = por %p179_p2, %p178_p0  ;;  %p7932_p6 = por %p185_p4, %p184_p3 }
   0xa   : > { %p6878_p7 = scmp.ge.s32.totalorder %s7838_s27, 1  ;;  %p271_p8 = scmp.lt.s32.totalorder %s7838_s27, 3 }
   0xc   : > { %p272_p9 = pnand %p6878_p7, %p271_p8 }
   0xd   : > { %s318_s13 = smul.u32 (!%p272_p9), 56, %s7911_s28  ;;  %s7840_s22 = smov (!%p272_p9), 4  }
   0xe   : > { %275 = sbr.rel (%p272_p9) target bundleno = 1460 (0x5b4), region = 44  ;;  %s332_s17 = sadd.s32 (!%p272_p9), 1, %s7911_s28 }
   0xf   : > { %p323_p10 = scmp.lt.s32.totalorder (!%p272_p9), %s318_s13, 118  ;;  %s9205_s18 = smul.u32 (!%p272_p9), 56, %s332_s17 }
  0x10   : > { %p343_p12 = scmp.lt.s32.totalorder (!%p272_p9), %s7911_s28, 1  ;;  %s7841_s15 = smov (!%p272_p9), 8  }
  0x11   : > { %p335_p11 = scmp.lt.s32.totalorder (!%p272_p9), %s9205_s18, 118  ;;  %s7843_s21 = smov (!%p272_p9), 16  }
  0x12   : > { %s7844_s23 = smov (!%p272_p9), 20  }
  0x13   : > { %s11629_s13 = smov (!%p323_p10, %s318_s13), 118  ;;  %v7942_v0 = vld [vmem:[%s11489_s1] ss:$0 sm:$0xff]  ;;  %vm1014_vm2 = vcmask 27648   ;;  %vm670_vm4 = vcmask 31744   ;;  %s11631_s18 = smov (!%p335_p11, %s9205_s18), 118 }
  0x14   : > { %s6879_s14 = sshll.u32 %s11629_s13, 3  ;;  %v8007_v38 = vld [vmem:[%s11488_s0] ss:$0 sm:$0xff]  ;;  %vm1276_vm8 = vsmask.f32 3328  ;;  %s6882_s20 = sshll.u32 %s11631_s18, 3 }
  0x15   : > { %s7947_s19 = scalar_lea.vmem %s11490_s2, %s6879_s14  ;;  %vm1277_vm9 = vsmask.f32 7440 }
  0x16   : > { %v7950_v1 = vld [vmem:[%s7947_s19 + $0x10] sm:$0xff]  ;;  %v7953_v2 = vld [vmem:[%s7947_s19 + $0x18] sm:$0xff]  ;;  %v7956_v3 = vld [vmem:[%s7947_s19] sm:$0xff]  ;;  %s9452_s29 = scalar_select %p343_p12, %s7911_s28, 1 }
  0x17   : > { %v421_v4 = vmul.f32 %v7942_v0, %v7950_v1  ;;  %v422_v5 = vmul.f32 %v7942_v0, %v7953_v2  ;;  %v7963_v6 = vld [vmem:[%s7947_s19 + $0x8] sm:$0xff]  ;;  %v419_v7 = vmul.f32 %v7942_v0, %v7956_v3  ;;  %v7968_v8 = vld [vmem:[%s7947_s19 + $0x20] sm:$0xff]  ;;  %v7997_v33 = vld [vmem:[%s7947_s19 + $0x30] sm:$0xff] }
  0x18   : > { %v7971_v9 = vld [vmem:[%s7947_s19 + $0x28] sm:$0xff]  ;;  %v420_v10 = vmul.f32 %v7942_v0, %v7963_v6  ;;  %v7977_v11 = vmul.f32 %v7942_v0, %v7968_v8  ;;  %v8016_v46 = vmul.f32 %v7942_v0, %v7997_v33  ;;  %vm8095_vm11 = vmor %vm1276_vm8, %vm1277_vm9  ;;  %s6883_s8 = sshll.u32 %s9452_s29, 3  ;;  %s7845_s29 = smov 24  }
  0x19   : > { %v7981_v12 = vmul.f32 %v7942_v0, %v7971_v9  ;;  %v7203_v13 = vand.u32 2147483647, %v421_v4  ;;  %v7205_v14 = vcvt.f32.s32 %v421_v4  ;;  %v7208_v15 = vand.u32 2147483648, %v421_v4  ;;  %s346_s14 = scalar_lea.vmem %s11495_s7, %s6883_s8  ;;  %s7846_s8 = smov 28  }
  0x1a   : > { %v7211_v16 = vand.u32 2147483647, %v422_v5  ;;  %v7213_v17 = vcvt.f32.s32 %v422_v5  ;;  %v7216_v18 = vand.u32 2147483648, %v422_v5  ;;  %v7187_v19 = vand.u32 2147483647, %v419_v7 }
  0x1b   : > { %v7189_v20 = vcvt.f32.s32 %v419_v7  ;;  %vm7983_vm0 = vcmp.lt.f32.partialorder %v7203_v13, 8388608.0  ;;  %v7206_v22 = vcvt.s32.f32 %v7205_v14  ;;  %v7192_v24 = vand.u32 2147483648, %v419_v7 }
  0x1c   : > { %vm7987_vm1 = vcmp.lt.f32.partialorder %v7211_v16, 8388608.0  ;;  %v7214_v25 = vcvt.s32.f32 %v7213_v17  ;;  %vm7991_vm3 = vcmp.lt.f32.partialorder %v7187_v19, 8388608.0  ;;  %v7195_v28 = vand.u32 2147483647, %v420_v10 }
  0x1d   : > { %v7190_v27 = vcvt.s32.f32 %v7189_v20  ;;  %v7207_v29 = vand.u32 2147483647, %v7206_v22  ;;  %v7197_v30 = vcvt.f32.s32 %v420_v10  ;;  %v7200_v31 = vand.u32 2147483648, %v420_v10 }
  0x1e   : > { %v7219_v32 = vand.u32 2147483647, %v7977_v11  ;;  %v7215_v34 = vand.u32 2147483647, %v7214_v25  ;;  %vm7999_vm5 = vcmp.lt.f32.partialorder %v7195_v28, 8388608.0  ;;  %v7221_v37 = vcvt.f32.s32 %v7977_v11  ;;  %v8058_v25 = vld [vmem:[%s7947_s19 + $0x40] sm:$0xff] }
  0x1f   : > { %v7191_v35 = vand.u32 2147483647, %v7190_v27  ;;  %v7209_v39 = vor.u32 %v7208_v15, %v7207_v29  ;;  %v7198_v40 = vcvt.s32.f32 %v7197_v30  ;;  %v7224_v42 = vand.u32 2147483648, %v7977_v11 }
  0x20   : > { %vm8009_vm6 = vcmp.lt.f32.partialorder %v7219_v32, 8388608.0  ;;  %v7217_v43 = vor.u32 %v7216_v18, %v7215_v34  ;;  %v7222_v45 = vcvt.s32.f32 %v7221_v37  ;;  %v7227_v49 = vand.u32 2147483647, %v7981_v12  ;;  %v8050_v18 = vld [vmem:[%s7947_s19 + $0x38] sm:$0xff] }
  0x21   : > { %v7193_v44 = vor.u32 %v7192_v24, %v7191_v35  ;;  %v7210_v47 = vsel %vm7983_vm0, %v7209_v39, %v421_v4  ;;  %v7199_v48 = vand.u32 2147483647, %v7198_v40  ;;  %v7229_v50 = vcvt.f32.s32 %v7981_v12 }
  0x22   : > { %v7218_v51 = vsel %vm7987_vm1, %v7217_v43, %v422_v5  ;;  %v539_v52 = vmul.f32 %v7210_v47, %v8007_v38  ;;  %v7223_v54 = vand.u32 2147483647, %v7222_v45  ;;  %vm8029_vm7 = vcmp.lt.f32.partialorder %v7227_v49, 8388608.0 }
  0x23   : > { %v7194_v53 = vsel %vm7991_vm3, %v7193_v44, %v419_v7  ;;  %v540_v55 = vmul.f32 %v7218_v51, %v8007_v38  ;;  %v7201_v56 = vor.u32 %v7200_v31, %v7199_v48  ;;  %v7230_v62 = vcvt.s32.f32 %v7229_v50 }
  0x24   : > { %v537_v57 = vmul.f32 %v7194_v53, %v8007_v38  ;;  %v7023_v59 = vpack.c.bf16 %v539_v52, %v539_v52  ;;  %v616_v60 = vsub.f32 %v7950_v1, %v539_v52  ;;  %v7225_v61 = vor.u32 %v7224_v42, %v7223_v54 }
  0x25   : > { %v617_v63 = vsub.f32 %v7953_v2, %v540_v55  ;;  %v7024_v4 = vpack.c.bf16 %v540_v55, %v540_v55  ;;  %v7202_v5 = vsel %vm7999_vm5, %v7201_v56, %v420_v10  ;;  %v7231_v10 = vand.u32 2147483647, %v7230_v62 }
  0x26   : > { %v7021_v7 = vpack.c.bf16 %v537_v57, %v537_v57  ;;  %1017 = vst.msk [vmem:[#allocation2 + $0x8] sm:$0xf] %vm1014_vm2, %v7023_v59  ;;  %v674_v13 = vsel %vm670_vm4, %v616_v60, 0.0  ;;  %v538_v14 = vmul.f32 %v7202_v5, %v8007_v38  ;;  %v614_v15 = vsub.f32 %v7956_v3, %v537_v57 }
  0x27   : > { %v7226_v1 = vsel %vm8009_vm6, %v7225_v61, %v7977_v11  ;;  %v676_v16 = vsel %vm670_vm4, %v617_v63, 0.0  ;;  %1018 = vst.msk [vmem:[#allocation2 + $0xc] sm:$0xf] %vm1014_vm2, %v7024_v4  ;;  %v7232_v17 = vand.u32 2147483648, %v7981_v12  ;;  %v7235_v20 = vand.u32 2147483647, %v8016_v46 }
  0x28   : > { %1015 = vst.msk [vmem:[#allocation2] sm:$0xf] %vm1014_vm2, %v7021_v7  ;;  %v541_v2 = vmul.f32 %v7226_v1, %v8007_v38  ;;  %v615_v3 = vsub.f32 %v7963_v6, %v538_v14  ;;  %v7022_v11 = vpack.c.bf16 %v538_v14, %v538_v14  ;;  %v671_v19 = vsel %vm670_vm4, %v614_v15, 0.0 }
  0x29   : > { %v7233_v23 = vor.u32 %v7232_v17, %v7231_v10  ;;  %v7237_v24 = vcvt.f32.s32 %v8016_v46  ;;  %vm8062_vm10 = vcmp.lt.f32.partialorder %v7235_v20, 8388608.0  ;;  %v7240_v6 = vand.u32 2147483648, %v8016_v46 }
  0x2a   : > { %v618_v21 = vsub.f32 %v7968_v8, %v541_v2  ;;  %v7025_v22 = vpack.c.bf16 %v541_v2, %v541_v2  ;;  %v672_v26 = vsel %vm670_vm4, %v615_v3, 0.0  ;;  %1016 = vst.msk [vmem:[#allocation2 + $0x4] sm:$0xf] %vm1014_vm2, %v7022_v11  ;;  %v8069_v28 = vmul.f32 %v7942_v0, %v8050_v18  ;;  %v8072_v8 = vld [vmem:[%s7947_s19 + $0x48] sm:$0xff] }
  0x2b   : > { %v673_v29 = vadd.f32 %v672_v26, %v671_v19  ;;  %v7234_v31 = vsel %vm8029_vm7, %v7233_v23, %v7981_v12  ;;  %v7238_v32 = vcvt.s32.f32 %v7237_v24  ;;  %v8082_v35 = vmul.f32 %v7942_v0, %v8058_v25 }
  0x2c   : > { %v678_v30 = vsel %vm670_vm4, %v618_v21, 0.0  ;;  %1019 = vst.msk [vmem:[#allocation2 + $0x10] sm:$0xf] %vm1014_vm2, %v7025_v22  ;;  %v542_v34 = vmul.f32 %v7234_v31, %v8007_v38  ;;  %v7243_v36 = vand.u32 2147483647, %v8069_v28  ;;  %v7245_v37 = vcvt.f32.s32 %v8069_v28 }
  0x2d   : > { %v1221_v39 = vld [vmem:[#allocation2 + $0x8] sm:$0xf]  ;;  %v675_v40 = vadd.f32 %v674_v13, %v673_v29  ;;  %v7239_v41 = vand.u32 2147483647, %v7238_v32  ;;  %v7248_v42 = vand.u32 2147483648, %v8069_v28  ;;  %v8089_v43 = vmul.f32 %v7942_v0, %v8072_v8 }
  0x2e   : > { %v1222_v12 = vld [vmem:[#allocation2 + $0xc] sm:$0xf]  ;;  %v1299_v44 = vshll.u32 %v1221_v39, 16  ;;  %v1303_v45 = vshrl.u32 %v1221_v39, 16  ;;  %v619_v48 = vsub.f32 %v7971_v9, %v542_v34  ;;  %v7026_v49 = vpack.c.bf16 %v542_v34, %v542_v34 }
  0x2f   : > { %v1219_v47 = vld [vmem:[#allocation2] sm:$0xf]  ;;  %v1309_v50 = vshll.u32 %v1222_v12, 16  ;;  %v1313_v51 = vshrl.u32 %v1222_v12, 16  ;;  %v677_v56 = vadd.f32 %v676_v16, %v675_v40  ;;  %v7241_v57 = vor.u32 %v7240_v6, %v7239_v41 }
  0x30   : > { %v1280_v52 = vshrl.u32 %v1219_v47, 16  ;;  %v1283_v53 = vshll.u32 %v1219_v47, 16  ;;  %v1301_v54 = vrot.slane %v1299_v44, 5  ;;  %v1305_v55 = vrot.slane %v1303_v45, 4  ;;  %1020 = vst.msk [vmem:[#allocation2 + $0x14] sm:$0xf] %vm1014_vm2, %v7026_v49 }
  0x31   : > { %v1311_v58 = vrot.slane %v1309_v50, 5  ;;  %v1315_v59 = vrot.slane %v1313_v51, 4  ;;  %v1220_v60 = vld [vmem:[#allocation2 + $0x4] sm:$0xf]  ;;  %v679_v7 = vadd.f32 %v678_v30, %v677_v56  ;;  %v7242_v3 = vsel %vm8062_vm10, %v7241_v57, %v8016_v46  ;;  %v8124_v44 = vld [vmem:[%s7947_s19 + $0x50] sm:$0xff] }
  0x32   : > { %v1282_v61 = vrot.slane %v1280_v52, 4  ;;  %v1285_v62 = vrot.slane %v1283_v53, 5  ;;  %v1306_v63 = vor.u32 %v1305_v55, %v1301_v54  ;;  %v1289_v4 = vshll.u32 %v1220_v60, 16 }
  0x33   : > { %v1293_v5 = vshrl.u32 %v1220_v60, 16  ;;  %v1223_v9 = vld [vmem:[#allocation2 + $0x10] sm:$0xf]  ;;  %v1316_v15 = vor.u32 %v1315_v59, %v1311_v58  ;;  %v543_v21 = vmul.f32 %v7242_v3, %v8007_v38  ;;  %v680_v24 = vsel %vm670_vm4, %v619_v48, 0.0  ;;  %v8145_v60 = vld [vmem:[%s7947_s19 + $0x58] sm:$0xff] }
  0x34   : > { %v1286_v14 = vor.u32 %v1285_v62, %v1282_v61  ;;  %v1319_v1 = vshll.u32 %v1223_v9, 16  ;;  %v1323_v16 = vshrl.u32 %v1223_v9, 16  ;;  %v1307_v2 = vrot.slane %v1306_v63, 4 }
  0x35   : > { %v1291_v10 = vrot.slane %v1289_v4, 5  ;;  %v1295_v17 = vrot.slane %v1293_v5, 4  ;;  %v1317_v19 = vrot.slane %v1316_v15, 4  ;;  %v620_v6 = vsub.f32 %v7997_v33, %v543_v21 }
  0x36   : > { %v1287_v11 = vrot.slane %v1286_v14, 4  ;;  %v1321_v20 = vrot.slane %v1319_v1, 5  ;;  %v1312_v22 = vsel %vm8095_vm11, %v1307_v2, %v1311_v58  ;;  %v1325_v26 = vrot.slane %v1323_v16, 4  ;;  %v8159_v2 = vld [vmem:[%s7947_s19 + $0x60] sm:$0xff] }
  0x37   : > { %v1296_v23 = vor.u32 %v1295_v17, %v1291_v10  ;;  %1847 = vrot.lane.b32.xlu1 %v1312_v22, %s7840_s22  ;;  %v7027_v29 = vpack.c.bf16 %v543_v21, %v543_v21  ;;  %v1224_v30 = vld [vmem:[#allocation2 + $0x14] sm:$0xf]  ;;  %v681_v39 = vadd.f32 %v680_v24, %v679_v7  ;;  %v682_v40 = vsel %vm670_vm4, %v620_v6, 0.0 }
  0x38   : > { %v1292_v27 = vsel %vm8095_vm11, %v1287_v11, %v1291_v10  ;;  %v1322_v46 = vsel %vm8095_vm11, %v1317_v19, %v1321_v20  ;;  %v1329_v32 = vshll.u32 %v1224_v30, 16  ;;  %v1333_v34 = vshrl.u32 %v1224_v30, 16 }
  0x39   : > { %1843 = vrot.lane.b32.xlu0 %v1292_v27, %s7840_s22  ;;  %v1297_v31 = vrot.slane %v1296_v23, 4  ;;  %1021 = vst.msk [vmem:[#allocation2 + $0x18] sm:$0xf] %vm1014_vm2, %v7027_v29  ;;  %v1326_v41 = vor.u32 %v1325_v26, %v1321_v20  ;;  %vm8117_vm12 = vcmp.lt.f32.partialorder %v7243_v36, 8388608.0  ;;  %v7246_v33 = vcvt.s32.f32 %v7245_v37 }
  0x3a   : > { %v1331_v47 = vrot.slane %v1329_v32, 5  ;;  %v1335_v48 = vrot.slane %v1333_v34, 4  ;;  %v683_v49 = vadd.f32 %v682_v40, %v681_v39  ;;  %v7251_v36 = vand.u32 2147483647, %v8082_v35 }
  0x3b   : > { %v1302_v45 = vsel %vm8095_vm11, %v1297_v31, %v1301_v54  ;;  %1849 = vrot.lane.b32.xlu1 %v1322_v46, %s7840_s22  ;;  %v1327_v50 = vrot.slane %v1326_v41, 4  ;;  %v7247_v51 = vand.u32 2147483647, %v7246_v33  ;;  %v7253_v52 = vcvt.f32.s32 %v8082_v35 }
  0x3c   : > { %v1336_v37 = vor.u32 %v1335_v48, %v1331_v47  ;;  %v7256_v53 = vand.u32 2147483648, %v8082_v35  ;;  %v429_v54 = vmul.f32 %v7942_v0, %v8124_v44  ;;  %v7259_v55 = vand.u32 2147483647, %v8089_v43 }
  0x3d   : > { %1845 = vrot.lane.b32.xlu0 %v1302_v45, %s7840_s22  ;;  %v1332_v56 = vsel %vm8095_vm11, %v1327_v50, %v1331_v47  ;;  %v7249_v57 = vor.u32 %v7248_v42, %v7247_v51  ;;  %vm8140_vm13 = vcmp.lt.f32.partialorder %v7251_v36, 8388608.0  ;;  %v7254_v59 = vcvt.s32.f32 %v7253_v52  ;;  %v8201_v50 = vld [vmem:[%s7947_s19 + $0x68] sm:$0xff] }
  0x3e   : > { %v1337_v61 = vrot.slane %v1336_v37, 4  ;;  %vm8147_vm14 = vcmp.lt.f32.partialorder %v7259_v55, 8388608.0  ;;  %v7261_v63 = vcvt.f32.s32 %v8089_v43  ;;  %v7264_v4 = vand.u32 2147483648, %v8089_v43 }
  0x3f   : > { %v7250_v42 = vsel %vm8117_vm12, %v7249_v57, %v8069_v28  ;;  %v7255_v5 = vand.u32 2147483647, %v7254_v59  ;;  %v7267_v9 = vand.u32 2147483647, %v429_v54  ;;  %v7269_v7 = vcvt.f32.s32 %v429_v54  ;;  %v8212_v57 = vld [vmem:[%s7947_s19 + $0x70] sm:$0xff] }
  0x40   : > { %v1225_v14 = vld [vmem:[#allocation2 + $0x18] sm:$0xf]  ;;  %v544_v15 = vmul.f32 %v7250_v42, %v8007_v38  ;;  %v7262_v1 = vcvt.s32.f32 %v7261_v63  ;;  %v7272_v16 = vand.u32 2147483648, %v429_v54  ;;  %v8163_v10 = vmul.f32 %v7942_v0, %v8145_v60 }
  0x41   : > { %1851 = vrot.lane.b32.xlu0 %v1332_v56, %s7840_s22  ;;  %v1339_v17 = vshll.u32 %v1225_v14, 16  ;;  %v1343_v3 = vshrl.u32 %v1225_v14, 16  ;;  %v7257_v11 = vor.u32 %v7256_v53, %v7255_v5  ;;  %vm8165_vm15 = vcmp.lt.f32.partialorder %v7267_v9, 8388608.0 }
  0x42   : > { %v621_v19 = vsub.f32 %v8050_v18, %v544_v15  ;;  %v7028_v20 = vpack.c.bf16 %v544_v15, %v544_v15  ;;  %v7263_v21 = vand.u32 2147483647, %v7262_v1  ;;  %v7270_v22 = vcvt.s32.f32 %v7269_v7 }
  0x43   : > { %v1341_v23 = vrot.slane %v1339_v17, 5  ;;  %v7258_v24 = vsel %vm8140_vm13, %v7257_v11, %v8082_v35  ;;  %v1345_v26 = vrot.slane %v1343_v3, 4  ;;  %v8175_v27 = vmul.f32 %v7942_v0, %v8159_v2 }
  0x44   : > { %v545_v46 = vmul.f32 %v7258_v24, %v8007_v38  ;;  %v684_v6 = vsel %vm670_vm4, %v621_v19, 0.0  ;;  %1022 = vst.msk [vmem:[#allocation2 + $0x1c] sm:$0xf] %vm1014_vm2, %v7028_v20  ;;  %v7265_v18 = vor.u32 %v7264_v4, %v7263_v21  ;;  %v7271_v29 = vand.u32 2147483647, %v7270_v22 }
  0x45   : > { %v1342_v30 = vsel %vm8095_vm11, %v1337_v61, %v1341_v23  ;;  %v685_v31 = vadd.f32 %v684_v6, %v683_v49  ;;  %v1346_v32 = vor.u32 %v1345_v26, %v1341_v23  ;;  %v7275_v35 = vand.u32 2147483647, %v8163_v10 }
  0x46   : > { %1853 = vrot.lane.b32.xlu1 %v1342_v30, %s7840_s22  ;;  %v622_v34 = vsub.f32 %v8058_v25, %v545_v46  ;;  %v7029_v39 = vpack.c.bf16 %v545_v46, %v545_v46  ;;  %v7266_v40 = vsel %vm8147_vm14, %v7265_v18, %v8089_v43  ;;  %v7273_v41 = vor.u32 %v7272_v16, %v7271_v29 }
  0x47   : > { %v1347_v12 = vrot.slane %v1346_v32, 4  ;;  %v546_v33 = vmul.f32 %v7266_v40, %v8007_v38  ;;  %vm8189_vm0 = vcmp.lt.f32.partialorder %v7275_v35, 8388608.0  ;;  %v7277_v47 = vcvt.f32.s32 %v8163_v10 }
  0x48   : > { %v686_v48 = vsel %vm670_vm4, %v622_v34, 0.0  ;;  %1023 = vst.msk [vmem:[#allocation2 + $0x20] sm:$0xf] %vm1014_vm2, %v7029_v39  ;;  %v7274_v25 = vsel %vm8165_vm15, %v7273_v41, %v429_v54  ;;  %v7280_v43 = vand.u32 2147483648, %v8163_v10  ;;  %v7283_v49 = vand.u32 2147483647, %v8175_v27 }
  0x49   : > { %v687_v51 = vadd.f32 %v686_v48, %v685_v31  ;;  %v547_v36 = vmul.f32 %v7274_v25, %v8007_v38  ;;  %v623_v52 = vsub.f32 %v8072_v8, %v546_v33  ;;  %v7030_v37 = vpack.c.bf16 %v546_v33, %v546_v33 }
  0x4a   : > { %v7278_v53 = vcvt.s32.f32 %v7277_v47  ;;  %vm8205_vm1 = vcmp.lt.f32.partialorder %v7283_v49, 8388608.0  ;;  %v7285_v56 = vcvt.f32.s32 %v8175_v27  ;;  %v7288_v54 = vand.u32 2147483648, %v8175_v27 }
  0x4b   : > { %v1226_v58 = vld [vmem:[#allocation2 + $0x1c] sm:$0xf]  ;;  %v624_v59 = vsub.f32 %v8124_v44, %v547_v36  ;;  %v688_v61 = vsel %vm670_vm4, %v623_v52, 0.0  ;;  %v7031_v62 = vpack.c.bf16 %v547_v36, %v547_v36  ;;  %1024 = vst.msk [vmem:[#allocation2 + $0x24] sm:$0xf] %vm1014_vm2, %v7030_v37  ;;  %v8219_v8 = vmul.f32 %v7942_v0, %v8201_v50 }
  0x4c   : > { %v1349_v63 = vshll.u32 %v1226_v58, 16  ;;  %v1353_v4 = vshrl.u32 %v1226_v58, 16  ;;  %v689_v42 = vadd.f32 %v688_v61, %v687_v51  ;;  %v7279_v5 = vand.u32 2147483647, %v7278_v53 }
  0x4d   : > { %v690_v9 = vsel %vm670_vm4, %v624_v59, 0.0  ;;  %1025 = vst.msk [vmem:[#allocation2 + $0x28] sm:$0xf] %vm1014_vm2, %v7031_v62  ;;  %v7286_v7 = vcvt.s32.f32 %v7285_v56  ;;  %v8225_v44 = vmul.f32 %v7942_v0, %v8212_v57  ;;  %v7291_v14 = vand.u32 2147483647, %v8219_v8  ;;  %v8260_v62 = vld [vmem:[%s7947_s19 + $0x80] sm:$0xff] }
  0x4e   : > { %v1351_v15 = vrot.slane %v1349_v63, 5  ;;  %v1355_v1 = vrot.slane %v1353_v4, 4  ;;  %v691_v16 = vadd.f32 %v690_v9, %v689_v42  ;;  %v7281_v17 = vor.u32 %v7280_v43, %v7279_v5 }
  0x4f   : > { %v1227_v3 = vld [vmem:[#allocation2 + $0x20] sm:$0xf]  ;;  %v7287_v11 = vand.u32 2147483647, %v7286_v7  ;;  %vm8228_vm3 = vcmp.lt.f32.partialorder %v7291_v14, 8388608.0  ;;  %v7293_v19 = vcvt.f32.s32 %v8219_v8  ;;  %v7296_v20 = vand.u32 2147483648, %v8219_v8 }
  0x50   : > { %v1356_v21 = vor.u32 %v1355_v1, %v1351_v15  ;;  %v1359_v22 = vshll.u32 %v1227_v3, 16  ;;  %v1363_v23 = vshrl.u32 %v1227_v3, 16  ;;  %v1352_v24 = vsel %vm8095_vm11, %v1347_v12, %v1351_v15 }
  0x51   : > { %1855 = vrot.lane.b32.xlu0 %v1352_v24, %s7840_s22  ;;  %v7282_v26 = vsel %vm8189_vm0, %v7281_v17, %v8163_v10  ;;  %v7289_v46 = vor.u32 %v7288_v54, %v7287_v11  ;;  %v7294_v6 = vcvt.s32.f32 %v7293_v19  ;;  %v7299_v18 = vand.u32 2147483647, %v8225_v44  ;;  %v8253_v54 = vld [vmem:[%s7947_s19 + $0x78] sm:$0xff]  ;;  %v8284_v19 = vld [vmem:[%s7947_s19 + $0x88] sm:$0xff] }
  0x52   : > { %v1357_v29 = vrot.slane %v1356_v21, 4  ;;  %v1361_v30 = vrot.slane %v1359_v22, 5  ;;  %v1228_v31 = vld [vmem:[#allocation2 + $0x24] sm:$0xf]  ;;  %v1365_v32 = vrot.slane %v1363_v23, 4  ;;  %v548_v35 = vmul.f32 %v7282_v26, %v8007_v38 }
  0x53   : > { %v1369_v34 = vshll.u32 %v1228_v31, 16  ;;  %v1373_v39 = vshrl.u32 %v1228_v31, 16  ;;  %v7290_v40 = vsel %vm8205_vm1, %v7289_v46, %v8175_v27  ;;  %v7295_v41 = vand.u32 2147483647, %v7294_v6  ;;  %v8301_v31 = vld [vmem:[%s7947_s19 + $0x90] sm:$0xff] }
  0x54   : > { %v1362_v10 = vsel %vm8095_vm11, %v1357_v29, %v1361_v30  ;;  %v1229_v12 = vld [vmem:[#allocation2 + $0x28] sm:$0xf]  ;;  %v1366_v33 = vor.u32 %v1365_v32, %v1361_v30  ;;  %v549_v45 = vmul.f32 %v7290_v40, %v8007_v38  ;;  %v625_v47 = vsub.f32 %v8145_v60, %v548_v35 }
  0x55   : > { %1857 = vrot.lane.b32.xlu1 %v1362_v10, %s7840_s22  ;;  %v1371_v48 = vrot.slane %v1369_v34, 5  ;;  %v1375_v25 = vrot.slane %v1373_v39, 4  ;;  %v1379_v43 = vshll.u32 %v1229_v12, 16  ;;  %v1383_v49 = vshrl.u32 %v1229_v12, 16 }
  0x56   : > { %v1367_v51 = vrot.slane %v1366_v33, 4  ;;  %v626_v27 = vsub.f32 %v8159_v2, %v549_v45  ;;  %v692_v36 = vsel %vm670_vm4, %v625_v47, 0.0  ;;  %v7032_v52 = vpack.c.bf16 %v548_v35, %v548_v35 }
  0x57   : > { %v1376_v37 = vor.u32 %v1375_v25, %v1371_v48  ;;  %v1381_v53 = vrot.slane %v1379_v43, 5  ;;  %v7033_v55 = vpack.c.bf16 %v549_v45, %v549_v45  ;;  %v693_v56 = vadd.f32 %v692_v36, %v691_v16 }
  0x58   : > { %v1372_v60 = vsel %vm8095_vm11, %v1367_v51, %v1371_v48  ;;  %v694_v58 = vsel %vm670_vm4, %v626_v27, 0.0  ;;  %1026 = vst.msk [vmem:[#allocation2 + $0x2c] sm:$0xf] %vm1014_vm2, %v7032_v52  ;;  %v1385_v59 = vrot.slane %v1383_v49, 4  ;;  %v7297_v61 = vor.u32 %v7296_v20, %v7295_v41 }
  0x59   : > { %v1377_v2 = vrot.slane %v1376_v37, 4  ;;  %1859 = vrot.lane.b32.xlu0 %v1372_v60, %s7840_s22  ;;  %1027 = vst.msk [vmem:[#allocation2 + $0x30] sm:$0xf] %vm1014_vm2, %v7033_v55  ;;  %v695_v63 = vadd.f32 %v694_v58, %v693_v56  ;;  %vm8264_vm5 = vcmp.lt.f32.partialorder %v7299_v18, 8388608.0  ;;  %v7301_v42 = vcvt.f32.s32 %v8225_v44 }
  0x5a   : > { %v1386_v5 = vor.u32 %v1385_v59, %v1381_v53  ;;  %v7298_v9 = vsel %vm8228_vm3, %v7297_v61, %v8219_v8  ;;  %v7304_v7 = vand.u32 2147483648, %v8225_v44  ;;  %v434_v14 = vmul.f32 %v7942_v0, %v8253_v54 }
  0x5b   : > { %v1382_v15 = vsel %vm8095_vm11, %v1377_v2, %v1381_v53  ;;  %v7302_v1 = vcvt.s32.f32 %v7301_v42  ;;  %v550_v16 = vmul.f32 %v7298_v9, %v8007_v38  ;;  %v8280_v17 = vmul.f32 %v7942_v0, %v8260_v62 }
  0x5c   : > { %1861 = vrot.lane.b32.xlu1 %v1382_v15, %s7840_s22  ;;  %v1387_v3 = vrot.slane %v1386_v5, 4  ;;  %v7307_v11 = vand.u32 2147483647, %v434_v14  ;;  %v7309_v8 = vcvt.f32.s32 %v434_v14  ;;  %v7312_v28 = vand.u32 2147483648, %v434_v14 }
  0x5d   : > { %v7303_v20 = vand.u32 2147483647, %v7302_v1  ;;  %v627_v21 = vsub.f32 %v8201_v50, %v550_v16  ;;  %v7034_v22 = vpack.c.bf16 %v550_v16, %v550_v16  ;;  %v7315_v23 = vand.u32 2147483647, %v8280_v17 }
  0x5e   : > { %vm8288_vm6 = vcmp.lt.f32.partialorder %v7307_v11, 8388608.0  ;;  %v7310_v26 = vcvt.s32.f32 %v7309_v8  ;;  %v7317_v46 = vcvt.f32.s32 %v8280_v17  ;;  %v7320_v6 = vand.u32 2147483648, %v8280_v17 }
  0x5f   : > { %v1230_v18 = vld [vmem:[#allocation2 + $0x2c] sm:$0xf]  ;;  %v7305_v29 = vor.u32 %v7304_v7, %v7303_v20  ;;  %v696_v30 = vsel %vm670_vm4, %v627_v21, 0.0  ;;  %1028 = vst.msk [vmem:[#allocation2 + $0x34] sm:$0xf] %vm1014_vm2, %v7034_v22  ;;  %vm8296_vm7 = vcmp.lt.f32.partialorder %v7315_v23, 8388608.0  ;;  %v8305_v32 = vmul.f32 %v7942_v0, %v8284_v19 }
  0x60   : > { %v1231_v35 = vld [vmem:[#allocation2 + $0x30] sm:$0xf]  ;;  %v1389_v34 = vshll.u32 %v1230_v18, 16  ;;  %v1393_v39 = vshrl.u32 %v1230_v18, 16  ;;  %v697_v40 = vadd.f32 %v696_v30, %v695_v63  ;;  %v7311_v41 = vand.u32 2147483647, %v7310_v26 }
  0x61   : > { %v1399_v10 = vshll.u32 %v1231_v35, 16  ;;  %v1403_v12 = vshrl.u32 %v1231_v35, 16  ;;  %v7306_v33 = vsel %vm8264_vm5, %v7305_v29, %v8225_v44  ;;  %v7318_v45 = vcvt.s32.f32 %v7317_v46  ;;  %v8343_v21 = vld [vmem:[%s7947_s19 + $0x98] sm:$0xff]  ;;  %v8355_v30 = vld [vmem:[%s7947_s19 + $0xa0] sm:$0xff] }
  0x62   : > { %v1391_v47 = vrot.slane %v1389_v34, 5  ;;  %v1395_v48 = vrot.slane %v1393_v39, 4  ;;  %v551_v25 = vmul.f32 %v7306_v33, %v8007_v38  ;;  %v7313_v43 = vor.u32 %v7312_v28, %v7311_v41 }
  0x63   : > { %v1401_v49 = vrot.slane %v1399_v10, 5  ;;  %v1405_v51 = vrot.slane %v1403_v12, 4  ;;  %v7319_v27 = vand.u32 2147483647, %v7318_v45  ;;  %v8313_v36 = vmul.f32 %v7942_v0, %v8301_v31 }
  0x64   : > { %v1396_v52 = vor.u32 %v1395_v48, %v1391_v47  ;;  %v1392_v37 = vsel %vm8095_vm11, %v1387_v3, %v1391_v47  ;;  %v628_v53 = vsub.f32 %v8212_v57, %v551_v25  ;;  %v7035_v44 = vpack.c.bf16 %v551_v25, %v551_v25 }
  0x65   : > { %1863 = vrot.lane.b32.xlu0 %v1392_v37, %s7840_s22  ;;  %v1406_v55 = vor.u32 %v1405_v51, %v1401_v49  ;;  %v7314_v56 = vsel %vm8288_vm6, %v7313_v43, %v434_v14  ;;  %v7321_v60 = vor.u32 %v7320_v6, %v7319_v27  ;;  %v7323_v58 = vand.u32 2147483647, %v8305_v32 }
  0x66   : > { %v1397_v59 = vrot.slane %v1396_v52, 4  ;;  %v698_v61 = vsel %vm670_vm4, %v628_v53, 0.0  ;;  %1029 = vst.msk [vmem:[#allocation2 + $0x38] sm:$0xf] %vm1014_vm2, %v7035_v44  ;;  %v1232_v2 = vld [vmem:[#allocation2 + $0x34] sm:$0xf]  ;;  %v552_v63 = vmul.f32 %v7314_v56, %v8007_v38  ;;  %v7325_v57 = vcvt.f32.s32 %v8305_v32 }
  0x67   : > { %v1409_v4 = vshll.u32 %v1232_v2, 16  ;;  %v1413_v42 = vshrl.u32 %v1232_v2, 16  ;;  %v699_v5 = vadd.f32 %v698_v61, %v697_v40  ;;  %v1407_v9 = vrot.slane %v1406_v55, 4 }
  0x68   : > { %v1402_v7 = vsel %vm8095_vm11, %v1397_v59, %v1401_v49  ;;  %v7322_v14 = vsel %vm8296_vm7, %v7321_v60, %v8280_v17  ;;  %v629_v15 = vsub.f32 %v8253_v54, %v552_v63  ;;  %v7036_v1 = vpack.c.bf16 %v552_v63, %v552_v63 }
  0x69   : > { %1865 = vrot.lane.b32.xlu1 %v1402_v7, %s7840_s22  ;;  %v1411_v16 = vrot.slane %v1409_v4, 5  ;;  %v1415_v3 = vrot.slane %v1413_v42, 4  ;;  %v553_v11 = vmul.f32 %v7322_v14, %v8007_v38  ;;  %vm8334_vm8 = vcmp.lt.f32.partialorder %v7323_v58, 8388608.0 }
  0x6a   : > { %v700_v28 = vsel %vm670_vm4, %v629_v15, 0.0  ;;  %1030 = vst.msk [vmem:[#allocation2 + $0x3c] sm:$0xf] %vm1014_vm2, %v7036_v1  ;;  %v7326_v20 = vcvt.s32.f32 %v7325_v57  ;;  %v7328_v17 = vand.u32 2147483648, %v8305_v32  ;;  %v7331_v54 = vand.u32 2147483647, %v8313_v36 }
  0x6b   : > { %v1416_v22 = vor.u32 %v1415_v3, %v1411_v16  ;;  %v1412_v23 = vsel %vm8095_vm11, %v1407_v9, %v1411_v16  ;;  %v630_v24 = vsub.f32 %v8260_v62, %v553_v11  ;;  %v7037_v26 = vpack.c.bf16 %v553_v11, %v553_v11 }
  0x6c   : > { %1867 = vrot.lane.b32.xlu0 %v1412_v23, %s7840_s22  ;;  %v701_v46 = vadd.f32 %v700_v28, %v699_v5  ;;  %v7327_v6 = vand.u32 2147483647, %v7326_v20  ;;  %vm8349_vm9 = vcmp.lt.f32.partialorder %v7331_v54, 8388608.0  ;;  %v7333_v29 = vcvt.f32.s32 %v8313_v36  ;;  %v8391_v23 = vld [vmem:[%s7947_s19 + $0xa8] sm:$0xff] }
  0x6d   : > { %v1233_v50 = vld [vmem:[#allocation2 + $0x38] sm:$0xf]  ;;  %v1417_v35 = vrot.slane %v1416_v22, 4  ;;  %v702_v34 = vsel %vm670_vm4, %v630_v24, 0.0  ;;  %1031 = vst.msk [vmem:[#allocation2 + $0x40] sm:$0xf] %vm1014_vm2, %v7037_v26  ;;  %v438_v39 = vmul.f32 %v7942_v0, %v8343_v21  ;;  %v8364_v45 = vmul.f32 %v7942_v0, %v8355_v30 }
  0x6e   : > { %v7336_v62 = vand.u32 2147483648, %v8313_v36  ;;  %v1419_v40 = vshll.u32 %v1233_v50, 16  ;;  %v1423_v41 = vshrl.u32 %v1233_v50, 16  ;;  %v703_v10 = vadd.f32 %v702_v34, %v701_v46  ;;  %v8394_v24 = vld [vmem:[%s7947_s19 + $0xb0] sm:$0xff] }
  0x6f   : > { %v7329_v12 = vor.u32 %v7328_v17, %v7327_v6  ;;  %v7334_v33 = vcvt.s32.f32 %v7333_v29  ;;  %v7339_v47 = vand.u32 2147483647, %v438_v39  ;;  %v7341_v48 = vcvt.f32.s32 %v438_v39  ;;  %v8404_v29 = vld [vmem:[%s7947_s19 + $0xb8] sm:$0xff] }
  0x70   : > { %v1421_v25 = vrot.slane %v1419_v40, 5  ;;  %v1425_v43 = vrot.slane %v1423_v41, 4  ;;  %v7344_v51 = vand.u32 2147483648, %v438_v39  ;;  %v7349_v5 = vcvt.f32.s32 %v8364_v45 }
  0x71   : > { %v7330_v49 = vsel %vm8334_vm8, %v7329_v12, %v8305_v32  ;;  %v1234_v27 = vld [vmem:[#allocation2 + $0x3c] sm:$0xf]  ;;  %v7335_v52 = vand.u32 2147483647, %v7334_v33  ;;  %vm8370_vm10 = vcmp.lt.f32.partialorder %v7339_v47, 8388608.0  ;;  %v7342_v44 = vcvt.s32.f32 %v7341_v48 }
  0x72   : > { %v554_v37 = vmul.f32 %v7330_v49, %v8007_v38  ;;  %v1422_v55 = vsel %vm8095_vm11, %v1417_v35, %v1421_v25  ;;  %v1429_v56 = vshll.u32 %v1234_v27, 16  ;;  %v1433_v60 = vshrl.u32 %v1234_v27, 16 }
  0x73   : > { %v1426_v58 = vor.u32 %v1425_v43, %v1421_v25  ;;  %1869 = vrot.lane.b32.xlu1 %v1422_v55, %s7840_s22  ;;  %v7337_v59 = vor.u32 %v7336_v62, %v7335_v52  ;;  %v7343_v2 = vand.u32 2147483647, %v7342_v44  ;;  %v7350_v22 = vcvt.s32.f32 %v7349_v5 }
  0x74   : > { %v631_v32 = vsub.f32 %v8284_v19, %v554_v37  ;;  %v7038_v61 = vpack.c.bf16 %v554_v37, %v554_v37  ;;  %v1235_v63 = vld [vmem:[#allocation2 + $0x40] sm:$0xf]  ;;  %v1431_v57 = vrot.slane %v1429_v56, 5  ;;  %v1435_v4 = vrot.slane %v1433_v60, 4 }
  0x75   : > { %v1427_v42 = vrot.slane %v1426_v58, 4  ;;  %v1439_v9 = vshll.u32 %v1235_v63, 16  ;;  %v1443_v7 = vshrl.u32 %v1235_v63, 16  ;;  %v7338_v14 = vsel %vm8349_vm9, %v7337_v59, %v8313_v36  ;;  %v8445_v59 = vld [vmem:[%s7947_s19 + $0xc0] sm:$0xff] }
  0x76   : > { %v704_v15 = vsel %vm670_vm4, %v631_v32, 0.0  ;;  %1032 = vst.msk [vmem:[#allocation2 + $0x44] sm:$0xf] %vm1014_vm2, %v7038_v61  ;;  %v1436_v19 = vor.u32 %v1435_v4, %v1431_v57  ;;  %v555_v16 = vmul.f32 %v7338_v14, %v8007_v38  ;;  %v7345_v28 = vor.u32 %v7344_v51, %v7343_v2 }
  0x77   : > { %v1432_v1 = vsel %vm8095_vm11, %v1427_v42, %v1431_v57  ;;  %v705_v3 = vadd.f32 %v704_v15, %v703_v10  ;;  %v1441_v11 = vrot.slane %v1439_v9, 5  ;;  %v1445_v8 = vrot.slane %v1443_v7, 4 }
  0x78   : > { %1871 = vrot.lane.b32.xlu0 %v1432_v1, %s7840_s22  ;;  %v7347_v36 = vand.u32 2147483647, %v8364_v45  ;;  %v1437_v20 = vrot.slane %v1436_v19, 4  ;;  %v632_v17 = vsub.f32 %v8301_v31, %v555_v16  ;;  %v7039_v54 = vpack.c.bf16 %v555_v16, %v555_v16  ;;  %v8457_v19 = vld [vmem:[%s11489_s1] ss:$0 sm:$0xff] }
  0x79   : > { %v1446_v26 = vor.u32 %v1445_v8, %v1441_v11  ;;  %v7346_v46 = vsel %vm8370_vm10, %v7345_v28, %v438_v39  ;;  %v7352_v18 = vand.u32 2147483648, %v8364_v45  ;;  %v7351_v35 = vand.u32 2147483647, %v7350_v22 }
  0x7a   : > { %vm8398_vm12 = vcmp.lt.f32.partialorder %v7347_v36, 8388608.0  ;;  %v1442_v31 = vsel %vm8095_vm11, %v1437_v20, %v1441_v11  ;;  %v706_v50 = vsel %vm670_vm4, %v632_v17, 0.0  ;;  %1033 = vst.msk [vmem:[#allocation2 + $0x48] sm:$0xf] %vm1014_vm2, %v7039_v54  ;;  %v556_v34 = vmul.f32 %v7346_v46, %v8007_v38 }
  0x7b   : > { %1873 = vrot.lane.b32.xlu1 %v1442_v31, %s7840_s22  ;;  %v707_v62 = vadd.f32 %v706_v50, %v705_v3  ;;  %v1447_v39 = vrot.slane %v1446_v26, 4  ;;  %v8414_v40 = vmul.f32 %v7942_v0, %v8391_v23  ;;  %v8418_v41 = vmul.f32 %v7942_v0, %v8394_v24 }
  0x7c   : > { %v7353_v12 = vor.u32 %v7352_v18, %v7351_v35  ;;  %v633_v33 = vsub.f32 %v8343_v21, %v556_v34  ;;  %v7040_v47 = vpack.c.bf16 %v556_v34, %v556_v34  ;;  %v8423_v48 = vmul.f32 %v7942_v0, %v8404_v29 }
  0x7d   : > { %v1236_v10 = vld [vmem:[#allocation2 + $0x44] sm:$0xf]  ;;  %v7355_v49 = vand.u32 2147483647, %v8414_v40  ;;  %v7357_v51 = vcvt.f32.s32 %v8414_v40  ;;  %v7360_v21 = vand.u32 2147483648, %v8414_v40  ;;  %v7365_v58 = vcvt.f32.s32 %v8418_v41 }
  0x7e   : > { %v1449_v25 = vshll.u32 %v1236_v10, 16  ;;  %v1453_v43 = vshrl.u32 %v1236_v10, 16  ;;  %v7354_v27 = vsel %vm8398_vm12, %v7353_v12, %v8364_v45  ;;  %v708_v52 = vsel %vm670_vm4, %v633_v33, 0.0  ;;  %1034 = vst.msk [vmem:[#allocation2 + $0x4c] sm:$0xf] %vm1014_vm2, %v7040_v47  ;;  %v8499_v45 = vld [vmem:[%s7947_s19 + $0xc8] sm:$0xff] }
  0x7f   : > { %v7363_v0 = vand.u32 2147483647, %v8418_v41  ;;  %v557_v44 = vmul.f32 %v7354_v27, %v8007_v38  ;;  %v709_v55 = vadd.f32 %v708_v52, %v707_v62  ;;  %vm8435_vm13 = vcmp.lt.f32.partialorder %v7355_v49, 8388608.0  ;;  %v8487_v49 = vld [vmem:[%s11488_s0] ss:$0 sm:$0xff] }
  0x80   : > { %v1451_v37 = vrot.slane %v1449_v25, 5  ;;  %v1455_v53 = vrot.slane %v1453_v43, 4  ;;  %v7358_v60 = vcvt.s32.f32 %v7357_v51  ;;  %v7366_v9 = vcvt.s32.f32 %v7365_v58  ;;  %v8502_v58 = vld [vmem:[%s7947_s19 + $0xd0] sm:$0xff] }
  0x81   : > { %vm8439_vm14 = vcmp.lt.f32.partialorder %v7363_v0, 8388608.0  ;;  %v1237_v32 = vld [vmem:[#allocation2 + $0x48] sm:$0xf]  ;;  %v634_v63 = vsub.f32 %v8355_v30, %v557_v44  ;;  %v7041_v57 = vpack.c.bf16 %v557_v44, %v557_v44  ;;  %v7368_v15 = vand.u32 2147483648, %v8418_v41 }
  0x82   : > { %v1456_v61 = vor.u32 %v1455_v53, %v1451_v37  ;;  %v1452_v2 = vsel %vm8095_vm11, %v1447_v39, %v1451_v37  ;;  %v1459_v4 = vshll.u32 %v1237_v32, 16  ;;  %v1463_v42 = vshrl.u32 %v1237_v32, 16  ;;  %v8505_v32 = vld [vmem:[%s7947_s19 + $0xd8] sm:$0xff] }
  0x83   : > { %1875 = vrot.lane.b32.xlu0 %v1452_v2, %s7840_s22  ;;  %v7359_v5 = vand.u32 2147483647, %v7358_v60  ;;  %v710_v14 = vsel %vm670_vm4, %v634_v63, 0.0  ;;  %1035 = vst.msk [vmem:[#allocation2 + $0x50] sm:$0xf] %vm1014_vm2, %v7041_v57  ;;  %v8461_v30 = vmul.f32 %v8457_v19, %v8445_v59  ;;  %v7373_v20 = vcvt.f32.s32 %v8423_v48  ;;  %v8515_v57 = vld [vmem:[%s7947_s19 + $0xe0] sm:$0xff] }
  0x84   : > { %v1457_v7 = vrot.slane %v1456_v61, 4  ;;  %v1461_v1 = vrot.slane %v1459_v4, 5  ;;  %v711_v16 = vadd.f32 %v710_v14, %v709_v55  ;;  %v1465_v3 = vrot.slane %v1463_v42, 4 }
  0x85   : > { %v7361_v11 = vor.u32 %v7360_v21, %v7359_v5  ;;  %v1238_v8 = vld [vmem:[#allocation2 + $0x4c] sm:$0xf]  ;;  %v7367_v28 = vand.u32 2147483647, %v7366_v9  ;;  %v7371_v36 = vand.u32 2147483647, %v8423_v48  ;;  %v7381_v17 = vcvt.f32.s32 %v8461_v30 }
  0x86   : > { %v1462_v54 = vsel %vm8095_vm11, %v1457_v7, %v1461_v1  ;;  %v1469_v22 = vshll.u32 %v1238_v8, 16  ;;  %v1473_v26 = vshrl.u32 %v1238_v8, 16  ;;  %v1466_v46 = vor.u32 %v1465_v3, %v1461_v1 }
  0x87   : > { %1877 = vrot.lane.b32.xlu1 %v1462_v54, %s7840_s22  ;;  %v7362_v6 = vsel %vm8435_vm13, %v7361_v11, %v8414_v40  ;;  %v7369_v18 = vor.u32 %v7368_v15, %v7367_v28  ;;  %vm8472_vm15 = vcmp.lt.f32.partialorder %v7371_v36, 8388608.0  ;;  %v7374_v50 = vcvt.s32.f32 %v7373_v20 }
  0x88   : > { %v1471_v35 = vrot.slane %v1469_v22, 5  ;;  %v1475_v34 = vrot.slane %v1473_v26, 4  ;;  %v1467_v62 = vrot.slane %v1466_v46, 4  ;;  %v558_v39 = vmul.f32 %v7362_v6, %v8007_v38 }
  0x89   : > { %v7370_v10 = vsel %vm8439_vm14, %v7369_v18, %v8418_v41  ;;  %v7375_v12 = vand.u32 2147483647, %v7374_v50  ;;  %v7376_v33 = vand.u32 2147483648, %v8423_v48  ;;  %v7379_v40 = vand.u32 2147483647, %v8461_v30 }
  0x8a   : > { %v1239_v47 = vld [vmem:[#allocation2 + $0x50] sm:$0xf]  ;;  %v1476_v25 = vor.u32 %v1475_v34, %v1471_v35  ;;  %v1472_v43 = vsel %vm8095_vm11, %v1467_v62, %v1471_v35  ;;  %v559_v38 = vmul.f32 %v8487_v49, %v7370_v10  ;;  %v635_v41 = vsub.f32 %v8391_v23, %v558_v39 }
  0x8b   : > { %v1479_v51 = vshll.u32 %v1239_v47, 16  ;;  %v1483_v27 = vshrl.u32 %v1239_v47, 16  ;;  %1879 = vrot.lane.b32.xlu0 %v1472_v43, %s7840_s22  ;;  %v7042_v52 = vpack.c.bf16 %v558_v39, %v558_v39  ;;  %v7377_v21 = vor.u32 %v7376_v33, %v7375_v12 }
  0x8c   : > { %v1477_v0 = vrot.slane %v1476_v25, 4  ;;  %v636_v37 = vsub.f32 %v8394_v24, %v559_v38  ;;  %v712_v53 = vsel %vm670_vm4, %v635_v41, 0.0  ;;  %v7043_v44 = vpack.c.bf16 %v559_v38, %v559_v38 }
  0x8d   : > { %v1481_v55 = vrot.slane %v1479_v51, 5  ;;  %1036 = vst.msk [vmem:[#allocation2 + $0x54] sm:$0xf] %vm1014_vm2, %v7042_v52  ;;  %v713_v56 = vadd.f32 %v712_v53, %v711_v16  ;;  %v1485_v23 = vrot.slane %v1483_v27, 4  ;;  %v7378_v60 = vsel %vm8472_vm15, %v7377_v21, %v8423_v48 }
  0x8e   : > { %v714_v24 = vsel %vm670_vm4, %v636_v37, 0.0  ;;  %1037 = vst.msk [vmem:[#allocation2 + $0x58] sm:$0xf] %vm1014_vm2, %v7043_v44  ;;  %vm8509_vm0 = vcmp.lt.f32.partialorder %v7379_v40, 8388608.0  ;;  %v7382_v2 = vcvt.s32.f32 %v7381_v17  ;;  %v7384_v63 = vand.u32 2147483648, %v8461_v30 }
  0x8f   : > { %v1482_v48 = vsel %vm8095_vm11, %v1477_v0, %v1481_v55  ;;  %v715_v4 = vadd.f32 %v714_v24, %v713_v56  ;;  %v1486_v42 = vor.u32 %v1485_v23, %v1481_v55  ;;  %v560_v5 = vmul.f32 %v8487_v49, %v7378_v60 }
  0x90   : > { %1881 = vrot.lane.b32.xlu1 %v1482_v48, %s7840_s22  ;;  %v7383_v9 = vand.u32 2147483647, %v7382_v2  ;;  %v444_v7 = vmul.f32 %v8457_v19, %v8499_v45  ;;  %v445_v14 = vmul.f32 %v8457_v19, %v8502_v58  ;;  %v8527_v15 = vmul.f32 %v8457_v19, %v8505_v32 }
  0x91   : > { %v1487_v1 = vrot.slane %v1486_v42, 4  ;;  %v637_v16 = vsub.f32 %v8404_v29, %v560_v5  ;;  %v7044_v3 = vpack.c.bf16 %v560_v5, %v560_v5  ;;  %v8532_v11 = vmul.f32 %v8457_v19, %v8515_v57 }
  0x92   : > { %v7385_v8 = vor.u32 %v7384_v63, %v7383_v9  ;;  %v7387_v28 = vand.u32 2147483647, %v444_v7  ;;  %v7389_v36 = vcvt.f32.s32 %v444_v7  ;;  %v7392_v20 = vand.u32 2147483648, %v444_v7 }
  0x93   : > { %v716_v17 = vsel %vm670_vm4, %v637_v16, 0.0  ;;  %1038 = vst.msk [vmem:[#allocation2 + $0x5c] sm:$0xf] %vm1014_vm2, %v7044_v3  ;;  %v7395_v54 = vand.u32 2147483647, %v445_v14  ;;  %v7397_v22 = vcvt.f32.s32 %v445_v14  ;;  %v7400_v26 = vand.u32 2147483648, %v445_v14 }
  0x94   : > { %v1240_v46 = vld [vmem:[#allocation2 + $0x54] sm:$0xf]  ;;  %v7386_v29 = vsel %vm8509_vm0, %v7385_v8, %v8461_v30  ;;  %v717_v6 = vadd.f32 %v716_v17, %v715_v4  ;;  %vm8539_vm1 = vcmp.lt.f32.partialorder %v7387_v28, 8388608.0  ;;  %v7390_v31 = vcvt.s32.f32 %v7389_v36  ;;  %v8575_v17 = vld [vmem:[%s7947_s19 + $0xe8] sm:$0xff] }
  0x95   : > { %v1241_v50 = vld [vmem:[#allocation2 + $0x58] sm:$0xf]  ;;  %v1489_v35 = vshll.u32 %v1240_v46, 16  ;;  %v1493_v34 = vshrl.u32 %v1240_v46, 16  ;;  %v561_v62 = vmul.f32 %v8487_v49, %v7386_v29  ;;  %vm8544_vm3 = vcmp.lt.f32.partialorder %v7395_v54, 8388608.0  ;;  %v8578_v54 = vld [vmem:[%s7947_s19 + $0xf0] sm:$0xff] }
  0x96   : > { %v1499_v10 = vshll.u32 %v1241_v50, 16  ;;  %v1503_v12 = vshrl.u32 %v1241_v50, 16  ;;  %v7391_v33 = vand.u32 2147483647, %v7390_v31  ;;  %v7398_v40 = vcvt.s32.f32 %v7397_v22 }
  0x97   : > { %v1491_v30 = vrot.slane %v1489_v35, 5  ;;  %v1495_v47 = vrot.slane %v1493_v34, 4  ;;  %v638_v25 = vsub.f32 %v8445_v59, %v561_v62  ;;  %v7045_v43 = vpack.c.bf16 %v561_v62, %v561_v62 }
  0x98   : > { %v1501_v38 = vrot.slane %v1499_v10, 5  ;;  %v1505_v41 = vrot.slane %v1503_v12, 4  ;;  %v7393_v51 = vor.u32 %v7392_v20, %v7391_v33  ;;  %v7399_v27 = vand.u32 2147483647, %v7398_v40 }
  0x99   : > { %v1496_v52 = vor.u32 %v1495_v47, %v1491_v30  ;;  %v1492_v21 = vsel %vm8095_vm11, %v1487_v1, %v1491_v30  ;;  %v718_v0 = vsel %vm670_vm4, %v638_v25, 0.0  ;;  %1039 = vst.msk [vmem:[#allocation2 + $0x60] sm:$0xf] %vm1014_vm2, %v7045_v43  ;;  %v7403_v37 = vand.u32 2147483647, %v8527_v15 }
  0x9a   : > { %1883 = vrot.lane.b32.xlu0 %v1492_v21, %s7840_s22  ;;  %v1242_v53 = vld [vmem:[#allocation2 + $0x5c] sm:$0xf]  ;;  %v719_v44 = vadd.f32 %v718_v0, %v717_v6  ;;  %v1506_v59 = vor.u32 %v1505_v41, %v1501_v38  ;;  %v7394_v55 = vsel %vm8539_vm1, %v7393_v51, %v444_v7  ;;  %v7401_v56 = vor.u32 %v7400_v26, %v7399_v27 }
  0x9b   : > { %v1497_v23 = vrot.slane %v1496_v52, 4  ;;  %v1509_v60 = vshll.u32 %v1242_v53, 16  ;;  %v1513_v24 = vshrl.u32 %v1242_v53, 16  ;;  %v562_v61 = vmul.f32 %v8487_v49, %v7394_v55 }
  0x9c   : > { %v1507_v2 = vrot.slane %v1506_v59, 4  ;;  %v7402_v63 = vsel %vm8544_vm3, %v7401_v56, %v445_v14  ;;  %vm8560_vm5 = vcmp.lt.f32.partialorder %v7403_v37, 8388608.0  ;;  %v7405_v4 = vcvt.f32.s32 %v8527_v15 }
  0x9d   : > { %v1502_v42 = vsel %vm8095_vm11, %v1497_v23, %v1501_v38  ;;  %v1511_v5 = vrot.slane %v1509_v60, 5  ;;  %v1515_v9 = vrot.slane %v1513_v24, 4  ;;  %v563_v7 = vmul.f32 %v8487_v49, %v7402_v63 }
  0x9e   : > { %1885 = vrot.lane.b32.xlu1 %v1502_v42, %s7840_s22  ;;  %v639_v1 = vsub.f32 %v8499_v45, %v562_v61  ;;  %v7046_v14 = vpack.c.bf16 %v562_v61, %v562_v61  ;;  %v7406_v16 = vcvt.s32.f32 %v7405_v4  ;;  %v7408_v3 = vand.u32 2147483648, %v8527_v15 }
  0x9f   : > { %v1516_v8 = vor.u32 %v1515_v9, %v1511_v5  ;;  %v1512_v28 = vsel %vm8095_vm11, %v1507_v2, %v1511_v5  ;;  %v640_v36 = vsub.f32 %v8502_v58, %v563_v7  ;;  %v7047_v20 = vpack.c.bf16 %v563_v7, %v563_v7 }
  0xa0   : > { %v1243_v22 = vld [vmem:[#allocation2 + $0x60] sm:$0xf]  ;;  %1887 = vrot.lane.b32.xlu0 %v1512_v28, %s7840_s22  ;;  %v720_v45 = vsel %vm670_vm4, %v639_v1, 0.0  ;;  %1040 = vst.msk [vmem:[#allocation2 + $0x64] sm:$0xf] %vm1014_vm2, %v7046_v14  ;;  %v7413_v46 = vcvt.f32.s32 %v8532_v11  ;;  %v7416_v29 = vand.u32 2147483648, %v8532_v11  ;;  %v448_v12 = vmul.f32 %v8457_v19, %v8575_v17 }
  0xa1   : > { %v7407_v26 = vand.u32 2147483647, %v7406_v16  ;;  %v1517_v6 = vrot.slane %v1516_v8, 4  ;;  %v1519_v18 = vshll.u32 %v1243_v22, 16  ;;  %v1523_v58 = vshrl.u32 %v1243_v22, 16 }
  0xa2   : > { %v722_v31 = vsel %vm670_vm4, %v640_v36, 0.0  ;;  %1041 = vst.msk [vmem:[#allocation2 + $0x68] sm:$0xf] %vm1014_vm2, %v7047_v20  ;;  %v721_v50 = vadd.f32 %v720_v45, %v719_v44  ;;  %v7411_v34 = vand.u32 2147483647, %v8532_v11  ;;  %v7414_v62 = vcvt.s32.f32 %v7413_v46  ;;  %v8628_v36 = vld [vmem:[%s7947_s19 + $0x100] sm:$0xff] }
  0xa3   : > { %v7409_v35 = vor.u32 %v7408_v3, %v7407_v26  ;;  %v1521_v39 = vrot.slane %v1519_v18, 5  ;;  %v1525_v10 = vrot.slane %v1523_v58, 4  ;;  %v8592_v33 = vmul.f32 %v8457_v19, %v8578_v54 }
  0xa4   : > { %v723_v40 = vadd.f32 %v722_v31, %v721_v50  ;;  %vm8597_vm6 = vcmp.lt.f32.partialorder %v7411_v34, 8388608.0  ;;  %v7415_v25 = vand.u32 2147483647, %v7414_v62  ;;  %v7419_v51 = vand.u32 2147483647, %v448_v12 }
  0xa5   : > { %v7410_v30 = vsel %vm8560_vm5, %v7409_v35, %v8527_v15  ;;  %v1522_v43 = vsel %vm8095_vm11, %v1517_v6, %v1521_v39  ;;  %v1526_v38 = vor.u32 %v1525_v10, %v1521_v39  ;;  %v7421_v52 = vcvt.f32.s32 %v448_v12 }
  0xa6   : > { %v564_v41 = vmul.f32 %v8487_v49, %v7410_v30  ;;  %1889 = vrot.lane.b32.xlu1 %v1522_v43, %s7840_s22  ;;  %v7417_v27 = vor.u32 %v7416_v29, %v7415_v25  ;;  %v7424_v21 = vand.u32 2147483648, %v448_v12  ;;  %v7427_v0 = vand.u32 2147483647, %v8592_v33 }
  0xa7   : > { %v1244_v15 = vld [vmem:[#allocation2 + $0x64] sm:$0xf]  ;;  %v1527_v37 = vrot.slane %v1526_v38, 4  ;;  %vm8607_vm7 = vcmp.lt.f32.partialorder %v7419_v51, 8388608.0  ;;  %v7422_v24 = vcvt.s32.f32 %v7421_v52  ;;  %v7429_v22 = vcvt.f32.s32 %v8592_v33 }
  0xa8   : > { %v641_v53 = vsub.f32 %v8505_v32, %v564_v41  ;;  %v7048_v44 = vpack.c.bf16 %v564_v41, %v564_v41  ;;  %v1529_v56 = vshll.u32 %v1244_v15, 16  ;;  %v1533_v23 = vshrl.u32 %v1244_v15, 16 }
  0xa9   : > { %v1245_v55 = vld [vmem:[#allocation2 + $0x68] sm:$0xf]  ;;  %v7418_v60 = vsel %vm8597_vm6, %v7417_v27, %v8532_v11  ;;  %v7423_v5 = vand.u32 2147483647, %v7422_v24  ;;  %v8619_v11 = vld [vmem:[%s7947_s19 + $0xf8] sm:$0xff]  ;;  %vm8623_vm8 = vcmp.lt.f32.partialorder %v7427_v0, 8388608.0  ;;  %v7430_v58 = vcvt.s32.f32 %v7429_v22 }
  0xaa   : > { %v1539_v61 = vshll.u32 %v1245_v55, 16  ;;  %v1543_v2 = vshrl.u32 %v1245_v55, 16  ;;  %v565_v63 = vmul.f32 %v8487_v49, %v7418_v60  ;;  %v724_v32 = vsel %vm670_vm4, %v641_v53, 0.0  ;;  %1042 = vst.msk [vmem:[#allocation2 + $0x6c] sm:$0xf] %vm1014_vm2, %v7048_v44  ;;  %v8666_v60 = vld [vmem:[%s7947_s19 + $0x110] sm:$0xff] }
  0xab   : > { %v1531_v48 = vrot.slane %v1529_v56, 5  ;;  %v1535_v4 = vrot.slane %v1533_v23, 4  ;;  %v725_v42 = vadd.f32 %v724_v32, %v723_v40  ;;  %v7425_v8 = vor.u32 %v7424_v21, %v7423_v5  ;;  %v8663_v23 = vld [vmem:[%s7947_s19 + $0x108] sm:$0xff] }
  0xac   : > { %v1541_v9 = vrot.slane %v1539_v61, 5  ;;  %v642_v7 = vsub.f32 %v8515_v57, %v565_v63  ;;  %v7049_v1 = vpack.c.bf16 %v565_v63, %v565_v63  ;;  %v1545_v14 = vrot.slane %v1543_v2, 4 }
  0xad   : > { %v1536_v16 = vor.u32 %v1535_v4, %v1531_v48  ;;  %v1532_v3 = vsel %vm8095_vm11, %v1527_v37, %v1531_v48  ;;  %v7432_v45 = vand.u32 2147483648, %v8592_v33  ;;  %v7426_v29 = vsel %vm8607_vm7, %v7425_v8, %v448_v12 }
  0xae   : > { %1891 = vrot.lane.b32.xlu0 %v1532_v3, %s7840_s22  ;;  %v726_v20 = vsel %vm670_vm4, %v642_v7, 0.0  ;;  %1043 = vst.msk [vmem:[#allocation2 + $0x70] sm:$0xf] %vm1014_vm2, %v7049_v1  ;;  %v1546_v57 = vor.u32 %v1545_v14, %v1541_v9  ;;  %v450_v6 = vmul.f32 %v8457_v19, %v8619_v11  ;;  %v566_v31 = vmul.f32 %v8487_v49, %v7426_v29 }
  0xaf   : > { %v1537_v26 = vrot.slane %v1536_v16, 4  ;;  %v727_v46 = vadd.f32 %v726_v20, %v725_v42  ;;  %v8642_v50 = vmul.f32 %v8457_v19, %v8628_v36  ;;  %v7431_v30 = vand.u32 2147483647, %v7430_v58 }
  0xb0   : > { %v1547_v18 = vrot.slane %v1546_v57, 4  ;;  %v7435_v62 = vand.u32 2147483647, %v450_v6  ;;  %v7437_v39 = vcvt.f32.s32 %v450_v6  ;;  %v7440_v10 = vand.u32 2147483648, %v450_v6 }
  0xb1   : > { %v1542_v35 = vsel %vm8095_vm11, %v1537_v26, %v1541_v9  ;;  %v1246_v34 = vld [vmem:[#allocation2 + $0x6c] sm:$0xf]  ;;  %v643_v47 = vsub.f32 %v8575_v17, %v566_v31  ;;  %v7050_v25 = vpack.c.bf16 %v566_v31, %v566_v31  ;;  %v7443_v41 = vand.u32 2147483647, %v8642_v50 }
  0xb2   : > { %1893 = vrot.lane.b32.xlu1 %v1542_v35, %s7840_s22  ;;  %v1549_v12 = vshll.u32 %v1246_v34, 16  ;;  %v1553_v40 = vshrl.u32 %v1246_v34, 16  ;;  %vm8648_vm9 = vcmp.lt.f32.partialorder %v7435_v62, 8388608.0  ;;  %v7438_v38 = vcvt.s32.f32 %v7437_v39 }
  0xb3   : > { %v7433_v52 = vor.u32 %v7432_v45, %v7431_v30  ;;  %v728_v21 = vsel %vm670_vm4, %v643_v47, 0.0  ;;  %1044 = vst.msk [vmem:[#allocation2 + $0x74] sm:$0xf] %vm1014_vm2, %v7050_v25  ;;  %vm8655_vm10 = vcmp.lt.f32.partialorder %v7443_v41, 8388608.0  ;;  %v7445_v53 = vcvt.f32.s32 %v8642_v50 }
  0xb4   : > { %v1551_v51 = vrot.slane %v1549_v12, 5  ;;  %v1555_v27 = vrot.slane %v1553_v40, 4  ;;  %v729_v15 = vadd.f32 %v728_v21, %v727_v46  ;;  %v7439_v17 = vand.u32 2147483647, %v7438_v38 }
  0xb5   : > { %v1247_v0 = vld [vmem:[#allocation2 + $0x70] sm:$0xf]  ;;  %v7434_v24 = vsel %vm8623_vm8, %v7433_v52, %v8592_v33  ;;  %v7446_v2 = vcvt.s32.f32 %v7445_v53  ;;  %v7448_v63 = vand.u32 2147483648, %v8642_v50  ;;  %v8678_v7 = vmul.f32 %v8457_v19, %v8663_v23 }
  0xb6   : > { %v1556_v44 = vor.u32 %v1555_v27, %v1551_v51  ;;  %v1559_v59 = vshll.u32 %v1247_v0, 16  ;;  %v1563_v55 = vshrl.u32 %v1247_v0, 16  ;;  %v1552_v56 = vsel %vm8095_vm11, %v1547_v18, %v1551_v51  ;;  %v8714_v27 = vld [vmem:[%s7947_s19 + $0x120] sm:$0xff] }
  0xb7   : > { %1895 = vrot.lane.b32.xlu0 %v1552_v56, %s7840_s22  ;;  %v7441_v61 = vor.u32 %v7440_v10, %v7439_v17  ;;  %v567_v4 = vmul.f32 %v8487_v49, %v7434_v24  ;;  %v7447_v9 = vand.u32 2147483647, %v7446_v2  ;;  %v8682_v33 = vmul.f32 %v8457_v19, %v8666_v60 }
  0xb8   : > { %v1557_v32 = vrot.slane %v1556_v44, 4  ;;  %v1561_v48 = vrot.slane %v1559_v59, 5  ;;  %v1565_v42 = vrot.slane %v1563_v55, 4  ;;  %v7451_v20 = vand.u32 2147483647, %v8678_v7 }
  0xb9   : > { %v7442_v5 = vsel %vm8648_vm9, %v7441_v61, %v450_v6  ;;  %v644_v14 = vsub.f32 %v8578_v54, %v567_v4  ;;  %v7051_v16 = vpack.c.bf16 %v567_v4, %v567_v4  ;;  %v7449_v8 = vor.u32 %v7448_v63, %v7447_v9 }
  0xba   : > { %v1562_v1 = vsel %vm8095_vm11, %v1557_v32, %v1561_v48  ;;  %v1566_v3 = vor.u32 %v1565_v42, %v1561_v48  ;;  %v568_v28 = vmul.f32 %v8487_v49, %v7442_v5  ;;  %v7453_v57 = vcvt.f32.s32 %v8678_v7  ;;  %v1248_v45 = vld [vmem:[#allocation2 + $0x74] sm:$0xf] }
  0xbb   : > { %1897 = vrot.lane.b32.xlu1 %v1562_v1, %s7840_s22  ;;  %v730_v22 = vsel %vm670_vm4, %v644_v14, 0.0  ;;  %1045 = vst.msk [vmem:[#allocation2 + $0x78] sm:$0xf] %vm1014_vm2, %v7051_v16  ;;  %v7456_v46 = vand.u32 2147483648, %v8678_v7  ;;  %v7461_v54 = vcvt.f32.s32 %v8682_v33  ;;  %v1569_v29 = vshll.u32 %v1248_v45, 16 }
  0xbc   : > { %v1567_v26 = vrot.slane %v1566_v3, 4  ;;  %v1573_v6 = vshrl.u32 %v1248_v45, 16  ;;  %v731_v18 = vadd.f32 %v730_v22, %v729_v15  ;;  %v7450_v58 = vsel %vm8655_vm10, %v7449_v8, %v8642_v50 }
  0xbd   : > { %v569_v31 = vmul.f32 %v8487_v49, %v7450_v58  ;;  %v645_v35 = vsub.f32 %v8619_v11, %v568_v28  ;;  %v7052_v34 = vpack.c.bf16 %v568_v28, %v568_v28  ;;  %vm8700_vm12 = vcmp.lt.f32.partialorder %v7451_v20, 8388608.0  ;;  %v8709_v11 = vld [vmem:[%s7947_s19 + $0x118] sm:$0xff] }
  0xbe   : > { %v1571_v39 = vrot.slane %v1569_v29, 5  ;;  %v1575_v10 = vrot.slane %v1573_v6, 4  ;;  %v7454_v12 = vcvt.s32.f32 %v7453_v57  ;;  %v7459_v40 = vand.u32 2147483647, %v8682_v33 }
  0xbf   : > { %v646_v30 = vsub.f32 %v8628_v36, %v569_v31  ;;  %v732_v47 = vsel %vm670_vm4, %v645_v35, 0.0  ;;  %v7053_v50 = vpack.c.bf16 %v569_v31, %v569_v31  ;;  %1046 = vst.msk [vmem:[#allocation2 + $0x7c] sm:$0xf] %vm1014_vm2, %v7052_v34  ;;  %v7462_v25 = vcvt.s32.f32 %v7461_v54 }
  0xc0   : > { %v1576_v43 = vor.u32 %v1575_v10, %v1571_v39  ;;  %v1572_v38 = vsel %vm8095_vm11, %v1567_v26, %v1571_v39  ;;  %v733_v41 = vadd.f32 %v732_v47, %v731_v18  ;;  %v7455_v51 = vand.u32 2147483647, %v7454_v12  ;;  %v8753_v39 = vld [vmem:[%s7947_s19 + $0x128] sm:$0xff]  ;;  %v8756_v10 = vld [vmem:[%s7947_s19 + $0x130] sm:$0xff] }
  0xc1   : > { %1899 = vrot.lane.b32.xlu0 %v1572_v38, %s7840_s22  ;;  %v734_v36 = vsel %vm670_vm4, %v646_v30, 0.0  ;;  %1047 = vst.msk [vmem:[#allocation2 + $0x80] sm:$0xf] %vm1014_vm2, %v7053_v50  ;;  %vm8719_vm13 = vcmp.lt.f32.partialorder %v7459_v40, 8388608.0  ;;  %v7463_v21 = vand.u32 2147483647, %v7462_v25  ;;  %v454_v44 = vmul.f32 %v8457_v19, %v8709_v11 }
  0xc2   : > { %v7464_v0 = vand.u32 2147483648, %v8682_v33  ;;  %v1249_v15 = vld [vmem:[#allocation2 + $0x78] sm:$0xf]  ;;  %v1577_v17 = vrot.slane %v1576_v43, 4  ;;  %v735_v37 = vadd.f32 %v734_v36, %v733_v41  ;;  %v7457_v53 = vor.u32 %v7456_v46, %v7455_v51 }
  0xc3   : > { %v1579_v59 = vshll.u32 %v1249_v15, 16  ;;  %v1583_v55 = vshrl.u32 %v1249_v15, 16  ;;  %v8728_v24 = vmul.f32 %v8457_v19, %v8714_v27  ;;  %v7467_v2 = vand.u32 2147483647, %v454_v44  ;;  %v8766_v50 = vld [vmem:[%s7947_s19 + $0x138] sm:$0xff] }
  0xc4   : > { %v7465_v56 = vor.u32 %v7464_v0, %v7463_v21  ;;  %v7458_v61 = vsel %vm8700_vm12, %v7457_v53, %v8678_v7  ;;  %v7469_v63 = vcvt.f32.s32 %v454_v44  ;;  %v7472_v32 = vand.u32 2147483648, %v454_v44 }
  0xc5   : > { %v1581_v48 = vrot.slane %v1579_v59, 5  ;;  %v1585_v4 = vrot.slane %v1583_v55, 4  ;;  %v570_v5 = vmul.f32 %v8487_v49, %v7458_v61  ;;  %vm8738_vm14 = vcmp.lt.f32.partialorder %v7467_v2, 8388608.0 }
  0xc6   : > { %v7466_v42 = vsel %vm8719_vm13, %v7465_v56, %v8682_v33  ;;  %v1250_v9 = vld [vmem:[#allocation2 + $0x7c] sm:$0xf]  ;;  %v7470_v16 = vcvt.s32.f32 %v7469_v63  ;;  %v7475_v7 = vand.u32 2147483647, %v8728_v24  ;;  %v7477_v47 = vcvt.f32.s32 %v8728_v24 }
  0xc7   : > { %v571_v1 = vmul.f32 %v8487_v49, %v7466_v42  ;;  %v1582_v3 = vsel %vm8095_vm11, %v1577_v17, %v1581_v48  ;;  %v1589_v8 = vshll.u32 %v1250_v9, 16  ;;  %v1593_v28 = vshrl.u32 %v1250_v9, 16 }
  0xc8   : > { %v1586_v20 = vor.u32 %v1585_v4, %v1581_v48  ;;  %1901 = vrot.lane.b32.xlu1 %v1582_v3, %s7840_s22  ;;  %v1251_v33 = vld [vmem:[#allocation2 + $0x80] sm:$0xf]  ;;  %v647_v57 = vsub.f32 %v8663_v23, %v570_v5  ;;  %v7054_v45 = vpack.c.bf16 %v570_v5, %v570_v5  ;;  %v7471_v23 = vand.u32 2147483647, %v7470_v16 }
  0xc9   : > { %v648_v22 = vsub.f32 %v8666_v60, %v571_v1  ;;  %v7055_v26 = vpack.c.bf16 %v571_v1, %v571_v1  ;;  %v1591_v46 = vrot.slane %v1589_v8, 5  ;;  %v1595_v54 = vrot.slane %v1593_v28, 4 }
  0xca   : > { %v1599_v29 = vshll.u32 %v1251_v33, 16  ;;  %v1603_v6 = vshrl.u32 %v1251_v33, 16  ;;  %v1587_v18 = vrot.slane %v1586_v20, 4  ;;  %v736_v58 = vsel %vm670_vm4, %v647_v57, 0.0  ;;  %1048 = vst.msk [vmem:[#allocation2 + $0x84] sm:$0xf] %vm1014_vm2, %v7054_v45 }
  0xcb   : > { %v738_v31 = vsel %vm670_vm4, %v648_v22, 0.0  ;;  %1049 = vst.msk [vmem:[#allocation2 + $0x88] sm:$0xf] %vm1014_vm2, %v7055_v26  ;;  %v1596_v60 = vor.u32 %v1595_v54, %v1591_v46  ;;  %v737_v34 = vadd.f32 %v736_v58, %v735_v37  ;;  %v7473_v40 = vor.u32 %v7472_v32, %v7471_v23  ;;  %v8801_v20 = vld [vmem:[%s7947_s19 + $0x140] sm:$0xff]  ;;  %v1109_v33 = vld [vmem:[#allocation2 + $0x8] sm:$0xf] }
  0xcc   : > { %v1601_v35 = vrot.slane %v1599_v29, 5  ;;  %v1605_v62 = vrot.slane %v1603_v6, 4  ;;  %v1592_v12 = vsel %vm8095_vm11, %v1587_v18, %v1591_v46  ;;  %vm8760_vm15 = vcmp.lt.f32.partialorder %v7475_v7, 8388608.0  ;;  %1165 = vst.msk [vmem:[#allocation3 + $0x8] sm:$0xf] %vm1014_vm2, %v1109_v33 }
  0xcd   : > { %v1597_v25 = vrot.slane %v1596_v60, 4  ;;  %1903 = vrot.lane.b32.xlu0 %v1592_v12, %s7840_s22  ;;  %v739_v43 = vadd.f32 %v738_v31, %v737_v34  ;;  %v7480_v41 = vand.u32 2147483648, %v8728_v24  ;;  %v7474_v51 = vsel %vm8738_vm14, %v7473_v40, %v454_v44  ;;  %v1107_v46 = vld [vmem:[#allocation2] sm:$0xf]  ;;  %v1110_v12 = vld [vmem:[#allocation2 + $0xc] sm:$0xf] }
  0xce   : > { %v1606_v38 = vor.u32 %v1605_v62, %v1601_v35  ;;  %v7478_v36 = vcvt.s32.f32 %v7477_v47  ;;  %v8774_v52 = vmul.f32 %v8457_v19, %v8753_v39  ;;  %v8778_v21 = vmul.f32 %v8457_v19, %v8756_v10  ;;  %1163 = vst.msk [vmem:[#allocation3] sm:$0xf] %vm1014_vm2, %v1107_v46  ;;  %1166 = vst.msk [vmem:[#allocation3 + $0xc] sm:$0xf] %vm1014_vm2, %v1110_v12  ;;  %v1114_v33 = vld [vmem:[#allocation2 + $0x1c] sm:$0xf] }
  0xcf   : > { %v1602_v0 = vsel %vm8095_vm11, %v1597_v25, %v1601_v35  ;;  %v572_v17 = vmul.f32 %v8487_v49, %v7474_v51  ;;  %v8785_v37 = vmul.f32 %v8457_v19, %v8766_v50  ;;  %v8819_v23 = vmul.f32 %v8457_v19, %v8801_v20  ;;  %1170 = vst.msk [vmem:[#allocation3 + $0x1c] sm:$0xf] %vm1014_vm2, %v1114_v33 }
  0xd0   : > { %v1607_v15 = vrot.slane %v1606_v38, 4  ;;  %1905 = vrot.lane.b32.xlu1 %v1602_v0, %s7840_s22  ;;  %v7479_v53 = vand.u32 2147483647, %v7478_v36  ;;  %v7483_v44 = vand.u32 2147483647, %v8774_v52  ;;  %v7485_v59 = vcvt.f32.s32 %v8774_v52 }
  0xd1   : > { %v7488_v55 = vand.u32 2147483648, %v8774_v52  ;;  %v1252_v56 = vld [vmem:[#allocation2 + $0x84] sm:$0xf]  ;;  %v649_v2 = vsub.f32 %v8709_v11, %v572_v17  ;;  %v7056_v63 = vpack.c.bf16 %v572_v17, %v572_v17  ;;  %v7491_v32 = vand.u32 2147483647, %v8778_v21 }
  0xd2   : > { %v1253_v61 = vld [vmem:[#allocation2 + $0x88] sm:$0xf]  ;;  %v7493_v48 = vcvt.f32.s32 %v8778_v21  ;;  %v1609_v4 = vshll.u32 %v1252_v56, 16  ;;  %v1613_v42 = vshrl.u32 %v1252_v56, 16  ;;  %v7481_v1 = vor.u32 %v7480_v41, %v7479_v53  ;;  %v1112_v56 = vld [vmem:[#allocation2 + $0x14] sm:$0xf] }
  0xd3   : > { %v1619_v5 = vshll.u32 %v1253_v61, 16  ;;  %v1623_v9 = vshrl.u32 %v1253_v61, 16  ;;  %v740_v14 = vsel %vm670_vm4, %v649_v2, 0.0  ;;  %1050 = vst.msk [vmem:[#allocation2 + $0x8c] sm:$0xf] %vm1014_vm2, %v7056_v63  ;;  %vm8796_vm0 = vcmp.lt.f32.partialorder %v7483_v44, 8388608.0 }
  0xd4   : > { %v7486_v11 = vcvt.s32.f32 %v7485_v59  ;;  %v1611_v7 = vrot.slane %v1609_v4, 5  ;;  %v1615_v3 = vrot.slane %v1613_v42, 4  ;;  %v741_v28 = vadd.f32 %v740_v14, %v739_v43  ;;  %v1108_v43 = vld [vmem:[#allocation2 + $0x4] sm:$0xf]  ;;  %v1111_v61 = vld [vmem:[#allocation2 + $0x10] sm:$0xf] }
  0xd5   : > { %v1621_v8 = vrot.slane %v1619_v5, 5  ;;  %v7482_v57 = vsel %vm8760_vm15, %v7481_v1, %v8728_v24  ;;  %v1625_v22 = vrot.slane %v1623_v9, 4  ;;  %vm8806_vm1 = vcmp.lt.f32.partialorder %v7491_v32, 8388608.0  ;;  %1164 = vst.msk [vmem:[#allocation3 + $0x4] sm:$0xf] %vm1014_vm2, %v1108_v43  ;;  %v8852_v5 = vld [vmem:[%s7947_s19 + $0x148] sm:$0xff] }
  0xd6   : > { %v7487_v45 = vand.u32 2147483647, %v7486_v11  ;;  %v1616_v54 = vor.u32 %v1615_v3, %v1611_v7  ;;  %v1612_v29 = vsel %vm8095_vm11, %v1607_v15, %v1611_v7  ;;  %v573_v6 = vmul.f32 %v8487_v49, %v7482_v57  ;;  %1168 = vst.msk [vmem:[#allocation3 + $0x14] sm:$0xf] %vm1014_vm2, %v1112_v56  ;;  %1167 = vst.msk [vmem:[#allocation3 + $0x10] sm:$0xf] %vm1014_vm2, %v1111_v61 }
  0xd7   : > { %v7494_v18 = vcvt.s32.f32 %v7493_v48  ;;  %1907 = vrot.lane.b32.xlu0 %v1612_v29, %s7840_s22  ;;  %v1626_v24 = vor.u32 %v1625_v22, %v1621_v8  ;;  %v7496_v31 = vand.u32 2147483648, %v8778_v21  ;;  %v7499_v47 = vand.u32 2147483647, %v8785_v37  ;;  %v1113_v57 = vld [vmem:[#allocation2 + $0x18] sm:$0xf]  ;;  %v8921_v3 = vld [vmem:[%s7947_s19 + $0x160] sm:$0xff] }
  0xd8   : > { %v7489_v58 = vor.u32 %v7488_v55, %v7487_v45  ;;  %v1617_v60 = vrot.slane %v1616_v54, 4  ;;  %v650_v35 = vsub.f32 %v8714_v27, %v573_v6  ;;  %v7057_v34 = vpack.c.bf16 %v573_v6, %v573_v6  ;;  %1169 = vst.msk [vmem:[#allocation3 + $0x18] sm:$0xf] %vm1014_vm2, %v1113_v57 }
  0xd9   : > { %v7495_v62 = vand.u32 2147483647, %v7494_v18  ;;  %v1627_v40 = vrot.slane %v1626_v24, 4  ;;  %v7501_v25 = vcvt.f32.s32 %v8785_v37  ;;  %vm8835_vm3 = vcmp.lt.f32.partialorder %v7499_v47, 8388608.0 }
  0xda   : > { %v7490_v30 = vsel %vm8796_vm0, %v7489_v58, %v8774_v52  ;;  %v1622_v38 = vsel %vm8095_vm11, %v1617_v60, %v1621_v8  ;;  %v742_v27 = vsel %vm670_vm4, %v650_v35, 0.0  ;;  %1051 = vst.msk [vmem:[#allocation2 + $0x90] sm:$0xf] %vm1014_vm2, %v7057_v34  ;;  %v1254_v41 = vld [vmem:[#allocation2 + $0x8c] sm:$0xf]  ;;  %v7504_v48 = vand.u32 2147483648, %v8785_v37  ;;  %v8883_v35 = vpop.permute.xlu0 %1843 }
  0xdb   : > { %v7497_v51 = vor.u32 %v7496_v31, %v7495_v62  ;;  %v574_v36 = vmul.f32 %v8487_v49, %v7490_v30  ;;  %1909 = vrot.lane.b32.xlu1 %v1622_v38, %s7840_s22  ;;  %v1629_v52 = vshll.u32 %v1254_v41, 16  ;;  %v1633_v0 = vshrl.u32 %v1254_v41, 16  ;;  %v1116_v30 = vld [vmem:[#allocation2 + $0x24] sm:$0xf]  ;;  %v1122_v38 = vld [vmem:[#allocation2 + $0x3c] sm:$0xf] }
  0xdc   : > { %v743_v15 = vadd.f32 %v742_v27, %v741_v28  ;;  %v7502_v55 = vcvt.s32.f32 %v7501_v25  ;;  %v7507_v4 = vand.u32 2147483647, %v8819_v23  ;;  %v7509_v42 = vcvt.f32.s32 %v8819_v23  ;;  %v8863_v28 = vld [vmem:[%s7947_s19 + $0x150] sm:$0xff]  ;;  %1172 = vst.msk [vmem:[#allocation3 + $0x24] sm:$0xf] %vm1014_vm2, %v1116_v30 }
  0xdd   : > { %v7498_v53 = vsel %vm8806_vm1, %v7497_v51, %v8778_v21  ;;  %v651_v44 = vsub.f32 %v8753_v39, %v574_v36  ;;  %v7058_v59 = vpack.c.bf16 %v574_v36, %v574_v36  ;;  %v1631_v2 = vrot.slane %v1629_v52, 5  ;;  %v8895_v52 = vpop.permute.xlu1 %1847  ;;  %1178 = vst.msk [vmem:[#allocation3 + $0x3c] sm:$0xf] %vm1014_vm2, %v1122_v38 }
  0xde   : > { %v1635_v63 = vrot.slane %v1633_v0, 4  ;;  %v575_v32 = vmul.f32 %v8487_v49, %v7498_v53  ;;  %v7503_v39 = vand.u32 2147483647, %v7502_v55  ;;  %vm8858_vm5 = vcmp.lt.f32.partialorder %v7507_v4, 8388608.0 }
  0xdf   : > { %v744_v21 = vsel %vm670_vm4, %v651_v44, 0.0  ;;  %1052 = vst.msk [vmem:[#allocation2 + $0x94] sm:$0xf] %vm1014_vm2, %v7058_v59  ;;  %v1632_v1 = vsel %vm8095_vm11, %v1627_v40, %v1631_v2  ;;  %v7510_v8 = vcvt.s32.f32 %v7509_v42  ;;  %v8870_v46 = vmul.f32 %v8457_v19, %v8852_v5 }
  0xe0   : > { %v1636_v9 = vor.u32 %v1635_v63, %v1631_v2  ;;  %v652_v14 = vsub.f32 %v8756_v10, %v575_v32  ;;  %v7059_v16 = vpack.c.bf16 %v575_v32, %v575_v32  ;;  %1911 = vrot.lane.b32.xlu0 %v1632_v1, %s7840_s22  ;;  %v745_v11 = vadd.f32 %v744_v21, %v743_v15  ;;  %v1117_v1 = vld [vmem:[#allocation2 + $0x28] sm:$0xf] }
  0xe1   : > { %v7505_v7 = vor.u32 %v7504_v48, %v7503_v39  ;;  %v1255_v22 = vld [vmem:[#allocation2 + $0x90] sm:$0xf]  ;;  %v7512_v10 = vand.u32 2147483648, %v8819_v23  ;;  %v7511_v24 = vand.u32 2147483647, %v7510_v8  ;;  %v8880_v31 = vmul.f32 %v8457_v19, %v8863_v28 }
  0xe2   : > { %v1637_v45 = vrot.slane %v1636_v9, 4  ;;  %v746_v26 = vsel %vm670_vm4, %v652_v14, 0.0  ;;  %1053 = vst.msk [vmem:[#allocation2 + $0x98] sm:$0xf] %vm1014_vm2, %v7059_v16  ;;  %v1639_v54 = vshll.u32 %v1255_v22, 16  ;;  %v1643_v29 = vshrl.u32 %v1255_v22, 16  ;;  %v8928_v22 = vpop.permute.xlu1 %1849 }
  0xe3   : > { %v747_v6 = vadd.f32 %v746_v26, %v745_v11  ;;  %v7506_v18 = vsel %vm8835_vm3, %v7505_v7, %v8785_v37  ;;  %v7515_v60 = vand.u32 2147483647, %v8870_v46  ;;  %v7517_v12 = vcvt.f32.s32 %v8870_v46  ;;  %v1115_v19 = vld [vmem:[#allocation2 + $0x20] sm:$0xf]  ;;  %v1118_v48 = vld [vmem:[#allocation2 + $0x2c] sm:$0xf] }
  0xe4   : > { %v576_v58 = vmul.f32 %v8487_v49, %v7506_v18  ;;  %v1641_v34 = vrot.slane %v1639_v54, 5  ;;  %v1645_v62 = vrot.slane %v1643_v29, 4  ;;  %v7520_v40 = vand.u32 2147483648, %v8870_v46  ;;  %1171 = vst.msk [vmem:[#allocation3 + $0x20] sm:$0xf] %vm1014_vm2, %v1115_v19  ;;  %v8912_v9 = vld [vmem:[%s7947_s19 + $0x158] sm:$0xff] }
  0xe5   : > { %v7513_v37 = vor.u32 %v7512_v10, %v7511_v24  ;;  %vm8888_vm6 = vcmp.lt.f32.partialorder %v7515_v60, 8388608.0  ;;  %v7518_v15 = vcvt.s32.f32 %v7517_v12  ;;  %v7523_v17 = vand.u32 2147483647, %v8880_v31  ;;  %1174 = vst.msk [vmem:[#allocation3 + $0x2c] sm:$0xf] %vm1014_vm2, %v1118_v48 }
  0xe6   : > { %v1256_v47 = vld [vmem:[#allocation2 + $0x94] sm:$0xf]  ;;  %v653_v25 = vsub.f32 %v8766_v50, %v576_v58  ;;  %v7060_v43 = vpack.c.bf16 %v576_v58, %v576_v58  ;;  %v1642_v27 = vsel %vm8095_vm11, %v1637_v45, %v1641_v34  ;;  %v1646_v36 = vor.u32 %v1645_v62, %v1641_v34  ;;  %1173 = vst.msk [vmem:[#allocation3 + $0x28] sm:$0xf] %vm1014_vm2, %v1117_v1  ;;  %v8936_v29 = vld [vmem:[%s11489_s1] ss:$0 sm:$0xff] }
  0xe7   : > { %v1649_v41 = vshll.u32 %v1256_v47, 16  ;;  %v1653_v51 = vshrl.u32 %v1256_v47, 16  ;;  %1913 = vrot.lane.b32.xlu1 %v1642_v27, %s7840_s22  ;;  %v7514_v50 = vsel %vm8858_vm5, %v7513_v37, %v8819_v23  ;;  %v7519_v32 = vand.u32 2147483647, %v7518_v15  ;;  %v8906_v23 = vpop.permute.xlu0 %1845  ;;  %v1120_v45 = vld [vmem:[#allocation2 + $0x34] sm:$0xf] }
  0xe8   : > { %v748_v0 = vsel %vm670_vm4, %v653_v25, 0.0  ;;  %1054 = vst.msk [vmem:[#allocation2 + $0x9c] sm:$0xf] %vm1014_vm2, %v7060_v43  ;;  %v1647_v55 = vrot.slane %v1646_v36, 4  ;;  %v577_v56 = vmul.f32 %v8487_v49, %v7514_v50  ;;  %vm8916_vm7 = vcmp.lt.f32.partialorder %v7523_v17, 8388608.0  ;;  %v8967_v17 = vpop.permute.xlu1 %1853 }
  0xe9   : > { %v1257_v53 = vld [vmem:[#allocation2 + $0x98] sm:$0xf]  ;;  %v1651_v44 = vrot.slane %v1649_v41, 5  ;;  %v1655_v59 = vrot.slane %v1653_v51, 4  ;;  %v749_v63 = vadd.f32 %v748_v0, %v747_v6  ;;  %v7521_v11 = vor.u32 %v7520_v40, %v7519_v32  ;;  %1176 = vst.msk [vmem:[#allocation3 + $0x34] sm:$0xf] %vm1014_vm2, %v1120_v45 }
  0xea   : > { %v1659_v61 = vshll.u32 %v1257_v53, 16  ;;  %v1663_v2 = vshrl.u32 %v1257_v53, 16  ;;  %v654_v4 = vsub.f32 %v8801_v20, %v577_v56  ;;  %v7061_v42 = vpack.c.bf16 %v577_v56, %v577_v56  ;;  %v1119_v18 = vld [vmem:[#allocation2 + $0x30] sm:$0xf]  ;;  %v1121_v19 = vld [vmem:[#allocation2 + $0x38] sm:$0xf] }
  0xeb   : > { %v1656_v21 = vor.u32 %v1655_v59, %v1651_v44  ;;  %v1652_v39 = vsel %vm8095_vm11, %v1647_v55, %v1651_v44  ;;  %v7525_v33 = vcvt.f32.s32 %v8880_v31  ;;  %v7528_v57 = vand.u32 2147483648, %v8880_v31  ;;  %1175 = vst.msk [vmem:[#allocation3 + $0x30] sm:$0xf] %vm1014_vm2, %v1119_v18  ;;  %v8953_v47 = vpop.permute.xlu0 %1851  ;;  %1177 = vst.msk [vmem:[#allocation3 + $0x38] sm:$0xf] %vm1014_vm2, %v1121_v19 }
  0xec   : > { %v1661_v14 = vrot.slane %v1659_v61, 5  ;;  %1915 = vrot.lane.b32.xlu0 %v1652_v39, %s7840_s22  ;;  %v1665_v16 = vrot.slane %v1663_v2, 4  ;;  %v750_v8 = vsel %vm670_vm4, %v654_v4, 0.0  ;;  %1055 = vst.msk [vmem:[#allocation2 + $0xa0] sm:$0xf] %vm1014_vm2, %v7061_v42  ;;  %v7522_v54 = vsel %vm8888_vm6, %v7521_v11, %v8870_v46  ;;  %v8973_v61 = vld [vmem:[%s7947_s19 + $0x168] sm:$0xff] }
  0xed   : > { %v1657_v20 = vrot.slane %v1656_v21, 4  ;;  %v751_v26 = vadd.f32 %v750_v8, %v749_v63  ;;  %v8940_v6 = vmul.f32 %v8936_v29, %v8912_v9  ;;  %v7526_v60 = vcvt.s32.f32 %v7525_v33  ;;  %v1124_v21 = vld [vmem:[#allocation2 + $0x44] sm:$0xf]  ;;  %v8982_v4 = vld [vmem:[%s11488_s0] ss:$0 sm:$0xff] }
  0xee   : > { %v1666_v10 = vor.u32 %v1665_v16, %v1661_v14  ;;  %v578_v34 = vmul.f32 %v8487_v49, %v7522_v54  ;;  %v8948_v46 = vmul.f32 %v8936_v29, %v8921_v3  ;;  %v8990_v16 = vld [vmem:[%s7947_s19 + $0x170] sm:$0xff]  ;;  %1180 = vst.msk [vmem:[#allocation3 + $0x44] sm:$0xf] %vm1014_vm2, %v1124_v21 }
  0xef   : > { %v1662_v24 = vsel %vm8095_vm11, %v1657_v20, %v1661_v14  ;;  %v1258_v58 = vld [vmem:[#allocation2 + $0x9c] sm:$0xf]  ;;  %v7531_v30 = vand.u32 2147483647, %v8940_v6  ;;  %v7527_v37 = vand.u32 2147483647, %v7526_v60  ;;  %v7533_v49 = vcvt.f32.s32 %v8940_v6  ;;  %v8992_v11 = vpop.permute.xlu0 %1855  ;;  %v9011_v60 = vpop.permute.xlu1 %1857 }
  0xf0   : > { %1917 = vrot.lane.b32.xlu1 %v1662_v24, %s7840_s22  ;;  %v1669_v62 = vshll.u32 %v1258_v58, 16  ;;  %v1673_v12 = vshrl.u32 %v1258_v58, 16  ;;  %v1667_v40 = vrot.slane %v1666_v10, 4  ;;  %v655_v25 = vsub.f32 %v8852_v5, %v578_v34 }
  0xf1   : > { %v7062_v43 = vpack.c.bf16 %v578_v34, %v578_v34  ;;  %vm8957_vm8 = vcmp.lt.f32.partialorder %v7531_v30, 8388608.0  ;;  %v7536_v36 = vand.u32 2147483648, %v8940_v6  ;;  %v7529_v50 = vor.u32 %v7528_v57, %v7527_v37  ;;  %v1125_v34 = vld [vmem:[#allocation2 + $0x48] sm:$0xf] }
  0xf2   : > { %v1671_v27 = vrot.slane %v1669_v62, 5  ;;  %v1675_v41 = vrot.slane %v1673_v12, 4  ;;  %v752_v5 = vsel %vm670_vm4, %v655_v25, 0.0  ;;  %v7534_v0 = vcvt.s32.f32 %v7533_v49  ;;  %1181 = vst.msk [vmem:[#allocation3 + $0x48] sm:$0xf] %vm1014_vm2, %v1125_v34 }
  0xf3   : > { %1056 = vst.msk [vmem:[#allocation2 + $0xa4] sm:$0xf] %vm1014_vm2, %v7062_v43  ;;  %v7539_v15 = vand.u32 2147483647, %v8948_v46  ;;  %v1259_v53 = vld [vmem:[#allocation2 + $0xa0] sm:$0xf]  ;;  %v753_v55 = vadd.f32 %v752_v5, %v751_v26  ;;  %v7541_v56 = vcvt.f32.s32 %v8948_v46  ;;  %v7530_v32 = vsel %vm8916_vm7, %v7529_v50, %v8880_v31  ;;  %v9028_v51 = vpop.permute.xlu0 %1859 }
  0xf4   : > { %v1676_v44 = vor.u32 %v1675_v41, %v1671_v27  ;;  %v1672_v59 = vsel %vm8095_vm11, %v1667_v40, %v1671_v27  ;;  %v1679_v2 = vshll.u32 %v1259_v53, 16  ;;  %v1683_v63 = vshrl.u32 %v1259_v53, 16  ;;  %v1123_v31 = vld [vmem:[#allocation2 + $0x40] sm:$0xf]  ;;  %v1127_v53 = vld [vmem:[#allocation2 + $0x50] sm:$0xf] }
  0xf5   : > { %1919 = vrot.lane.b32.xlu0 %v1672_v59, %s7840_s22  ;;  %v7535_v48 = vand.u32 2147483647, %v7534_v0  ;;  %v579_v42 = vmul.f32 %v8982_v4, %v7530_v32  ;;  %vm8985_vm9 = vcmp.lt.f32.partialorder %v7539_v15, 8388608.0  ;;  %v7542_v14 = vcvt.s32.f32 %v7541_v56  ;;  %1179 = vst.msk [vmem:[#allocation3 + $0x40] sm:$0xf] %vm1014_vm2, %v1123_v31 }
  0xf6   : > { %v1677_v39 = vrot.slane %v1676_v44, 4  ;;  %v1681_v7 = vrot.slane %v1679_v2, 5  ;;  %v1685_v20 = vrot.slane %v1683_v63, 4  ;;  %v7544_v33 = vand.u32 2147483648, %v8948_v46  ;;  %v1128_v15 = vld [vmem:[#allocation2 + $0x54] sm:$0xf] }
  0xf7   : > { %v7537_v8 = vor.u32 %v7536_v36, %v7535_v48  ;;  %v656_v57 = vsub.f32 %v8863_v28, %v579_v42  ;;  %v7063_v45 = vpack.c.bf16 %v579_v42, %v579_v42  ;;  %v7543_v26 = vand.u32 2147483647, %v7542_v14  ;;  %v1126_v28 = vld [vmem:[#allocation2 + $0x4c] sm:$0xf]  ;;  %1184 = vst.msk [vmem:[#allocation3 + $0x54] sm:$0xf] %vm1014_vm2, %v1128_v15  ;;  %v9045_v48 = vpop.permute.xlu1 %1861 }
  0xf8   : > { %v9000_v10 = vmul.f32 %v8936_v29, %v8973_v61  ;;  %v1682_v54 = vsel %vm8095_vm11, %v1677_v39, %v1681_v7  ;;  %v1686_v18 = vor.u32 %v1685_v20, %v1681_v7  ;;  %v9009_v58 = vmul.f32 %v8936_v29, %v8990_v16  ;;  %1182 = vst.msk [vmem:[#allocation3 + $0x4c] sm:$0xf] %vm1014_vm2, %v1126_v28  ;;  %v9056_v20 = vld [vmem:[%s7947_s19 + $0x180] sm:$0xff]  ;;  %v1134_v42 = vld [vmem:[#allocation2 + $0x6c] sm:$0xf] }
  0xf9   : > { %v7538_v24 = vsel %vm8957_vm8, %v7537_v8, %v8940_v6  ;;  %1921 = vrot.lane.b32.xlu1 %v1682_v54, %s7840_s22  ;;  %v754_v62 = vsel %vm670_vm4, %v656_v57, 0.0  ;;  %1057 = vst.msk [vmem:[#allocation2 + $0xa8] sm:$0xf] %vm1014_vm2, %v7063_v45  ;;  %v7545_v40 = vor.u32 %v7544_v33, %v7543_v26  ;;  %1183 = vst.msk [vmem:[#allocation3 + $0x50] sm:$0xf] %vm1014_vm2, %v1127_v53  ;;  %v9062_v26 = vpop.permute.xlu0 %1863  ;;  %vm2011_vm8 = vcmask 60448  }
  0xfa   : > { %v1260_v12 = vld [vmem:[#allocation2 + $0xa4] sm:$0xf]  ;;  %v580_v30 = vmul.f32 %v8982_v4, %v7538_v24  ;;  %v7547_v6 = vand.u32 2147483647, %v9000_v10  ;;  %v755_v43 = vadd.f32 %v754_v62, %v753_v55  ;;  %v1687_v49 = vrot.slane %v1686_v18, 4  ;;  %v9038_v55 = vld [vmem:[%s7947_s19 + $0x178] sm:$0xff] }
  0xfb   : > { %v1689_v37 = vshll.u32 %v1260_v12, 16  ;;  %v1693_v25 = vshrl.u32 %v1260_v12, 16  ;;  %v7546_v38 = vsel %vm8985_vm9, %v7545_v40, %v8948_v46  ;;  %v7549_v0 = vcvt.f32.s32 %v9000_v10  ;;  %v1130_v54 = vld [vmem:[#allocation2 + $0x5c] sm:$0xf]  ;;  %v1129_v62 = vld [vmem:[#allocation2 + $0x58] sm:$0xf] }
  0xfc   : > { %v657_v19 = vsub.f32 %v8912_v9, %v580_v30  ;;  %v7064_v27 = vpack.c.bf16 %v580_v30, %v580_v30  ;;  %vm9024_vm10 = vcmp.lt.f32.partialorder %v7547_v6, 8388608.0  ;;  %v581_v5 = vmul.f32 %v8982_v4, %v7546_v38  ;;  %1186 = vst.msk [vmem:[#allocation3 + $0x5c] sm:$0xf] %vm1014_vm2, %v1130_v54  ;;  %1185 = vst.msk [vmem:[#allocation3 + $0x58] sm:$0xf] %vm1014_vm2, %v1129_v62 }
  0xfd   : > { %v1691_v36 = vrot.slane %v1689_v37, 5  ;;  %v1695_v50 = vrot.slane %v1693_v25, 4  ;;  %v7552_v9 = vand.u32 2147483648, %v9000_v10  ;;  %v7555_v44 = vand.u32 2147483647, %v9009_v58 }
  0xfe   : > { %v756_v46 = vsel %vm670_vm4, %v657_v19, 0.0  ;;  %1058 = vst.msk [vmem:[#allocation2 + $0xac] sm:$0xf] %vm1014_vm2, %v7064_v27  ;;  %v7557_v59 = vcvt.f32.s32 %v9009_v58  ;;  %v658_v63 = vsub.f32 %v8921_v3, %v581_v5  ;;  %v7065_v32 = vpack.c.bf16 %v581_v5, %v581_v5  ;;  %v9079_v19 = vpop.permute.xlu1 %1865  ;;  %v1131_v15 = vld [vmem:[#allocation2 + $0x60] sm:$0xf] }
  0xff   : > { %v1696_v56 = vor.u32 %v1695_v50, %v1691_v36  ;;  %v1692_v2 = vsel %vm8095_vm11, %v1687_v49, %v1691_v36  ;;  %v757_v21 = vadd.f32 %v756_v46, %v755_v43  ;;  %v7550_v39 = vcvt.s32.f32 %v7549_v0  ;;  %v1132_v0 = vld [vmem:[#allocation2 + $0x64] sm:$0xf]  ;;  %1187 = vst.msk [vmem:[#allocation3 + $0x60] sm:$0xf] %vm1014_vm2, %v1131_v15  ;;  %1190 = vst.msk [vmem:[#allocation3 + $0x6c] sm:$0xf] %vm1014_vm2, %v1134_v42 }
 0x100   : > { %1923 = vrot.lane.b32.xlu0 %v1692_v2, %s7840_s22  ;;  %vm9048_vm12 = vcmp.lt.f32.partialorder %v7555_v44, 8388608.0  ;;  %v7558_v1 = vcvt.s32.f32 %v7557_v59  ;;  %v1261_v14 = vld [vmem:[#allocation2 + $0xa8] sm:$0xf]  ;;  %v758_v7 = vsel %vm670_vm4, %v658_v63, 0.0  ;;  %1059 = vst.msk [vmem:[#allocation2 + $0xb0] sm:$0xf] %vm1014_vm2, %v7065_v32  ;;  %v9060_v8 = vmul.f32 %v8936_v29, %v9038_v55 }
 0x101   : > { %v1697_v31 = vrot.slane %v1696_v56, 4  ;;  %v7560_v3 = vand.u32 2147483648, %v9009_v58  ;;  %v1699_v33 = vshll.u32 %v1261_v14, 16  ;;  %v1703_v57 = vshrl.u32 %v1261_v14, 16  ;;  %1188 = vst.msk [vmem:[#allocation3 + $0x64] sm:$0xf] %vm1014_vm2, %v1132_v0 }
 0x102   : > { %v7551_v45 = vand.u32 2147483647, %v7550_v39  ;;  %v9064_v18 = vadd.f32 %v758_v7, %v757_v21  ;;  %v7559_v24 = vand.u32 2147483647, %v7558_v1  ;;  %v7563_v28 = vand.u32 2147483647, %v9060_v8  ;;  %v9094_v21 = vpop.permute.xlu0 %1867 }
 0x103   : > { %v7565_v34 = vcvt.f32.s32 %v9060_v8  ;;  %v1701_v12 = vrot.slane %v1699_v33, 5  ;;  %v1705_v40 = vrot.slane %v1703_v57, 4  ;;  %v9071_v6 = vmul.f32 %v8936_v29, %v9056_v20  ;;  %v1137_v42 = vld [vmem:[#allocation2 + $0x78] sm:$0xf]  ;;  %2014 = vst.msk [vmem:[#allocation3 + $0x8] sm:$0xf] %vm2011_vm8, %v8895_v52 }
 0x104   : > { %v7553_v30 = vor.u32 %v7552_v9, %v7551_v45  ;;  %v7561_v25 = vor.u32 %v7560_v3, %v7559_v24  ;;  %vm9074_vm13 = vcmp.lt.f32.partialorder %v7563_v28, 8388608.0  ;;  %v7568_v38 = vand.u32 2147483648, %v9060_v8  ;;  %v1133_v3 = vld [vmem:[#allocation2 + $0x68] sm:$0xf]  ;;  %v9106_v28 = vpop.permute.xlu1 %1869  ;;  %1193 = vst.msk [vmem:[#allocation3 + $0x78] sm:$0xf] %vm1014_vm2, %v1137_v42 }
 0x105   : > { %v1262_v37 = vld [vmem:[#allocation2 + $0xac] sm:$0xf]  ;;  %v7566_v49 = vcvt.s32.f32 %v7565_v34  ;;  %v1702_v27 = vsel %vm8095_vm11, %v1697_v31, %v1701_v12  ;;  %v1706_v5 = vor.u32 %v1705_v40, %v1701_v12  ;;  %v7571_v44 = vand.u32 2147483647, %v9071_v6  ;;  %1189 = vst.msk [vmem:[#allocation3 + $0x68] sm:$0xf] %vm1014_vm2, %v1133_v3 }
 0x106   : > { %v1709_v36 = vshll.u32 %v1262_v37, 16  ;;  %v1713_v50 = vshrl.u32 %v1262_v37, 16  ;;  %1925 = vrot.lane.b32.xlu1 %v1702_v27, %s7840_s22  ;;  %v7554_v53 = vsel %vm9024_vm10, %v7553_v30, %v9000_v10  ;;  %v7562_v46 = vsel %vm9048_vm12, %v7561_v25, %v9009_v58  ;;  %v9104_v24 = vld [vmem:[%s7947_s19 + $0x188] sm:$0xff]  ;;  %v9116_v12 = vld [vmem:[%s7947_s19 + $0x190] sm:$0xff]  ;;  %2012 = vst.msk [vmem:[#allocation3] sm:$0xf] %vm2011_vm8, %v8883_v35 }
 0x107   : > { %v7567_v9 = vand.u32 2147483647, %v7566_v49  ;;  %v1263_v59 = vld [vmem:[#allocation2 + $0xb0] sm:$0xf]  ;;  %v1707_v63 = vrot.slane %v1706_v5, 4  ;;  %v582_v32 = vmul.f32 %v8982_v4, %v7554_v53  ;;  %v583_v58 = vmul.f32 %v8982_v4, %v7562_v46  ;;  %v9132_v5 = vpop.permute.xlu0 %1871 }
 0x108   : > { %v1711_v56 = vrot.slane %v1709_v36, 5  ;;  %v1715_v2 = vrot.slane %v1713_v50, 4  ;;  %v1719_v10 = vshll.u32 %v1263_v59, 16  ;;  %v1723_v41 = vshrl.u32 %v1263_v59, 16  ;;  %v1136_v49 = vld [vmem:[#allocation2 + $0x74] sm:$0xf] }
 0x109   : > { %v7569_v39 = vor.u32 %v7568_v38, %v7567_v9  ;;  %v659_v31 = vsub.f32 %v8973_v61, %v582_v32  ;;  %v7066_v7 = vpack.c.bf16 %v582_v32, %v582_v32  ;;  %v660_v57 = vsub.f32 %v8990_v16, %v583_v58  ;;  %v1135_v38 = vld [vmem:[#allocation2 + $0x70] sm:$0xf]  ;;  %v9130_v50 = vld [vmem:[%s7947_s19 + $0x198] sm:$0xff]  ;;  %1192 = vst.msk [vmem:[#allocation3 + $0x74] sm:$0xf] %vm1014_vm2, %v1136_v49  ;;  %v9153_v32 = vpop.permute.xlu1 %1873 }
 0x10a   : > { %v1716_v1 = vor.u32 %v1715_v2, %v1711_v56  ;;  %v1712_v14 = vsel %vm8095_vm11, %v1707_v63, %v1711_v56  ;;  %v1721_v33 = vrot.slane %v1719_v10, 5  ;;  %v7067_v45 = vpack.c.bf16 %v583_v58, %v583_v58  ;;  %1191 = vst.msk [vmem:[#allocation3 + $0x70] sm:$0xf] %vm1014_vm2, %v1135_v38  ;;  %v1138_v10 = vld [vmem:[#allocation2 + $0x7c] sm:$0xf] }
 0x10b   : > { %1927 = vrot.lane.b32.xlu0 %v1712_v14, %s7840_s22  ;;  %v1725_v54 = vrot.slane %v1723_v41, 4  ;;  %v760_v61 = vsel %vm670_vm4, %v659_v31, 0.0  ;;  %1060 = vst.msk [vmem:[#allocation2 + $0xb4] sm:$0xf] %vm1014_vm2, %v7066_v7  ;;  %v7570_v62 = vsel %vm9074_vm13, %v7569_v39, %v9060_v8  ;;  %v7573_v16 = vcvt.f32.s32 %v9071_v6  ;;  %1194 = vst.msk [vmem:[#allocation3 + $0x7c] sm:$0xf] %vm1014_vm2, %v1138_v10 }
 0x10c   : > { %v1717_v34 = vrot.slane %v1716_v1, 4  ;;  %v762_v40 = vsel %vm670_vm4, %v660_v57, 0.0  ;;  %1061 = vst.msk [vmem:[#allocation2 + $0xb8] sm:$0xf] %vm1014_vm2, %v7067_v45  ;;  %v761_v30 = vadd.f32 %v760_v61, %v9064_v18  ;;  %v7576_v25 = vand.u32 2147483648, %v9071_v6  ;;  %v9169_v61 = vpop.permute.xlu0 %1875 }
 0x10d   : > { %v1726_v37 = vor.u32 %v1725_v54, %v1721_v33  ;;  %v7574_v43 = vcvt.s32.f32 %v7573_v16  ;;  %v584_v8 = vmul.f32 %v8982_v4, %v7570_v62  ;;  %v9127_v36 = vmul.f32 %v8936_v29, %v9104_v24  ;;  %2015 = vst.msk [vmem:[#allocation3 + $0xc] sm:$0xf] %vm2011_vm8, %v8928_v22  ;;  %2013 = vst.msk [vmem:[#allocation3 + $0x4] sm:$0xf] %vm2011_vm8, %v8906_v23 }
 0x10e   : > { %v1722_v27 = vsel %vm8095_vm11, %v1717_v34, %v1721_v33  ;;  %v763_v18 = vadd.f32 %v762_v40, %v761_v30  ;;  %vm9137_vm14 = vcmp.lt.f32.partialorder %v7571_v44, 8388608.0  ;;  %v9143_v15 = vmul.f32 %v8936_v29, %v9116_v12  ;;  %2017 = vst.msk [vmem:[#allocation3 + $0x14] sm:$0xf] %vm2011_vm8, %v8967_v17  ;;  %2016 = vst.msk [vmem:[#allocation3 + $0x10] sm:$0xf] %vm2011_vm8, %v8953_v47 }
 0x10f   : > { %1929 = vrot.lane.b32.xlu1 %v1722_v27, %s7840_s22  ;;  %v7575_v53 = vand.u32 2147483647, %v7574_v43  ;;  %v661_v46 = vsub.f32 %v9038_v55, %v584_v8  ;;  %v7068_v9 = vpack.c.bf16 %v584_v8, %v584_v8  ;;  %v7579_v59 = vand.u32 2147483647, %v9127_v36  ;;  %v9177_v43 = vld [vmem:[%s7947_s19 + $0x1a0] sm:$0xff] }
 0x110   : > { %v1727_v56 = vrot.slane %v1726_v37, 4  ;;  %v7581_v2 = vcvt.f32.s32 %v9127_v36  ;;  %v7589_v63 = vcvt.f32.s32 %v9143_v15  ;;  %v9151_v44 = vmul.f32 %v8936_v29, %v9130_v50  ;;  %v1140_v37 = vld [vmem:[#allocation2 + $0x84] sm:$0xf]  ;;  %2019 = vst.msk [vmem:[#allocation3 + $0x1c] sm:$0xf] %vm2011_vm8, %v9011_v60 }
 0x111   : > { %v7577_v41 = vor.u32 %v7576_v25, %v7575_v53  ;;  %v764_v58 = vsel %vm670_vm4, %v661_v46, 0.0  ;;  %1062 = vst.msk [vmem:[#allocation2 + $0xbc] sm:$0xf] %vm1014_vm2, %v7068_v9  ;;  %v7584_v55 = vand.u32 2147483648, %v9127_v36  ;;  %v7587_v39 = vand.u32 2147483647, %v9143_v15  ;;  %v9181_v53 = vpop.permute.xlu1 %1877 }
 0x112   : > { %v1264_v1 = vld [vmem:[#allocation2 + $0xb4] sm:$0xf]  ;;  %vm9160_vm15 = vcmp.lt.f32.partialorder %v7579_v59, 8388608.0  ;;  %v7582_v31 = vcvt.s32.f32 %v7581_v2  ;;  %v7590_v7 = vcvt.s32.f32 %v7589_v63  ;;  %v7592_v3 = vand.u32 2147483648, %v9143_v15  ;;  %1196 = vst.msk [vmem:[#allocation3 + $0x84] sm:$0xf] %vm1014_vm2, %v1140_v37 }
 0x113   : > { %v1265_v33 = vld [vmem:[#allocation2 + $0xb8] sm:$0xf]  ;;  %v1729_v57 = vshll.u32 %v1264_v1, 16  ;;  %v1733_v45 = vshrl.u32 %v1264_v1, 16  ;;  %v7578_v54 = vsel %vm9137_vm14, %v7577_v41, %v9071_v6  ;;  %v765_v34 = vadd.f32 %v764_v58, %v763_v18  ;;  %v1139_v46 = vld [vmem:[#allocation2 + $0x80] sm:$0xf] }
 0x114   : > { %v1739_v62 = vshll.u32 %v1265_v33, 16  ;;  %v1743_v16 = vshrl.u32 %v1265_v33, 16  ;;  %v585_v40 = vmul.f32 %v8982_v4, %v7578_v54  ;;  %v7583_v30 = vand.u32 2147483647, %v7582_v31  ;;  %1195 = vst.msk [vmem:[#allocation3 + $0x80] sm:$0xf] %vm1014_vm2, %v1139_v46 }
 0x115   : > { %v1731_v25 = vrot.slane %v1729_v57, 5  ;;  %v1735_v49 = vrot.slane %v1733_v45, 4  ;;  %vm9172_vm0 = vcmp.lt.f32.partialorder %v7587_v39, 8388608.0  ;;  %v7591_v27 = vand.u32 2147483647, %v7590_v7  ;;  %v9196_v7 = vpop.permute.xlu0 %1879 }
 0x116   : > { %v1741_v6 = vrot.slane %v1739_v62, 5  ;;  %v662_v8 = vsub.f32 %v9056_v20, %v585_v40  ;;  %v7069_v18 = vpack.c.bf16 %v585_v40, %v585_v40  ;;  %v1745_v0 = vrot.slane %v1743_v16, 4  ;;  %2018 = vst.msk [vmem:[#allocation3 + $0x18] sm:$0xf] %vm2011_vm8, %v8992_v11  ;;  %2021 = vst.msk [vmem:[#allocation3 + $0x24] sm:$0xf] %vm2011_vm8, %v9045_v48 }
 0x117   : > { %v1736_v9 = vor.u32 %v1735_v49, %v1731_v25  ;;  %v1732_v59 = vsel %vm8095_vm11, %v1727_v56, %v1731_v25  ;;  %v7585_v2 = vor.u32 %v7584_v55, %v7583_v30  ;;  %v7593_v63 = vor.u32 %v7592_v3, %v7591_v27  ;;  %v1142_v56 = vld [vmem:[#allocation2 + $0x8c] sm:$0xf]  ;;  %v1141_v3 = vld [vmem:[#allocation2 + $0x88] sm:$0xf]  ;;  %v9214_v25 = vpop.permute.xlu1 %1881  ;;  %2020 = vst.msk [vmem:[#allocation3 + $0x20] sm:$0xf] %vm2011_vm8, %v9028_v51 }
 0x118   : > { %1931 = vrot.lane.b32.xlu0 %v1732_v59, %s7840_s22  ;;  %1063 = vst.msk [vmem:[#allocation2 + $0xc0] sm:$0xf] %vm1014_vm2, %v7069_v18  ;;  %v1266_v10 = vld [vmem:[#allocation2 + $0xbc] sm:$0xf]  ;;  %v1746_v20 = vor.u32 %v1745_v0, %v1741_v6  ;;  %v9191_v41 = vmul.f32 %v8936_v29, %v9177_v43  ;;  %v7595_v58 = vand.u32 2147483647, %v9151_v44  ;;  %v7597_v39 = vcvt.f32.s32 %v9151_v44 }
 0x119   : > { %v1737_v55 = vrot.slane %v1736_v9, 4  ;;  %v766_v42 = vsel %vm670_vm4, %v662_v8, 0.0  ;;  %v1749_v1 = vshll.u32 %v1266_v10, 16  ;;  %v1753_v31 = vshrl.u32 %v1266_v10, 16  ;;  %1198 = vst.msk [vmem:[#allocation3 + $0x8c] sm:$0xf] %vm1014_vm2, %v1142_v56 }
 0x11a   : > { %v1747_v33 = vrot.slane %v1746_v20, 4  ;;  %v7586_v57 = vsel %vm9160_vm15, %v7585_v2, %v9127_v36  ;;  %v7594_v45 = vsel %vm9172_vm0, %v7593_v63, %v9143_v15  ;;  %v7598_v54 = vcvt.s32.f32 %v7597_v39  ;;  %1197 = vst.msk [vmem:[#allocation3 + $0x88] sm:$0xf] %vm1014_vm2, %v1141_v3  ;;  %v1144_v8 = vld [vmem:[#allocation2 + $0x94] sm:$0xf]  ;;  %v9226_v59 = vld [vmem:[%s7947_s19 + $0x1a8] sm:$0xff] }
 0x11b   : > { %v1742_v62 = vsel %vm8095_vm11, %v1737_v55, %v1741_v6  ;;  %v1751_v16 = vrot.slane %v1749_v1, 5  ;;  %v1755_v40 = vrot.slane %v1753_v31, 4  ;;  %v586_v30 = vmul.f32 %v8982_v4, %v7586_v57  ;;  %v1143_v18 = vld [vmem:[#allocation2 + $0x90] sm:$0xf]  ;;  %1200 = vst.msk [vmem:[#allocation3 + $0x94] sm:$0xf] %vm1014_vm2, %v1144_v8 }
 0x11c   : > { %1933 = vrot.lane.b32.xlu1 %v1742_v62, %s7840_s22  ;;  %v767_v14 = vadd.f32 %v766_v42, %v765_v34  ;;  %v587_v36 = vmul.f32 %v8982_v4, %v7594_v45  ;;  %v7599_v15 = vand.u32 2147483647, %v7598_v54  ;;  %v7600_v37 = vand.u32 2147483648, %v9151_v44  ;;  %v9229_v2 = vld [vmem:[%s7947_s19 + $0x1b0] sm:$0xff]  ;;  %1199 = vst.msk [vmem:[#allocation3 + $0x90] sm:$0xf] %vm1014_vm2, %v1143_v18 }
 0x11d   : > { %v1756_v49 = vor.u32 %v1755_v40, %v1751_v16  ;;  %v1752_v38 = vsel %vm8095_vm11, %v1747_v33, %v1751_v16  ;;  %v663_v27 = vsub.f32 %v9104_v24, %v586_v30  ;;  %v7070_v6 = vpack.c.bf16 %v586_v30, %v586_v30  ;;  %v1146_v1 = vld [vmem:[#allocation2 + $0x9c] sm:$0xf]  ;;  %v1145_v45 = vld [vmem:[#allocation2 + $0x98] sm:$0xf]  ;;  %v9256_v30 = vpop.permute.xlu1 %1885  ;;  %v1147_v8 = vld [vmem:[#allocation2 + $0xa0] sm:$0xf] }
 0x11e   : > { %1935 = vrot.lane.b32.xlu0 %v1752_v38, %s7840_s22  ;;  %v664_v34 = vsub.f32 %v9116_v12, %v587_v36  ;;  %v7071_v0 = vpack.c.bf16 %v587_v36, %v587_v36  ;;  %vm9221_vm1 = vcmp.lt.f32.partialorder %v7595_v58, 8388608.0  ;;  %v7601_v9 = vor.u32 %v7600_v37, %v7599_v15  ;;  %v9238_v58 = vpop.permute.xlu0 %1883  ;;  %1202 = vst.msk [vmem:[#allocation3 + $0x9c] sm:$0xf] %vm1014_vm2, %v1146_v1 }
 0x11f   : > { %v1267_v24 = vld [vmem:[#allocation2 + $0xc0] sm:$0xf]  ;;  %v1757_v63 = vrot.slane %v1756_v49, 4  ;;  %v768_v10 = vsel %vm670_vm4, %v663_v27, 0.0  ;;  %1064 = vst.msk [vmem:[#allocation2 + $0xc4] sm:$0xf] %vm1014_vm2, %v7070_v6  ;;  %v7605_v20 = vcvt.f32.s32 %v9191_v41  ;;  %v9248_v57 = vmul.f32 %v8936_v29, %v9226_v59 }
 0x120   : > { %v7603_v12 = vand.u32 2147483647, %v9191_v41  ;;  %v1759_v39 = vshll.u32 %v1267_v24, 16  ;;  %v1763_v56 = vshrl.u32 %v1267_v24, 16  ;;  %v770_v55 = vsel %vm670_vm4, %v664_v34, 0.0 }
 0x121   : > { %1065 = vst.msk [vmem:[#allocation2 + $0xc8] sm:$0xf] %vm1014_vm2, %v7071_v0  ;;  %v7608_v42 = vand.u32 2147483648, %v9191_v41  ;;  %v769_v31 = vadd.f32 %v768_v10, %v767_v14  ;;  %v7602_v3 = vsel %vm9221_vm1, %v7601_v9, %v9151_v44  ;;  %v7606_v33 = vcvt.s32.f32 %v7605_v20  ;;  %1201 = vst.msk [vmem:[#allocation3 + $0x98] sm:$0xf] %vm1014_vm2, %v1145_v45  ;;  %v9292_v45 = vpop.permute.xlu1 %1889 }
 0x122   : > { %v1761_v54 = vrot.slane %v1759_v39, 5  ;;  %v1765_v62 = vrot.slane %v1763_v56, 4  ;;  %v588_v16 = vmul.f32 %v8982_v4, %v7602_v3  ;;  %v9254_v40 = vmul.f32 %v8936_v29, %v9229_v2  ;;  %v1148_v6 = vld [vmem:[#allocation2 + $0xa4] sm:$0xf]  ;;  %v9275_v9 = vpop.permute.xlu0 %1887  ;;  %1203 = vst.msk [vmem:[#allocation3 + $0xa0] sm:$0xf] %vm1014_vm2, %v1147_v8 }
 0x123   : > { %vm9259_vm3 = vcmp.lt.f32.partialorder %v7603_v12, 8388608.0  ;;  %v7607_v14 = vand.u32 2147483647, %v7606_v33  ;;  %v7611_v36 = vand.u32 2147483647, %v9248_v57  ;;  %v7613_v15 = vcvt.f32.s32 %v9248_v57 }
 0x124   : > { %v1762_v37 = vsel %vm8095_vm11, %v1757_v63, %v1761_v54  ;;  %v1766_v49 = vor.u32 %v1765_v62, %v1761_v54  ;;  %v665_v38 = vsub.f32 %v9130_v50, %v588_v16  ;;  %v7072_v27 = vpack.c.bf16 %v588_v16, %v588_v16  ;;  %1204 = vst.msk [vmem:[#allocation3 + $0xa4] sm:$0xf] %vm1014_vm2, %v1148_v6  ;;  %v1150_v54 = vld [vmem:[#allocation2 + $0xac] sm:$0xf] }
 0x125   : > { %1937 = vrot.lane.b32.xlu1 %v1762_v37, %s7840_s22  ;;  %v771_v18 = vadd.f32 %v770_v55, %v769_v31  ;;  %v7609_v34 = vor.u32 %v7608_v42, %v7607_v14  ;;  %v7614_v0 = vcvt.s32.f32 %v7613_v15  ;;  %v7616_v46 = vand.u32 2147483648, %v9248_v57  ;;  %v9296_v15 = vld [vmem:[%s7947_s19 + $0x1b8] sm:$0xff]  ;;  %1206 = vst.msk [vmem:[#allocation3 + $0xac] sm:$0xf] %vm1014_vm2, %v1150_v54  ;;  %s9306_s19 = scalar_lea.vmem %s11491_s3, %s6882_s20  ;;  %v9328_v54 = vpop.permute.xlu1 %1893  ;;  %s7842_s20 = smov 12  }
 0x126   : > { %v1268_v24 = vld [vmem:[#allocation2 + $0xc4] sm:$0xf]  ;;  %v1767_v63 = vrot.slane %v1766_v49, 4  ;;  %1066 = vst.msk [vmem:[#allocation2 + $0xcc] sm:$0xf] %vm1014_vm2, %v7072_v27  ;;  %vm9280_vm5 = vcmp.lt.f32.partialorder %v7611_v36, 8388608.0  ;;  %v7621_v12 = vcvt.f32.s32 %v9254_v40 }
 0x127   : > { %v7619_v10 = vand.u32 2147483647, %v9254_v40  ;;  %v1769_v39 = vshll.u32 %v1268_v24, 16  ;;  %v1773_v56 = vshrl.u32 %v1268_v24, 16  ;;  %v7610_v55 = vsel %vm9259_vm3, %v7609_v34, %v9191_v41  ;;  %v1149_v41 = vld [vmem:[#allocation2 + $0xa8] sm:$0xf] }
 0x128   : > { %v1269_v20 = vld [vmem:[#allocation2 + $0xc8] sm:$0xf]  ;;  %v772_v42 = vsel %vm670_vm4, %v665_v38, 0.0  ;;  %v589_v3 = vmul.f32 %v8982_v4, %v7610_v55  ;;  %v7615_v33 = vand.u32 2147483647, %v7614_v0  ;;  %v7622_v14 = vcvt.s32.f32 %v7621_v12  ;;  %v9308_v0 = vpop.permute.xlu0 %1891 }
 0x129   : > { %v1779_v1 = vshll.u32 %v1269_v20, 16  ;;  %v1783_v31 = vshrl.u32 %v1269_v20, 16  ;;  %v1771_v62 = vrot.slane %v1769_v39, 5  ;;  %v1775_v16 = vrot.slane %v1773_v56, 4  ;;  %1205 = vst.msk [vmem:[#allocation3 + $0xa8] sm:$0xf] %vm1014_vm2, %v1149_v41 }
 0x12a   : > { %v7624_v36 = vand.u32 2147483648, %v9254_v40  ;;  %v666_v37 = vsub.f32 %v9177_v43, %v589_v3  ;;  %v7073_v49 = vpack.c.bf16 %v589_v3, %v589_v3  ;;  %v7617_v8 = vor.u32 %v7616_v46, %v7615_v33  ;;  %v1151_v20 = vld [vmem:[#allocation2 + $0xb0] sm:$0xf]  ;;  %v404_v33 = vld [vmem:[%s9306_s19] sm:$0xff]  ;;  %2023 = vst.msk [vmem:[#allocation3 + $0x2c] sm:$0xf] %vm2011_vm8, %v9079_v19 }
 0x12b   : > { %v1781_v44 = vrot.slane %v1779_v1, 5  ;;  %v1785_v38 = vrot.slane %v1783_v31, 4  ;;  %v1776_v27 = vor.u32 %v1775_v16, %v1771_v62  ;;  %v1772_v6 = vsel %vm8095_vm11, %v1767_v63, %v1771_v62  ;;  %v1152_v63 = vld [vmem:[#allocation2 + $0xb4] sm:$0xf]  ;;  %1207 = vst.msk [vmem:[#allocation3 + $0xb0] sm:$0xf] %vm1014_vm2, %v1151_v20 }
 0x12c   : > { %v7623_v34 = vand.u32 2147483647, %v7622_v14  ;;  %1939 = vrot.lane.b32.xlu0 %v1772_v6, %s7840_s22  ;;  %1067 = vst.msk [vmem:[#allocation2 + $0xd0] sm:$0xf] %vm1014_vm2, %v7073_v49  ;;  %v773_v43 = vadd.f32 %v772_v42, %v771_v18  ;;  %vm9312_vm6 = vcmp.lt.f32.partialorder %v7619_v10, 8388608.0  ;;  %v9318_v46 = vmul.f32 %v8936_v29, %v9296_v15 }
 0x12d   : > { %v1786_v24 = vor.u32 %v1785_v38, %v1781_v44  ;;  %v1777_v39 = vrot.slane %v1776_v27, 4  ;;  %v774_v56 = vsel %vm670_vm4, %v666_v37, 0.0  ;;  %v1270_v55 = vld [vmem:[#allocation2 + $0xcc] sm:$0xf]  ;;  %v7618_v18 = vsel %vm9280_vm5, %v7617_v8, %v9248_v57  ;;  %1208 = vst.msk [vmem:[#allocation3 + $0xb4] sm:$0xf] %vm1014_vm2, %v1152_v63  ;;  %v9344_v8 = vpop.permute.xlu0 %1895 }
 0x12e   : > { %v7625_v42 = vor.u32 %v7624_v36, %v7623_v34  ;;  %v1789_v10 = vshll.u32 %v1270_v55, 16  ;;  %v1793_v1 = vshrl.u32 %v1270_v55, 16  ;;  %v590_v3 = vmul.f32 %v8982_v4, %v7618_v18  ;;  %v1154_v49 = vld [vmem:[#allocation2 + $0xbc] sm:$0xf]  ;;  %v1153_v38 = vld [vmem:[#allocation2 + $0xb8] sm:$0xf] }
 0x12f   : > { %v1787_v31 = vrot.slane %v1786_v24, 4  ;;  %v1782_v62 = vsel %vm8095_vm11, %v1777_v39, %v1781_v44  ;;  %v7627_v50 = vand.u32 2147483647, %v9318_v46  ;;  %v7629_v16 = vcvt.f32.s32 %v9318_v46  ;;  %1210 = vst.msk [vmem:[#allocation3 + $0xbc] sm:$0xf] %vm1014_vm2, %v1154_v49 }
 0x130   : > { %v7626_v57 = vsel %vm9312_vm6, %v7625_v42, %v9254_v40  ;;  %1941 = vrot.lane.b32.xlu1 %v1782_v62, %s7840_s22  ;;  %v1791_v14 = vrot.slane %v1789_v10, 5  ;;  %v1795_v36 = vrot.slane %v1793_v1, 4  ;;  %v667_v37 = vsub.f32 %v9226_v59, %v590_v3  ;;  %1209 = vst.msk [vmem:[#allocation3 + $0xb8] sm:$0xf] %vm1014_vm2, %v1153_v38  ;;  %v2070_v10 = vld [vmem:[#allocation2 + $0x8] sm:$0xf] }
 0x131   : > { %v591_v41 = vmul.f32 %v8982_v4, %v7626_v57  ;;  %v7074_v27 = vpack.c.bf16 %v590_v3, %v590_v3  ;;  %v7630_v44 = vcvt.s32.f32 %v7629_v16  ;;  %v7632_v6 = vand.u32 2147483648, %v9318_v46  ;;  %2022 = vst.msk [vmem:[#allocation3 + $0x28] sm:$0xf] %vm2011_vm8, %v9062_v26  ;;  %2025 = vst.msk [vmem:[#allocation3 + $0x34] sm:$0xf] %vm2011_vm8, %v9106_v28 }
 0x132   : > { %v9342_v40 = vmul.f32 %v8936_v29, %v404_v33  ;;  %v1796_v34 = vor.u32 %v1795_v36, %v1791_v14  ;;  %v775_v24 = vadd.f32 %v774_v56, %v773_v43  ;;  %v1792_v59 = vsel %vm8095_vm11, %v1787_v31, %v1791_v14  ;;  %v1898_v43 = vpop.permute.xlu1 %1897  ;;  %v1156_v56 = vld [vmem:[#allocation2 + $0xc4] sm:$0xf]  ;;  %v1155_v31 = vld [vmem:[#allocation2 + $0xc0] sm:$0xf]  ;;  %2024 = vst.msk [vmem:[#allocation3 + $0x30] sm:$0xf] %vm2011_vm8, %v9094_v21 }
 0x133   : > { %v1271_v12 = vld [vmem:[#allocation2 + $0xd0] sm:$0xf]  ;;  %1943 = vrot.lane.b32.xlu0 %v1792_v59, %s7840_s22  ;;  %v668_v63 = vsub.f32 %v9229_v2, %v591_v41  ;;  %v776_v20 = vsel %vm670_vm4, %v667_v37, 0.0  ;;  %v7075_v29 = vpack.c.bf16 %v591_v41, %v591_v41  ;;  %1068 = vst.msk [vmem:[#allocation2 + $0xd4] sm:$0xf] %vm1014_vm2, %v7074_v27  ;;  %vm9354_vm7 = vcmp.lt.f32.partialorder %v7627_v50, 8388608.0  ;;  %v1900_v41 = vpop.permute.xlu0 %1899 }
 0x134   : > { %v7631_v39 = vand.u32 2147483647, %v7630_v44  ;;  %v1797_v55 = vrot.slane %v1796_v34, 4  ;;  %v1799_v18 = vshll.u32 %v1271_v12, 16  ;;  %v1803_v42 = vshrl.u32 %v1271_v12, 16 }
 0x135   : > { %1069 = vst.msk [vmem:[#allocation2 + $0xd8] sm:$0xf] %vm1014_vm2, %v7075_v29  ;;  %v7637_v2 = vcvt.f32.s32 %v9342_v40  ;;  %1212 = vst.msk [vmem:[#allocation3 + $0xc4] sm:$0xf] %vm1014_vm2, %v1156_v56  ;;  %v777_v33 = vadd.f32 %v776_v20, %v775_v24  ;;  %v7635_v57 = vand.u32 2147483647, %v9342_v40 }
 0x136   : > { %v7633_v1 = vor.u32 %v7632_v6, %v7631_v39  ;;  %v1801_v3 = vrot.slane %v1799_v18, 5  ;;  %v1805_v62 = vrot.slane %v1803_v42, 4  ;;  %1211 = vst.msk [vmem:[#allocation3 + $0xc0] sm:$0xf] %vm1014_vm2, %v1155_v31  ;;  %v778_v50 = vsel %vm670_vm4, %v668_v63, 0.0 }
 0x137   : > { %v7638_v14 = vcvt.s32.f32 %v7637_v2  ;;  %v7640_v36 = vand.u32 2147483648, %v9342_v40  ;;  %v1158_v27 = vld [vmem:[#allocation2 + $0xcc] sm:$0xf]  ;;  %v1157_v44 = vld [vmem:[#allocation2 + $0xc8] sm:$0xf]  ;;  %v779_v34 = vadd.f32 %v778_v50, %v777_v33  ;;  %vm9374_vm9 = vcmp.lt.f32.partialorder %v7635_v57, 8388608.0 }
 0x138   : > { %v7634_v16 = vsel %vm9354_vm7, %v7633_v1, %v9318_v46  ;;  %v1802_v37 = vsel %vm8095_vm11, %v1797_v55, %v1801_v3  ;;  %v1806_v49 = vor.u32 %v1805_v62, %v1801_v3  ;;  %1214 = vst.msk [vmem:[#allocation3 + $0xcc] sm:$0xf] %vm1014_vm2, %v1158_v27  ;;  %1213 = vst.msk [vmem:[#allocation3 + $0xc8] sm:$0xf] %vm1014_vm2, %v1157_v44  ;;  %vm2182_vm10 = vcmask 1042432  }
 0x139   : > { %v592_v38 = vmul.f32 %v8982_v4, %v7634_v16  ;;  %1945 = vrot.lane.b32.xlu1 %v1802_v37, %s7840_s22  ;;  %v7639_v6 = vand.u32 2147483647, %v7638_v14  ;;  %2027 = vst.msk [vmem:[#allocation3 + $0x3c] sm:$0xf] %vm2011_vm8, %v9153_v32  ;;  %2026 = vst.msk [vmem:[#allocation3 + $0x38] sm:$0xf] %vm2011_vm8, %v9132_v5 }
 0x13a   : > { %v1272_v46 = vld [vmem:[#allocation2 + $0xd4] sm:$0xf]  ;;  %2029 = vst.msk [vmem:[#allocation3 + $0x44] sm:$0xf] %vm2011_vm8, %v9181_v53  ;;  %2028 = vst.msk [vmem:[#allocation3 + $0x40] sm:$0xf] %vm2011_vm8, %v9169_v61  ;;  %v1902_v35 = vpop.permute.xlu1 %1901 }
 0x13b   : > { %v669_v59 = vsub.f32 %v9296_v15, %v592_v38  ;;  %v7076_v12 = vpack.c.bf16 %v592_v38, %v592_v38  ;;  %2031 = vst.msk [vmem:[#allocation3 + $0x4c] sm:$0xf] %vm2011_vm8, %v9214_v25  ;;  %2030 = vst.msk [vmem:[#allocation3 + $0x48] sm:$0xf] %vm2011_vm8, %v9196_v7  ;;  %v1809_v52 = vshll.u32 %v1272_v46, 16  ;;  %v1813_v23 = vshrl.u32 %v1272_v46, 16 }
 0x13c   : > { %2033 = vst.msk [vmem:[#allocation3 + $0x54] sm:$0xf] %vm2011_vm8, %v9256_v30  ;;  %2032 = vst.msk [vmem:[#allocation3 + $0x50] sm:$0xf] %vm2011_vm8, %v9238_v58  ;;  %v1807_v22 = vrot.slane %v1806_v49, 4  ;;  %v7641_v47 = vor.u32 %v7640_v36, %v7639_v6  ;;  %vm2183_vm12 = vcmask 1046532  }
 0x13d   : > { %2035 = vst.msk [vmem:[#allocation3 + $0x5c] sm:$0xf] %vm2011_vm8, %v9292_v45  ;;  %2034 = vst.msk [vmem:[#allocation3 + $0x58] sm:$0xf] %vm2011_vm8, %v9275_v9  ;;  %v1273_v17 = vld [vmem:[#allocation2 + $0xd8] sm:$0xf] }
 0x13e   : > { %2037 = vst.msk [vmem:[#allocation3 + $0x64] sm:$0xf] %vm2011_vm8, %v9328_v54  ;;  %2036 = vst.msk [vmem:[#allocation3 + $0x60] sm:$0xf] %vm2011_vm8, %v9308_v0  ;;  %v780_v11 = vsel %vm670_vm4, %v669_v59, 0.0  ;;  %v1811_v60 = vrot.slane %v1809_v52, 5  ;;  %v7642_v19 = vsel %vm9374_vm9, %v7641_v47, %v9342_v40 }
 0x13f   : > { %2039 = vst.msk [vmem:[#allocation3 + $0x6c] sm:$0xf] %vm2011_vm8, %v1898_v43  ;;  %2038 = vst.msk [vmem:[#allocation3 + $0x68] sm:$0xf] %vm2011_vm8, %v9344_v8  ;;  %v1815_v51 = vrot.slane %v1813_v23, 4  ;;  %v1819_v48 = vshll.u32 %v1273_v17, 16  ;;  %v781_v21 = vadd.f32 %v780_v11, %v779_v34  ;;  %v607_v7 = vmul.f32 %v8982_v4, %v7642_v19  ;;  %v1904_v25 = vpop.permute.xlu0 %1903 }
 0x140   : > { %2040 = vst.msk [vmem:[#allocation3 + $0x70] sm:$0xf] %vm2011_vm8, %v1900_v41  ;;  %2041 = vst.msk [vmem:[#allocation3 + $0x74] sm:$0xf] %vm2011_vm8, %v1902_v35  ;;  %v1823_v26 = vshrl.u32 %v1273_v17, 16  ;;  %v1812_v53 = vsel %vm8095_vm11, %v1807_v22, %v1811_v60  ;;  %v2190_v50 = vrot.slane %v2070_v10, 5 }
 0x141   : > { %1070 = vst.msk [vmem:[#allocation2 + $0xdc] sm:$0xf] %vm1014_vm2, %v7076_v12  ;;  %v1160_v28 = vld [vmem:[#allocation2 + $0xd4] sm:$0xf]  ;;  %v1159_v5 = vld [vmem:[#allocation2 + $0xd0] sm:$0xf]  ;;  %v1816_v32 = vor.u32 %v1815_v51, %v1811_v60  ;;  %1947 = vrot.lane.b32.xlu0 %v1812_v53, %s7840_s22  ;;  %v7077_v45 = vpack.c.bf16 %v607_v7, %v607_v7  ;;  %vm9463_vm13 = vmor %vm2182_vm10, %vm2183_vm12 }
 0x142   : > { %v1821_v61 = vrot.slane %v1819_v48, 5  ;;  %1216 = vst.msk [vmem:[#allocation3 + $0xd4] sm:$0xf] %vm1014_vm2, %v1160_v28  ;;  %1215 = vst.msk [vmem:[#allocation3 + $0xd0] sm:$0xf] %vm1014_vm2, %v1159_v5  ;;  %v782_v58 = vrot.slane %v781_v21, 4  ;;  %v1906_v40 = vpop.permute.xlu1 %1905 }
 0x143   : > { %v1825_v30 = vrot.slane %v1823_v26, 4  ;;  %2042 = vst.msk [vmem:[#allocation3 + $0x78] sm:$0xf] %vm2011_vm8, %v1904_v25  ;;  %v1817_v9 = vrot.slane %v1816_v32, 4  ;;  %v1161_v15 = vld [vmem:[#allocation2 + $0xd8] sm:$0xf] }
 0x144   : > { %v783_v0 = vadd.f32 %v782_v58, %v781_v21  ;;  %v2069_v4 = vld [vmem:[#allocation2 + $0x4] sm:$0xf]  ;;  %1217 = vst.msk [vmem:[#allocation3 + $0xd8] sm:$0xf] %vm1014_vm2, %v1161_v15  ;;  %1100 = vst.msk [vmem:[#allocation2 + $0xe0] sm:$0xf] %vm1014_vm2, %v7077_v45 }
 0x145   : > { %v1826_v54 = vor.u32 %v1825_v30, %v1821_v61  ;;  %v1822_v8 = vsel %vm8095_vm11, %v1817_v9, %v1821_v61  ;;  %v2068_v20 = vld [vmem:[#allocation2] sm:$0xe]  ;;  %2043 = vst.msk [vmem:[#allocation3 + $0x7c] sm:$0xf] %vm2011_vm8, %v1906_v40  ;;  %v2187_v3 = vrot.slane %v2069_v4, 5  ;;  %v2192_v38 = vrot.slane %v2190_v50, 4 }
 0x146   : > { %1949 = vrot.lane.b32.xlu1 %v1822_v8, %s7840_s22  ;;  %v784_v55 = vrot.slane %v783_v0, 2  ;;  %v6949_v2 = vrot.slane %v2068_v20, 9  ;;  %v2071_v16 = vld [vmem:[#allocation2 + $0xc] sm:$0xf]  ;;  %v2072_v14 = vld [vmem:[#allocation2 + $0x10] sm:$0xf] }
 0x147   : > { %v1827_v18 = vrot.slane %v1826_v54, 4  ;;  %v2193_v46 = vrot.slane %v2071_v16, 5  ;;  %v2196_v34 = vrot.slane %v2072_v14, 5  ;;  %v2189_v59 = vrot.slane %v2187_v3, 4  ;;  %v2073_v12 = vld [vmem:[#allocation2 + $0x14] sm:$0xf] }
 0x148   : > { %v1274_v63 = vld [vmem:[#allocation2 + $0xdc] sm:$0xf]  ;;  %v785_v1 = vadd.f32 %v784_v55, %v783_v0  ;;  %v2188_v49 = vsel %vm9463_vm13, %v6949_v2, %v2187_v3  ;;  %v2074_v35 = vld [vmem:[#allocation2 + $0x18] sm:$0xf]  ;;  %v2199_v17 = vrot.slane %v2073_v12, 5  ;;  %vm2522_vm15 = vcmask 93248  }
 0x149   : > { %v1829_v29 = vshll.u32 %v1274_v63, 16  ;;  %v1833_v39 = vshrl.u32 %v1274_v63, 16  ;;  %v1162_v42 = vld [vmem:[#allocation2 + $0xdc] sm:$0xf]  ;;  %v1908_v36 = vpop.permute.xlu0 %1907  ;;  %v2194_v23 = vsel %vm9463_vm13, %v2192_v38, %v2193_v46  ;;  %v2198_v22 = vrot.slane %v2196_v34, 4 }
 0x14a   : > { %1218 = vst.msk [vmem:[#allocation3 + $0xdc] sm:$0xf] %vm1014_vm2, %v1162_v42  ;;  %v786_v62 = vrot.slane %v785_v1, 1  ;;  %v2202_v11 = vrot.slane %v2074_v35, 5  ;;  %v2191_v60 = vsel %vm9463_vm13, %v2189_v59, %v2190_v50  ;;  %v2195_v51 = vrot.slane %v2193_v46, 4 }
 0x14b   : > { %v1831_v43 = vrot.slane %v1829_v29, 5  ;;  %v1835_v56 = vrot.slane %v1833_v39, 4  ;;  %v1275_v41 = vld [vmem:[#allocation2 + $0xe0] sm:$0x1]  ;;  %2044 = vst.msk [vmem:[#allocation3 + $0x80] sm:$0xf] %vm2011_vm8, %v1908_v36  ;;  %v2200_v19 = vsel %vm9463_vm13, %v2198_v22, %v2199_v17 }
 0x14c   : > { %v787_v37 = vadd.f32 %v786_v62, %v785_v1  ;;  %v1839_v44 = vshll.u32 %v1275_v41, 16  ;;  %v2075_v48 = vld [vmem:[#allocation2 + $0x1c] sm:$0xf]  ;;  %v2076_v26 = vld [vmem:[#allocation2 + $0x20] sm:$0xf]  ;;  %v2204_v21 = vrot.slane %v2202_v11, 4  ;;  %v2197_v61 = vsel %vm9463_vm13, %v2195_v51, %v2196_v34 }
 0x14d   : > { %v1836_v33 = vor.u32 %v1835_v56, %v1831_v43  ;;  %v1832_v57 = vsel %vm8095_vm11, %v1827_v18, %v1831_v43  ;;  %v1910_v52 = vpop.permute.xlu1 %1909  ;;  %v2205_v5 = vrot.slane %v2075_v48, 5  ;;  %v2208_v32 = vrot.slane %v2076_v26, 5  ;;  %v2077_v7 = vld [vmem:[#allocation2 + $0x24] sm:$0xf]  ;;  %v2078_v25 = vld [vmem:[#allocation2 + $0x28] sm:$0xf] }
 0x14e   : > { %1951 = vrot.lane.b32.xlu0 %v1832_v57, %s7840_s22  ;;  %v788_v6 = vmul.f32 0.125, %v787_v37  ;;  %v1841_v24 = vrot.slane %v1839_v44, 5  ;;  %2045 = vst.msk [vmem:[#allocation3 + $0x84] sm:$0xf] %vm2011_vm8, %v1910_v52  ;;  %v2201_v53 = vrot.slane %v2199_v17, 4  ;;  %v2211_v9 = vrot.slane %v2077_v7, 5 }
 0x14f   : > { %v1837_v27 = vrot.slane %v1836_v33, 4  ;;  %v2206_v58 = vsel %vm9463_vm13, %v2204_v21, %v2205_v5  ;;  %v2210_v30 = vrot.slane %v2208_v32, 4  ;;  %v2214_v45 = vrot.slane %v2078_v25, 5  ;;  %v2079_v54 = vld [vmem:[#allocation2 + $0x2c] sm:$0xf] }
 0x150   : > { %789 = vst.msk [vmem:[%s346_s14] sm:$0xff] %vm670_vm4, %v788_v6  ;;  %v2203_v15 = vsel %vm9463_vm13, %v2201_v53, %v2202_v11  ;;  %v2207_v0 = vrot.slane %v2205_v5, 4  ;;  %v2080_v4 = vld [vmem:[#allocation2 + $0x30] sm:$0xf]  ;;  %v2217_v20 = vrot.slane %v2079_v54, 5  ;;  %v2213_v55 = vrot.slane %v2211_v9, 4 }
 0x151   : > { %v1842_v47 = vsel %vm8095_vm11, %v1837_v27, %v1841_v24  ;;  %v2212_v8 = vsel %vm9463_vm13, %v2210_v30, %v2211_v9  ;;  %v2216_v63 = vrot.slane %v2214_v45, 4  ;;  %v2220_v29 = vrot.slane %v2080_v4, 5  ;;  %v2081_v18 = vld [vmem:[#allocation2 + $0x34] sm:$0xf]  ;;  %v2082_v42 = vld [vmem:[#allocation2 + $0x38] sm:$0xf] }
 0x152   : > { %2354 = vrot.lane.b32.xlu0 %v2188_v49, %s7841_s15  ;;  %1953 = vrot.lane.b32.xlu1 %v1842_v47, %s7840_s22  ;;  %v1912_v28 = vpop.permute.xlu0 %1911  ;;  %v2209_v39 = vsel %vm9463_vm13, %v2207_v0, %v2208_v32  ;;  %v2223_v1 = vrot.slane %v2081_v18, 5  ;;  %v2226_v2 = vrot.slane %v2082_v42, 5  ;;  %v2215_v3 = vsel %vm9463_vm13, %v2213_v55, %v2214_v45  ;;  %v2083_v62 = vld [vmem:[#allocation2 + $0x3c] sm:$0xf]  ;;  %v2084_v57 = vld [vmem:[#allocation2 + $0x40] sm:$0xf] }
 0x153   : > { %2046 = vst.msk [vmem:[#allocation3 + $0x88] sm:$0xf] %vm2011_vm8, %v1912_v28  ;;  %v2218_v43 = vsel %vm9463_vm13, %v2216_v63, %v2217_v20  ;;  %v2222_v56 = vrot.slane %v2220_v29, 4  ;;  %v2219_v33 = vrot.slane %v2217_v20, 4  ;;  %v2229_v36 = vrot.slane %v2083_v62, 5  ;;  %s7847_s14 = smov 32  }
 0x154   : > { %v2228_v14 = vrot.slane %v2226_v2, 4  ;;  %v2232_v41 = vrot.slane %v2084_v57, 5  ;;  %v2225_v49 = vrot.slane %v2223_v1, 4  ;;  %v2085_v38 = vld [vmem:[#allocation2 + $0x44] sm:$0xf]  ;;  %vm2859_vm1 = vcmask 126048  }
 0x155   : > { %v2224_v16 = vsel %vm9463_vm13, %v2222_v56, %v2223_v1  ;;  %v2221_v37 = vsel %vm9463_vm13, %v2219_v33, %v2220_v29  ;;  %v2086_v27 = vld [vmem:[#allocation2 + $0x48] sm:$0xf]  ;;  %v2235_v34 = vrot.slane %v2085_v38, 5  ;;  %v2231_v12 = vrot.slane %v2229_v36, 4  ;;  %v2087_v35 = vld [vmem:[#allocation2 + $0x4c] sm:$0xf] }
 0x156   : > { %2358 = vrot.lane.b32.xlu0 %v2194_v23, %s7841_s15  ;;  %2356 = vrot.lane.b32.xlu1 %v2191_v60, %s7841_s15  ;;  %v2230_v44 = vsel %vm9463_vm13, %v2228_v14, %v2229_v36  ;;  %v2234_v6 = vrot.slane %v2232_v41, 4  ;;  %v2238_v24 = vrot.slane %v2086_v27, 5  ;;  %v2227_v59 = vsel %vm9463_vm13, %v2225_v49, %v2226_v2  ;;  %v2088_v52 = vld [vmem:[#allocation2 + $0x50] sm:$0xf]  ;;  %v2089_v48 = vld [vmem:[#allocation2 + $0x54] sm:$0xf] }
 0x157   : > { %v2241_v17 = vrot.slane %v2087_v35, 5  ;;  %v2244_v11 = vrot.slane %v2088_v52, 5  ;;  %v2233_v60 = vsel %vm9463_vm13, %v2231_v12, %v2232_v41  ;;  %v2237_v51 = vrot.slane %v2235_v34, 4  ;;  %v2090_v26 = vld [vmem:[#allocation2 + $0x58] sm:$0xf]  ;;  %s7084_s22 = smul.u32 7168, %s7911_s28 }
 0x158   : > { %v2236_v23 = vsel %vm9463_vm13, %v2234_v6, %v2235_v34  ;;  %v2240_v22 = vrot.slane %v2238_v24, 4  ;;  %v2247_v28 = vrot.slane %v2089_v48, 5  ;;  %v2250_v5 = vrot.slane %v2090_v26, 5  ;;  %v2091_v53 = vld [vmem:[#allocation2 + $0x5c] sm:$0xf] }
 0x159   : > { %v1914_v40 = vpop.permute.xlu1 %1913  ;;  %v2246_v21 = vrot.slane %v2244_v11, 4  ;;  %v2239_v32 = vsel %vm9463_vm13, %v2237_v51, %v2238_v24  ;;  %v2092_v7 = vld [vmem:[#allocation2 + $0x60] sm:$0xf]  ;;  %v2253_v9 = vrot.slane %v2091_v53, 5  ;;  %v2093_v54 = vld [vmem:[#allocation2 + $0x64] sm:$0xf] }
 0x15a   : > { %2362 = vrot.lane.b32.xlu0 %v2200_v19, %s7841_s15  ;;  %2360 = vrot.lane.b32.xlu1 %v2197_v61, %s7841_s15  ;;  %2047 = vst.msk [vmem:[#allocation3 + $0x8c] sm:$0xf] %vm2011_vm8, %v1914_v40  ;;  %v2242_v19 = vsel %vm9463_vm13, %v2240_v22, %v2241_v17  ;;  %v2243_v61 = vrot.slane %v2241_v17, 4  ;;  %v2252_v30 = vrot.slane %v2250_v5, 4  ;;  %v2256_v45 = vrot.slane %v2092_v7, 5 }
 0x15b   : > { %v2249_v0 = vrot.slane %v2247_v28, 4  ;;  %v2094_v4 = vld [vmem:[#allocation2 + $0x68] sm:$0xf]  ;;  %v2259_v63 = vrot.slane %v2093_v54, 5  ;;  %v2255_v55 = vrot.slane %v2253_v9, 4  ;;  %vm3705_vm3 = vcmask 158848  }
 0x15c   : > { %v2254_v40 = vsel %vm9463_vm13, %v2252_v30, %v2253_v9  ;;  %v2262_v20 = vrot.slane %v2094_v4, 5  ;;  %v2095_v18 = vld [vmem:[#allocation2 + $0x6c] sm:$0xf]  ;;  %v2096_v42 = vld [vmem:[#allocation2 + $0x70] sm:$0xf]  ;;  %vm4213_vm5 = vcmask 191648  }
 0x15d   : > { %v2265_v56 = vrot.slane %v2095_v18, 5  ;;  %v2268_v1 = vrot.slane %v2096_v42, 5  ;;  %v2261_v33 = vrot.slane %v2259_v63, 4  ;;  %v2097_v62 = vld [vmem:[#allocation2 + $0x74] sm:$0xf]  ;;  %vm6262_vm6 = vcmask 1041408  }
 0x15e   : > { %2366 = vrot.lane.b32.xlu0 %v2206_v58, %s7841_s15  ;;  %2364 = vrot.lane.b32.xlu1 %v2203_v15, %s7841_s15  ;;  %v1916_v10 = vpop.permute.xlu0 %1915  ;;  %v2248_v58 = vsel %vm9463_vm13, %v2246_v21, %v2247_v28  ;;  %v2245_v15 = vsel %vm9463_vm13, %v2243_v61, %v2244_v11  ;;  %v2098_v57 = vld [vmem:[#allocation2 + $0x78] sm:$0xf]  ;;  %v2271_v14 = vrot.slane %v2097_v62, 5  ;;  %v2099_v38 = vld [vmem:[#allocation2 + $0x7c] sm:$0xf]  ;;  %vm4550_vm7 = vcmask 224448  }
 0x15f   : > { %2048 = vst.msk [vmem:[#allocation3 + $0x90] sm:$0xf] %vm2011_vm8, %v1916_v10  ;;  %v2274_v36 = vrot.slane %v2098_v57, 5  ;;  %v2267_v49 = vrot.slane %v2265_v56, 4  ;;  %v2100_v27 = vld [vmem:[#allocation2 + $0x80] sm:$0xf] }
 0x160   : > { %v2280_v34 = vrot.slane %v2100_v27, 5  ;;  %v2101_v12 = vld [vmem:[#allocation2 + $0x84] sm:$0xf]  ;;  %v2102_v35 = vld [vmem:[#allocation2 + $0x88] sm:$0xf]  ;;  %vm5904_vm9 = vcmask 290048  }
 0x161   : > { %v2276_v6 = vrot.slane %v2274_v36, 4  ;;  %v2269_v24 = vsel %vm9463_vm13, %v2267_v49, %v2268_v1  ;;  %v2283_v22 = vrot.slane %v2101_v12, 5  ;;  %v2104_v51 = vld [vmem:[#allocation2 + $0x90] sm:$0xf]  ;;  %v2105_v61 = vld [vmem:[#allocation2 + $0x94] sm:$0xf] }
 0x162   : > { %2370 = vrot.lane.b32.xlu0 %v2212_v8, %s7841_s15  ;;  %2368 = vrot.lane.b32.xlu1 %v2209_v39, %s7841_s15  ;;  %v1918_v50 = vpop.permute.xlu1 %1917  ;;  %v2258_v8 = vrot.slane %v2256_v45, 4  ;;  %v2251_v39 = vsel %vm9463_vm13, %v2249_v0, %v2250_v5  ;;  %v2292_v28 = vrot.slane %v2104_v51, 5  ;;  %v2106_v53 = vld [vmem:[#allocation2 + $0x98] sm:$0xf]  ;;  %v2295_v30 = vrot.slane %v2105_v61, 5 }
 0x163   : > { %2049 = vst.msk [vmem:[#allocation3 + $0x94] sm:$0xf] %vm2011_vm8, %v1918_v50  ;;  %v2298_v9 = vrot.slane %v2106_v53, 5  ;;  %v2107_v54 = vld [vmem:[#allocation2 + $0x9c] sm:$0xf]  ;;  %vm6177_vm10 = vcmask 293888  }
 0x164   : > { %v2260_v10 = vsel %vm9463_vm13, %v2258_v8, %v2259_v63  ;;  %v2108_v4 = vld [vmem:[#allocation2 + $0xa0] sm:$0xf]  ;;  %v2301_v63 = vrot.slane %v2107_v54, 5  ;;  %v2110_v18 = vld [vmem:[#allocation2 + $0xa8] sm:$0xf] }
 0x165   : > { %v2300_v8 = vrot.slane %v2298_v9, 4  ;;  %v2111_v57 = vld [vmem:[#allocation2 + $0xac] sm:$0xf] }
 0x166   : > { %2374 = vrot.lane.b32.xlu0 %v2218_v43, %s7841_s15  ;;  %2372 = vrot.lane.b32.xlu1 %v2215_v3, %s7841_s15  ;;  %v2264_v43 = vrot.slane %v2262_v20, 4  ;;  %v2257_v3 = vsel %vm9463_vm13, %v2255_v55, %v2256_v45  ;;  %v2109_v55 = vld [vmem:[#allocation2 + $0xa4] sm:$0xf]  ;;  %v2303_v62 = vrot.slane %v2301_v63, 4  ;;  %v2313_v27 = vrot.slane %v2111_v57, 5 }
 0x167   : > { %v1920_v46 = vpop.permute.xlu0 %1919  ;;  %v2302_v42 = vsel %vm9463_vm13, %v2300_v8, %v2301_v63  ;;  %v9652_v63 = vld [vmem:[%s11488_s0] ss:$0 sm:$0xff] }
 0x168   : > { %2050 = vst.msk [vmem:[#allocation3 + $0x98] sm:$0xf] %vm2011_vm8, %v1920_v46  ;;  %v2266_v50 = vsel %vm9463_vm13, %v2264_v43, %v2265_v56  ;;  %v2277_v46 = vrot.slane %v2099_v38, 5  ;;  %v2307_v56 = vrot.slane %v2109_v55, 5 }
 0x16a   : > { %2378 = vrot.lane.b32.xlu0 %v2224_v16, %s7841_s15  ;;  %2376 = vrot.lane.b32.xlu1 %v2221_v37, %s7841_s15  ;;  %v2270_v16 = vrot.slane %v2268_v1, 4  ;;  %v2263_v37 = vsel %vm9463_vm13, %v2261_v33, %v2262_v20  ;;  %v2278_v52 = vsel %vm9463_vm13, %v2276_v6, %v2277_v46  ;;  %v2279_v11 = vrot.slane %v2277_v46, 4  ;;  %v2113_v6 = vld [vmem:[#allocation2 + $0xb4] sm:$0xf]  ;;  %v2114_v46 = vld [vmem:[#allocation2 + $0xb8] sm:$0xf] }
 0x16b   : > { %v1922_v47 = vpop.permute.xlu1 %1921  ;;  %v2304_v20 = vrot.slane %v2108_v4, 5  ;;  %v2310_v1 = vrot.slane %v2110_v18, 5  ;;  %v2117_v4 = vld [vmem:[#allocation2 + $0xc4] sm:$0xf] }
 0x16c   : > { %2051 = vst.msk [vmem:[#allocation3 + $0x9c] sm:$0xf] %vm2011_vm8, %v1922_v47  ;;  %v2286_v47 = vrot.slane %v2102_v35, 5  ;;  %v2281_v5 = vsel %vm9463_vm13, %v2279_v11, %v2280_v34 }
 0x16e   : > { %2382 = vrot.lane.b32.xlu0 %v2230_v44, %s7841_s15  ;;  %2380 = vrot.lane.b32.xlu1 %v2227_v59, %s7841_s15  ;;  %v2272_v44 = vsel %vm9463_vm13, %v2270_v16, %v2271_v14  ;;  %v2273_v59 = vrot.slane %v2271_v14, 4  ;;  %v2288_v26 = vrot.slane %v2286_v47, 4  ;;  %v9615_v16 = vld [vmem:[%s11489_s1] ss:$0 sm:$0xff] }
 0x170   : > { %v2275_v17 = vsel %vm9463_vm13, %v2273_v59, %v2274_v36 }
 0x172   : > { %2386 = vrot.lane.b32.xlu0 %v2236_v23, %s7841_s15  ;;  %2384 = vrot.lane.b32.xlu1 %v2233_v60, %s7841_s15  ;;  %v1924_v25 = vpop.permute.xlu0 %1923  ;;  %v2282_v23 = vrot.slane %v2280_v34, 4  ;;  %v2103_v60 = vld [vmem:[#allocation2 + $0x8c] sm:$0xf]  ;;  %v2305_v34 = vsel %vm9463_vm13, %v2303_v62, %v2304_v20 }
 0x173   : > { %2052 = vst.msk [vmem:[#allocation3 + $0xa0] sm:$0xf] %vm2011_vm8, %v1924_v25  ;;  %v2289_v21 = vrot.slane %v2103_v60, 5  ;;  %v2294_v25 = vrot.slane %v2292_v28, 4 }
 0x174   : > { %v2284_v48 = vsel %vm9463_vm13, %v2282_v23, %v2283_v22 }
 0x175   : > { %v2290_v7 = vsel %vm9463_vm13, %v2288_v26, %v2289_v21  ;;  %v2291_v0 = vrot.slane %v2289_v21, 4  ;;  %v2315_v21 = vrot.slane %v2313_v27, 4 }
 0x176   : > { %2390 = vrot.lane.b32.xlu0 %v2242_v19, %s7841_s15  ;;  %2388 = vrot.lane.b32.xlu1 %v2239_v32, %s7841_s15  ;;  %v2285_v32 = vrot.slane %v2283_v22, 4  ;;  %v2319_v22 = vrot.slane %v2113_v6, 5 }
 0x178   : > { %v1926_v29 = vpop.permute.xlu1 %1925  ;;  %v2321_v54 = vrot.slane %v2319_v22, 4 }
 0x179   : > { %2053 = vst.msk [vmem:[#allocation3 + $0xa4] sm:$0xf] %vm2011_vm8, %v1926_v29  ;;  %v2293_v29 = vsel %vm9463_vm13, %v2291_v0, %v2292_v28  ;;  %v2116_v28 = vld [vmem:[#allocation2 + $0xc0] sm:$0xf] }
 0x17a   : > { %2394 = vrot.lane.b32.xlu0 %v2248_v58, %s7841_s15  ;;  %2392 = vrot.lane.b32.xlu1 %v2245_v15, %s7841_s15  ;;  %v2287_v15 = vsel %vm9463_vm13, %v2285_v32, %v2286_v47  ;;  %v2322_v47 = vrot.slane %v2114_v46, 5 }
 0x17d   : > { %v1928_v2 = vpop.permute.xlu0 %1927 }
 0x17e   : > { %2398 = vrot.lane.b32.xlu0 %v2254_v40, %s7841_s15  ;;  %2396 = vrot.lane.b32.xlu1 %v2251_v39, %s7841_s15  ;;  %2054 = vst.msk [vmem:[#allocation3 + $0xa8] sm:$0xf] %vm2011_vm8, %v1928_v2  ;;  %v2296_v40 = vsel %vm9463_vm13, %v2294_v25, %v2295_v30  ;;  %v2297_v39 = vrot.slane %v2295_v30, 4  ;;  %v406_v2 = vld [vmem:[%s9306_s19 + $0x10] sm:$0xff] }
 0x17f   : > { %v595_v14 = vmul.f32 %v9615_v16, %v406_v2 }
 0x180   : > { %v2299_v33 = vsel %vm9463_vm13, %v2297_v39, %v2298_v9 }
 0x181   : > { %v1930_v41 = vpop.permute.xlu1 %1929  ;;  %v7653_v49 = vcvt.f32.s32 %v595_v14  ;;  %v7651_v60 = vand.u32 2147483647, %v595_v14  ;;  %v7656_v51 = vand.u32 2147483648, %v595_v14 }
 0x182   : > { %2402 = vrot.lane.b32.xlu0 %v2260_v10, %s7841_s15  ;;  %2400 = vrot.lane.b32.xlu1 %v2257_v3, %s7841_s15  ;;  %2055 = vst.msk [vmem:[#allocation3 + $0xac] sm:$0xf] %vm2011_vm8, %v1930_v41  ;;  %v2306_v10 = vrot.slane %v2304_v20, 4  ;;  %v405_v3 = vld [vmem:[%s9306_s19 + $0x8] sm:$0xff] }
 0x183   : > { %v594_v36 = vmul.f32 %v9615_v16, %v405_v3  ;;  %v7654_v59 = vcvt.s32.f32 %v7653_v49  ;;  %vm9634_vm4 = vcmp.lt.f32.partialorder %v7651_v60, 8388608.0  ;;  %v2119_v3 = vld [vmem:[#allocation2 + $0xcc] sm:$0xf]  ;;  %v2121_v49 = vld [vmem:[#allocation2 + $0xd4] sm:$0xf] }
 0x184   : > { %v2308_v41 = vsel %vm9463_vm13, %v2306_v10, %v2307_v56  ;;  %v2331_v10 = vrot.slane %v2117_v4, 5  ;;  %v2343_v6 = vrot.slane %v2121_v49, 5  ;;  %v2599_v49 = vld [vmem:[#allocation2 + $0x5c] sm:$0xf] }
 0x185   : > { %v7645_v38 = vcvt.f32.s32 %v594_v36  ;;  %v7655_v11 = vand.u32 2147483647, %v7654_v59  ;;  %v7648_v26 = vand.u32 2147483648, %v594_v36  ;;  %v2123_v59 = vld [vmem:[#allocation2 + $0xdc] sm:$0xf] }
 0x186   : > { %2406 = vrot.lane.b32.xlu0 %v2266_v50, %s7841_s15  ;;  %2404 = vrot.lane.b32.xlu1 %v2263_v37, %s7841_s15  ;;  %v2112_v50 = vld [vmem:[#allocation2 + $0xb0] sm:$0xf]  ;;  %v2312_v37 = vrot.slane %v2310_v1, 4 }
 0x187   : > { %v7646_v12 = vcvt.s32.f32 %v7645_v38  ;;  %v7657_v25 = vor.u32 %v7656_v51, %v7655_v11  ;;  %v2122_v38 = vld [vmem:[#allocation2 + $0xd8] sm:$0xf]  ;;  %v2124_v11 = vld [vmem:[#allocation2 + $0xe0] sm:$0x1] }
 0x188   : > { %v2314_v35 = vsel %vm9463_vm13, %v2312_v37, %v2313_v27  ;;  %v2333_v37 = vrot.slane %v2331_v10, 4  ;;  %v2346_v46 = vrot.slane %v2122_v38, 5 }
 0x189   : > { %v7647_v32 = vand.u32 2147483647, %v7646_v12 }
 0x18a   : > { %2410 = vrot.lane.b32.xlu0 %v2272_v44, %s7841_s15  ;;  %2408 = vrot.lane.b32.xlu1 %v2269_v24, %s7841_s15  ;;  %v1932_v19 = vpop.permute.xlu0 %1931  ;;  %v2316_v44 = vrot.slane %v2112_v50, 5  ;;  %v2309_v24 = vrot.slane %v2307_v56, 4 }
 0x18b   : > { %2056 = vst.msk [vmem:[#allocation3 + $0xb0] sm:$0xf] %vm2011_vm8, %v1932_v19  ;;  %v7649_v30 = vor.u32 %v7648_v26, %v7647_v32  ;;  %v2352_v26 = vrot.slane %v2124_v11, 5  ;;  %v2607_v11 = vld [vmem:[#allocation2 + $0x7c] sm:$0xf] }
 0x18c   : > { %v2311_v19 = vsel %vm9463_vm13, %v2309_v24, %v2310_v1  ;;  %v2317_v0 = vsel %vm9463_vm13, %v2315_v21, %v2316_v44  ;;  %v2323_v1 = vsel %vm9463_vm13, %v2321_v54, %v2322_v47  ;;  %v2587_v54 = vld [vmem:[#allocation2 + $0x2c] sm:$0xf] }
 0x18e   : > { %2414 = vrot.lane.b32.xlu0 %v2278_v52, %s7841_s15  ;;  %2412 = vrot.lane.b32.xlu1 %v2275_v17, %s7841_s15  ;;  %v1934_v58 = vpop.permute.xlu1 %1933  ;;  %v2318_v52 = vrot.slane %v2316_v44, 4  ;;  %v2115_v17 = vld [vmem:[#allocation2 + $0xbc] sm:$0xf] }
 0x18f   : > { %2057 = vst.msk [vmem:[#allocation3 + $0xb4] sm:$0xf] %vm2011_vm8, %v1934_v58  ;;  %v2325_v9 = vrot.slane %v2115_v17, 5  ;;  %v2582_v58 = vld [vmem:[#allocation2 + $0x18] sm:$0xf] }
 0x190   : > { %v1936_v45 = vpop.permute.xlu0 %1935  ;;  %v2320_v61 = vsel %vm9463_vm13, %v2318_v52, %v2319_v22  ;;  %v2348_v52 = vrot.slane %v2346_v46, 4 }
 0x191   : > { %2058 = vst.msk [vmem:[#allocation3 + $0xb8] sm:$0xf] %vm2011_vm8, %v1936_v45  ;;  %v2328_v45 = vrot.slane %v2116_v28, 5  ;;  %v2327_v2 = vrot.slane %v2325_v9, 4 }
 0x192   : > { %2418 = vrot.lane.b32.xlu0 %v2284_v48, %s7841_s15  ;;  %2416 = vrot.lane.b32.xlu1 %v2281_v5, %s7841_s15  ;;  %v7643_v48 = vand.u32 2147483647, %v594_v36  ;;  %v2324_v5 = vrot.slane %v2322_v47, 4  ;;  %v2345_v47 = vrot.slane %v2343_v6, 4 }
 0x193   : > { %v2330_v55 = vrot.slane %v2328_v45, 4 }
 0x194   : > { %vm9638_vm14 = vcmp.lt.f32.partialorder %v7643_v48, 8388608.0  ;;  %v2326_v39 = vsel %vm9463_vm13, %v2324_v5, %v2325_v9  ;;  %v2347_v51 = vsel %vm9463_vm13, %v2345_v47, %v2346_v46  ;;  %v2581_v5 = vld [vmem:[#allocation2 + $0x14] sm:$0xf]  ;;  %v2585_v9 = vld [vmem:[#allocation2 + $0x24] sm:$0xf] }
 0x195   : > { %v2332_v62 = vsel %vm9463_vm13, %v2330_v55, %v2331_v10  ;;  %v2590_v10 = vld [vmem:[#allocation2 + $0x38] sm:$0xf]  ;;  %v2604_v47 = vld [vmem:[#allocation2 + $0x70] sm:$0xf] }
 0x196   : > { %2422 = vrot.lane.b32.xlu0 %v2290_v7, %s7841_s15  ;;  %2420 = vrot.lane.b32.xlu1 %v2287_v15, %s7841_s15  ;;  %v7658_v15 = vsel %vm9634_vm4, %v7657_v25, %v595_v14  ;;  %v2337_v14 = vrot.slane %v2119_v3, 5  ;;  %v2583_v7 = vld [vmem:[#allocation2 + $0x1c] sm:$0xf] }
 0x197   : > { %v1938_v43 = vpop.permute.xlu1 %1937  ;;  %v609_v20 = vmul.f32 %v9652_v63, %v7658_v15  ;;  %v2584_v15 = vld [vmem:[#allocation2 + $0x20] sm:$0xf] }
 0x198   : > { %2059 = vst.msk [vmem:[#allocation3 + $0xbc] sm:$0xf] %vm2011_vm8, %v1938_v43  ;;  %v2339_v24 = vrot.slane %v2337_v14, 4 }
 0x19a   : > { %2426 = vrot.lane.b32.xlu0 %v2296_v40, %s7841_s15  ;;  %2424 = vrot.lane.b32.xlu1 %v2293_v29, %s7841_s15  ;;  %v2118_v40 = vld [vmem:[#allocation2 + $0xc8] sm:$0xf]  ;;  %v7650_v29 = vsel %vm9638_vm14, %v7649_v30, %v594_v36 }
 0x19b   : > { %v608_v18 = vmul.f32 %v9652_v63, %v7650_v29  ;;  %v2334_v43 = vrot.slane %v2118_v40, 5  ;;  %v2586_v40 = vld [vmem:[#allocation2 + $0x28] sm:$0xf] }
 0x19d   : > { %v7078_v56 = vpack.c.bf16 %v608_v18, %v608_v18  ;;  %v2336_v57 = vrot.slane %v2334_v43, 4  ;;  %v2591_v18 = vld [vmem:[#allocation2 + $0x3c] sm:$0xf] }
 0x19e   : > { %2430 = vrot.lane.b32.xlu0 %v2302_v42, %s7841_s15  ;;  %2428 = vrot.lane.b32.xlu1 %v2299_v33, %s7841_s15  ;;  %v1940_v23 = vpop.permute.xlu0 %1939  ;;  %v7079_v42 = vpack.c.bf16 %v609_v20, %v609_v20  ;;  %v2120_v33 = vld [vmem:[#allocation2 + $0xd0] sm:$0xf]  ;;  %v2589_v20 = vld [vmem:[#allocation2 + $0x34] sm:$0xf] }
 0x19f   : > { %2060 = vst.msk [vmem:[#allocation3 + $0xc0] sm:$0xf] %vm2011_vm8, %v1940_v23  ;;  %v2340_v36 = vrot.slane %v2120_v33, 5  ;;  %v2338_v27 = vsel %vm9463_vm13, %v2336_v57, %v2337_v14  ;;  %v2349_v23 = vrot.slane %v2123_v59, 5  ;;  %v2595_v33 = vld [vmem:[#allocation2 + $0x4c] sm:$0xf] }
 0x1a0   : > { %1102 = vst.msk [vmem:[#allocation2 + $0xe8] sm:$0xf] %vm1014_vm2, %v7079_v42  ;;  %1101 = vst.msk [vmem:[#allocation2 + $0xe4] sm:$0xf] %vm1014_vm2, %v7078_v56  ;;  %v2593_v56 = vld [vmem:[#allocation2 + $0x44] sm:$0xf] }
 0x1a1   : > { %v2342_v44 = vrot.slane %v2340_v36, 4  ;;  %v2341_v22 = vsel %vm9463_vm13, %v2339_v24, %v2340_v36  ;;  %v2350_v60 = vsel %vm9463_vm13, %v2348_v52, %v2349_v23  ;;  %v2351_v48 = vrot.slane %v2349_v23, 4  ;;  %v2594_v57 = vld [vmem:[#allocation2 + $0x48] sm:$0xf]  ;;  %v2597_v14 = vld [vmem:[#allocation2 + $0x54] sm:$0xf] }
 0x1a2   : > { %2434 = vrot.lane.b32.xlu0 %v2308_v41, %s7841_s15  ;;  %2432 = vrot.lane.b32.xlu1 %v2305_v34, %s7841_s15  ;;  %v1942_v53 = vpop.permute.xlu1 %1941  ;;  %v2329_v41 = vsel %vm9463_vm13, %v2327_v2, %v2328_v45  ;;  %v2335_v34 = vsel %vm9463_vm13, %v2333_v37, %v2334_v43  ;;  %v2592_v2 = vld [vmem:[#allocation2 + $0x40] sm:$0xf]  ;;  %v2603_v59 = vld [vmem:[#allocation2 + $0x6c] sm:$0xf]  ;;  %v2605_v23 = vld [vmem:[#allocation2 + $0x74] sm:$0xf] }
 0x1a3   : > { %2061 = vst.msk [vmem:[#allocation3 + $0xc4] sm:$0xf] %vm2011_vm8, %v1942_v53  ;;  %v2344_v12 = vsel %vm9463_vm13, %v2342_v44, %v2343_v6  ;;  %v2353_v28 = vsel %vm9463_vm13, %v2351_v48, %v2352_v26  ;;  %v2601_v6 = vld [vmem:[#allocation2 + $0x64] sm:$0xf] }
 0x1a4   : > { %v2609_v26 = vld [vmem:[#allocation2 + $0x84] sm:$0xf] }
 0x1a5   : > { %v1944_v8 = vpop.permute.xlu0 %1943 }
 0x1a6   : > { %2438 = vrot.lane.b32.xlu0 %v2314_v35, %s7841_s15  ;;  %2436 = vrot.lane.b32.xlu1 %v2311_v19, %s7841_s15  ;;  %2062 = vst.msk [vmem:[#allocation3 + $0xc8] sm:$0xf] %vm2011_vm8, %v1944_v8  ;;  %v2579_v19 = vld [vmem:[#allocation2 + $0xc] sm:$0xf] }
 0x1aa   : > { %2442 = vrot.lane.b32.xlu0 %v2320_v61, %s7841_s15  ;;  %2440 = vrot.lane.b32.xlu1 %v2317_v0, %s7841_s15  ;;  %v2580_v61 = vld [vmem:[#allocation2 + $0x10] sm:$0xf] }
 0x1ab   : > { %v1946_v50 = vpop.permute.xlu1 %1945 }
 0x1ac   : > { %2063 = vst.msk [vmem:[#allocation3 + $0xcc] sm:$0xf] %vm2011_vm8, %v1946_v50 }
 0x1ae   : > { %2446 = vrot.lane.b32.xlu0 %v2326_v39, %s7841_s15  ;;  %2444 = vrot.lane.b32.xlu1 %v2323_v1, %s7841_s15  ;;  %v2588_v39 = vld [vmem:[#allocation2 + $0x30] sm:$0xf] }
 0x1b2   : > { %2450 = vrot.lane.b32.xlu0 %v2332_v62, %s7841_s15  ;;  %2448 = vrot.lane.b32.xlu1 %v2329_v41, %s7841_s15  ;;  %v2596_v41 = vld [vmem:[#allocation2 + $0x50] sm:$0xf] }
 0x1b3   : > { %v1948_v35 = vpop.permute.xlu0 %1947 }
 0x1b4   : > { %2064 = vst.msk [vmem:[#allocation3 + $0xd0] sm:$0xf] %vm2011_vm8, %v1948_v35  ;;  %v2602_v35 = vld [vmem:[#allocation2 + $0x68] sm:$0xf] }
 0x1b6   : > { %2454 = vrot.lane.b32.xlu0 %v2338_v27, %s7841_s15  ;;  %2452 = vrot.lane.b32.xlu1 %v2335_v34, %s7841_s15  ;;  %v2598_v27 = vld [vmem:[#allocation2 + $0x58] sm:$0xf]  ;;  %v2600_v34 = vld [vmem:[#allocation2 + $0x60] sm:$0xf] }
 0x1b8   : > { %v1950_v17 = vpop.permute.xlu1 %1949 }
 0x1b9   : > { %2065 = vst.msk [vmem:[#allocation3 + $0xd4] sm:$0xf] %vm2011_vm8, %v1950_v17 }
 0x1ba   : > { %2458 = vrot.lane.b32.xlu0 %v2344_v12, %s7841_s15  ;;  %2456 = vrot.lane.b32.xlu1 %v2341_v22, %s7841_s15 }
 0x1be   : > { %2462 = vrot.lane.b32.xlu0 %v2350_v60, %s7841_s15  ;;  %2460 = vrot.lane.b32.xlu1 %v2347_v51, %s7841_s15  ;;  %v2606_v51 = vld [vmem:[#allocation2 + $0x78] sm:$0xf] }
 0x1c0   : > { %v1952_v21 = vpop.permute.xlu0 %1951 }
 0x1c1   : > { %2066 = vst.msk [vmem:[#allocation3 + $0xd8] sm:$0xf] %vm2011_vm8, %v1952_v21  ;;  %v2608_v21 = vld [vmem:[#allocation2 + $0x80] sm:$0xf] }
 0x1c2   : > { %2691 = vrot.lane.b32.xlu0 %v2579_v19, %s7842_s20  ;;  %2464 = vrot.lane.b32.xlu1 %v2353_v28, %s7841_s15 }
 0x1c4   : > { %v2355_v32 = vpop.permute.xlu0 %2354  ;;  %v1954_v53 = vpop.permute.xlu1 %1953 }
 0x1c5   : > { %2523 = vst.msk [vmem:[#allocation3] sm:$0xf] %vm2522_vm15, %v2355_v32 }
 0x1c6   : > { %2695 = vrot.lane.b32.xlu0 %v2581_v5, %s7842_s20  ;;  %2067 = vst.msk [vmem:[#allocation3 + $0xdc] sm:$0xf] %vm2011_vm8, %v1954_v53  ;;  %2693 = vrot.lane.b32.xlu1 %v2580_v61, %s7842_s20  ;;  %v2611_v5 = vld [vmem:[#allocation2 + $0x8c] sm:$0xf]  ;;  %v2610_v61 = vld [vmem:[#allocation2 + $0x88] sm:$0xf] }
 0x1c7   : > { %vm5396_vm8 = vcmask 257248  }
 0x1c8   : > { %v2359_v25 = vpop.permute.xlu0 %2358  ;;  %v2357_v30 = vpop.permute.xlu1 %2356 }
 0x1c9   : > { %2525 = vst.msk [vmem:[#allocation3 + $0x8] sm:$0xf] %vm2522_vm15, %v2359_v25  ;;  %2524 = vst.msk [vmem:[#allocation3 + $0x4] sm:$0xf] %vm2522_vm15, %v2357_v30 }
 0x1ca   : > { %2699 = vrot.lane.b32.xlu0 %v2583_v7, %s7842_s20  ;;  %2697 = vrot.lane.b32.xlu1 %v2582_v58, %s7842_s20  ;;  %v2613_v7 = vld [vmem:[#allocation2 + $0x94] sm:$0xf]  ;;  %v2612_v58 = vld [vmem:[#allocation2 + $0x90] sm:$0xf] }
 0x1cc   : > { %v2363_v45 = vpop.permute.xlu0 %2362  ;;  %v2361_v0 = vpop.permute.xlu1 %2360 }
 0x1cd   : > { %2527 = vst.msk [vmem:[#allocation3 + $0x10] sm:$0xf] %vm2522_vm15, %v2363_v45  ;;  %2526 = vst.msk [vmem:[#allocation3 + $0xc] sm:$0xf] %vm2522_vm15, %v2361_v0 }
 0x1ce   : > { %2703 = vrot.lane.b32.xlu0 %v2585_v9, %s7842_s20  ;;  %2701 = vrot.lane.b32.xlu1 %v2584_v15, %s7842_s20  ;;  %v2615_v9 = vld [vmem:[#allocation2 + $0x9c] sm:$0xf]  ;;  %v2614_v15 = vld [vmem:[#allocation2 + $0x98] sm:$0xf] }
 0x1d0   : > { %v2367_v4 = vpop.permute.xlu0 %2366  ;;  %v2365_v8 = vpop.permute.xlu1 %2364 }
 0x1d1   : > { %2529 = vst.msk [vmem:[#allocation3 + $0x18] sm:$0xf] %vm2522_vm15, %v2367_v4  ;;  %2528 = vst.msk [vmem:[#allocation3 + $0x14] sm:$0xf] %vm2522_vm15, %v2365_v8  ;;  %v407_v4 = vld [vmem:[%s9306_s19 + $0x18] sm:$0xff] }
 0x1d2   : > { %2707 = vrot.lane.b32.xlu0 %v2587_v54, %s7842_s20  ;;  %2705 = vrot.lane.b32.xlu1 %v2586_v40, %s7842_s20  ;;  %v2617_v54 = vld [vmem:[#allocation2 + $0xa4] sm:$0xf]  ;;  %v2616_v8 = vld [vmem:[#allocation2 + $0xa0] sm:$0xf] }
 0x1d4   : > { %v2371_v29 = vpop.permute.xlu0 %2370  ;;  %v2369_v55 = vpop.permute.xlu1 %2368 }
 0x1d5   : > { %2531 = vst.msk [vmem:[#allocation3 + $0x20] sm:$0xf] %vm2522_vm15, %v2371_v29  ;;  %2530 = vst.msk [vmem:[#allocation3 + $0x1c] sm:$0xf] %vm2522_vm15, %v2369_v55 }
 0x1d6   : > { %2711 = vrot.lane.b32.xlu0 %v2589_v20, %s7842_s20  ;;  %2709 = vrot.lane.b32.xlu1 %v2588_v39, %s7842_s20  ;;  %v596_v20 = vmul.f32 %v9615_v16, %v407_v4  ;;  %v2619_v39 = vld [vmem:[#allocation2 + $0xac] sm:$0xf]  ;;  %v2620_v16 = vld [vmem:[#allocation2 + $0xb0] sm:$0xf] }
 0x1d8   : > { %v2375_v42 = vpop.permute.xlu0 %2374  ;;  %v2373_v43 = vpop.permute.xlu1 %2372 }
 0x1d9   : > { %2533 = vst.msk [vmem:[#allocation3 + $0x28] sm:$0xf] %vm2522_vm15, %v2375_v42  ;;  %2532 = vst.msk [vmem:[#allocation3 + $0x24] sm:$0xf] %vm2522_vm15, %v2373_v43  ;;  %v7661_v42 = vcvt.f32.s32 %v596_v20  ;;  %v2621_v43 = vld [vmem:[#allocation2 + $0xb4] sm:$0xf] }
 0x1da   : > { %2715 = vrot.lane.b32.xlu0 %v2591_v18, %s7842_s20  ;;  %2713 = vrot.lane.b32.xlu1 %v2590_v10, %s7842_s20  ;;  %v2618_v18 = vld [vmem:[#allocation2 + $0xa8] sm:$0xf] }
 0x1dc   : > { %v2379_v1 = vpop.permute.xlu0 %2378  ;;  %v2377_v3 = vpop.permute.xlu1 %2376 }
 0x1dd   : > { %2535 = vst.msk [vmem:[#allocation3 + $0x30] sm:$0xf] %vm2522_vm15, %v2379_v1  ;;  %2534 = vst.msk [vmem:[#allocation3 + $0x2c] sm:$0xf] %vm2522_vm15, %v2377_v3  ;;  %v7662_v1 = vcvt.s32.f32 %v7661_v42  ;;  %v2623_v3 = vld [vmem:[#allocation2 + $0xbc] sm:$0xf] }
 0x1de   : > { %2719 = vrot.lane.b32.xlu0 %v2593_v56, %s7842_s20  ;;  %2717 = vrot.lane.b32.xlu1 %v2592_v2, %s7842_s20 }
 0x1e0   : > { %v2383_v62 = vpop.permute.xlu0 %2382  ;;  %v2381_v50 = vpop.permute.xlu1 %2380 }
 0x1e1   : > { %2537 = vst.msk [vmem:[#allocation3 + $0x38] sm:$0xf] %vm2522_vm15, %v2383_v62  ;;  %2536 = vst.msk [vmem:[#allocation3 + $0x34] sm:$0xf] %vm2522_vm15, %v2381_v50  ;;  %v7659_v62 = vand.u32 2147483647, %v596_v20 }
 0x1e2   : > { %2723 = vrot.lane.b32.xlu0 %v2595_v33, %s7842_s20  ;;  %2721 = vrot.lane.b32.xlu1 %v2594_v57, %s7842_s20  ;;  %v7664_v57 = vand.u32 2147483648, %v596_v20  ;;  %v2622_v50 = vld [vmem:[#allocation2 + $0xb8] sm:$0xf] }
 0x1e3   : > { %vm7660_vm0 = vcmp.lt.f32.partialorder %v7659_v62, 8388608.0 }
 0x1e4   : > { %v2387_v36 = vpop.permute.xlu0 %2386  ;;  %v2385_v37 = vpop.permute.xlu1 %2384 }
 0x1e5   : > { %2539 = vst.msk [vmem:[#allocation3 + $0x40] sm:$0xf] %vm2522_vm15, %v2387_v36  ;;  %2538 = vst.msk [vmem:[#allocation3 + $0x3c] sm:$0xf] %vm2522_vm15, %v2385_v37  ;;  %v2916_v37 = vld [vmem:[#allocation2 + $0xc] sm:$0xf] }
 0x1e6   : > { %2727 = vrot.lane.b32.xlu0 %v2597_v14, %s7842_s20  ;;  %2725 = vrot.lane.b32.xlu1 %v2596_v41, %s7842_s20  ;;  %v7663_v14 = vand.u32 2147483647, %v7662_v1  ;;  %v2625_v41 = vld [vmem:[#allocation2 + $0xc4] sm:$0xf]  ;;  %v2924_v1 = vld [vmem:[#allocation2 + $0x2c] sm:$0xf] }
 0x1e8   : > { %v2391_v38 = vpop.permute.xlu0 %2390  ;;  %v2389_v44 = vpop.permute.xlu1 %2388 }
 0x1e9   : > { %2541 = vst.msk [vmem:[#allocation3 + $0x48] sm:$0xf] %vm2522_vm15, %v2391_v38  ;;  %2540 = vst.msk [vmem:[#allocation3 + $0x44] sm:$0xf] %vm2522_vm15, %v2389_v44  ;;  %v7665_v38 = vor.u32 %v7664_v57, %v7663_v14  ;;  %v2974_v44 = vshrl.u32 %v2916_v37, 16 }
 0x1ea   : > { %2731 = vrot.lane.b32.xlu0 %v2599_v49, %s7842_s20  ;;  %2729 = vrot.lane.b32.xlu1 %v2598_v27, %s7842_s20  ;;  %v2624_v27 = vld [vmem:[#allocation2 + $0xc0] sm:$0xf] }
 0x1ec   : > { %v2395_v46 = vpop.permute.xlu0 %2394  ;;  %v2393_v24 = vpop.permute.xlu1 %2392 }
 0x1ed   : > { %2543 = vst.msk [vmem:[#allocation3 + $0x50] sm:$0xf] %vm2522_vm15, %v2395_v46  ;;  %2542 = vst.msk [vmem:[#allocation3 + $0x4c] sm:$0xf] %vm2522_vm15, %v2393_v24  ;;  %v7666_v24 = vsel %vm7660_vm0, %v7665_v38, %v596_v20 }
 0x1ee   : > { %2735 = vrot.lane.b32.xlu0 %v2601_v6, %s7842_s20  ;;  %2733 = vrot.lane.b32.xlu1 %v2600_v34, %s7842_s20  ;;  %v2977_v6 = vshll.u32 %v2916_v37, 16  ;;  %v2627_v34 = vld [vmem:[#allocation2 + $0xcc] sm:$0xf]  ;;  %v3057_v37 = vshrl.u32 %v2924_v1, 16 }
 0x1f0   : > { %v2399_v12 = vpop.permute.xlu0 %2398  ;;  %v2397_v52 = vpop.permute.xlu1 %2396 }
 0x1f1   : > { %2545 = vst.msk [vmem:[#allocation3 + $0x58] sm:$0xf] %vm2522_vm15, %v2399_v12  ;;  %2544 = vst.msk [vmem:[#allocation3 + $0x54] sm:$0xf] %vm2522_vm15, %v2397_v52  ;;  %v2918_v12 = vld [vmem:[#allocation2 + $0x14] sm:$0xf] }
 0x1f2   : > { %2739 = vrot.lane.b32.xlu0 %v2603_v59, %s7842_s20  ;;  %2737 = vrot.lane.b32.xlu1 %v2602_v35, %s7842_s20  ;;  %v610_v35 = vmul.f32 %v9652_v63, %v7666_v24  ;;  %v2626_v52 = vld [vmem:[#allocation2 + $0xc8] sm:$0xf]  ;;  %v2920_v63 = vld [vmem:[#allocation2 + $0x1c] sm:$0xf] }
 0x1f4   : > { %v2403_v22 = vpop.permute.xlu0 %2402  ;;  %v2401_v17 = vpop.permute.xlu1 %2400 }
 0x1f5   : > { %2547 = vst.msk [vmem:[#allocation3 + $0x60] sm:$0xf] %vm2522_vm15, %v2403_v22  ;;  %2546 = vst.msk [vmem:[#allocation3 + $0x5c] sm:$0xf] %vm2522_vm15, %v2401_v17  ;;  %v2976_v22 = vrot.slane %v2974_v44, 4  ;;  %v7080_v17 = vpack.c.bf16 %v610_v35, %v610_v35 }
 0x1f6   : > { %2743 = vrot.lane.b32.xlu0 %v2605_v23, %s7842_s20  ;;  %2741 = vrot.lane.b32.xlu1 %v2604_v47, %s7842_s20  ;;  %v2917_v23 = vld [vmem:[#allocation2 + $0x10] sm:$0xf]  ;;  %v2979_v47 = vrot.slane %v2977_v6, 5 }
 0x1f7   : > { %1103 = vst.msk [vmem:[#allocation2 + $0xec] sm:$0xf] %vm1014_vm2, %v7080_v17 }
 0x1f8   : > { %v2407_v60 = vpop.permute.xlu0 %2406  ;;  %v2405_v48 = vpop.permute.xlu1 %2404 }
 0x1f9   : > { %2549 = vst.msk [vmem:[#allocation3 + $0x68] sm:$0xf] %vm2522_vm15, %v2407_v60  ;;  %2548 = vst.msk [vmem:[#allocation3 + $0x64] sm:$0xf] %vm2522_vm15, %v2405_v48  ;;  %v2629_v60 = vld [vmem:[#allocation2 + $0xd4] sm:$0xf] }
 0x1fa   : > { %2747 = vrot.lane.b32.xlu0 %v2607_v11, %s7842_s20  ;;  %2745 = vrot.lane.b32.xlu1 %v2606_v51, %s7842_s20  ;;  %v2993_v51 = vshll.u32 %v2918_v12, 16  ;;  %v2997_v48 = vshrl.u32 %v2918_v12, 16 }
 0x1fc   : > { %v2411_v19 = vpop.permute.xlu0 %2410  ;;  %v2409_v28 = vpop.permute.xlu1 %2408 }
 0x1fd   : > { %2551 = vst.msk [vmem:[#allocation3 + $0x70] sm:$0xf] %vm2522_vm15, %v2411_v19  ;;  %2550 = vst.msk [vmem:[#allocation3 + $0x6c] sm:$0xf] %vm2522_vm15, %v2409_v28  ;;  %v2987_v28 = vshrl.u32 %v2917_v23, 16 }
 0x1fe   : > { %2751 = vrot.lane.b32.xlu0 %v2609_v26, %s7842_s20  ;;  %2749 = vrot.lane.b32.xlu1 %v2608_v21, %s7842_s20  ;;  %v2919_v26 = vld [vmem:[#allocation2 + $0x18] sm:$0xf]  ;;  %v2983_v21 = vshll.u32 %v2917_v23, 16 }
 0x1ff   : > { %v2989_v4 = vrot.slane %v2987_v28, 4 }
 0x200   : > { %v2415_v32 = vpop.permute.xlu0 %2414  ;;  %v2413_v53 = vpop.permute.xlu1 %2412 }
 0x201   : > { %2553 = vst.msk [vmem:[#allocation3 + $0x78] sm:$0xf] %vm2522_vm15, %v2415_v32  ;;  %2552 = vst.msk [vmem:[#allocation3 + $0x74] sm:$0xf] %vm2522_vm15, %v2413_v53  ;;  %v2980_v32 = vor.u32 %v2979_v47, %v2976_v22  ;;  %v3007_v53 = vshrl.u32 %v2919_v26, 16 }
 0x202   : > { %2755 = vrot.lane.b32.xlu0 %v2611_v5, %s7842_s20  ;;  %2753 = vrot.lane.b32.xlu1 %v2610_v61, %s7842_s20  ;;  %v2628_v5 = vld [vmem:[#allocation2 + $0xd0] sm:$0xf]  ;;  %v3003_v61 = vshll.u32 %v2919_v26, 16  ;;  %v2634_v47 = vld [vmem:[#allocation2 + $0xe8] sm:$0xf] }
 0x203   : > { %v2925_v22 = vld [vmem:[#allocation2 + $0x30] sm:$0xf] }
 0x204   : > { %v2419_v25 = vpop.permute.xlu0 %2418  ;;  %v2417_v30 = vpop.permute.xlu1 %2416 }
 0x205   : > { %2555 = vst.msk [vmem:[#allocation3 + $0x80] sm:$0xf] %vm2522_vm15, %v2419_v25  ;;  %2554 = vst.msk [vmem:[#allocation3 + $0x7c] sm:$0xf] %vm2522_vm15, %v2417_v30  ;;  %v9802_v30 = vrot.slane %v2993_v51, 5  ;;  %v3059_v51 = vrot.slane %v3057_v37, 4 }
 0x206   : > { %2759 = vrot.lane.b32.xlu0 %v2613_v7, %s7842_s20  ;;  %2757 = vrot.lane.b32.xlu1 %v2612_v58, %s7842_s20  ;;  %v2922_v7 = vld [vmem:[#allocation2 + $0x24] sm:$0xf]  ;;  %v2631_v58 = vld [vmem:[#allocation2 + $0xdc] sm:$0xf] }
 0x207   : > { %v3037_v20 = vshrl.u32 %v2922_v7, 16 }
 0x208   : > { %v2423_v45 = vpop.permute.xlu0 %2422  ;;  %v2421_v0 = vpop.permute.xlu1 %2420 }
 0x209   : > { %2557 = vst.msk [vmem:[#allocation3 + $0x88] sm:$0xf] %vm2522_vm15, %v2423_v45  ;;  %2556 = vst.msk [vmem:[#allocation3 + $0x84] sm:$0xf] %vm2522_vm15, %v2421_v0  ;;  %v3017_v45 = vshrl.u32 %v2920_v63, 16  ;;  %v3039_v14 = vrot.slane %v3037_v20, 4 }
 0x20a   : > { %2763 = vrot.lane.b32.xlu0 %v2615_v9, %s7842_s20  ;;  %2761 = vrot.lane.b32.xlu1 %v2614_v15, %s7842_s20  ;;  %v3013_v9 = vshll.u32 %v2920_v63, 16  ;;  %v2999_v15 = vrot.slane %v2997_v48, 4  ;;  %v2929_v20 = vld [vmem:[#allocation2 + $0x40] sm:$0xf] }
 0x20c   : > { %v2427_v40 = vpop.permute.xlu0 %2426  ;;  %v2425_v29 = vpop.permute.xlu1 %2424 }
 0x20d   : > { %2559 = vst.msk [vmem:[#allocation3 + $0x90] sm:$0xf] %vm2522_vm15, %v2427_v40  ;;  %2558 = vst.msk [vmem:[#allocation3 + $0x8c] sm:$0xf] %vm2522_vm15, %v2425_v29  ;;  %v2921_v40 = vld [vmem:[#allocation2 + $0x20] sm:$0xf] }
 0x20e   : > { %2767 = vrot.lane.b32.xlu0 %v2617_v54, %s7842_s20  ;;  %2765 = vrot.lane.b32.xlu1 %v2616_v8, %s7842_s20  ;;  %v2985_v54 = vrot.slane %v2983_v21, 5  ;;  %v3033_v8 = vshll.u32 %v2922_v7, 16  ;;  %v2630_v29 = vld [vmem:[#allocation2 + $0xd8] sm:$0xf] }
 0x210   : > { %v2431_v55 = vpop.permute.xlu0 %2430  ;;  %v2429_v10 = vpop.permute.xlu1 %2428  ;;  %v2990_v62 = vor.u32 %v2989_v4, %v2985_v54  ;;  %v9816_v57 = vrot.slane %v3033_v8, 5 }
 0x211   : > { %2561 = vst.msk [vmem:[#allocation3 + $0x98] sm:$0xf] %vm2522_vm15, %v2431_v55  ;;  %2560 = vst.msk [vmem:[#allocation3 + $0x94] sm:$0xf] %vm2522_vm15, %v2429_v10  ;;  %v2981_v55 = vrot.slane %v2980_v32, 4  ;;  %v3009_v10 = vrot.slane %v3007_v53, 4 }
 0x212   : > { %2771 = vrot.lane.b32.xlu0 %v2619_v39, %s7842_s20  ;;  %2769 = vrot.lane.b32.xlu1 %v2618_v18, %s7842_s20  ;;  %v2633_v39 = vld [vmem:[#allocation2 + $0xe4] sm:$0xf]  ;;  %v9808_v18 = vrot.slane %v3003_v61, 5  ;;  %v3040_v23 = vor.u32 %v3039_v14, %v9816_v57  ;;  %v3063_v61 = vshll.u32 %v2925_v22, 16  ;;  %v2928_v53 = vld [vmem:[#allocation2 + $0x3c] sm:$0xf] }
 0x213   : > { %v2986_v38 = vsel %vm8095_vm11, %v2981_v55, %v2985_v54  ;;  %v3097_v8 = vshrl.u32 %v2928_v53, 16 }
 0x214   : > { %v2435_v56 = vpop.permute.xlu0 %2434  ;;  %v2433_v2 = vpop.permute.xlu1 %2432  ;;  %v3041_v7 = vrot.slane %v3040_v23, 4 }
 0x215   : > { %2563 = vst.msk [vmem:[#allocation3 + $0xa0] sm:$0xf] %vm2522_vm15, %v2435_v56  ;;  %2562 = vst.msk [vmem:[#allocation3 + $0x9c] sm:$0xf] %vm2522_vm15, %v2433_v2  ;;  %v3000_v56 = vor.u32 %v2999_v15, %v9802_v30  ;;  %v2927_v15 = vld [vmem:[#allocation2 + $0x38] sm:$0xf] }
 0x216   : > { %2775 = vrot.lane.b32.xlu0 %v2621_v43, %s7842_s20  ;;  %2773 = vrot.lane.b32.xlu1 %v2620_v16, %s7842_s20  ;;  %v9810_v43 = vrot.slane %v3013_v9, 5  ;;  %v3019_v16 = vrot.slane %v3017_v45, 4  ;;  %v3099_v37 = vrot.slane %v3097_v8, 4 }
 0x217   : > { %v3001_v44 = vrot.slane %v3000_v56, 4 }
 0x218   : > { %v2439_v33 = vpop.permute.xlu0 %2438  ;;  %v2437_v36 = vpop.permute.xlu1 %2436  ;;  %v3020_v6 = vor.u32 %v3019_v16, %v9810_v43  ;;  %v3083_v16 = vshll.u32 %v2927_v15, 16 }
 0x219   : > { %2565 = vst.msk [vmem:[#allocation3 + $0xa8] sm:$0xf] %vm2522_vm15, %v2439_v33  ;;  %2564 = vst.msk [vmem:[#allocation3 + $0xa4] sm:$0xf] %vm2522_vm15, %v2437_v36  ;;  %v3027_v33 = vshrl.u32 %v2921_v40, 16 }
 0x21a   : > { %2779 = vrot.lane.b32.xlu0 %v2623_v3, %s7842_s20  ;;  %2777 = vrot.lane.b32.xlu1 %v2622_v50, %s7842_s20  ;;  %v3023_v3 = vshll.u32 %v2921_v40, 16  ;;  %v2923_v50 = vld [vmem:[#allocation2 + $0x28] sm:$0xf]  ;;  %v2632_v36 = vld [vmem:[#allocation2 + $0xe0] sm:$0xf]  ;;  %v3021_v63 = vrot.slane %v3020_v6, 4 }
 0x21b   : > { %v3043_v12 = vshll.u32 %v2923_v50, 16  ;;  %v3047_v35 = vshrl.u32 %v2923_v50, 16  ;;  %v3093_v40 = vshll.u32 %v2928_v53, 16  ;;  %v3085_v6 = vrot.slane %v3083_v16, 5 }
 0x21c   : > { %v2443_v49 = vpop.permute.xlu0 %2442  ;;  %v2441_v46 = vpop.permute.xlu1 %2440  ;;  %v3025_v24 = vrot.slane %v3023_v3, 5  ;;  %v3103_v3 = vshll.u32 %v2929_v20, 16 }
 0x21d   : > { %2567 = vst.msk [vmem:[#allocation3 + $0xb0] sm:$0xf] %vm2522_vm15, %v2443_v49  ;;  %2566 = vst.msk [vmem:[#allocation3 + $0xac] sm:$0xf] %vm2522_vm15, %v2441_v46  ;;  %v2926_v46 = vld [vmem:[#allocation2 + $0x34] sm:$0xf] }
 0x21e   : > { %2783 = vrot.lane.b32.xlu0 %v2625_v41, %s7842_s20  ;;  %2781 = vrot.lane.b32.xlu1 %v2624_v27, %s7842_s20  ;;  %v3053_v41 = vshll.u32 %v2924_v1, 16  ;;  %v3010_v27 = vor.u32 %v3009_v10, %v9808_v18  ;;  %v3049_v32 = vrot.slane %v3047_v35, 4  ;;  %v3026_v4 = vsel %vm8095_vm11, %v3021_v63, %v3025_v24  ;;  %v2933_v63 = vld [vmem:[#allocation2 + $0x50] sm:$0xf] }
 0x21f   : > { %v3087_v1 = vshrl.u32 %v2927_v15, 16  ;;  %v9855_v14 = vrot.slane %v3093_v40, 5  ;;  %v3147_v8 = vshrl.u32 %v2933_v63, 16 }
 0x220   : > { %v2447_v59 = vpop.permute.xlu0 %2446  ;;  %v2445_v11 = vpop.permute.xlu1 %2444  ;;  %v9828_v17 = vrot.slane %v3053_v41, 5  ;;  %v3011_v26 = vrot.slane %v3010_v27, 4 }
 0x221   : > { %2569 = vst.msk [vmem:[#allocation3 + $0xb8] sm:$0xf] %vm2522_vm15, %v2447_v59  ;;  %2568 = vst.msk [vmem:[#allocation3 + $0xb4] sm:$0xf] %vm2522_vm15, %v2445_v11  ;;  %v3029_v59 = vrot.slane %v3027_v33, 4  ;;  %v3073_v11 = vshll.u32 %v2926_v46, 16 }
 0x222   : > { %2787 = vrot.lane.b32.xlu0 %v2627_v34, %s7842_s20  ;;  %2785 = vrot.lane.b32.xlu1 %v2626_v52, %s7842_s20  ;;  %v2991_v52 = vrot.slane %v2990_v62, 4  ;;  %v3060_v45 = vor.u32 %v3059_v51, %v9828_v17  ;;  %v3107_v33 = vshrl.u32 %v2929_v20, 16  ;;  %v2932_v62 = vld [vmem:[#allocation2 + $0x4c] sm:$0xf] }
 0x223   : > { %v3030_v28 = vor.u32 %v3029_v59, %v3025_v24  ;;  %v9840_v9 = vrot.slane %v3073_v11, 5  ;;  %v3137_v24 = vshrl.u32 %v2932_v62, 16  ;;  %v3100_v11 = vor.u32 %v3099_v37, %v9855_v14 }
 0x224   : > { %v2451_v19 = vpop.permute.xlu0 %2450  ;;  %v2449_v25 = vpop.permute.xlu1 %2448 }
 0x225   : > { %2571 = vst.msk [vmem:[#allocation3 + $0xc0] sm:$0xf] %vm2522_vm15, %v2451_v19  ;;  %2570 = vst.msk [vmem:[#allocation3 + $0xbc] sm:$0xf] %vm2522_vm15, %v2449_v25  ;;  %v3006_v19 = vsel %vm8095_vm11, %v3001_v44, %v9808_v18  ;;  %v3067_v25 = vshrl.u32 %v2925_v22, 16  ;;  %v3065_v18 = vrot.slane %v3063_v61, 5 }
 0x226   : > { %2791 = vrot.lane.b32.xlu0 %v2629_v60, %s7842_s20  ;;  %2789 = vrot.lane.b32.xlu1 %v2628_v5, %s7842_s20  ;;  %v3077_v60 = vshrl.u32 %v2926_v46, 16  ;;  %v3045_v5 = vrot.slane %v3043_v12, 5  ;;  %v2931_v46 = vld [vmem:[#allocation2 + $0x48] sm:$0xf]  ;;  %v3089_v12 = vrot.slane %v3087_v1, 4  ;;  %v3109_v22 = vrot.slane %v3107_v33, 4 }
 0x227   : > { %v3069_v56 = vrot.slane %v3067_v25, 4 }
 0x228   : > { %v2455_v0 = vpop.permute.xlu0 %2454  ;;  %v2453_v42 = vpop.permute.xlu1 %2452  ;;  %v3050_v55 = vor.u32 %v3049_v32, %v3045_v5  ;;  %v3046_v10 = vsel %vm8095_vm11, %v3041_v7, %v3045_v5  ;;  %v3139_v5 = vrot.slane %v3137_v24, 4  ;;  %v3090_v53 = vor.u32 %v3089_v12, %v3085_v6 }
 0x229   : > { %2573 = vst.msk [vmem:[#allocation3 + $0xc8] sm:$0xf] %vm2522_vm15, %v2455_v0  ;;  %2572 = vst.msk [vmem:[#allocation3 + $0xc4] sm:$0xf] %vm2522_vm15, %v2453_v42  ;;  %v3079_v0 = vrot.slane %v3077_v60, 4  ;;  %v3070_v44 = vor.u32 %v3069_v56, %v3065_v18 }
 0x22a   : > { %2795 = vrot.lane.b32.xlu0 %v2631_v58, %s7842_s20  ;;  %2793 = vrot.lane.b32.xlu1 %v2630_v29, %s7842_s20  ;;  %v2996_v58 = vsel %vm8095_vm11, %v2991_v52, %v9802_v30  ;;  %v3016_v30 = vsel %vm8095_vm11, %v3011_v26, %v9810_v43  ;;  %v2930_v42 = vld [vmem:[#allocation2 + $0x44] sm:$0xf]  ;;  %v3051_v27 = vrot.slane %v3050_v55, 4  ;;  %v9866_v52 = vrot.slane %v3103_v3, 5  ;;  %v2937_v56 = vld [vmem:[#allocation2 + $0x60] sm:$0xf] }
 0x22b   : > { %v3080_v43 = vor.u32 %v3079_v0, %v9840_v9  ;;  %v3117_v41 = vshrl.u32 %v2930_v42, 16  ;;  %v3127_v26 = vshrl.u32 %v2931_v46, 16  ;;  %v3071_v61 = vrot.slane %v3070_v44, 4  ;;  %v2936_v0 = vld [vmem:[#allocation2 + $0x5c] sm:$0xf] }
 0x22c   : > { %v2459_v2 = vpop.permute.xlu0 %2458  ;;  %v2457_v49 = vpop.permute.xlu1 %2456  ;;  %v3056_v32 = vsel %vm8095_vm11, %v3051_v27, %v9828_v17  ;;  %v3143_v17 = vshll.u32 %v2933_v63, 16  ;;  %v2942_v63 = vld [vmem:[#allocation2 + $0x74] sm:$0xf] }
 0x22d   : > { %2575 = vst.msk [vmem:[#allocation3 + $0xd0] sm:$0xf] %vm2522_vm15, %v2459_v2  ;;  %2574 = vst.msk [vmem:[#allocation3 + $0xcc] sm:$0xf] %vm2522_vm15, %v2457_v49  ;;  %v3061_v2 = vrot.slane %v3060_v45, 4  ;;  %v3081_v35 = vrot.slane %v3080_v43, 4  ;;  %v3076_v55 = vsel %vm8095_vm11, %v3071_v61, %v9840_v9 }
 0x22e   : > { %2799 = vrot.lane.b32.xlu0 %v2633_v39, %s7842_s20  ;;  %2797 = vrot.lane.b32.xlu1 %v2632_v36, %s7842_s20  ;;  %v3031_v39 = vrot.slane %v3030_v28, 4  ;;  %v3113_v36 = vshll.u32 %v2930_v42, 16  ;;  %v3119_v60 = vrot.slane %v3117_v41, 4  ;;  %v3101_v45 = vrot.slane %v3100_v11, 4  ;;  %v2940_v11 = vld [vmem:[#allocation2 + $0x6c] sm:$0xf] }
 0x22f   : > { %v3066_v59 = vsel %vm8095_vm11, %v3061_v2, %v3065_v18  ;;  %v3086_v25 = vsel %vm8095_vm11, %v3081_v35, %v3085_v6  ;;  %v3129_v40 = vrot.slane %v3127_v26, 4  ;;  %v3091_v18 = vrot.slane %v3090_v53, 4  ;;  %v2939_v35 = vld [vmem:[#allocation2 + $0x68] sm:$0xf] }
 0x230   : > { %v2463_v34 = vpop.permute.xlu0 %2462  ;;  %v2461_v48 = vpop.permute.xlu1 %2460  ;;  %v3036_v49 = vsel %vm8095_vm11, %v3031_v39, %v9816_v57  ;;  %v2934_v57 = vld [vmem:[#allocation2 + $0x54] sm:$0xf]  ;;  %v3173_v42 = vshll.u32 %v2936_v0, 16  ;;  %v3106_v2 = vsel %vm8095_vm11, %v3101_v45, %v9866_v52  ;;  %v3187_v6 = vshrl.u32 %v2937_v56, 16  ;;  %v2941_v45 = vld [vmem:[#allocation2 + $0x70] sm:$0xf] }
 0x231   : > { %2577 = vst.msk [vmem:[#allocation3 + $0xd8] sm:$0xf] %vm2522_vm15, %v2463_v34  ;;  %2576 = vst.msk [vmem:[#allocation3 + $0xd4] sm:$0xf] %vm2522_vm15, %v2461_v48  ;;  %v3133_v34 = vshll.u32 %v2932_v62, 16  ;;  %v3123_v48 = vshll.u32 %v2931_v46, 16  ;;  %v3096_v27 = vsel %vm8095_vm11, %v3091_v18, %v9855_v14 }
 0x232   : > { %3537 = vrot.lane.b32.xlu0 %v2986_v38, %s7843_s21  ;;  %2801 = vrot.lane.b32.xlu1 %v2634_v47, %s7842_s20  ;;  %v9868_v47 = vrot.slane %v3113_v36, 5  ;;  %v3157_v28 = vshrl.u32 %v2934_v57, 16  ;;  %v3145_v62 = vrot.slane %v3143_v17, 5  ;;  %v2938_v36 = vld [vmem:[#allocation2 + $0x64] sm:$0xf]  ;;  %v9905_v44 = vrot.slane %v3173_v42, 5  ;;  %s11438_s20 = scalar_lea.hbm %s11494_s6, %s7084_s22 }
 0x233   : > { %v3197_v12 = vshrl.u32 %v2938_v36, 16  ;;  %v3213_v53 = vshll.u32 %v2940_v11, 16 }
 0x234   : > { %v2692_v21 = vpop.permute.xlu0 %2691  ;;  %v2465_v54 = vpop.permute.xlu1 %2464  ;;  %v3120_v15 = vor.u32 %v3119_v60, %v9868_v47  ;;  %v3159_v39 = vrot.slane %v3157_v28, 4  ;;  %v3203_v28 = vshll.u32 %v2939_v35, 16 }
 0x235   : > { %2860 = vst.msk [vmem:[#allocation3] sm:$0xf] %vm2859_vm1, %v2692_v21  ;;  %v3153_v21 = vshll.u32 %v2934_v57, 16  ;;  %v9935_v42 = vrot.slane %v3213_v53, 5  ;;  %v2948_v53 = vld [vmem:[#allocation2 + $0x8c] sm:$0xf] }
 0x236   : > { %3541 = vrot.lane.b32.xlu0 %v3006_v19, %s7843_s21  ;;  %2578 = vst.msk [vmem:[#allocation3 + $0xdc] sm:$0xf] %vm2522_vm15, %v2465_v54  ;;  %3539 = vrot.lane.b32.xlu1 %v2996_v58, %s7843_s21  ;;  %v9874_v19 = vrot.slane %v3133_v34, 5  ;;  %v3110_v58 = vor.u32 %v3109_v22, %v9866_v52  ;;  %v3121_v43 = vrot.slane %v3120_v15, 4  ;;  %v3233_v15 = vshll.u32 %v2942_v63, 16 }
 0x237   : > { %v9887_v20 = vrot.slane %v3153_v21, 5 }
 0x238   : > { %v2696_v29 = vpop.permute.xlu0 %2695  ;;  %v2694_v50 = vpop.permute.xlu1 %2693  ;;  %v3111_v1 = vrot.slane %v3110_v58, 4 }
 0x239   : > { %2862 = vst.msk [vmem:[#allocation3 + $0x8] sm:$0xf] %vm2859_vm1, %v2696_v29  ;;  %2861 = vst.msk [vmem:[#allocation3 + $0x4] sm:$0xf] %vm2859_vm1, %v2694_v50  ;;  %v2935_v29 = vld [vmem:[#allocation2 + $0x58] sm:$0xf] }
 0x23a   : > { %3545 = vrot.lane.b32.xlu0 %v3026_v4, %s7843_s21  ;;  %3543 = vrot.lane.b32.xlu1 %v3016_v30, %s7843_s21  ;;  %v3125_v4 = vrot.slane %v3123_v48, 5  ;;  %v3140_v30 = vor.u32 %v3139_v5, %v9874_v19  ;;  %v3149_v50 = vrot.slane %v3147_v8, 4  ;;  %v3163_v9 = vshll.u32 %v2935_v29, 16 }
 0x23b   : > { %v3167_v37 = vshrl.u32 %v2935_v29, 16  ;;  %v3116_v52 = vsel %vm8095_vm11, %v3111_v1, %v9868_v47  ;;  %v3189_v47 = vrot.slane %v3187_v6, 4  ;;  %v3207_v5 = vshrl.u32 %v2939_v35, 16 }
 0x23c   : > { %v2700_v38 = vpop.permute.xlu0 %2699  ;;  %v2698_v23 = vpop.permute.xlu1 %2697  ;;  %v3130_v33 = vor.u32 %v3129_v40, %v3125_v4  ;;  %v3141_v41 = vrot.slane %v3140_v30, 4  ;;  %v3126_v24 = vsel %vm8095_vm11, %v3121_v43, %v3125_v4  ;;  %v3165_v22 = vrot.slane %v3163_v9, 5 }
 0x23d   : > { %2864 = vst.msk [vmem:[#allocation3 + $0x10] sm:$0xf] %vm2859_vm1, %v2700_v38  ;;  %2863 = vst.msk [vmem:[#allocation3 + $0xc] sm:$0xf] %vm2859_vm1, %v2698_v23  ;;  %v3183_v38 = vshll.u32 %v2937_v56, 16  ;;  %v3150_v23 = vor.u32 %v3149_v50, %v3145_v62  ;;  %v9933_v29 = vrot.slane %v3203_v28, 5 }
 0x23e   : > { %3549 = vrot.lane.b32.xlu0 %v3046_v10, %s7843_s21  ;;  %3547 = vrot.lane.b32.xlu1 %v3036_v49, %s7843_s21  ;;  %v3177_v10 = vshrl.u32 %v2936_v0, 16  ;;  %v3160_v49 = vor.u32 %v3159_v39, %v9887_v20  ;;  %v3131_v57 = vrot.slane %v3130_v33, 4  ;;  %v3146_v60 = vsel %vm8095_vm11, %v3141_v41, %v3145_v62 }
 0x23f   : > { %v9917_v26 = vrot.slane %v3183_v38, 5  ;;  %v3237_v0 = vshrl.u32 %v2942_v63, 16  ;;  %v3151_v4 = vrot.slane %v3150_v23, 4  ;;  %v3209_v39 = vrot.slane %v3207_v5, 4 }
 0x240   : > { %v2704_v51 = vpop.permute.xlu0 %2703  ;;  %v2702_v7 = vpop.permute.xlu1 %2701  ;;  %v3179_v46 = vrot.slane %v3177_v10, 4  ;;  %v3161_v48 = vrot.slane %v3160_v49, 4  ;;  %v3223_v10 = vshll.u32 %v2941_v45, 16  ;;  %v3227_v1 = vshrl.u32 %v2941_v45, 16 }
 0x241   : > { %2866 = vst.msk [vmem:[#allocation3 + $0x18] sm:$0xf] %vm2859_vm1, %v2704_v51  ;;  %2865 = vst.msk [vmem:[#allocation3 + $0x14] sm:$0xf] %vm2859_vm1, %v2702_v7  ;;  %v3169_v51 = vrot.slane %v3167_v37, 4  ;;  %v3217_v7 = vshrl.u32 %v2940_v11, 16  ;;  %v3190_v8 = vor.u32 %v3189_v47, %v9917_v26  ;;  %v3156_v50 = vsel %vm8095_vm11, %v3151_v4, %v9887_v20 }
 0x242   : > { %3553 = vrot.lane.b32.xlu0 %v3066_v59, %s7843_s21  ;;  %3551 = vrot.lane.b32.xlu1 %v3056_v32, %s7843_s21  ;;  %v3193_v59 = vshll.u32 %v2938_v36, 16  ;;  %v3180_v21 = vor.u32 %v3179_v46, %v9905_v44  ;;  %v3166_v17 = vsel %vm8095_vm11, %v3161_v48, %v3165_v22  ;;  %v3239_v43 = vrot.slane %v3237_v0, 4  ;;  %v2945_v37 = vld [vmem:[#allocation2 + $0x80] sm:$0xf]  ;;  %v2947_v47 = vld [vmem:[#allocation2 + $0x88] sm:$0xf] }
 0x243   : > { %v3170_v40 = vor.u32 %v3169_v51, %v3165_v22  ;;  %v3219_v56 = vrot.slane %v3217_v7, 4  ;;  %v3191_v36 = vrot.slane %v3190_v8, 4  ;;  %v3210_v38 = vor.u32 %v3209_v39, %v9933_v29  ;;  %v2950_v39 = vld [vmem:[#allocation2 + $0x94] sm:$0xf] }
 0x244   : > { %v2708_v54 = vpop.permute.xlu0 %2707  ;;  %v2706_v16 = vpop.permute.xlu1 %2705  ;;  %v9921_v61 = vrot.slane %v3193_v59, 5  ;;  %v3181_v30 = vrot.slane %v3180_v21, 4  ;;  %v3225_v6 = vrot.slane %v3223_v10, 5  ;;  %v3287_v0 = vshrl.u32 %v2947_v47, 16 }
 0x245   : > { %2868 = vst.msk [vmem:[#allocation3 + $0x20] sm:$0xf] %vm2859_vm1, %v2708_v54  ;;  %2867 = vst.msk [vmem:[#allocation3 + $0x1c] sm:$0xf] %vm2859_vm1, %v2706_v16  ;;  %v3136_v54 = vsel %vm8095_vm11, %v3131_v57, %v9874_v19  ;;  %v3171_v9 = vrot.slane %v3170_v40, 4  ;;  %v3220_v46 = vor.u32 %v3219_v56, %v9935_v42  ;;  %v3267_v57 = vshrl.u32 %v2945_v37, 16 }
 0x246   : > { %3557 = vrot.lane.b32.xlu0 %v3086_v25, %s7843_s21  ;;  %3555 = vrot.lane.b32.xlu1 %v3076_v55, %s7843_s21  ;;  %v3199_v25 = vrot.slane %v3197_v12, 4  ;;  %v2944_v55 = vld [vmem:[#allocation2 + $0x7c] sm:$0xf]  ;;  %v3186_v41 = vsel %vm8095_vm11, %v3181_v30, %v9917_v26  ;;  %v3196_v48 = vsel %vm8095_vm11, %v3191_v36, %v9921_v61  ;;  %v3211_v28 = vrot.slane %v3210_v38, 4  ;;  %v2949_v56 = vld [vmem:[#allocation2 + $0x90] sm:$0xf] }
 0x247   : > { %v3253_v33 = vshll.u32 %v2944_v55, 16  ;;  %v3257_v62 = vshrl.u32 %v2944_v55, 16  ;;  %v3176_v22 = vsel %vm8095_vm11, %v3171_v9, %v9905_v44  ;;  %v3221_v63 = vrot.slane %v3220_v46, 4 }
 0x248   : > { %v2712_v3 = vpop.permute.xlu0 %2711  ;;  %v2710_v34 = vpop.permute.xlu1 %2709  ;;  %v3200_v19 = vor.u32 %v3199_v25, %v9921_v61  ;;  %v3269_v25 = vrot.slane %v3267_v57, 4  ;;  %v3297_v8 = vshrl.u32 %v2948_v53, 16  ;;  %v3216_v30 = vsel %vm8095_vm11, %v3211_v28, %v9935_v42 }
 0x249   : > { %2870 = vst.msk [vmem:[#allocation3 + $0x28] sm:$0xf] %vm2859_vm1, %v2712_v3  ;;  %2869 = vst.msk [vmem:[#allocation3 + $0x24] sm:$0xf] %vm2859_vm1, %v2710_v34  ;;  %v2943_v3 = vld [vmem:[#allocation2 + $0x78] sm:$0xf]  ;;  %v3226_v40 = vsel %vm8095_vm11, %v3221_v63, %v3225_v6 }
 0x24a   : > { %3561 = vrot.lane.b32.xlu0 %v3106_v2, %s7843_s21  ;;  %3559 = vrot.lane.b32.xlu1 %v3096_v27, %s7843_s21  ;;  %v9939_v2 = vrot.slane %v3233_v15, 5  ;;  %v3201_v27 = vrot.slane %v3200_v19, 4  ;;  %v2946_v34 = vld [vmem:[#allocation2 + $0x84] sm:$0xf]  ;;  %v3243_v59 = vshll.u32 %v2943_v3, 16  ;;  %v3247_v12 = vshrl.u32 %v2943_v3, 16 }
 0x24b   : > { %v3259_v23 = vrot.slane %v3257_v62, 4  ;;  %v3273_v11 = vshll.u32 %v2946_v34, 16  ;;  %v3283_v15 = vshll.u32 %v2947_v47, 16  ;;  %v3289_v42 = vrot.slane %v3287_v0, 4  ;;  %v2952_v3 = vld [vmem:[#allocation2 + $0x9c] sm:$0xf] }
 0x24c   : > { %v2716_v14 = vpop.permute.xlu0 %2715  ;;  %v2714_v32 = vpop.permute.xlu1 %2713  ;;  %v3240_v35 = vor.u32 %v3239_v43, %v9939_v2  ;;  %v3206_v26 = vsel %vm8095_vm11, %v3201_v27, %v9933_v29  ;;  %v3245_v5 = vrot.slane %v3243_v59, 5  ;;  %v3317_v9 = vshrl.u32 %v2950_v39, 16  ;;  %v2951_v27 = vld [vmem:[#allocation2 + $0x98] sm:$0xf]  ;;  %v2953_v63 = vld [vmem:[#allocation2 + $0xa0] sm:$0xf] }
 0x24d   : > { %2872 = vst.msk [vmem:[#allocation3 + $0x30] sm:$0xf] %vm2859_vm1, %v2716_v14  ;;  %2871 = vst.msk [vmem:[#allocation3 + $0x2c] sm:$0xf] %vm2859_vm1, %v2714_v32  ;;  %v3263_v14 = vshll.u32 %v2945_v37, 16  ;;  %v3249_v32 = vrot.slane %v3247_v12, 4 }
 0x24e   : > { %3565 = vrot.lane.b32.xlu0 %v3126_v24, %s7843_s21  ;;  %3563 = vrot.lane.b32.xlu1 %v3116_v52, %s7843_s21  ;;  %v3229_v24 = vrot.slane %v3227_v1, 4  ;;  %v9956_v52 = vrot.slane %v3253_v33, 5  ;;  %v3241_v7 = vrot.slane %v3240_v35, 4  ;;  %v9975_v45 = vrot.slane %v3273_v11, 5 }
 0x24f   : > { %v9971_v61 = vrot.slane %v3263_v14, 5  ;;  %v9989_v1 = vrot.slane %v3283_v15, 5  ;;  %v3299_v36 = vrot.slane %v3297_v8, 4  ;;  %v3303_v37 = vshll.u32 %v2949_v56, 16  ;;  %v2956_v15 = vld [vmem:[#allocation2 + $0xac] sm:$0xf] }
 0x250   : > { %v2720_v58 = vpop.permute.xlu0 %2719  ;;  %v2718_v18 = vpop.permute.xlu1 %2717  ;;  %v3230_v44 = vor.u32 %v3229_v24, %v3225_v6  ;;  %v3246_v19 = vsel %vm8095_vm11, %v3241_v7, %v3245_v5  ;;  %v3333_v6 = vshll.u32 %v2952_v3, 16  ;;  %v3337_v46 = vshrl.u32 %v2952_v3, 16  ;;  %v2958_v3 = vld [vmem:[#allocation2 + $0xb4] sm:$0xf] }
 0x251   : > { %2874 = vst.msk [vmem:[#allocation3 + $0x38] sm:$0xf] %vm2859_vm1, %v2720_v58  ;;  %2873 = vst.msk [vmem:[#allocation3 + $0x34] sm:$0xf] %vm2859_vm1, %v2718_v18  ;;  %v3260_v58 = vor.u32 %v3259_v23, %v9956_v52  ;;  %v3250_v18 = vor.u32 %v3249_v32, %v3245_v5  ;;  %v3270_v10 = vor.u32 %v3269_v25, %v9971_v61  ;;  %v3319_v57 = vrot.slane %v3317_v9, 4 }
 0x252   : > { %3569 = vrot.lane.b32.xlu0 %v3146_v60, %s7843_s21  ;;  %3567 = vrot.lane.b32.xlu1 %v3136_v54, %s7843_s21  ;;  %v3277_v60 = vshrl.u32 %v2946_v34, 16  ;;  %v3231_v55 = vrot.slane %v3230_v44, 4  ;;  %v3290_v59 = vor.u32 %v3289_v42, %v9989_v1  ;;  %v2954_v23 = vld [vmem:[#allocation2 + $0xa4] sm:$0xf]  ;;  %v3305_v11 = vrot.slane %v3303_v37, 5 }
 0x253   : > { %v3251_v34 = vrot.slane %v3250_v18, 4  ;;  %v3339_v47 = vrot.slane %v3337_v46, 4  ;;  %v3353_v44 = vshll.u32 %v2954_v23, 16  ;;  %v3357_v5 = vshrl.u32 %v2954_v23, 16  ;;  %v2955_v32 = vld [vmem:[#allocation2 + $0xa8] sm:$0xf] }
 0x254   : > { %v2724_v16 = vpop.permute.xlu0 %2723  ;;  %v2722_v49 = vpop.permute.xlu1 %2721  ;;  %v3279_v54 = vrot.slane %v3277_v60, 4  ;;  %v3236_v38 = vsel %vm8095_vm11, %v3231_v55, %v9939_v2  ;;  %v3291_v7 = vrot.slane %v3290_v59, 4  ;;  %v3363_v8 = vshll.u32 %v2955_v32, 16  ;;  %v2959_v23 = vld [vmem:[#allocation2 + $0xb8] sm:$0xf] }
 0x255   : > { %2876 = vst.msk [vmem:[#allocation3 + $0x40] sm:$0xf] %vm2859_vm1, %v2724_v16  ;;  %2875 = vst.msk [vmem:[#allocation3 + $0x3c] sm:$0xf] %vm2859_vm1, %v2722_v49  ;;  %v3261_v16 = vrot.slane %v3260_v58, 4  ;;  %v3307_v49 = vshrl.u32 %v2949_v56, 16 }
 0x256   : > { %3573 = vrot.lane.b32.xlu0 %v3166_v17, %s7843_s21  ;;  %3571 = vrot.lane.b32.xlu1 %v3156_v50, %s7843_s21  ;;  %v3293_v17 = vshll.u32 %v2948_v53, 16  ;;  %v3280_v43 = vor.u32 %v3279_v54, %v9975_v45  ;;  %v3313_v50 = vshll.u32 %v2950_v39, 16  ;;  %v3373_v39 = vshll.u32 %v2956_v15, 16 }
 0x257   : > { %v3266_v24 = vsel %vm8095_vm11, %v3261_v16, %v9971_v61  ;;  %v3309_v60 = vrot.slane %v3307_v49, 4  ;;  %v3377_v55 = vshrl.u32 %v2956_v15, 16  ;;  %v3359_v18 = vrot.slane %v3357_v5, 4 }
 0x258   : > { %v2728_v20 = vpop.permute.xlu0 %2727  ;;  %v2726_v51 = vpop.permute.xlu1 %2725  ;;  %v9992_v62 = vrot.slane %v3293_v17, 5  ;;  %v3281_v35 = vrot.slane %v3280_v43, 4  ;;  %v10005_v14 = vrot.slane %v3313_v50, 5  ;;  %v10042_v49 = vrot.slane %v3373_v39, 5 }
 0x259   : > { %2878 = vst.msk [vmem:[#allocation3 + $0x48] sm:$0xf] %vm2859_vm1, %v2728_v20  ;;  %2877 = vst.msk [vmem:[#allocation3 + $0x44] sm:$0xf] %vm2859_vm1, %v2726_v51  ;;  %v3271_v20 = vrot.slane %v3270_v10, 4  ;;  %v3323_v51 = vshll.u32 %v2951_v27, 16  ;;  %v3310_v0 = vor.u32 %v3309_v60, %v3305_v11 }
 0x25a   : > { %3577 = vrot.lane.b32.xlu0 %v3186_v41, %s7843_s21  ;;  %3575 = vrot.lane.b32.xlu1 %v3176_v22, %s7843_s21  ;;  %v3300_v2 = vor.u32 %v3299_v36, %v9992_v62  ;;  %v3286_v61 = vsel %vm8095_vm11, %v3281_v35, %v9989_v1  ;;  %v3320_v58 = vor.u32 %v3319_v57, %v10005_v14  ;;  %v10039_v36 = vrot.slane %v3363_v8, 5  ;;  %v2964_v8 = vld [vmem:[#allocation2 + $0xcc] sm:$0xf] }
 0x25b   : > { %v3276_v28 = vsel %vm8095_vm11, %v3271_v20, %v9975_v45  ;;  %v3325_v45 = vrot.slane %v3323_v51, 5  ;;  %v3296_v16 = vsel %vm8095_vm11, %v3291_v7, %v9992_v62  ;;  %v3311_v42 = vrot.slane %v3310_v0, 4  ;;  %v2961_v0 = vld [vmem:[#allocation2 + $0xc0] sm:$0xf] }
 0x25c   : > { %v2732_v21 = vpop.permute.xlu0 %2731  ;;  %v2730_v4 = vpop.permute.xlu1 %2729  ;;  %v3301_v25 = vrot.slane %v3300_v2, 4  ;;  %v3321_v56 = vrot.slane %v3320_v58, 4  ;;  %v3393_v46 = vshll.u32 %v2958_v3, 16  ;;  %v3407_v7 = vshrl.u32 %v2959_v23, 16 }
 0x25d   : > { %2880 = vst.msk [vmem:[#allocation3 + $0x50] sm:$0xf] %vm2859_vm1, %v2732_v21  ;;  %2879 = vst.msk [vmem:[#allocation3 + $0x4c] sm:$0xf] %vm2859_vm1, %v2730_v4  ;;  %v3256_v21 = vsel %vm8095_vm11, %v3251_v34, %v9956_v52  ;;  %v3343_v4 = vshll.u32 %v2953_v63, 16  ;;  %v3397_v34 = vshrl.u32 %v2958_v3, 16  ;;  %v3316_v35 = vsel %vm8095_vm11, %v3311_v42, %v10005_v14 }
 0x25e   : > { %3581 = vrot.lane.b32.xlu0 %v3206_v26, %s7843_s21  ;;  %3579 = vrot.lane.b32.xlu1 %v3196_v48, %s7843_s21  ;;  %v3327_v48 = vshrl.u32 %v2951_v27, 16  ;;  %v10011_v26 = vrot.slane %v3333_v6, 5  ;;  %v3306_v10 = vsel %vm8095_vm11, %v3301_v25, %v3305_v11  ;;  %v3326_v6 = vsel %vm8095_vm11, %v3321_v56, %v3325_v45 }
 0x25f   : > { %v3457_v3 = vshrl.u32 %v2964_v8, 16 }
 0x260   : > { %v2736_v29 = vpop.permute.xlu0 %2735  ;;  %v2734_v33 = vpop.permute.xlu1 %2733  ;;  %v3329_v54 = vrot.slane %v3327_v48, 4  ;;  %v3340_v17 = vor.u32 %v3339_v47, %v10011_v26  ;;  %v2962_v48 = vld [vmem:[#allocation2 + $0xc4] sm:$0xf]  ;;  %v10058_v47 = vrot.slane %v3393_v46, 5 }
 0x261   : > { %2882 = vst.msk [vmem:[#allocation3 + $0x58] sm:$0xf] %vm2859_vm1, %v2736_v29  ;;  %2881 = vst.msk [vmem:[#allocation3 + $0x54] sm:$0xf] %vm2859_vm1, %v2734_v33  ;;  %v10029_v29 = vrot.slane %v3353_v44, 5  ;;  %v3345_v33 = vrot.slane %v3343_v4, 5 }
 0x262   : > { %3585 = vrot.lane.b32.xlu0 %v3226_v40, %s7843_s21  ;;  %3583 = vrot.lane.b32.xlu1 %v3216_v30, %s7843_s21  ;;  %v3347_v40 = vshrl.u32 %v2953_v63, 16  ;;  %v3367_v30 = vshrl.u32 %v2955_v32, 16  ;;  %v3330_v43 = vor.u32 %v3329_v54, %v3325_v45  ;;  %v3341_v9 = vrot.slane %v3340_v17, 4 }
 0x263   : > { %v3360_v62 = vor.u32 %v3359_v18, %v10029_v29  ;;  %v3437_v25 = vshrl.u32 %v2962_v48, 16  ;;  %v3409_v18 = vrot.slane %v3407_v7, 4 }
 0x264   : > { %v2740_v41 = vpop.permute.xlu0 %2739  ;;  %v2738_v12 = vpop.permute.xlu1 %2737  ;;  %v3349_v50 = vrot.slane %v3347_v40, 4  ;;  %v3369_v37 = vrot.slane %v3367_v30, 4  ;;  %v3331_v2 = vrot.slane %v3330_v43, 4  ;;  %v3453_v43 = vshll.u32 %v2964_v8, 16 }
 0x265   : > { %2884 = vst.msk [vmem:[#allocation3 + $0x60] sm:$0xf] %vm2859_vm1, %v2740_v41  ;;  %2883 = vst.msk [vmem:[#allocation3 + $0x5c] sm:$0xf] %vm2859_vm1, %v2738_v12  ;;  %v2957_v41 = vld [vmem:[#allocation2 + $0xb0] sm:$0xf] }
 0x266   : > { %3589 = vrot.lane.b32.xlu0 %v3246_v19, %s7843_s21  ;;  %3587 = vrot.lane.b32.xlu1 %v3236_v38, %s7843_s21  ;;  %v3379_v38 = vrot.slane %v3377_v55, 4  ;;  %v3387_v59 = vshrl.u32 %v2957_v41, 16  ;;  %v2960_v12 = vld [vmem:[#allocation2 + $0xbc] sm:$0xf]  ;;  %v3350_v57 = vor.u32 %v3349_v50, %v3345_v33  ;;  %v3370_v11 = vor.u32 %v3369_v37, %v10039_v36 }
 0x267   : > { %v3361_v60 = vrot.slane %v3360_v62, 4  ;;  %v3413_v14 = vshll.u32 %v2960_v12, 16  ;;  %v3336_v58 = vsel %vm8095_vm11, %v3331_v2, %v10011_v26 }
 0x268   : > { %v2744_v22 = vpop.permute.xlu0 %2743  ;;  %v2742_v53 = vpop.permute.xlu1 %2741  ;;  %v3380_v51 = vor.u32 %v3379_v38, %v10042_v49  ;;  %v3389_v32 = vrot.slane %v3387_v59, 4  ;;  %v3351_v15 = vrot.slane %v3350_v57, 4  ;;  %v3371_v26 = vrot.slane %v3370_v11, 4  ;;  %v2965_v59 = vld [vmem:[#allocation2 + $0xd0] sm:$0xf] }
 0x269   : > { %2886 = vst.msk [vmem:[#allocation3 + $0x68] sm:$0xf] %vm2859_vm1, %v2744_v22  ;;  %2885 = vst.msk [vmem:[#allocation3 + $0x64] sm:$0xf] %vm2859_vm1, %v2742_v53  ;;  %v3346_v22 = vsel %vm8095_vm11, %v3341_v9, %v3345_v33  ;;  %v3403_v53 = vshll.u32 %v2959_v23, 16  ;;  %v10070_v4 = vrot.slane %v3413_v14, 5 }
 0x26a   : > { %3593 = vrot.lane.b32.xlu0 %v3266_v24, %s7843_s21  ;;  %3591 = vrot.lane.b32.xlu1 %v3256_v21, %s7843_s21  ;;  %v3383_v24 = vshll.u32 %v2957_v41, 16  ;;  %v3417_v21 = vshrl.u32 %v2960_v12, 16  ;;  %v3381_v54 = vrot.slane %v3380_v51, 4  ;;  %v3356_v42 = vsel %vm8095_vm11, %v3351_v15, %v10029_v29  ;;  %v2966_v41 = vld [vmem:[#allocation2 + $0xd4] sm:$0xf] }
 0x26b   : > { %v3405_v55 = vrot.slane %v3403_v53, 5  ;;  %v3376_v37 = vsel %vm8095_vm11, %v3371_v26, %v10042_v49  ;;  %v3473_v12 = vshll.u32 %v2966_v41, 16  ;;  %v3477_v49 = vshrl.u32 %v2966_v41, 16  ;;  %v2967_v53 = vld [vmem:[#allocation2 + $0xd8] sm:$0xf] }
 0x26c   : > { %v2748_v52 = vpop.permute.xlu0 %2747  ;;  %v2746_v19 = vpop.permute.xlu1 %2745  ;;  %v3385_v5 = vrot.slane %v3383_v24, 5  ;;  %v3419_v17 = vrot.slane %v3417_v21, 4  ;;  %v10093_v24 = vrot.slane %v3453_v43, 5  ;;  %v3463_v21 = vshll.u32 %v2965_v59, 16 }
 0x26d   : > { %2888 = vst.msk [vmem:[#allocation3 + $0x70] sm:$0xf] %vm2859_vm1, %v2748_v52  ;;  %2887 = vst.msk [vmem:[#allocation3 + $0x6c] sm:$0xf] %vm2859_vm1, %v2746_v19  ;;  %v3366_v52 = vsel %vm8095_vm11, %v3361_v60, %v10039_v36  ;;  %v3423_v19 = vshll.u32 %v2961_v0, 16  ;;  %v3410_v29 = vor.u32 %v3409_v18, %v3405_v55  ;;  %v3479_v7 = vrot.slane %v3477_v49, 4 }
 0x26e   : > { %3597 = vrot.lane.b32.xlu0 %v3286_v61, %s7843_s21  ;;  %3595 = vrot.lane.b32.xlu1 %v3276_v28, %s7843_s21  ;;  %v3399_v28 = vrot.slane %v3397_v34, 4  ;;  %v3433_v61 = vshll.u32 %v2962_v48, 16  ;;  %v3390_v39 = vor.u32 %v3389_v32, %v3385_v5  ;;  %v3386_v50 = vsel %vm8095_vm11, %v3381_v54, %v3385_v5  ;;  %v2968_v48 = vld [vmem:[#allocation2 + $0xdc] sm:$0xf] }
 0x26f   : > { %v3420_v36 = vor.u32 %v3419_v17, %v10070_v4  ;;  %v3425_v46 = vrot.slane %v3423_v19, 5  ;;  %v3411_v11 = vrot.slane %v3410_v29, 4  ;;  %v10104_v5 = vrot.slane %v3473_v12, 5  ;;  %v2969_v19 = vld [vmem:[#allocation2 + $0xe0] sm:$0xf] }
 0x270   : > { %v2752_v1 = vpop.permute.xlu0 %2751  ;;  %v2750_v27 = vpop.permute.xlu1 %2749  ;;  %v3400_v40 = vor.u32 %v3399_v28, %v10058_v47  ;;  %v10076_v56 = vrot.slane %v3433_v61, 5  ;;  %v3467_v28 = vshrl.u32 %v2965_v59, 16  ;;  %v3465_v54 = vrot.slane %v3463_v21, 5 }
 0x271   : > { %2890 = vst.msk [vmem:[#allocation3 + $0x78] sm:$0xf] %vm2859_vm1, %v2752_v1  ;;  %2889 = vst.msk [vmem:[#allocation3 + $0x74] sm:$0xf] %vm2859_vm1, %v2750_v27  ;;  %v3439_v1 = vrot.slane %v3437_v25, 4  ;;  %v3421_v23 = vrot.slane %v3420_v36, 4  ;;  %v3416_v15 = vsel %vm8095_vm11, %v3411_v11, %v10070_v4  ;;  %v3480_v4 = vor.u32 %v3479_v7, %v10104_v5 }
 0x272   : > { %3601 = vrot.lane.b32.xlu0 %v3306_v10, %s7843_s21  ;;  %3599 = vrot.lane.b32.xlu1 %v3296_v16, %s7843_s21  ;;  %v3427_v10 = vshrl.u32 %v2961_v0, 16  ;;  %v2963_v16 = vld [vmem:[#allocation2 + $0xc8] sm:$0xf]  ;;  %v3401_v9 = vrot.slane %v3400_v40, 4  ;;  %v3469_v40 = vrot.slane %v3467_v28, 4  ;;  %v3483_v17 = vshll.u32 %v2967_v53, 16 }
 0x273   : > { %v3443_v38 = vshll.u32 %v2963_v16, 16  ;;  %v3447_v27 = vshrl.u32 %v2963_v16, 16  ;;  %v3426_v25 = vsel %vm8095_vm11, %v3421_v23, %v3425_v46  ;;  %v3487_v8 = vshrl.u32 %v2967_v53, 16  ;;  %v3762_v7 = vld [vmem:[#allocation2 + $0xc] sm:$0xe] }
 0x274   : > { %v2756_v20 = vpop.permute.xlu0 %2755  ;;  %v2754_v63 = vpop.permute.xlu1 %2753  ;;  %v3429_v34 = vrot.slane %v3427_v10, 4  ;;  %v3406_v57 = vsel %vm8095_vm11, %v3401_v9, %v3405_v55  ;;  %v3503_v41 = vshll.u32 %v2969_v19, 16  ;;  %v3481_v29 = vrot.slane %v3480_v4, 4  ;;  %v3766_v4 = vld [vmem:[#allocation2 + $0x1c] sm:$0xf] }
 0x275   : > { %2892 = vst.msk [vmem:[#allocation3 + $0x80] sm:$0xf] %vm2859_vm1, %v2756_v20  ;;  %2891 = vst.msk [vmem:[#allocation3 + $0x7c] sm:$0xf] %vm2859_vm1, %v2754_v63  ;;  %v3440_v20 = vor.u32 %v3439_v1, %v10076_v56  ;;  %v3445_v60 = vrot.slane %v3443_v38, 5  ;;  %v3449_v51 = vrot.slane %v3447_v27, 4 }
 0x276   : > { %3605 = vrot.lane.b32.xlu0 %v3326_v6, %s7843_s21  ;;  %3603 = vrot.lane.b32.xlu1 %v3316_v35, %s7843_s21  ;;  %v3391_v6 = vrot.slane %v3390_v39, 4  ;;  %v3459_v35 = vrot.slane %v3457_v3, 4  ;;  %v3430_v14 = vor.u32 %v3429_v34, %v3425_v46  ;;  %v3470_v3 = vor.u32 %v3469_v40, %v3465_v54 }
 0x277   : > { %v3450_v0 = vor.u32 %v3449_v51, %v3445_v60  ;;  %v3505_v12 = vrot.slane %v3503_v41, 5 }
 0x278   : > { %v2760_v44 = vpop.permute.xlu0 %2759  ;;  %v2758_v45 = vpop.permute.xlu1 %2757  ;;  %v3396_v63 = vsel %vm8095_vm11, %v3391_v6, %v10058_v47  ;;  %v3460_v32 = vor.u32 %v3459_v35, %v10093_v24  ;;  %v3497_v47 = vshrl.u32 %v2968_v48, 16  ;;  %v2971_v6 = vld [vmem:[#allocation2 + $0xe8] sm:$0xf] }
 0x279   : > { %2894 = vst.msk [vmem:[#allocation3 + $0x88] sm:$0xf] %vm2859_vm1, %v2760_v44  ;;  %2893 = vst.msk [vmem:[#allocation3 + $0x84] sm:$0xf] %vm2859_vm1, %v2758_v45  ;;  %v3441_v44 = vrot.slane %v3440_v20, 4  ;;  %v3451_v43 = vrot.slane %v3450_v0, 4 }
 0x27a   : > { %3609 = vrot.lane.b32.xlu0 %v3346_v22, %s7843_s21  ;;  %3607 = vrot.lane.b32.xlu1 %v3336_v58, %s7843_s21  ;;  %v3493_v58 = vshll.u32 %v2968_v48, 16  ;;  %v2970_v45 = vld [vmem:[#allocation2 + $0xe4] sm:$0xf]  ;;  %v3461_v39 = vrot.slane %v3460_v32, 4  ;;  %v3499_v1 = vrot.slane %v3497_v47, 4  ;;  %v3471_v20 = vrot.slane %v3470_v3, 4 }
 0x27b   : > { %v3446_v26 = vsel %vm8095_vm11, %v3441_v44, %v3445_v60  ;;  %v3513_v10 = vshll.u32 %v2970_v45, 16  ;;  %v3517_v16 = vshrl.u32 %v2970_v45, 16  ;;  %v3523_v35 = vshll.u32 %v2971_v6, 16  ;;  %v2972_v44 = vld [vmem:[#allocation2 + $0xec] sm:$0x1] }
 0x27c   : > { %v2764_v30 = vpop.permute.xlu0 %2763  ;;  %v2762_v33 = vpop.permute.xlu1 %2761  ;;  %v10119_v18 = vrot.slane %v3493_v58, 5  ;;  %v3466_v36 = vsel %vm8095_vm11, %v3461_v39, %v3465_v54  ;;  %v3476_v60 = vsel %vm8095_vm11, %v3471_v20, %v10104_v5  ;;  %v3533_v58 = vshll.u32 %v2972_v44, 16  ;;  %v3763_v47 = vld [vmem:[#allocation2 + $0x10] sm:$0xf]  ;;  %v3765_v39 = vld [vmem:[#allocation2 + $0x18] sm:$0xf] }
 0x27d   : > { %2896 = vst.msk [vmem:[#allocation3 + $0x90] sm:$0xf] %vm2859_vm1, %v2764_v30  ;;  %2895 = vst.msk [vmem:[#allocation3 + $0x8c] sm:$0xf] %vm2859_vm1, %v2762_v33  ;;  %v3431_v30 = vrot.slane %v3430_v14, 4  ;;  %v3485_v33 = vrot.slane %v3483_v17, 5 }
 0x27e   : > { %3613 = vrot.lane.b32.xlu0 %v3366_v52, %s7843_s21  ;;  %3611 = vrot.lane.b32.xlu1 %v3356_v42, %s7843_s21  ;;  %v10130_v38 = vrot.slane %v3513_v10, 5  ;;  %v3500_v27 = vor.u32 %v3499_v1, %v10119_v18  ;;  %v3519_v46 = vrot.slane %v3517_v16, 4  ;;  %v6950_v45 = vrot.slane %v3762_v7, 9  ;;  %v3767_v3 = vld [vmem:[#allocation2 + $0x20] sm:$0xf] }
 0x27f   : > { %v3436_v9 = vsel %vm8095_vm11, %v3431_v30, %v10076_v56  ;;  %v3456_v56 = vsel %vm8095_vm11, %v3451_v43, %v10093_v24  ;;  %v3486_v23 = vsel %vm8095_vm11, %v3481_v29, %v3485_v33  ;;  %v3878_v40 = vrot.slane %v3763_v47, 5  ;;  %v3776_v47 = vld [vmem:[#allocation2 + $0x44] sm:$0xf] }
 0x280   : > { %v2768_v62 = vpop.permute.xlu0 %2767  ;;  %v2766_v2 = vpop.permute.xlu1 %2765  ;;  %v3520_v11 = vor.u32 %v3519_v46, %v10130_v38  ;;  %v3884_v16 = vrot.slane %v3765_v39, 5  ;;  %v3887_v1 = vrot.slane %v3766_v4, 5 }
 0x281   : > { %2898 = vst.msk [vmem:[#allocation3 + $0x98] sm:$0xf] %vm2859_vm1, %v2768_v62  ;;  %2897 = vst.msk [vmem:[#allocation3 + $0x94] sm:$0xf] %vm2859_vm1, %v2766_v2  ;;  %v3527_v2 = vshrl.u32 %v2971_v6, 16  ;;  %v3880_v43 = vrot.slane %v3878_v40, 4 }
 0x282   : > { %3617 = vrot.lane.b32.xlu0 %v3386_v50, %s7843_s21  ;;  %3615 = vrot.lane.b32.xlu1 %v3376_v37, %s7843_s21  ;;  %v3489_v50 = vrot.slane %v3487_v8, 4  ;;  %v3507_v37 = vshrl.u32 %v2969_v19, 16  ;;  %v3521_v32 = vrot.slane %v3520_v11, 4  ;;  %v3770_v6 = vld [vmem:[#allocation2 + $0x2c] sm:$0xf] }
 0x283   : > { %v3529_v14 = vrot.slane %v3527_v2, 4  ;;  %v3771_v2 = vld [vmem:[#allocation2 + $0x30] sm:$0xf] }
 0x284   : > { %v2772_v22 = vpop.permute.xlu0 %2771  ;;  %v2770_v61 = vpop.permute.xlu1 %2769  ;;  %v3490_v59 = vor.u32 %v3489_v50, %v3485_v33  ;;  %v3509_v49 = vrot.slane %v3507_v37, 4  ;;  %v3768_v33 = vld [vmem:[#allocation2 + $0x24] sm:$0xf]  ;;  %v3890_v37 = vrot.slane %v3767_v3, 5 }
 0x285   : > { %2900 = vst.msk [vmem:[#allocation3 + $0xa0] sm:$0xf] %vm2859_vm1, %v2772_v22  ;;  %2899 = vst.msk [vmem:[#allocation3 + $0x9c] sm:$0xf] %vm2859_vm1, %v2770_v61  ;;  %v3501_v22 = vrot.slane %v3500_v27, 4 }
 0x286   : > { %3621 = vrot.lane.b32.xlu0 %v3406_v57, %s7843_s21  ;;  %3619 = vrot.lane.b32.xlu1 %v3396_v63, %s7843_s21  ;;  %v3491_v51 = vrot.slane %v3490_v59, 4  ;;  %v3510_v48 = vor.u32 %v3509_v49, %v3505_v12  ;;  %v3525_v63 = vrot.slane %v3523_v35, 5  ;;  %v3769_v27 = vld [vmem:[#allocation2 + $0x28] sm:$0xf]  ;;  %v3892_v35 = vrot.slane %v3890_v37, 4 }
 0x287   : > { %v3506_v28 = vsel %vm8095_vm11, %v3501_v22, %v3505_v12  ;;  %v3896_v59 = vrot.slane %v3769_v27, 5  ;;  %v3899_v12 = vrot.slane %v3770_v6, 5 }
 0x288   : > { %v2776_v52 = vpop.permute.xlu0 %2775  ;;  %v2774_v55 = vpop.permute.xlu1 %2773  ;;  %v3496_v5 = vsel %vm8095_vm11, %v3491_v51, %v10119_v18  ;;  %v3511_v61 = vrot.slane %v3510_v48, 4  ;;  %v3526_v0 = vsel %vm8095_vm11, %v3521_v32, %v3525_v63  ;;  %v3879_v18 = vsel %vm9463_vm13, %v6950_v45, %v3878_v40 }
 0x289   : > { %2902 = vst.msk [vmem:[#allocation3 + $0xa8] sm:$0xf] %vm2859_vm1, %v2776_v52  ;;  %2901 = vst.msk [vmem:[#allocation3 + $0xa4] sm:$0xf] %vm2859_vm1, %v2774_v55  ;;  %v3901_v11 = vrot.slane %v3899_v12, 4  ;;  %v3917_v40 = vrot.slane %v3776_v47, 5 }
 0x28a   : > { %3625 = vrot.lane.b32.xlu0 %v3426_v25, %s7843_s21  ;;  %3623 = vrot.lane.b32.xlu1 %v3416_v15, %s7843_s21  ;;  %v3530_v25 = vor.u32 %v3529_v14, %v3525_v63  ;;  %v3764_v15 = vld [vmem:[#allocation2 + $0x14] sm:$0xf]  ;;  %v3516_v8 = vsel %vm8095_vm11, %v3511_v61, %v10130_v38  ;;  %v3886_v38 = vrot.slane %v3884_v16, 4  ;;  %v3898_v63 = vrot.slane %v3896_v59, 4  ;;  %v3773_v14 = vld [vmem:[#allocation2 + $0x38] sm:$0xf] }
 0x28b   : > { %v3881_v17 = vrot.slane %v3764_v15, 5  ;;  %v3908_v7 = vrot.slane %v3773_v14, 5 }
 0x28c   : > { %v2780_v42 = vpop.permute.xlu0 %2779  ;;  %v2778_v62 = vpop.permute.xlu1 %2777  ;;  %v3531_v30 = vrot.slane %v3530_v25, 4  ;;  %v3888_v49 = vsel %vm9463_vm13, %v3886_v38, %v3887_v1  ;;  %v3900_v61 = vsel %vm9463_vm13, %v3898_v63, %v3899_v12  ;;  %v3782_v38 = vld [vmem:[#allocation2 + $0x5c] sm:$0xf]  ;;  %v3786_v63 = vld [vmem:[#allocation2 + $0x6c] sm:$0xf] }
 0x28d   : > { %2904 = vst.msk [vmem:[#allocation3 + $0xb0] sm:$0xf] %vm2859_vm1, %v2780_v42  ;;  %2903 = vst.msk [vmem:[#allocation3 + $0xac] sm:$0xf] %vm2859_vm1, %v2778_v62  ;;  %v3883_v19 = vrot.slane %v3881_v17, 4  ;;  %v3893_v62 = vrot.slane %v3768_v33, 5  ;;  %v3882_v29 = vsel %vm9463_vm13, %v3880_v43, %v3881_v17 }
 0x28e   : > { %3629 = vrot.lane.b32.xlu0 %v3446_v26, %s7843_s21  ;;  %3627 = vrot.lane.b32.xlu1 %v3436_v9, %s7843_s21  ;;  %v3535_v26 = vrot.slane %v3533_v58, 5  ;;  %v3775_v58 = vld [vmem:[#allocation2 + $0x40] sm:$0xf]  ;;  %v3780_v43 = vld [vmem:[#allocation2 + $0x54] sm:$0xf] }
 0x28f   : > { %v3885_v9 = vsel %vm9463_vm13, %v3883_v19, %v3884_v16  ;;  %v3894_v48 = vsel %vm9463_vm13, %v3892_v35, %v3893_v62  ;;  %v3784_v35 = vld [vmem:[#allocation2 + $0x64] sm:$0xf] }
 0x290   : > { %v2784_v34 = vpop.permute.xlu0 %2783  ;;  %v2782_v57 = vpop.permute.xlu1 %2781  ;;  %v3536_v42 = vsel %vm8095_vm11, %v3531_v30, %v3535_v26  ;;  %v3777_v30 = vld [vmem:[#allocation2 + $0x48] sm:$0xf]  ;;  %v3778_v26 = vld [vmem:[#allocation2 + $0x4c] sm:$0xf] }
 0x291   : > { %2906 = vst.msk [vmem:[#allocation3 + $0xb8] sm:$0xf] %vm2859_vm1, %v2784_v34  ;;  %2905 = vst.msk [vmem:[#allocation3 + $0xb4] sm:$0xf] %vm2859_vm1, %v2782_v57  ;;  %v3772_v57 = vld [vmem:[#allocation2 + $0x34] sm:$0xf] }
 0x292   : > { %3633 = vrot.lane.b32.xlu0 %v3466_v36, %s7843_s21  ;;  %3631 = vrot.lane.b32.xlu1 %v3456_v56, %s7843_s21  ;;  %v3889_v36 = vrot.slane %v3887_v1, 4  ;;  %v3895_v56 = vrot.slane %v3893_v62, 4  ;;  %v3905_v51 = vrot.slane %v3772_v57, 5  ;;  %v3920_v19 = vrot.slane %v3777_v30, 5 }
 0x294   : > { %v2788_v24 = vpop.permute.xlu0 %2787  ;;  %v2786_v21 = vpop.permute.xlu1 %2785  ;;  %v3891_v34 = vsel %vm9463_vm13, %v3889_v36, %v3890_v37  ;;  %v3897_v22 = vsel %vm9463_vm13, %v3895_v56, %v3896_v59  ;;  %v3907_v32 = vrot.slane %v3905_v51, 4  ;;  %v3922_v62 = vrot.slane %v3920_v19, 4 }
 0x295   : > { %2908 = vst.msk [vmem:[#allocation3 + $0xc0] sm:$0xf] %vm2859_vm1, %v2788_v24  ;;  %2907 = vst.msk [vmem:[#allocation3 + $0xbc] sm:$0xf] %vm2859_vm1, %v2786_v21  ;;  %v3774_v21 = vld [vmem:[#allocation2 + $0x3c] sm:$0xf] }
 0x296   : > { %3637 = vrot.lane.b32.xlu0 %v3486_v23, %s7843_s21  ;;  %3635 = vrot.lane.b32.xlu1 %v3476_v60, %s7843_s21  ;;  %v3902_v60 = vrot.slane %v3771_v2, 5 }
 0x298   : > { %v2792_v53 = vpop.permute.xlu0 %2791  ;;  %v2790_v52 = vpop.permute.xlu1 %2789  ;;  %v3903_v44 = vsel %vm9463_vm13, %v3901_v11, %v3902_v60  ;;  %v3904_v25 = vrot.slane %v3902_v60, 4 }
 0x299   : > { %2910 = vst.msk [vmem:[#allocation3 + $0xc8] sm:$0xf] %vm2859_vm1, %v2792_v53  ;;  %2909 = vst.msk [vmem:[#allocation3 + $0xc4] sm:$0xf] %vm2859_vm1, %v2790_v52  ;;  %v3909_v52 = vsel %vm9463_vm13, %v3907_v32, %v3908_v7 }
 0x29a   : > { %3641 = vrot.lane.b32.xlu0 %v3506_v28, %s7843_s21  ;;  %3639 = vrot.lane.b32.xlu1 %v3496_v5, %s7843_s21  ;;  %v3911_v5 = vrot.slane %v3774_v21, 5  ;;  %v3906_v17 = vsel %vm9463_vm13, %v3904_v25, %v3905_v51  ;;  %v3788_v25 = vld [vmem:[#allocation2 + $0x74] sm:$0xf] }
 0x29c   : > { %v2796_v54 = vpop.permute.xlu0 %2795  ;;  %v2794_v55 = vpop.permute.xlu1 %2793 }
 0x29d   : > { %2912 = vst.msk [vmem:[#allocation3 + $0xd0] sm:$0xf] %vm2859_vm1, %v2796_v54  ;;  %2911 = vst.msk [vmem:[#allocation3 + $0xcc] sm:$0xf] %vm2859_vm1, %v2794_v55  ;;  %v3914_v54 = vrot.slane %v3775_v58, 5  ;;  %v3919_v55 = vrot.slane %v3917_v40, 4 }
 0x29e   : > { %3645 = vrot.lane.b32.xlu0 %v3526_v0, %s7843_s21  ;;  %3643 = vrot.lane.b32.xlu1 %v3516_v8, %s7843_s21  ;;  %v3913_v0 = vrot.slane %v3911_v5, 4  ;;  %v3910_v8 = vrot.slane %v3908_v7, 4 }
 0x29f   : > { %v3916_v1 = vrot.slane %v3914_v54, 4  ;;  %v3921_v33 = vsel %vm9463_vm13, %v3919_v55, %v3920_v19 }
 0x2a0   : > { %v2800_v10 = vpop.permute.xlu0 %2799  ;;  %v2798_v50 = vpop.permute.xlu1 %2797  ;;  %v3915_v4 = vsel %vm9463_vm13, %v3913_v0, %v3914_v54  ;;  %v3912_v16 = vsel %vm9463_vm13, %v3910_v8, %v3911_v5  ;;  %v3790_v8 = vld [vmem:[#allocation2 + $0x7c] sm:$0xf] }
 0x2a1   : > { %2914 = vst.msk [vmem:[#allocation3 + $0xd8] sm:$0xf] %vm2859_vm1, %v2800_v10  ;;  %2913 = vst.msk [vmem:[#allocation3 + $0xd4] sm:$0xf] %vm2859_vm1, %v2798_v50  ;;  %v3923_v10 = vrot.slane %v3778_v26, 5  ;;  %v3918_v37 = vsel %vm9463_vm13, %v3916_v1, %v3917_v40 }
 0x2a2   : > { %4045 = vrot.lane.b32.xlu0 %v3879_v18, %s7844_s23  ;;  %3647 = vrot.lane.b32.xlu1 %v3536_v42, %s7843_s21  ;;  %v3779_v42 = vld [vmem:[#allocation2 + $0x50] sm:$0xf]  ;;  %v3792_v1 = vld [vmem:[#allocation2 + $0x84] sm:$0xf] }
 0x2a3   : > { %v3925_v50 = vrot.slane %v3923_v10, 4  ;;  %v3926_v36 = vrot.slane %v3779_v42, 5  ;;  %v3924_v59 = vsel %vm9463_vm13, %v3922_v62, %v3923_v10  ;;  %v3794_v62 = vld [vmem:[#allocation2 + $0x8c] sm:$0xf] }
 0x2a4   : > { %v3538_v41 = vpop.permute.xlu0 %3537  ;;  %v2802_v46 = vpop.permute.xlu1 %2801 }
 0x2a5   : > { %3706 = vst.msk [vmem:[#allocation3] sm:$0xf] %vm3705_vm3, %v3538_v41  ;;  %v3929_v41 = vrot.slane %v3780_v43, 5  ;;  %v3927_v6 = vsel %vm9463_vm13, %v3925_v50, %v3926_v36  ;;  %v3928_v12 = vrot.slane %v3926_v36, 4 }
 0x2a6   : > { %4049 = vrot.lane.b32.xlu0 %v3885_v9, %s7844_s23  ;;  %2915 = vst.msk [vmem:[#allocation3 + $0xdc] sm:$0xf] %vm2859_vm1, %v2802_v46  ;;  %4047 = vrot.lane.b32.xlu1 %v3882_v29, %s7844_s23  ;;  %v3781_v29 = vld [vmem:[#allocation2 + $0x58] sm:$0xf] }
 0x2a7   : > { %v3931_v46 = vrot.slane %v3929_v41, 4  ;;  %v3932_v56 = vrot.slane %v3781_v29, 5  ;;  %v3930_v60 = vsel %vm9463_vm13, %v3928_v12, %v3929_v41  ;;  %v3796_v12 = vld [vmem:[#allocation2 + $0x94] sm:$0xf] }
 0x2a8   : > { %v3542_v20 = vpop.permute.xlu0 %3541  ;;  %v3540_v23 = vpop.permute.xlu1 %3539 }
 0x2a9   : > { %3708 = vst.msk [vmem:[#allocation3 + $0x8] sm:$0xf] %vm3705_vm3, %v3542_v20  ;;  %3707 = vst.msk [vmem:[#allocation3 + $0x4] sm:$0xf] %vm3705_vm3, %v3540_v23  ;;  %v3935_v20 = vrot.slane %v3782_v38, 5  ;;  %v3933_v57 = vsel %vm9463_vm13, %v3931_v46, %v3932_v56  ;;  %v3934_v51 = vrot.slane %v3932_v56, 4 }
 0x2aa   : > { %4053 = vrot.lane.b32.xlu0 %v3891_v34, %s7844_s23  ;;  %4051 = vrot.lane.b32.xlu1 %v3888_v49, %s7844_s23  ;;  %v3783_v49 = vld [vmem:[#allocation2 + $0x60] sm:$0xf] }
 0x2ab   : > { %v3937_v23 = vrot.slane %v3935_v20, 4  ;;  %v3938_v11 = vrot.slane %v3783_v49, 5  ;;  %v3936_v7 = vsel %vm9463_vm13, %v3934_v51, %v3935_v20  ;;  %v3798_v51 = vld [vmem:[#allocation2 + $0x9c] sm:$0xf] }
 0x2ac   : > { %v3546_v24 = vpop.permute.xlu0 %3545  ;;  %v3544_v28 = vpop.permute.xlu1 %3543 }
 0x2ad   : > { %3710 = vst.msk [vmem:[#allocation3 + $0x10] sm:$0xf] %vm3705_vm3, %v3546_v24  ;;  %3709 = vst.msk [vmem:[#allocation3 + $0xc] sm:$0xf] %vm3705_vm3, %v3544_v28  ;;  %v3941_v24 = vrot.slane %v3784_v35, 5  ;;  %v3939_v21 = vsel %vm9463_vm13, %v3937_v23, %v3938_v11  ;;  %v3940_v5 = vrot.slane %v3938_v11, 4 }
 0x2ae   : > { %4057 = vrot.lane.b32.xlu0 %v3897_v22, %s7844_s23  ;;  %4055 = vrot.lane.b32.xlu1 %v3894_v48, %s7844_s23  ;;  %v3785_v48 = vld [vmem:[#allocation2 + $0x68] sm:$0xf] }
 0x2af   : > { %v3943_v28 = vrot.slane %v3941_v24, 4  ;;  %v3944_v32 = vrot.slane %v3785_v48, 5  ;;  %v3942_v54 = vsel %vm9463_vm13, %v3940_v5, %v3941_v24  ;;  %v3800_v5 = vld [vmem:[#allocation2 + $0xa4] sm:$0xf] }
 0x2b0   : > { %v3550_v53 = vpop.permute.xlu0 %3549  ;;  %v3548_v15 = vpop.permute.xlu1 %3547 }
 0x2b1   : > { %3712 = vst.msk [vmem:[#allocation3 + $0x18] sm:$0xf] %vm3705_vm3, %v3550_v53  ;;  %3711 = vst.msk [vmem:[#allocation3 + $0x14] sm:$0xf] %vm3705_vm3, %v3548_v15  ;;  %v3947_v53 = vrot.slane %v3786_v63, 5  ;;  %v3945_v47 = vsel %vm9463_vm13, %v3943_v28, %v3944_v32  ;;  %v3946_v40 = vrot.slane %v3944_v32, 4 }
 0x2b2   : > { %4061 = vrot.lane.b32.xlu0 %v3903_v44, %s7844_s23  ;;  %4059 = vrot.lane.b32.xlu1 %v3900_v61, %s7844_s23  ;;  %v3787_v61 = vld [vmem:[#allocation2 + $0x70] sm:$0xf] }
 0x2b3   : > { %v3949_v15 = vrot.slane %v3947_v53, 4  ;;  %v3950_v0 = vrot.slane %v3787_v61, 5  ;;  %v3948_v19 = vsel %vm9463_vm13, %v3946_v40, %v3947_v53  ;;  %v3802_v40 = vld [vmem:[#allocation2 + $0xac] sm:$0xf] }
 0x2b4   : > { %v3554_v45 = vpop.permute.xlu0 %3553  ;;  %v3552_v39 = vpop.permute.xlu1 %3551 }
 0x2b5   : > { %3714 = vst.msk [vmem:[#allocation3 + $0x20] sm:$0xf] %vm3705_vm3, %v3554_v45  ;;  %3713 = vst.msk [vmem:[#allocation3 + $0x1c] sm:$0xf] %vm3705_vm3, %v3552_v39  ;;  %v3953_v45 = vrot.slane %v3788_v25, 5  ;;  %v3951_v26 = vsel %vm9463_vm13, %v3949_v15, %v3950_v0  ;;  %v3952_v10 = vrot.slane %v3950_v0, 4 }
 0x2b6   : > { %4065 = vrot.lane.b32.xlu0 %v3909_v52, %s7844_s23  ;;  %4063 = vrot.lane.b32.xlu1 %v3906_v17, %s7844_s23  ;;  %v3789_v17 = vld [vmem:[#allocation2 + $0x78] sm:$0xf] }
 0x2b7   : > { %v3955_v39 = vrot.slane %v3953_v45, 4  ;;  %v3956_v55 = vrot.slane %v3789_v17, 5  ;;  %v3954_v36 = vsel %vm9463_vm13, %v3952_v10, %v3953_v45  ;;  %v3804_v10 = vld [vmem:[#allocation2 + $0xb4] sm:$0xf] }
 0x2b8   : > { %v3558_v18 = vpop.permute.xlu0 %3557  ;;  %v3556_v3 = vpop.permute.xlu1 %3555 }
 0x2b9   : > { %3716 = vst.msk [vmem:[#allocation3 + $0x28] sm:$0xf] %vm3705_vm3, %v3558_v18  ;;  %3715 = vst.msk [vmem:[#allocation3 + $0x24] sm:$0xf] %vm3705_vm3, %v3556_v3  ;;  %v3959_v18 = vrot.slane %v3790_v8, 5  ;;  %v3957_v43 = vsel %vm9463_vm13, %v3955_v39, %v3956_v55  ;;  %v3958_v41 = vrot.slane %v3956_v55, 4 }
 0x2ba   : > { %4069 = vrot.lane.b32.xlu0 %v3915_v4, %s7844_s23  ;;  %4067 = vrot.lane.b32.xlu1 %v3912_v16, %s7844_s23  ;;  %v3791_v16 = vld [vmem:[#allocation2 + $0x80] sm:$0xf] }
 0x2bb   : > { %v3961_v3 = vrot.slane %v3959_v18, 4  ;;  %v3962_v50 = vrot.slane %v3791_v16, 5  ;;  %v3960_v56 = vsel %vm9463_vm13, %v3958_v41, %v3959_v18  ;;  %v3806_v41 = vld [vmem:[#allocation2 + $0xbc] sm:$0xf] }
 0x2bc   : > { %v3562_v9 = vpop.permute.xlu0 %3561  ;;  %v3560_v27 = vpop.permute.xlu1 %3559 }
 0x2bd   : > { %3718 = vst.msk [vmem:[#allocation3 + $0x30] sm:$0xf] %vm3705_vm3, %v3562_v9  ;;  %3717 = vst.msk [vmem:[#allocation3 + $0x2c] sm:$0xf] %vm3705_vm3, %v3560_v27  ;;  %v3965_v9 = vrot.slane %v3792_v1, 5  ;;  %v3963_v38 = vsel %vm9463_vm13, %v3961_v3, %v3962_v50  ;;  %v3964_v20 = vrot.slane %v3962_v50, 4 }
 0x2be   : > { %4073 = vrot.lane.b32.xlu0 %v3921_v33, %s7844_s23  ;;  %4071 = vrot.lane.b32.xlu1 %v3918_v37, %s7844_s23  ;;  %v3793_v37 = vld [vmem:[#allocation2 + $0x88] sm:$0xf] }
 0x2bf   : > { %v3967_v27 = vrot.slane %v3965_v9, 4  ;;  %v3968_v46 = vrot.slane %v3793_v37, 5  ;;  %v3966_v11 = vsel %vm9463_vm13, %v3964_v20, %v3965_v9  ;;  %v3808_v20 = vld [vmem:[#allocation2 + $0xc4] sm:$0xf] }
 0x2c0   : > { %v3566_v34 = vpop.permute.xlu0 %3565  ;;  %v3564_v2 = vpop.permute.xlu1 %3563 }
 0x2c1   : > { %3720 = vst.msk [vmem:[#allocation3 + $0x38] sm:$0xf] %vm3705_vm3, %v3566_v34  ;;  %3719 = vst.msk [vmem:[#allocation3 + $0x34] sm:$0xf] %vm3705_vm3, %v3564_v2  ;;  %v3971_v34 = vrot.slane %v3794_v62, 5  ;;  %v3969_v35 = vsel %vm9463_vm13, %v3967_v27, %v3968_v46  ;;  %v3970_v24 = vrot.slane %v3968_v46, 4 }
 0x2c2   : > { %4077 = vrot.lane.b32.xlu0 %v3927_v6, %s7844_s23  ;;  %4075 = vrot.lane.b32.xlu1 %v3924_v59, %s7844_s23  ;;  %v3795_v59 = vld [vmem:[#allocation2 + $0x90] sm:$0xf] }
 0x2c3   : > { %v3973_v2 = vrot.slane %v3971_v34, 4  ;;  %v3974_v23 = vrot.slane %v3795_v59, 5  ;;  %v3972_v32 = vsel %vm9463_vm13, %v3970_v24, %v3971_v34  ;;  %v3810_v24 = vld [vmem:[#allocation2 + $0xcc] sm:$0xf] }
 0x2c4   : > { %v3570_v22 = vpop.permute.xlu0 %3569  ;;  %v3568_v14 = vpop.permute.xlu1 %3567 }
 0x2c5   : > { %3722 = vst.msk [vmem:[#allocation3 + $0x40] sm:$0xf] %vm3705_vm3, %v3570_v22  ;;  %3721 = vst.msk [vmem:[#allocation3 + $0x3c] sm:$0xf] %vm3705_vm3, %v3568_v14  ;;  %v3977_v22 = vrot.slane %v3796_v12, 5  ;;  %v3975_v63 = vsel %vm9463_vm13, %v3973_v2, %v3974_v23  ;;  %v3976_v53 = vrot.slane %v3974_v23, 4 }
 0x2c6   : > { %4081 = vrot.lane.b32.xlu0 %v3933_v57, %s7844_s23  ;;  %4079 = vrot.lane.b32.xlu1 %v3930_v60, %s7844_s23  ;;  %v3797_v60 = vld [vmem:[#allocation2 + $0x98] sm:$0xf] }
 0x2c7   : > { %v3979_v14 = vrot.slane %v3977_v22, 4  ;;  %v3980_v28 = vrot.slane %v3797_v60, 5  ;;  %v3978_v0 = vsel %vm9463_vm13, %v3976_v53, %v3977_v22  ;;  %v3812_v53 = vld [vmem:[#allocation2 + $0xd4] sm:$0xf] }
 0x2c8   : > { %v3574_v44 = vpop.permute.xlu0 %3573  ;;  %v3572_v58 = vpop.permute.xlu1 %3571 }
 0x2c9   : > { %3724 = vst.msk [vmem:[#allocation3 + $0x48] sm:$0xf] %vm3705_vm3, %v3574_v44  ;;  %3723 = vst.msk [vmem:[#allocation3 + $0x44] sm:$0xf] %vm3705_vm3, %v3572_v58  ;;  %v3983_v44 = vrot.slane %v3798_v51, 5  ;;  %v3981_v25 = vsel %vm9463_vm13, %v3979_v14, %v3980_v28  ;;  %v3982_v45 = vrot.slane %v3980_v28, 4 }
 0x2ca   : > { %4085 = vrot.lane.b32.xlu0 %v3939_v21, %s7844_s23  ;;  %4083 = vrot.lane.b32.xlu1 %v3936_v7, %s7844_s23  ;;  %v3799_v7 = vld [vmem:[#allocation2 + $0xa0] sm:$0xf] }
 0x2cb   : > { %v3985_v58 = vrot.slane %v3983_v44, 4  ;;  %v3986_v15 = vrot.slane %v3799_v7, 5  ;;  %v3984_v55 = vsel %vm9463_vm13, %v3982_v45, %v3983_v44  ;;  %v3814_v45 = vld [vmem:[#allocation2 + $0xdc] sm:$0xf] }
 0x2cc   : > { %v3578_v52 = vpop.permute.xlu0 %3577  ;;  %v3576_v30 = vpop.permute.xlu1 %3575 }
 0x2cd   : > { %3726 = vst.msk [vmem:[#allocation3 + $0x50] sm:$0xf] %vm3705_vm3, %v3578_v52  ;;  %3725 = vst.msk [vmem:[#allocation3 + $0x4c] sm:$0xf] %vm3705_vm3, %v3576_v30  ;;  %v3989_v52 = vrot.slane %v3800_v5, 5  ;;  %v3987_v8 = vsel %vm9463_vm13, %v3985_v58, %v3986_v15  ;;  %v3988_v18 = vrot.slane %v3986_v15, 4 }
 0x2ce   : > { %4089 = vrot.lane.b32.xlu0 %v3945_v47, %s7844_s23  ;;  %4087 = vrot.lane.b32.xlu1 %v3942_v54, %s7844_s23  ;;  %v3801_v54 = vld [vmem:[#allocation2 + $0xa8] sm:$0xf] }
 0x2cf   : > { %v3991_v30 = vrot.slane %v3989_v52, 4  ;;  %v3992_v39 = vrot.slane %v3801_v54, 5  ;;  %v3990_v50 = vsel %vm9463_vm13, %v3988_v18, %v3989_v52  ;;  %v3816_v18 = vld [vmem:[#allocation2 + $0xe4] sm:$0xf] }
 0x2d0   : > { %v3582_v4 = vpop.permute.xlu0 %3581  ;;  %v3580_v42 = vpop.permute.xlu1 %3579 }
 0x2d1   : > { %3728 = vst.msk [vmem:[#allocation3 + $0x58] sm:$0xf] %vm3705_vm3, %v3582_v4  ;;  %3727 = vst.msk [vmem:[#allocation3 + $0x54] sm:$0xf] %vm3705_vm3, %v3580_v42  ;;  %v3995_v4 = vrot.slane %v3802_v40, 5  ;;  %v3993_v1 = vsel %vm9463_vm13, %v3991_v30, %v3992_v39  ;;  %v3994_v9 = vrot.slane %v3992_v39, 4 }
 0x2d2   : > { %4093 = vrot.lane.b32.xlu0 %v3951_v26, %s7844_s23  ;;  %4091 = vrot.lane.b32.xlu1 %v3948_v19, %s7844_s23  ;;  %v3803_v19 = vld [vmem:[#allocation2 + $0xb0] sm:$0xf] }
 0x2d3   : > { %v3997_v42 = vrot.slane %v3995_v4, 4  ;;  %v3998_v3 = vrot.slane %v3803_v19, 5  ;;  %v3996_v46 = vsel %vm9463_vm13, %v3994_v9, %v3995_v4 }
 0x2d4   : > { %v3586_v33 = vpop.permute.xlu0 %3585  ;;  %v3584_v29 = vpop.permute.xlu1 %3583 }
 0x2d5   : > { %3730 = vst.msk [vmem:[#allocation3 + $0x60] sm:$0xf] %vm3705_vm3, %v3586_v33  ;;  %3729 = vst.msk [vmem:[#allocation3 + $0x5c] sm:$0xf] %vm3705_vm3, %v3584_v29  ;;  %v4001_v33 = vrot.slane %v3804_v10, 5  ;;  %v3999_v62 = vsel %vm9463_vm13, %v3997_v42, %v3998_v3  ;;  %v4000_v34 = vrot.slane %v3998_v3, 4 }
 0x2d6   : > { %4097 = vrot.lane.b32.xlu0 %v3957_v43, %s7844_s23  ;;  %4095 = vrot.lane.b32.xlu1 %v3954_v36, %s7844_s23  ;;  %v3805_v36 = vld [vmem:[#allocation2 + $0xb8] sm:$0xf] }
 0x2d7   : > { %v4003_v29 = vrot.slane %v4001_v33, 4  ;;  %v4004_v27 = vrot.slane %v3805_v36, 5  ;;  %v4002_v23 = vsel %vm9463_vm13, %v4000_v34, %v4001_v33 }
 0x2d8   : > { %v3590_v6 = vpop.permute.xlu0 %3589  ;;  %v3588_v49 = vpop.permute.xlu1 %3587 }
 0x2d9   : > { %3732 = vst.msk [vmem:[#allocation3 + $0x68] sm:$0xf] %vm3705_vm3, %v3590_v6  ;;  %3731 = vst.msk [vmem:[#allocation3 + $0x64] sm:$0xf] %vm3705_vm3, %v3588_v49  ;;  %v4007_v6 = vrot.slane %v3806_v41, 5  ;;  %v4005_v12 = vsel %vm9463_vm13, %v4003_v29, %v4004_v27  ;;  %v4006_v22 = vrot.slane %v4004_v27, 4 }
 0x2da   : > { %4101 = vrot.lane.b32.xlu0 %v3963_v38, %s7844_s23  ;;  %4099 = vrot.lane.b32.xlu1 %v3960_v56, %s7844_s23  ;;  %v3807_v56 = vld [vmem:[#allocation2 + $0xc0] sm:$0xf] }
 0x2db   : > { %v4009_v49 = vrot.slane %v4007_v6, 4  ;;  %v4010_v2 = vrot.slane %v3807_v56, 5  ;;  %v4008_v28 = vsel %vm9463_vm13, %v4006_v22, %v4007_v6  ;;  %v3818_v6 = vld [vmem:[#allocation2 + $0xec] sm:$0x1]  ;;  %v4607_v56 = vld [vmem:[#allocation2 + $0x18] sm:$0xf] }
 0x2dc   : > { %v3594_v57 = vpop.permute.xlu0 %3593  ;;  %v3592_v48 = vpop.permute.xlu1 %3591  ;;  %v4635_v22 = vld [vmem:[#allocation2 + $0x88] sm:$0xf] }
 0x2dd   : > { %3734 = vst.msk [vmem:[#allocation3 + $0x70] sm:$0xf] %vm3705_vm3, %v3594_v57  ;;  %3733 = vst.msk [vmem:[#allocation3 + $0x6c] sm:$0xf] %vm3705_vm3, %v3592_v48  ;;  %v4013_v57 = vrot.slane %v3808_v20, 5  ;;  %v4011_v51 = vsel %vm9463_vm13, %v4009_v49, %v4010_v2  ;;  %v4012_v44 = vrot.slane %v4010_v2, 4 }
 0x2de   : > { %4105 = vrot.lane.b32.xlu0 %v3969_v35, %s7844_s23  ;;  %4103 = vrot.lane.b32.xlu1 %v3966_v11, %s7844_s23  ;;  %v3809_v11 = vld [vmem:[#allocation2 + $0xc8] sm:$0xf]  ;;  %v4665_v2 = vshrl.u32 %v4607_v56, 16 }
 0x2df   : > { %v4015_v48 = vrot.slane %v4013_v57, 4  ;;  %v4016_v14 = vrot.slane %v3809_v11, 5  ;;  %v4014_v15 = vsel %vm9463_vm13, %v4012_v44, %v4013_v57  ;;  %v4668_v57 = vshll.u32 %v4607_v56, 16  ;;  %v4608_v11 = vld [vmem:[#allocation2 + $0x1c] sm:$0xf] }
 0x2e0   : > { %v3598_v21 = vpop.permute.xlu0 %3597  ;;  %v3596_v61 = vpop.permute.xlu1 %3595  ;;  %v4674_v44 = vshll.u32 %v4608_v11, 16 }
 0x2e1   : > { %3736 = vst.msk [vmem:[#allocation3 + $0x78] sm:$0xf] %vm3705_vm3, %v3598_v21  ;;  %3735 = vst.msk [vmem:[#allocation3 + $0x74] sm:$0xf] %vm3705_vm3, %v3596_v61  ;;  %v4019_v21 = vrot.slane %v3810_v24, 5  ;;  %v4017_v5 = vsel %vm9463_vm13, %v4015_v48, %v4016_v14  ;;  %v4018_v52 = vrot.slane %v4016_v14, 4 }
 0x2e2   : > { %4109 = vrot.lane.b32.xlu0 %v3975_v63, %s7844_s23  ;;  %4107 = vrot.lane.b32.xlu1 %v3972_v32, %s7844_s23  ;;  %v3811_v32 = vld [vmem:[#allocation2 + $0xd0] sm:$0xf]  ;;  %v4667_v48 = vrot.slane %v4665_v2, 4  ;;  %v4944_v14 = vshll.u32 %v4635_v22, 16 }
 0x2e3   : > { %v4021_v61 = vrot.slane %v4019_v21, 4  ;;  %v4022_v58 = vrot.slane %v3811_v32, 5  ;;  %v4020_v39 = vsel %vm9463_vm13, %v4018_v52, %v4019_v21  ;;  %v4948_v21 = vshrl.u32 %v4635_v22, 16  ;;  %v10421_v22 = vld [vmem:[#allocation2 + $0x28] sm:$0xf] }
 0x2e4   : > { %v3602_v47 = vpop.permute.xlu0 %3601  ;;  %v3600_v17 = vpop.permute.xlu1 %3599  ;;  %v4678_v32 = vshrl.u32 %v4608_v11, 16 }
 0x2e5   : > { %3738 = vst.msk [vmem:[#allocation3 + $0x80] sm:$0xf] %vm3705_vm3, %v3602_v47  ;;  %3737 = vst.msk [vmem:[#allocation3 + $0x7c] sm:$0xf] %vm3705_vm3, %v3600_v17  ;;  %v4025_v47 = vrot.slane %v3812_v53, 5  ;;  %v4023_v40 = vsel %vm9463_vm13, %v4021_v61, %v4022_v58  ;;  %v4024_v4 = vrot.slane %v4022_v58, 4 }
 0x2e6   : > { %4113 = vrot.lane.b32.xlu0 %v3981_v25, %s7844_s23  ;;  %4111 = vrot.lane.b32.xlu1 %v3978_v0, %s7844_s23  ;;  %v3813_v0 = vld [vmem:[#allocation2 + $0xd8] sm:$0xf]  ;;  %v4271_v53 = vld [vmem:[#allocation2 + $0x1c] sm:$0xf]  ;;  %v4950_v52 = vrot.slane %v4948_v21, 4 }
 0x2e7   : > { %v4027_v17 = vrot.slane %v4025_v47, 4  ;;  %v4028_v30 = vrot.slane %v3813_v0, 5  ;;  %v4026_v3 = vsel %vm9463_vm13, %v4024_v4, %v4025_v47 }
 0x2e8   : > { %v3606_v26 = vpop.permute.xlu0 %3605  ;;  %v3604_v16 = vpop.permute.xlu1 %3603 }
 0x2e9   : > { %3740 = vst.msk [vmem:[#allocation3 + $0x88] sm:$0xf] %vm3705_vm3, %v3606_v26  ;;  %3739 = vst.msk [vmem:[#allocation3 + $0x84] sm:$0xf] %vm3705_vm3, %v3604_v16  ;;  %v4031_v26 = vrot.slane %v3814_v45, 5  ;;  %v4029_v10 = vsel %vm9463_vm13, %v4027_v17, %v4028_v30  ;;  %v4030_v33 = vrot.slane %v4028_v30, 4 }
 0x2ea   : > { %4117 = vrot.lane.b32.xlu0 %v3987_v8, %s7844_s23  ;;  %4115 = vrot.lane.b32.xlu1 %v3984_v55, %s7844_s23  ;;  %v3815_v55 = vld [vmem:[#allocation2 + $0xe0] sm:$0xf]  ;;  %v4676_v45 = vrot.slane %v4674_v44, 5  ;;  %v4273_v30 = vld [vmem:[#allocation2 + $0x24] sm:$0xf] }
 0x2eb   : > { %v4033_v16 = vrot.slane %v4031_v26, 4  ;;  %v4034_v42 = vrot.slane %v3815_v55, 5  ;;  %v4032_v29 = vsel %vm9463_vm13, %v4030_v33, %v4031_v26  ;;  %v4300_v26 = vld [vmem:[#allocation2 + $0x90] sm:$0xf] }
 0x2ec   : > { %v3610_v43 = vpop.permute.xlu0 %3609  ;;  %v3608_v37 = vpop.permute.xlu1 %3607 }
 0x2ed   : > { %3742 = vst.msk [vmem:[#allocation3 + $0x90] sm:$0xf] %vm3705_vm3, %v3610_v43  ;;  %3741 = vst.msk [vmem:[#allocation3 + $0x8c] sm:$0xf] %vm3705_vm3, %v3608_v37  ;;  %v4037_v43 = vrot.slane %v3816_v18, 5  ;;  %v4035_v36 = vsel %vm9463_vm13, %v4033_v16, %v4034_v42 }
 0x2ee   : > { %4121 = vrot.lane.b32.xlu0 %v3993_v1, %s7844_s23  ;;  %4119 = vrot.lane.b32.xlu1 %v3990_v50, %s7844_s23  ;;  %v3817_v50 = vld [vmem:[#allocation2 + $0xe8] sm:$0xf] }
 0x2ef   : > { %v4039_v41 = vrot.slane %v4037_v43, 4 }
 0x2f0   : > { %v3614_v38 = vpop.permute.xlu0 %3613  ;;  %v3612_v59 = vpop.permute.xlu1 %3611 }
 0x2f1   : > { %3744 = vst.msk [vmem:[#allocation3 + $0x98] sm:$0xf] %vm3705_vm3, %v3614_v38  ;;  %3743 = vst.msk [vmem:[#allocation3 + $0x94] sm:$0xf] %vm3705_vm3, %v3612_v59  ;;  %v4036_v38 = vrot.slane %v4034_v42, 4 }
 0x2f2   : > { %4125 = vrot.lane.b32.xlu0 %v3999_v62, %s7844_s23  ;;  %4123 = vrot.lane.b32.xlu1 %v3996_v46, %s7844_s23  ;;  %v4040_v62 = vrot.slane %v3817_v50, 5 }
 0x2f3   : > { %v4038_v20 = vsel %vm9463_vm13, %v4036_v38, %v4037_v43 }
 0x2f4   : > { %v3618_v35 = vpop.permute.xlu0 %3617  ;;  %v3616_v60 = vpop.permute.xlu1 %3615  ;;  %v4041_v46 = vsel %vm9463_vm13, %v4039_v41, %v4040_v62  ;;  %v4042_v59 = vrot.slane %v4040_v62, 4 }
 0x2f5   : > { %3746 = vst.msk [vmem:[#allocation3 + $0xa0] sm:$0xf] %vm3705_vm3, %v3618_v35  ;;  %3745 = vst.msk [vmem:[#allocation3 + $0x9c] sm:$0xf] %vm3705_vm3, %v3616_v60  ;;  %v4270_v35 = vld [vmem:[#allocation2 + $0x18] sm:$0xf] }
 0x2f6   : > { %4129 = vrot.lane.b32.xlu0 %v4005_v12, %s7844_s23  ;;  %4127 = vrot.lane.b32.xlu1 %v4002_v23, %s7844_s23  ;;  %v4043_v12 = vrot.slane %v3818_v6, 5 }
 0x2f8   : > { %v3622_v63 = vpop.permute.xlu0 %3621  ;;  %v3620_v7 = vpop.permute.xlu1 %3619  ;;  %v4044_v24 = vsel %vm9463_vm13, %v4042_v59, %v4043_v12  ;;  %v4301_v59 = vld [vmem:[#allocation2 + $0x94] sm:$0xf] }
 0x2f9   : > { %3748 = vst.msk [vmem:[#allocation3 + $0xa8] sm:$0xf] %vm3705_vm3, %v3622_v63  ;;  %3747 = vst.msk [vmem:[#allocation3 + $0xa4] sm:$0xf] %vm3705_vm3, %v3620_v7  ;;  %v4670_v63 = vrot.slane %v4668_v57, 5 }
 0x2fa   : > { %4133 = vrot.lane.b32.xlu0 %v4011_v51, %s7844_s23  ;;  %4131 = vrot.lane.b32.xlu1 %v4008_v28, %s7844_s23  ;;  %v4272_v51 = vld [vmem:[#allocation2 + $0x20] sm:$0xf] }
 0x2fb   : > { %v4609_v7 = vld [vmem:[#allocation2 + $0x20] sm:$0xf]  ;;  %v4671_v47 = vor.u32 %v4670_v63, %v4667_v48 }
 0x2fc   : > { %v3626_v25 = vpop.permute.xlu0 %3625  ;;  %v3624_v54 = vpop.permute.xlu1 %3623  ;;  %v4688_v58 = vshrl.u32 %v4609_v7, 16 }
 0x2fd   : > { %3750 = vst.msk [vmem:[#allocation3 + $0xb0] sm:$0xf] %vm3705_vm3, %v3626_v25  ;;  %3749 = vst.msk [vmem:[#allocation3 + $0xac] sm:$0xf] %vm3705_vm3, %v3624_v54  ;;  %v4298_v25 = vld [vmem:[#allocation2 + $0x88] sm:$0xf] }
 0x2fe   : > { %4137 = vrot.lane.b32.xlu0 %v4017_v5, %s7844_s23  ;;  %4135 = vrot.lane.b32.xlu1 %v4014_v15, %s7844_s23  ;;  %v4636_v5 = vld [vmem:[#allocation2 + $0x8c] sm:$0xf]  ;;  %v10402_v15 = vrot.slane %v4944_v14, 5  ;;  %v4680_v54 = vrot.slane %v4678_v32, 4  ;;  %v4672_v55 = vrot.slane %v4671_v47, 4  ;;  %v4690_v16 = vrot.slane %v4688_v58, 4 }
 0x2ff   : > { %v4954_v17 = vshll.u32 %v4636_v5, 16  ;;  %v4704_v14 = vshll.u32 %v10421_v22, 16 }
 0x300   : > { %v3630_v8 = vpop.permute.xlu0 %3629  ;;  %v3628_v19 = vpop.permute.xlu1 %3627  ;;  %v4681_v42 = vor.u32 %v4680_v54, %v4676_v45  ;;  %v4677_v62 = vsel %vm8095_vm11, %v4672_v55, %v4676_v45  ;;  %v5454_v54 = vld [vmem:[#allocation2 + $0x1c] sm:$0xf] }
 0x301   : > { %3752 = vst.msk [vmem:[#allocation3 + $0xb8] sm:$0xf] %vm3705_vm3, %v3630_v8  ;;  %3751 = vst.msk [vmem:[#allocation3 + $0xb4] sm:$0xf] %vm3705_vm3, %v3628_v19  ;;  %v4958_v8 = vshrl.u32 %v4636_v5, 16  ;;  %v4951_v19 = vor.u32 %v4950_v52, %v10402_v15  ;;  %v10441_v52 = vrot.slane %v4704_v14, 5 }
 0x302   : > { %4141 = vrot.lane.b32.xlu0 %v4023_v40, %s7844_s23  ;;  %4139 = vrot.lane.b32.xlu1 %v4020_v39, %s7844_s23  ;;  %v4684_v40 = vshll.u32 %v4609_v7, 16  ;;  %v4637_v39 = vld [vmem:[#allocation2 + $0x90] sm:$0xf]  ;;  %v10499_v14 = vld [vmem:[#allocation2 + $0x98] sm:$0xf] }
 0x303   : > { %v4968_v18 = vshrl.u32 %v4637_v39, 16  ;;  %v4960_v33 = vrot.slane %v4958_v8, 4  ;;  %v4964_v50 = vshll.u32 %v4637_v39, 16  ;;  %v5569_v39 = vrot.slane %v5454_v54, 5 }
 0x304   : > { %v3634_v1 = vpop.permute.xlu0 %3633  ;;  %v3632_v9 = vpop.permute.xlu1 %3631  ;;  %v4686_v43 = vrot.slane %v4684_v40, 5 }
 0x305   : > { %3754 = vst.msk [vmem:[#allocation3 + $0xc0] sm:$0xf] %vm3705_vm3, %v3634_v1  ;;  %3753 = vst.msk [vmem:[#allocation3 + $0xbc] sm:$0xf] %vm3705_vm3, %v3632_v9  ;;  %v4299_v9 = vld [vmem:[#allocation2 + $0x8c] sm:$0xf] }
 0x306   : > { %4145 = vrot.lane.b32.xlu0 %v4029_v10, %s7844_s23  ;;  %4143 = vrot.lane.b32.xlu1 %v4026_v3, %s7844_s23  ;;  %v4610_v10 = vld [vmem:[#allocation2 + $0x24] sm:$0xf]  ;;  %v4956_v3 = vrot.slane %v4954_v17, 5  ;;  %v4691_v38 = vor.u32 %v4690_v16, %v4686_v43  ;;  %v4970_v6 = vrot.slane %v4968_v18, 4 }
 0x307   : > { %v4698_v41 = vshrl.u32 %v4610_v10, 16 }
 0x308   : > { %v3638_v37 = vpop.permute.xlu0 %3637  ;;  %v3636_v27 = vpop.permute.xlu1 %3635  ;;  %v4961_v56 = vor.u32 %v4960_v33, %v4956_v3  ;;  %v4692_v11 = vrot.slane %v4691_v38, 4 }
 0x309   : > { %3756 = vst.msk [vmem:[#allocation3 + $0xc8] sm:$0xf] %vm3705_vm3, %v3638_v37  ;;  %3755 = vst.msk [vmem:[#allocation3 + $0xc4] sm:$0xf] %vm3705_vm3, %v3636_v27  ;;  %v4638_v27 = vld [vmem:[#allocation2 + $0x94] sm:$0xf] }
 0x30a   : > { %4149 = vrot.lane.b32.xlu0 %v4035_v36, %s7844_s23  ;;  %4147 = vrot.lane.b32.xlu1 %v4032_v29, %s7844_s23  ;;  %v4694_v36 = vshll.u32 %v4610_v10, 16  ;;  %v4952_v29 = vrot.slane %v4951_v19, 4  ;;  %v4978_v2 = vshrl.u32 %v4638_v27, 16  ;;  %v4962_v48 = vrot.slane %v4961_v56, 4  ;;  %v5455_v19 = vld [vmem:[#allocation2 + $0x20] sm:$0xf] }
 0x30b   : > { %v5482_v10 = vld [vmem:[#allocation2 + $0x8c] sm:$0xf]  ;;  %v5572_v33 = vrot.slane %v5455_v19, 5  ;;  %v4640_v19 = vld [vmem:[#allocation2 + $0x9c] sm:$0xf] }
 0x30c   : > { %v3642_v34 = vpop.permute.xlu0 %3641  ;;  %v3640_v49 = vpop.permute.xlu1 %3639  ;;  %v4696_v12 = vrot.slane %v4694_v36, 5 }
 0x30d   : > { %3758 = vst.msk [vmem:[#allocation3 + $0xd0] sm:$0xf] %vm3705_vm3, %v3642_v34  ;;  %3757 = vst.msk [vmem:[#allocation3 + $0xcc] sm:$0xf] %vm3705_vm3, %v3640_v49  ;;  %v4682_v34 = vrot.slane %v4681_v42, 4  ;;  %v4700_v49 = vrot.slane %v4698_v41, 4 }
 0x30e   : > { %4153 = vrot.lane.b32.xlu0 %v4041_v46, %s7844_s23  ;;  %4151 = vrot.lane.b32.xlu1 %v4038_v20, %s7844_s23  ;;  %v4966_v20 = vrot.slane %v4964_v50, 5  ;;  %v4697_v32 = vsel %vm8095_vm11, %v4692_v11, %v4696_v12  ;;  %v5653_v50 = vrot.slane %v5482_v10, 5  ;;  %v5571_v41 = vrot.slane %v5569_v39, 4 }
 0x30f   : > { %v4701_v63 = vor.u32 %v4700_v49, %v4696_v12  ;;  %v5484_v12 = vld [vmem:[#allocation2 + $0x94] sm:$0xf] }
 0x310   : > { %v3646_v23 = vpop.permute.xlu0 %3645  ;;  %v3644_v60 = vpop.permute.xlu1 %3643  ;;  %v4967_v58 = vsel %vm8095_vm11, %v4962_v48, %v4966_v20 }
 0x311   : > { %3760 = vst.msk [vmem:[#allocation3 + $0xd8] sm:$0xf] %vm3705_vm3, %v3646_v23  ;;  %3759 = vst.msk [vmem:[#allocation3 + $0xd4] sm:$0xf] %vm3705_vm3, %v3644_v60  ;;  %v4957_v23 = vsel %vm8095_vm11, %v4952_v29, %v4956_v3  ;;  %v4702_v47 = vrot.slane %v4701_v63, 4 }
 0x312   : > { %4382 = vrot.lane.b32.xlu0 %v4270_v35, %s7845_s29  ;;  %4155 = vrot.lane.b32.xlu1 %v4044_v24, %s7844_s23  ;;  %v4974_v35 = vshll.u32 %v4638_v27, 16  ;;  %v4971_v24 = vor.u32 %v4970_v6, %v4966_v20  ;;  %v5574_v27 = vrot.slane %v5572_v33, 4  ;;  %v7740_v6 = vld [vmem:[%s11492_s4 + $0x8] sm:$0xff]   ;;  %v5573_v20 = vsel %vm9463_vm13, %v5571_v41, %v5572_v33  ;;  %v4303_v41 = vld [vmem:[#allocation2 + $0x9c] sm:$0xf]  ;;  %s7848_s23 = smov [#allocation4]  }
 0x313   : > { %s7782_s9 = sshll.u32 %s7848_s23, 4  ;;  %s7783_s9 = int_to_ptr.vmem [resolvable:$false] %s7782_s9 }
 0x314   : > { %v4046_v28 = vpop.permute.xlu0 %4045  ;;  %v3648_v61 = vpop.permute.xlu1 %3647  ;;  %v4976_v21 = vrot.slane %v4974_v35, 5  ;;  %v4972_v7 = vrot.slane %v4971_v24, 4  ;;  %v10485_v35 = vld [vmem:[#allocation2 + $0x28] sm:$0xf]  ;;  %v5659_v24 = vrot.slane %v5484_v12, 5 }
 0x315   : > { %4214 = vst.msk [vmem:[#allocation3] sm:$0xf] %vm4213_vm5, %v4046_v28  ;;  %v4980_v28 = vrot.slane %v4978_v2, 4  ;;  %v5578_v48 = vrot.slane %v10485_v35, 5  ;;  %v5486_v35 = vld [vmem:[#allocation2 + $0x9c] sm:$0xf] }
 0x316   : > { %4386 = vrot.lane.b32.xlu0 %v4272_v51, %s7845_s29  ;;  %3761 = vst.msk [vmem:[#allocation3 + $0xdc] sm:$0xf] %vm3705_vm3, %v3648_v61  ;;  %4384 = vrot.lane.b32.xlu1 %v4271_v53, %s7845_s29  ;;  %v4687_v51 = vsel %vm8095_vm11, %v4682_v34, %v4686_v43  ;;  %v10432_v53 = vld [vmem:[#allocation2 + $0x98] sm:$0xf]  ;;  %v4977_v17 = vsel %vm8095_vm11, %v4972_v7, %v4976_v21  ;;  %v5662_v7 = vrot.slane %v10499_v14, 5 }
 0x317   : > { %v5453_v61 = vld [vmem:[#allocation2 + $0x18] sm:$0xe]  ;;  %v4984_v45 = vshll.u32 %v10432_v53, 16  ;;  %v7739_v43 = vld [vmem:[%s11492_s4 + $0x10] ss:$0 sps:$4 sm:$0x33]  }
 0x318   : > { %v4050_v0 = vpop.permute.xlu0 %4049  ;;  %v4048_v4 = vpop.permute.xlu1 %4047  ;;  %v6951_v8 = vrot.slane %v5453_v61, 9  ;;  %7184 = vmatprep.subr.msk.bf16.mxu0 %vm6262_vm6, %v7739_v43  ;;  %7185 = vmatprep.subr.msk.bf16.mxu1 %vm6262_vm6, %v7739_v43  ;;  %v4988_v54 = vshrl.u32 %v10432_v53, 16 }
 0x319   : > { %4216 = vst.msk [vmem:[#allocation3 + $0x8] sm:$0xf] %vm4213_vm5, %v4050_v0  ;;  %4215 = vst.msk [vmem:[#allocation3 + $0x4] sm:$0xf] %vm4213_vm5, %v4048_v4  ;;  %v4981_v0 = vor.u32 %v4980_v28, %v4976_v21  ;;  %v4707_v4 = vsel %vm8095_vm11, %v4702_v47, %v10441_v52  ;;  %v10454_v18 = vrot.slane %v4984_v45, 5 }
 0x31a   : > { %4438 = vrot.lane.b32.xlu0 %v4298_v25, %s7845_s29  ;;  %4388 = vrot.lane.b32.xlu1 %v4273_v30, %s7845_s29  ;;  %v10435_v25 = vld [vmem:[#allocation2 + $0x88] sm:$0xf] }
 0x31b   : > { %v5650_v30 = vrot.slane %v10435_v25, 5  ;;  %v4982_v55 = vrot.slane %v4981_v0, 4  ;;  %v4612_v0 = vld [vmem:[#allocation2 + $0x2c] sm:$0xf] }
 0x31c   : > { %v4054_v1 = vpop.permute.xlu0 %4053  ;;  %v4052_v37 = vpop.permute.xlu1 %4051 }
 0x31d   : > { %4218 = vst.msk [vmem:[#allocation3 + $0x10] sm:$0xf] %vm4213_vm5, %v4054_v1  ;;  %4217 = vst.msk [vmem:[#allocation3 + $0xc] sm:$0xf] %vm4213_vm5, %v4052_v37  ;;  %v5570_v1 = vsel %vm9463_vm13, %v6951_v8, %v5569_v39  ;;  %v5652_v42 = vrot.slane %v5650_v30, 4  ;;  %v4987_v36 = vsel %vm8095_vm11, %v4982_v55, %v10454_v18  ;;  %v4718_v39 = vshrl.u32 %v4612_v0, 16 }
 0x31e   : > { %4442 = vrot.lane.b32.xlu0 %v4300_v26, %s7845_s29  ;;  %4440 = vrot.lane.b32.xlu1 %v4299_v9, %s7845_s29  ;;  %v6264_v9 = vsel %vm6262_vm6, %v7739_v43, 0  ;;  %v5483_v37 = vld [vmem:[#allocation2 + $0x90] sm:$0xf] }
 0x31f   : > { %7117 = vmatpush3.bf16.msra.mxu0 %v6264_v9  ;;  %v5654_v38 = vsel %vm9463_vm13, %v5652_v42, %v5653_v50  ;;  %7181 = vmatpush3.bf16.msra.mxu1 %v6264_v9  ;;  %v5656_v34 = vrot.slane %v5483_v37, 5  ;;  %v4613_v55 = vld [vmem:[#allocation2 + $0x30] sm:$0xf]  ;;  %v4990_v42 = vrot.slane %v4988_v54, 4  ;;  %v4720_v33 = vrot.slane %v4718_v39, 4 }
 0x320   : > { %v4058_v46 = vpop.permute.xlu0 %4057  ;;  %v4056_v57 = vpop.permute.xlu1 %4055  ;;  %7118 = vmatprep.subr.bf16.mxu0 %v7740_v6  ;;  %7179 = vmatprep.subr.bf16.mxu1 %v7740_v6  ;;  %v4728_v53 = vshrl.u32 %v4613_v55, 16  ;;  %v4994_v9 = vshll.u32 %v4640_v19, 16  ;;  %v4304_v37 = vld [vmem:[#allocation2 + $0xa0] sm:$0xf] }
 0x321   : > { %4220 = vst.msk [vmem:[#allocation3 + $0x18] sm:$0xf] %vm4213_vm5, %v4058_v46  ;;  %4219 = vst.msk [vmem:[#allocation3 + $0x14] sm:$0xf] %vm4213_vm5, %v4056_v57  ;;  %v5658_v57 = vrot.slane %v5656_v34, 4 }
 0x322   : > { %5228 = vrot.lane.b32.xlu0 %v4677_v62, %s7846_s8  ;;  %4444 = vrot.lane.b32.xlu1 %v4301_v59, %s7845_s29  ;;  %v5456_v62 = vld [vmem:[#allocation2 + $0x24] sm:$0xf]  ;;  %v5655_v59 = vrot.slane %v5653_v50, 4  ;;  %v4724_v50 = vshll.u32 %v4613_v55, 16 }
 0x323   : > { %v5575_v56 = vrot.slane %v5456_v62, 5  ;;  %7119 = vmatpush3.bf16.msra.mxu0 %v7740_v6  ;;  %7182 = vmatpush3.bf16.msra.mxu1 %v7740_v6  ;;  %v5660_v21 = vsel %vm9463_vm13, %v5658_v57, %v5659_v24  ;;  %v4641_v62 = vld [vmem:[#allocation2 + $0xa0] sm:$0xf]  ;;  %v4614_v6 = vld [vmem:[#allocation2 + $0x34] sm:$0xf] }
 0x324   : > { %v4062_v60 = vpop.permute.xlu0 %4061  ;;  %v4060_v44 = vpop.permute.xlu1 %4059  ;;  %v4734_v57 = vshll.u32 %v4614_v6, 16 }
 0x325   : > { %4222 = vst.msk [vmem:[#allocation3 + $0x20] sm:$0xf] %vm4213_vm5, %v4062_v60  ;;  %4221 = vst.msk [vmem:[#allocation3 + $0x1c] sm:$0xf] %vm4213_vm5, %v4060_v44  ;;  %v5576_v2 = vsel %vm9463_vm13, %v5574_v27, %v5575_v56  ;;  %v5657_v60 = vsel %vm9463_vm13, %v5655_v59, %v5656_v34  ;;  %v4991_v27 = vor.u32 %v4990_v42, %v10454_v18  ;;  %v4996_v59 = vrot.slane %v4994_v9, 5 }
 0x326   : > { %5284 = vrot.lane.b32.xlu0 %v4957_v23, %s7846_s8  ;;  %5230 = vrot.lane.b32.xlu1 %v4687_v51, %s7846_s8  ;;  %v7742_v23 = vld [vmem:[%s11492_s4] sm:$0xff]   ;;  %v5577_v51 = vrot.slane %v5575_v56, 4 }
 0x327   : > { %7120 = vmatprep.subr.bf16.mxu0 %v7742_v23  ;;  %7180 = vmatprep.subr.bf16.mxu1 %v7742_v23 }
 0x328   : > { %v4066_v5 = vpop.permute.xlu0 %4065  ;;  %v4064_v40 = vpop.permute.xlu1 %4063  ;;  %7121 = vmatpush3.bf16.msra.mxu0 %v7742_v23  ;;  %7183 = vmatpush3.bf16.msra.mxu1 %v7742_v23  ;;  %v5579_v44 = vsel %vm9463_vm13, %v5577_v51, %v5578_v48  ;;  %v4738_v23 = vshrl.u32 %v4614_v6, 16  ;;  %v4642_v51 = vld [vmem:[#allocation2 + $0xa4] sm:$0xf] }
 0x329   : > { %4224 = vst.msk [vmem:[#allocation3 + $0x28] sm:$0xf] %vm4213_vm5, %v4066_v5  ;;  %4223 = vst.msk [vmem:[#allocation3 + $0x24] sm:$0xf] %vm4213_vm5, %v4064_v40  ;;  %v4708_v5 = vshrl.u32 %v10421_v22, 16 }
 0x32a   : > { %5232 = vrot.lane.b32.xlu0 %v4697_v32, %s7846_s8  ;;  %5286 = vrot.lane.b32.xlu1 %v4967_v58, %s7846_s8  ;;  %v5661_v32 = vrot.slane %v5659_v24, 4  ;;  %v4274_v58 = vld [vmem:[#allocation2 + $0x28] sm:$0xf]  ;;  %v4302_v40 = vld [vmem:[#allocation2 + $0x98] sm:$0xf]  ;;  %v4992_v24 = vrot.slane %v4991_v27, 4 }
 0x32c   : > { %v4070_v26 = vpop.permute.xlu0 %4069  ;;  %v4068_v16 = vpop.permute.xlu1 %4067  ;;  %v5663_v45 = vsel %vm9463_vm13, %v5661_v32, %v5662_v7  ;;  %v4997_v54 = vsel %vm8095_vm11, %v4992_v24, %v4996_v59 }
 0x32d   : > { %4226 = vst.msk [vmem:[#allocation3 + $0x30] sm:$0xf] %vm4213_vm5, %v4070_v26  ;;  %4225 = vst.msk [vmem:[#allocation3 + $0x2c] sm:$0xf] %vm4213_vm5, %v4068_v16  ;;  %v4714_v26 = vshll.u32 %v4612_v0, 16  ;;  %v5018_v0 = vshrl.u32 %v4642_v51, 16 }
 0x32e   : > { %5288 = vrot.lane.b32.xlu0 %v4977_v17, %s7846_s8  ;;  %5234 = vrot.lane.b32.xlu1 %v4707_v4, %s7846_s8  ;;  %v4710_v17 = vrot.slane %v4708_v5, 4  ;;  %v4275_v4 = vld [vmem:[#allocation2 + $0x2c] sm:$0xf]  ;;  %v4276_v16 = vld [vmem:[#allocation2 + $0x30] sm:$0xf] }
 0x32f   : > { %v4305_v5 = vld [vmem:[#allocation2 + $0xa4] sm:$0xf] }
 0x330   : > { %v4074_v3 = vpop.permute.xlu0 %4073  ;;  %v4072_v29 = vpop.permute.xlu1 %4071 }
 0x331   : > { %4228 = vst.msk [vmem:[#allocation3 + $0x38] sm:$0xf] %vm4213_vm5, %v4074_v3  ;;  %4227 = vst.msk [vmem:[#allocation3 + $0x34] sm:$0xf] %vm4213_vm5, %v4072_v29  ;;  %v4716_v3 = vrot.slane %v4714_v26, 5 }
 0x332   : > { %5736 = vrot.lane.b32.xlu0 %v5570_v1, %s7847_s14  ;;  %5290 = vrot.lane.b32.xlu1 %v4987_v36, %s7846_s8  ;;  %v4711_v1 = vor.u32 %v4710_v17, %v10441_v52  ;;  %v4998_v36 = vshrl.u32 %v4640_v19, 16 }
 0x333   : > { %v4721_v56 = vor.u32 %v4720_v33, %v4716_v3 }
 0x334   : > { %v4078_v46 = vpop.permute.xlu0 %4077  ;;  %v4076_v49 = vpop.permute.xlu1 %4075  ;;  %v4712_v52 = vrot.slane %v4711_v1, 4  ;;  %v5000_v12 = vrot.slane %v4998_v36, 4  ;;  %v10555_v1 = vld [vmem:[#allocation2 + $0xa8] sm:$0xf] }
 0x335   : > { %4230 = vst.msk [vmem:[#allocation3 + $0x40] sm:$0xf] %vm4213_vm5, %v4078_v46  ;;  %4229 = vst.msk [vmem:[#allocation3 + $0x3c] sm:$0xf] %vm4213_vm5, %v4076_v49  ;;  %v4730_v46 = vrot.slane %v4728_v53, 4  ;;  %v5004_v49 = vshll.u32 %v4641_v62, 16 }
 0x336   : > { %5792 = vrot.lane.b32.xlu0 %v5654_v38, %s7847_s14  ;;  %5738 = vrot.lane.b32.xlu1 %v5573_v20, %s7847_s14  ;;  %v5008_v38 = vshrl.u32 %v4641_v62, 16  ;;  %v4726_v20 = vrot.slane %v4724_v50, 5  ;;  %v5024_v36 = vshll.u32 %v10555_v1, 16 }
 0x337   : > { %v5006_v32 = vrot.slane %v5004_v49, 5  ;;  %v5665_v49 = vrot.slane %v5486_v35, 5 }
 0x338   : > { %v4082_v11 = vpop.permute.xlu0 %4081  ;;  %v4080_v63 = vpop.permute.xlu1 %4079 }
 0x339   : > { %4232 = vst.msk [vmem:[#allocation3 + $0x48] sm:$0xf] %vm4213_vm5, %v4082_v11  ;;  %4231 = vst.msk [vmem:[#allocation3 + $0x44] sm:$0xf] %vm4213_vm5, %v4080_v63  ;;  %v4717_v11 = vsel %vm8095_vm11, %v4712_v52, %v4716_v3  ;;  %v5010_v63 = vrot.slane %v5008_v38, 4 }
 0x33a   : > { %5740 = vrot.lane.b32.xlu0 %v5576_v2, %s7847_s14  ;;  %5794 = vrot.lane.b32.xlu1 %v5657_v60, %s7847_s14  ;;  %v4277_v2 = vld [vmem:[#allocation2 + $0x34] sm:$0xf]  ;;  %v4731_v60 = vor.u32 %v4730_v46, %v4726_v20  ;;  %v10576_v46 = vrot.slane %v5024_v36, 5 }
 0x33b   : > { %v5011_v17 = vor.u32 %v5010_v63, %v5006_v32 }
 0x33c   : > { %v4086_v28 = vpop.permute.xlu0 %4085  ;;  %v4084_v61 = vpop.permute.xlu1 %4083 }
 0x33d   : > { %4234 = vst.msk [vmem:[#allocation3 + $0x50] sm:$0xf] %vm4213_vm5, %v4086_v28  ;;  %4233 = vst.msk [vmem:[#allocation3 + $0x4c] sm:$0xf] %vm4213_vm5, %v4084_v61  ;;  %v4722_v28 = vrot.slane %v4721_v56, 4  ;;  %v4736_v61 = vrot.slane %v4734_v57, 5 }
 0x33e   : > { %5796 = vrot.lane.b32.xlu0 %v5660_v21, %s7847_s14  ;;  %5742 = vrot.lane.b32.xlu1 %v5579_v44, %s7847_s14  ;;  %v5001_v44 = vor.u32 %v5000_v12, %v4996_v59  ;;  %v5012_v42 = vrot.slane %v5011_v17, 4  ;;  %v10609_v17 = vld [vmem:[#allocation2 + $0xa8] sm:$0xf] }
 0x33f   : > { %v4727_v26 = vsel %vm8095_vm11, %v4722_v28, %v4726_v20  ;;  %v5664_v20 = vrot.slane %v5662_v7, 4  ;;  %v5488_v28 = vld [vmem:[#allocation2 + $0xa4] sm:$0xf] }
 0x340   : > { %v4090_v47 = vpop.permute.xlu0 %4089  ;;  %v4088_v22 = vpop.permute.xlu1 %4087  ;;  %v5002_v39 = vrot.slane %v5001_v44, 4 }
 0x341   : > { %4236 = vst.msk [vmem:[#allocation3 + $0x58] sm:$0xf] %vm4213_vm5, %v4090_v47  ;;  %4235 = vst.msk [vmem:[#allocation3 + $0x54] sm:$0xf] %vm4213_vm5, %v4088_v22  ;;  %v5014_v47 = vshll.u32 %v4642_v51, 16  ;;  %v5666_v7 = vsel %vm9463_vm13, %v5664_v20, %v5665_v49 }
 0x342   : > { %4390 = vrot.lane.b32.xlu0 %v4274_v58, %s7845_s29  ;;  %5798 = vrot.lane.b32.xlu1 %v5663_v45, %s7847_s14  ;;  %v4740_v58 = vrot.slane %v4738_v23, 4  ;;  %v10544_v22 = vld [vmem:[#allocation2 + $0x38] sm:$0xf]  ;;  %v5007_v3 = vsel %vm8095_vm11, %v5002_v39, %v5006_v32  ;;  %v5487_v23 = vld [vmem:[#allocation2 + $0xa0] sm:$0xf] }
 0x343   : > { %v4744_v55 = vshll.u32 %v10544_v22, 16  ;;  %v5016_v19 = vrot.slane %v5014_v47, 5  ;;  %v10598_v32 = vld [vmem:[#allocation2 + $0x38] sm:$0xf]  ;;  %v5671_v47 = vrot.slane %v5488_v28, 5 }
 0x344   : > { %v4094_v8 = vpop.permute.xlu0 %4093  ;;  %v4092_v10 = vpop.permute.xlu1 %4091 }
 0x345   : > { %4238 = vst.msk [vmem:[#allocation3 + $0x60] sm:$0xf] %vm4213_vm5, %v4094_v8  ;;  %4237 = vst.msk [vmem:[#allocation3 + $0x5c] sm:$0xf] %vm4213_vm5, %v4092_v10  ;;  %v5020_v10 = vrot.slane %v5018_v0, 4  ;;  %v10562_v50 = vrot.slane %v4744_v55, 5  ;;  %v5017_v62 = vsel %vm8095_vm11, %v5012_v42, %v5016_v19 }
 0x346   : > { %4446 = vrot.lane.b32.xlu0 %v4302_v40, %s7845_s29  ;;  %4392 = vrot.lane.b32.xlu1 %v4275_v4, %s7845_s29  ;;  %v4732_v40 = vrot.slane %v4731_v60, 4  ;;  %v4741_v4 = vor.u32 %v4740_v58, %v4736_v61  ;;  %v5668_v60 = vrot.slane %v5487_v23, 5  ;;  %v5674_v55 = vrot.slane %v10609_v17, 5  ;;  %v4616_v42 = vld [vmem:[#allocation2 + $0x3c] sm:$0xf] }
 0x347   : > { %v5021_v9 = vor.u32 %v5020_v10, %v5016_v19  ;;  %v4748_v19 = vshrl.u32 %v10544_v22, 16  ;;  %v5464_v17 = vld [vmem:[#allocation2 + $0x44] sm:$0xf] }
 0x348   : > { %v4098_v43 = vpop.permute.xlu0 %4097  ;;  %v4096_v29 = vpop.permute.xlu1 %4095  ;;  %v4737_v53 = vsel %vm8095_vm11, %v4732_v40, %v4736_v61  ;;  %v4742_v33 = vrot.slane %v4741_v4, 4  ;;  %v5670_v61 = vrot.slane %v5668_v60, 4  ;;  %v5673_v4 = vrot.slane %v5671_v47, 4 }
 0x349   : > { %4240 = vst.msk [vmem:[#allocation3 + $0x68] sm:$0xf] %vm4213_vm5, %v4098_v43  ;;  %4239 = vst.msk [vmem:[#allocation3 + $0x64] sm:$0xf] %vm4213_vm5, %v4096_v29  ;;  %v5580_v29 = vrot.slane %v5578_v48, 4  ;;  %v5022_v6 = vrot.slane %v5021_v9, 4 }
 0x34a   : > { %4394 = vrot.lane.b32.xlu0 %v4276_v16, %s7845_s29  ;;  %4448 = vrot.lane.b32.xlu1 %v4303_v41, %s7845_s29  ;;  %v5458_v41 = vld [vmem:[#allocation2 + $0x2c] sm:$0xf]  ;;  %v4747_v27 = vsel %vm8095_vm11, %v4742_v33, %v10562_v50  ;;  %v4306_v33 = vld [vmem:[#allocation2 + $0xa8] sm:$0xf]  ;;  %v4750_v9 = vrot.slane %v4748_v19, 4 }
 0x34b   : > { %v5581_v38 = vrot.slane %v5458_v41, 5  ;;  %v4754_v41 = vshll.u32 %v4616_v42, 16  ;;  %v4309_v19 = vld [vmem:[#allocation2 + $0xb4] sm:$0xf] }
 0x34c   : > { %v4102_v34 = vpop.permute.xlu0 %4101  ;;  %v4100_v18 = vpop.permute.xlu1 %4099 }
 0x34d   : > { %4242 = vst.msk [vmem:[#allocation3 + $0x70] sm:$0xf] %vm4213_vm5, %v4102_v34  ;;  %4241 = vst.msk [vmem:[#allocation3 + $0x6c] sm:$0xf] %vm4213_vm5, %v4100_v18  ;;  %v5459_v34 = vld [vmem:[#allocation2 + $0x30] sm:$0xf]  ;;  %v5582_v56 = vsel %vm9463_vm13, %v5580_v29, %v5581_v38 }
 0x34e   : > { %4450 = vrot.lane.b32.xlu0 %v4304_v37, %s7845_s29  ;;  %4396 = vrot.lane.b32.xlu1 %v4277_v2, %s7845_s29  ;;  %v5584_v12 = vrot.slane %v5459_v34, 5  ;;  %v5027_v2 = vsel %vm8095_vm11, %v5022_v6, %v10576_v46  ;;  %v5583_v57 = vrot.slane %v5581_v38, 4  ;;  %v5460_v18 = vld [vmem:[#allocation2 + $0x34] sm:$0xf]  ;;  %v4617_v29 = vld [vmem:[#allocation2 + $0x40] sm:$0xf]  ;;  %v4751_v6 = vor.u32 %v4750_v9, %v10562_v50 }
 0x34f   : > { %v5587_v51 = vrot.slane %v5460_v18, 5  ;;  %v4764_v20 = vshll.u32 %v4617_v29, 16 }
 0x350   : > { %v4106_v21 = vpop.permute.xlu0 %4105  ;;  %v4104_v45 = vpop.permute.xlu1 %4103  ;;  %v5585_v63 = vsel %vm9463_vm13, %v5583_v57, %v5584_v12  ;;  %v4645_v57 = vld [vmem:[#allocation2 + $0xb0] sm:$0xf]  ;;  %v4752_v50 = vrot.slane %v4751_v6, 4  ;;  %v10665_v6 = vld [vmem:[#allocation2 + $0xb8] sm:$0xf] }
 0x351   : > { %4244 = vst.msk [vmem:[#allocation3 + $0x78] sm:$0xf] %vm4213_vm5, %v4106_v21  ;;  %4243 = vst.msk [vmem:[#allocation3 + $0x74] sm:$0xf] %vm4213_vm5, %v4104_v45  ;;  %v5667_v21 = vrot.slane %v5665_v49, 4  ;;  %v5589_v45 = vrot.slane %v5587_v51, 4 }
 0x352   : > { %5236 = vrot.lane.b32.xlu0 %v4717_v11, %s7846_s8  ;;  %4452 = vrot.lane.b32.xlu1 %v4305_v5, %s7845_s29  ;;  %v5586_v11 = vrot.slane %v5584_v12, 4  ;;  %v4307_v49 = vld [vmem:[#allocation2 + $0xac] sm:$0xf]  ;;  %v5048_v18 = vshrl.u32 %v4645_v57, 16  ;;  %v5044_v28 = vshll.u32 %v4645_v57, 16 }
 0x353   : > { %v5669_v0 = vsel %vm9463_vm13, %v5667_v21, %v5668_v60 }
 0x354   : > { %v4110_v8 = vpop.permute.xlu0 %4109  ;;  %v4108_v16 = vpop.permute.xlu1 %4107  ;;  %v5588_v5 = vsel %vm9463_vm13, %v5586_v11, %v5587_v51  ;;  %v4766_v51 = vrot.slane %v4764_v20, 5 }
 0x355   : > { %4246 = vst.msk [vmem:[#allocation3 + $0x80] sm:$0xf] %vm4213_vm5, %v4110_v8  ;;  %4245 = vst.msk [vmem:[#allocation3 + $0x7c] sm:$0xf] %vm4213_vm5, %v4108_v16  ;;  %v5672_v8 = vsel %vm9463_vm13, %v5670_v61, %v5671_v47  ;;  %v4278_v16 = vld [vmem:[#allocation2 + $0x38] sm:$0xf] }
 0x356   : > { %5292 = vrot.lane.b32.xlu0 %v4997_v54, %s7846_s8  ;;  %5238 = vrot.lane.b32.xlu1 %v4727_v26, %s7846_s8  ;;  %v5590_v54 = vrot.slane %v10598_v32, 5  ;;  %v5490_v32 = vld [vmem:[#allocation2 + $0xac] sm:$0xf] }
 0x358   : > { %v4114_v43 = vpop.permute.xlu0 %4113  ;;  %v4112_v37 = vpop.permute.xlu1 %4111  ;;  %v5591_v39 = vsel %vm9463_vm13, %v5589_v45, %v5590_v54  ;;  %v4646_v45 = vld [vmem:[#allocation2 + $0xb4] sm:$0xf] }
 0x359   : > { %4248 = vst.msk [vmem:[#allocation3 + $0x88] sm:$0xf] %vm4213_vm5, %v4114_v43  ;;  %4247 = vst.msk [vmem:[#allocation3 + $0x84] sm:$0xf] %vm4213_vm5, %v4112_v37  ;;  %v5675_v43 = vsel %vm9463_vm13, %v5673_v4, %v5674_v55  ;;  %v4758_v37 = vshrl.u32 %v4616_v42, 16  ;;  %v5046_v4 = vrot.slane %v5044_v28, 5 }
 0x35a   : > { %5240 = vrot.lane.b32.xlu0 %v4737_v53, %s7846_s8  ;;  %5294 = vrot.lane.b32.xlu1 %v5007_v3, %s7846_s8  ;;  %v5028_v3 = vshrl.u32 %v10555_v1, 16  ;;  %v4768_v1 = vshrl.u32 %v4617_v29, 16  ;;  %v5058_v42 = vshrl.u32 %v4646_v45, 16  ;;  %v5677_v28 = vrot.slane %v5490_v32, 5 }
 0x35c   : > { %v4118_v52 = vpop.permute.xlu0 %4117  ;;  %v4116_v48 = vpop.permute.xlu1 %4115  ;;  %v5030_v34 = vrot.slane %v5028_v3, 4  ;;  %v4770_v11 = vrot.slane %v4768_v1, 4 }
 0x35d   : > { %4250 = vst.msk [vmem:[#allocation3 + $0x90] sm:$0xf] %vm4213_vm5, %v4118_v52  ;;  %4249 = vst.msk [vmem:[#allocation3 + $0x8c] sm:$0xf] %vm4213_vm5, %v4116_v48  ;;  %v4644_v52 = vld [vmem:[#allocation2 + $0xac] sm:$0xf] }
 0x35e   : > { %5296 = vrot.lane.b32.xlu0 %v5017_v62, %s7846_s8  ;;  %5242 = vrot.lane.b32.xlu1 %v4747_v27, %s7846_s8  ;;  %v4279_v62 = vld [vmem:[#allocation2 + $0x3c] sm:$0xf]  ;;  %v4280_v27 = vld [vmem:[#allocation2 + $0x40] sm:$0xf]  ;;  %v4756_v48 = vrot.slane %v4754_v41, 5  ;;  %v5038_v12 = vshrl.u32 %v4644_v52, 16 }
 0x360   : > { %v4122_v59 = vpop.permute.xlu0 %4121  ;;  %v4120_v14 = vpop.permute.xlu1 %4119  ;;  %v5040_v21 = vrot.slane %v5038_v12, 4  ;;  %v5064_v12 = vshll.u32 %v10665_v6, 16 }
 0x361   : > { %4252 = vst.msk [vmem:[#allocation3 + $0x98] sm:$0xf] %vm4213_vm5, %v4122_v59  ;;  %4251 = vst.msk [vmem:[#allocation3 + $0x94] sm:$0xf] %vm4213_vm5, %v4120_v14  ;;  %v5034_v59 = vshll.u32 %v4644_v52, 16  ;;  %v5031_v14 = vor.u32 %v5030_v34, %v10576_v46 }
 0x362   : > { %5744 = vrot.lane.b32.xlu0 %v5582_v56, %s7847_s14  ;;  %5298 = vrot.lane.b32.xlu1 %v5027_v2, %s7846_s8  ;;  %v4760_v56 = vrot.slane %v4758_v37, 4  ;;  %v4308_v2 = vld [vmem:[#allocation2 + $0xb0] sm:$0xf] }
 0x363   : > { %v5032_v47 = vrot.slane %v5031_v14, 4 }
 0x364   : > { %v4126_v24 = vpop.permute.xlu0 %4125  ;;  %v4124_v44 = vpop.permute.xlu1 %4123  ;;  %v4761_v60 = vor.u32 %v4760_v56, %v4756_v48 }
 0x365   : > { %4254 = vst.msk [vmem:[#allocation3 + $0xa0] sm:$0xf] %vm4213_vm5, %v4126_v24  ;;  %4253 = vst.msk [vmem:[#allocation3 + $0x9c] sm:$0xf] %vm4213_vm5, %v4124_v44  ;;  %v4281_v44 = vld [vmem:[#allocation2 + $0x44] sm:$0xf] }
 0x366   : > { %5800 = vrot.lane.b32.xlu0 %v5666_v7, %s7847_s14  ;;  %5746 = vrot.lane.b32.xlu1 %v5585_v63, %s7847_s14  ;;  %v4618_v7 = vld [vmem:[#allocation2 + $0x44] sm:$0xf]  ;;  %v5036_v63 = vrot.slane %v5034_v59, 5 }
 0x367   : > { %v4778_v61 = vshrl.u32 %v4618_v7, 16 }
 0x368   : > { %v4130_v58 = vpop.permute.xlu0 %4129  ;;  %v4128_v40 = vpop.permute.xlu1 %4127  ;;  %v5037_v3 = vsel %vm8095_vm11, %v5032_v47, %v5036_v63 }
 0x369   : > { %4256 = vst.msk [vmem:[#allocation3 + $0xa8] sm:$0xf] %vm4213_vm5, %v4130_v58  ;;  %4255 = vst.msk [vmem:[#allocation3 + $0xa4] sm:$0xf] %vm4213_vm5, %v4128_v40  ;;  %v4757_v58 = vsel %vm8095_vm11, %v4752_v50, %v4756_v48  ;;  %v5050_v40 = vrot.slane %v5048_v18, 4 }
 0x36a   : > { %5748 = vrot.lane.b32.xlu0 %v5588_v5, %s7847_s14  ;;  %5802 = vrot.lane.b32.xlu1 %v5669_v0, %s7847_s14  ;;  %v4774_v5 = vshll.u32 %v4618_v7, 16  ;;  %v4771_v0 = vor.u32 %v4770_v11, %v4766_v51  ;;  %v10686_v11 = vrot.slane %v5064_v12, 5  ;;  %v4648_v12 = vld [vmem:[#allocation2 + $0xbc] sm:$0xf] }
 0x36b   : > { %v5051_v9 = vor.u32 %v5050_v40, %v5046_v4 }
 0x36c   : > { %v4134_v26 = vpop.permute.xlu0 %4133  ;;  %v4132_v10 = vpop.permute.xlu1 %4131 }
 0x36d   : > { %4258 = vst.msk [vmem:[#allocation3 + $0xb0] sm:$0xf] %vm4213_vm5, %v4134_v26  ;;  %4257 = vst.msk [vmem:[#allocation3 + $0xac] sm:$0xf] %vm4213_vm5, %v4132_v10  ;;  %v4762_v26 = vrot.slane %v4761_v60, 4  ;;  %v4776_v10 = vrot.slane %v4774_v5, 5 }
 0x36e   : > { %5804 = vrot.lane.b32.xlu0 %v5672_v8, %s7847_s14  ;;  %5750 = vrot.lane.b32.xlu1 %v5591_v39, %s7847_s14  ;;  %v5041_v39 = vor.u32 %v5040_v21, %v5036_v63  ;;  %v5052_v34 = vrot.slane %v5051_v9, 4  ;;  %v10719_v9 = vld [vmem:[#allocation2 + $0xb8] sm:$0xf] }
 0x36f   : > { %v4767_v41 = vsel %vm8095_vm11, %v4762_v26, %v4766_v51  ;;  %v5676_v51 = vrot.slane %v5674_v55, 4  ;;  %v5492_v26 = vld [vmem:[#allocation2 + $0xb4] sm:$0xf] }
 0x370   : > { %v4138_v53 = vpop.permute.xlu0 %4137  ;;  %v4136_v22 = vpop.permute.xlu1 %4135  ;;  %v5042_v37 = vrot.slane %v5041_v39, 4 }
 0x371   : > { %4260 = vst.msk [vmem:[#allocation3 + $0xb8] sm:$0xf] %vm4213_vm5, %v4138_v53  ;;  %4259 = vst.msk [vmem:[#allocation3 + $0xb4] sm:$0xf] %vm4213_vm5, %v4136_v22  ;;  %v5054_v53 = vshll.u32 %v4646_v45, 16  ;;  %v5599_v45 = vrot.slane %v5464_v17, 5 }
 0x372   : > { %4398 = vrot.lane.b32.xlu0 %v4278_v16, %s7845_s29  ;;  %5806 = vrot.lane.b32.xlu1 %v5675_v43, %s7847_s14  ;;  %v4780_v16 = vrot.slane %v4778_v61, 4  ;;  %v10654_v22 = vld [vmem:[#allocation2 + $0x48] sm:$0xf]  ;;  %v5047_v48 = vsel %vm8095_vm11, %v5042_v37, %v5046_v4  ;;  %v5491_v61 = vld [vmem:[#allocation2 + $0xb0] sm:$0xf] }
 0x373   : > { %v4784_v29 = vshll.u32 %v10654_v22, 16  ;;  %v5056_v52 = vrot.slane %v5054_v53, 5  ;;  %v10708_v4 = vld [vmem:[#allocation2 + $0x48] sm:$0xf]  ;;  %v5683_v53 = vrot.slane %v5492_v26, 5  ;;  %v4788_v37 = vshrl.u32 %v10654_v22, 16 }
 0x374   : > { %v4142_v36 = vpop.permute.xlu0 %4141  ;;  %v4140_v38 = vpop.permute.xlu1 %4139  ;;  %v4620_v22 = vld [vmem:[#allocation2 + $0x4c] sm:$0xf]  ;;  %v4622_v17 = vld [vmem:[#allocation2 + $0x54] sm:$0xf] }
 0x375   : > { %4262 = vst.msk [vmem:[#allocation3 + $0xc0] sm:$0xf] %vm4213_vm5, %v4142_v36  ;;  %4261 = vst.msk [vmem:[#allocation3 + $0xbc] sm:$0xf] %vm4213_vm5, %v4140_v38  ;;  %v5060_v38 = vrot.slane %v5058_v42, 4  ;;  %v10672_v20 = vrot.slane %v4784_v29, 5  ;;  %v5057_v57 = vsel %vm8095_vm11, %v5052_v34, %v5056_v52 }
 0x376   : > { %4454 = vrot.lane.b32.xlu0 %v4306_v33, %s7845_s29  ;;  %4400 = vrot.lane.b32.xlu1 %v4279_v62, %s7845_s29  ;;  %v4772_v33 = vrot.slane %v4771_v0, 4  ;;  %v4781_v62 = vor.u32 %v4780_v16, %v4776_v10  ;;  %v5680_v0 = vrot.slane %v5491_v61, 5  ;;  %v5685_v29 = vrot.slane %v5683_v53, 4 }
 0x377   : > { %v5061_v59 = vor.u32 %v5060_v38, %v5056_v52  ;;  %v5686_v52 = vrot.slane %v10719_v9, 5  ;;  %v4790_v34 = vrot.slane %v4788_v37, 4 }
 0x378   : > { %v4146_v35 = vpop.permute.xlu0 %4145  ;;  %v4144_v23 = vpop.permute.xlu1 %4143  ;;  %v4777_v1 = vsel %vm8095_vm11, %v4772_v33, %v4776_v10  ;;  %v4782_v56 = vrot.slane %v4781_v62, 4  ;;  %v5682_v10 = vrot.slane %v5680_v0, 4 }
 0x379   : > { %4264 = vst.msk [vmem:[#allocation3 + $0xc8] sm:$0xf] %vm4213_vm5, %v4146_v35  ;;  %4263 = vst.msk [vmem:[#allocation3 + $0xc4] sm:$0xf] %vm4213_vm5, %v4144_v23  ;;  %v5592_v23 = vrot.slane %v5590_v54, 4  ;;  %v5062_v7 = vrot.slane %v5061_v59, 4 }
 0x37a   : > { %4402 = vrot.lane.b32.xlu0 %v4280_v27, %s7845_s29  ;;  %4456 = vrot.lane.b32.xlu1 %v4307_v49, %s7845_s29  ;;  %v5462_v49 = vld [vmem:[#allocation2 + $0x3c] sm:$0xf]  ;;  %v4787_v14 = vsel %vm8095_vm11, %v4782_v56, %v10672_v20  ;;  %v4310_v59 = vld [vmem:[#allocation2 + $0xb8] sm:$0xf] }
 0x37b   : > { %v5593_v18 = vrot.slane %v5462_v49, 5 }
 0x37c   : > { %v4150_v24 = vpop.permute.xlu0 %4149  ;;  %v4148_v46 = vpop.permute.xlu1 %4147 }
 0x37d   : > { %4266 = vst.msk [vmem:[#allocation3 + $0xd0] sm:$0xf] %vm4213_vm5, %v4150_v24  ;;  %4265 = vst.msk [vmem:[#allocation3 + $0xcc] sm:$0xf] %vm4213_vm5, %v4148_v46  ;;  %v5463_v24 = vld [vmem:[#allocation2 + $0x40] sm:$0xf]  ;;  %v5594_v60 = vsel %vm9463_vm13, %v5592_v23, %v5593_v18  ;;  %v5678_v46 = vsel %vm9463_vm13, %v5676_v51, %v5677_v28  ;;  %v4791_v23 = vor.u32 %v4790_v34, %v10672_v20 }
 0x37e   : > { %4458 = vrot.lane.b32.xlu0 %v4308_v2, %s7845_s29  ;;  %4404 = vrot.lane.b32.xlu1 %v4281_v44, %s7845_s29  ;;  %v5596_v21 = vrot.slane %v5463_v24, 5  ;;  %v5067_v44 = vsel %vm8095_vm11, %v5062_v7, %v10686_v11  ;;  %v5595_v5 = vrot.slane %v5593_v18, 4  ;;  %v4621_v18 = vld [vmem:[#allocation2 + $0x50] sm:$0xf] }
 0x37f   : > { %v4284_v24 = vld [vmem:[#allocation2 + $0x50] sm:$0xf]  ;;  %v4808_v32 = vshrl.u32 %v4621_v18, 16  ;;  %v4804_v20 = vshll.u32 %v4621_v18, 16 }
 0x380   : > { %v4154_v8 = vpop.permute.xlu0 %4153  ;;  %v4152_v43 = vpop.permute.xlu1 %4151  ;;  %v5597_v40 = vsel %vm9463_vm13, %v5595_v5, %v5596_v21 }
 0x381   : > { %4268 = vst.msk [vmem:[#allocation3 + $0xd8] sm:$0xf] %vm4213_vm5, %v4154_v8  ;;  %4267 = vst.msk [vmem:[#allocation3 + $0xd4] sm:$0xf] %vm4213_vm5, %v4152_v43  ;;  %v5679_v8 = vrot.slane %v5677_v28, 4  ;;  %v5601_v43 = vrot.slane %v5599_v45, 4 }
 0x382   : > { %5244 = vrot.lane.b32.xlu0 %v4757_v58, %s7846_s8  ;;  %4460 = vrot.lane.b32.xlu1 %v4309_v19, %s7845_s29  ;;  %v5598_v58 = vrot.slane %v5596_v21, 4  ;;  %v4311_v21 = vld [vmem:[#allocation2 + $0xbc] sm:$0xf]  ;;  %v4792_v28 = vrot.slane %v4791_v23, 4 }
 0x383   : > { %v5681_v42 = vsel %vm9463_vm13, %v5679_v8, %v5680_v0  ;;  %v4810_v0 = vrot.slane %v4808_v32, 4  ;;  %v10757_v8 = vrot.slane %v4804_v20, 5 }
 0x384   : > { %v4383_v36 = vpop.permute.xlu0 %4382  ;;  %v4156_v27 = vpop.permute.xlu1 %4155  ;;  %v5600_v19 = vsel %vm9463_vm13, %v5598_v58, %v5599_v45 }
 0x385   : > { %4551 = vst.msk [vmem:[#allocation3] sm:$0xf] %vm4550_vm7, %v4383_v36  ;;  %v5684_v36 = vsel %vm9463_vm13, %v5682_v10, %v5683_v53  ;;  %v409_v10 = vld [vmem:[%s9306_s19 + $0x28] sm:$0xff]  ;;  %v4285_v53 = vld [vmem:[#allocation2 + $0x54] sm:$0xf]  ;;  %v4811_v37 = vor.u32 %v4810_v0, %v10757_v8 }
 0x386   : > { %5300 = vrot.lane.b32.xlu0 %v5037_v3, %s7846_s8  ;;  %4269 = vst.msk [vmem:[#allocation3 + $0xdc] sm:$0xf] %vm4213_vm5, %v4156_v27  ;;  %5246 = vrot.lane.b32.xlu1 %v4767_v41, %s7846_s8  ;;  %v5602_v3 = vrot.slane %v10708_v4, 5  ;;  %v4282_v27 = vld [vmem:[#allocation2 + $0x48] sm:$0xf] }
 0x388   : > { %v4387_v35 = vpop.permute.xlu0 %4386  ;;  %v4385_v2 = vpop.permute.xlu1 %4384  ;;  %v5603_v62 = vsel %vm9463_vm13, %v5601_v43, %v5602_v3  ;;  %v10768_v43 = vld [vmem:[%s11489_s1] ss:$0 sm:$0xff] }
 0x389   : > { %4553 = vst.msk [vmem:[#allocation3 + $0x8] sm:$0xf] %vm4550_vm7, %v4387_v35  ;;  %4552 = vst.msk [vmem:[#allocation3 + $0x4] sm:$0xf] %vm4550_vm7, %v4385_v2  ;;  %v5687_v35 = vsel %vm9463_vm13, %v5685_v29, %v5686_v52  ;;  %v4794_v2 = vshll.u32 %v4620_v22, 16 }
 0x38a   : > { %5248 = vrot.lane.b32.xlu0 %v4777_v1, %s7846_s8  ;;  %5302 = vrot.lane.b32.xlu1 %v5047_v48, %s7846_s8  ;;  %v5068_v48 = vshrl.u32 %v10665_v6, 16  ;;  %v5078_v6 = vshrl.u32 %v4648_v12, 16 }
 0x38b   : > { %v4796_v51 = vrot.slane %v4794_v2, 5 }
 0x38c   : > { %v4439_v50 = vpop.permute.xlu0 %4438  ;;  %v4389_v54 = vpop.permute.xlu1 %4388  ;;  %v5080_v61 = vrot.slane %v5078_v6, 4  ;;  %v4812_v6 = vrot.slane %v4811_v37, 4 }
 0x38d   : > { %4579 = vst.msk [vmem:[#allocation3 + $0x70] sm:$0xf] %vm4550_vm7, %v4439_v50  ;;  %4554 = vst.msk [vmem:[#allocation3 + $0xc] sm:$0xf] %vm4550_vm7, %v4389_v54  ;;  %v4283_v50 = vld [vmem:[#allocation2 + $0x4c] sm:$0xf] }
 0x38e   : > { %5304 = vrot.lane.b32.xlu0 %v5057_v57, %s7846_s8  ;;  %5250 = vrot.lane.b32.xlu1 %v4787_v14, %s7846_s8  ;;  %v4798_v57 = vshrl.u32 %v4620_v22, 16  ;;  %v5074_v14 = vshll.u32 %v4648_v12, 16  ;;  %v5070_v54 = vrot.slane %v5068_v48, 4  ;;  %v4313_v12 = vld [vmem:[#allocation2 + $0xc4] sm:$0xf] }
 0x390   : > { %v4443_v63 = vpop.permute.xlu0 %4442  ;;  %v4441_v55 = vpop.permute.xlu1 %4440  ;;  %v10751_v5 = vrot.slane %v5074_v14, 5 }
 0x391   : > { %4581 = vst.msk [vmem:[#allocation3 + $0x78] sm:$0xf] %vm4550_vm7, %v4443_v63  ;;  %4580 = vst.msk [vmem:[#allocation3 + $0x74] sm:$0xf] %vm4550_vm7, %v4441_v55  ;;  %v4800_v63 = vrot.slane %v4798_v57, 4 }
 0x392   : > { %5752 = vrot.lane.b32.xlu0 %v5594_v60, %s7847_s14  ;;  %5306 = vrot.lane.b32.xlu1 %v5067_v44, %s7846_s8  ;;  %v4649_v44 = vld [vmem:[#allocation2 + $0xc0] sm:$0xf] }
 0x393   : > { %v5088_v58 = vshrl.u32 %v4649_v44, 16  ;;  %v5084_v26 = vshll.u32 %v4649_v44, 16 }
 0x394   : > { %v5229_v47 = vpop.permute.xlu0 %5228  ;;  %v4445_v39 = vpop.permute.xlu1 %4444 }
 0x395   : > { %5397 = vst.msk [vmem:[#allocation3] sm:$0xf] %vm5396_vm8, %v5229_v47  ;;  %v5071_v47 = vor.u32 %v5070_v54, %v10686_v11  ;;  %v4797_v11 = vsel %vm8095_vm11, %v4792_v28, %v4796_v51  ;;  %v5090_v29 = vrot.slane %v5088_v58, 4  ;;  %v10781_v34 = vrot.slane %v5084_v26, 5 }
 0x396   : > { %5808 = vrot.lane.b32.xlu0 %v5678_v46, %s7847_s14  ;;  %4582 = vst.msk [vmem:[#allocation3 + $0x7c] sm:$0xf] %vm4550_vm7, %v4445_v39  ;;  %5754 = vrot.lane.b32.xlu1 %v5597_v40, %s7847_s14  ;;  %v4312_v46 = vld [vmem:[#allocation2 + $0xc0] sm:$0xf]  ;;  %v4801_v40 = vor.u32 %v4800_v63, %v4796_v51  ;;  %v4814_v39 = vshll.u32 %v4622_v17, 16 }
 0x398   : > { %v5285_v16 = vpop.permute.xlu0 %5284  ;;  %v5231_v33 = vpop.permute.xlu1 %5230  ;;  %v4816_v48 = vrot.slane %v4814_v39, 5 }
 0x399   : > { %5425 = vst.msk [vmem:[#allocation3 + $0x70] sm:$0xf] %vm5396_vm8, %v5285_v16  ;;  %5398 = vst.msk [vmem:[#allocation3 + $0x4] sm:$0xf] %vm5396_vm8, %v5231_v33  ;;  %v408_v16 = vld [vmem:[%s9306_s19 + $0x20] sm:$0xff]  ;;  %v10771_v33 = vmul.f32 %v10768_v43, %v409_v10 }
 0x39a   : > { %5756 = vrot.lane.b32.xlu0 %v5600_v19, %s7847_s14  ;;  %5810 = vrot.lane.b32.xlu1 %v5681_v42, %s7847_s14  ;;  %v4818_v19 = vshrl.u32 %v4622_v17, 16  ;;  %v5081_v42 = vor.u32 %v5080_v61, %v10751_v5  ;;  %v4817_v0 = vsel %vm8095_vm11, %v4812_v6, %v4816_v48 }
 0x39b   : > { %v7677_v22 = vcvt.f32.s32 %v10771_v33  ;;  %v7680_v63 = vand.u32 2147483648, %v10771_v33  ;;  %v7675_v20 = vand.u32 2147483647, %v10771_v33 }
 0x39c   : > { %v5233_v41 = vpop.permute.xlu0 %5232  ;;  %v5287_v38 = vpop.permute.xlu1 %5286 }
 0x39d   : > { %5399 = vst.msk [vmem:[#allocation3 + $0x8] sm:$0xf] %vm5396_vm8, %v5233_v41  ;;  %5426 = vst.msk [vmem:[#allocation3 + $0x74] sm:$0xf] %vm5396_vm8, %v5287_v38  ;;  %v5072_v41 = vrot.slane %v5071_v47, 4  ;;  %v10775_v38 = vmul.f32 %v10768_v43, %v408_v16  ;;  %v7678_v23 = vcvt.s32.f32 %v7677_v22  ;;  %vm7676_vm12 = vcmp.lt.f32.partialorder %v7675_v20, 8388608.0 }
 0x39e   : > { %5812 = vrot.lane.b32.xlu0 %v5684_v36, %s7847_s14  ;;  %5758 = vrot.lane.b32.xlu1 %v5603_v62, %s7847_s14  ;;  %v4650_v62 = vld [vmem:[#allocation2 + $0xc4] sm:$0xf]  ;;  %v5604_v22 = vrot.slane %v5602_v3, 4 }
 0x39f   : > { %v5094_v2 = vshll.u32 %v4650_v62, 16  ;;  %v5098_v57 = vshrl.u32 %v4650_v62, 16  ;;  %v5077_v14 = vsel %vm8095_vm11, %v5072_v41, %v10751_v5  ;;  %v7679_v51 = vand.u32 2147483647, %v7678_v23  ;;  %v10805_v5 = vld [vmem:[#allocation2 + $0xc8] sm:$0xf] }
 0x3a0   : > { %v5289_v1 = vpop.permute.xlu0 %5288  ;;  %v5235_v56 = vpop.permute.xlu1 %5234  ;;  %v7667_v28 = vand.u32 2147483647, %v10775_v38  ;;  %v5466_v41 = vld [vmem:[#allocation2 + $0x4c] sm:$0xf] }
 0x3a1   : > { %5427 = vst.msk [vmem:[#allocation3 + $0x78] sm:$0xf] %vm5396_vm8, %v5289_v1  ;;  %5400 = vst.msk [vmem:[#allocation3 + $0xc] sm:$0xf] %vm5396_vm8, %v5235_v56  ;;  %v4802_v1 = vrot.slane %v4801_v40, 4  ;;  %v4820_v56 = vrot.slane %v4818_v19, 4 }
 0x3a2   : > { %4406 = vrot.lane.b32.xlu0 %v4282_v27, %s7845_s29  ;;  %5814 = vrot.lane.b32.xlu1 %v5687_v35, %s7847_s14  ;;  %v10783_v35 = vld [vmem:[#allocation2 + $0x58] sm:$0xf]  ;;  %v5096_v61 = vrot.slane %v5094_v2, 5  ;;  %v5100_v17 = vrot.slane %v5098_v57, 4  ;;  %vm10810_vm4 = vcmp.lt.f32.partialorder %v7667_v28, 8388608.0 }
 0x3a3   : > { %v4807_v32 = vsel %vm8095_vm11, %v4802_v1, %v10757_v8  ;;  %v5494_v2 = vld [vmem:[#allocation2 + $0xbc] sm:$0xf] }
 0x3a4   : > { %v5737_v49 = vpop.permute.xlu0 %5736  ;;  %v5291_v7 = vpop.permute.xlu1 %5290 }
 0x3a5   : > { %5905 = vst.msk [vmem:[#allocation3] sm:$0xf] %vm5904_vm9, %v5737_v49  ;;  %v10787_v49 = vrot.slane %v5081_v42, 4  ;;  %v410_v42 = vld [vmem:[%s9306_s19 + $0x30] sm:$0xff]  ;;  %s309_s19 = sand.u32 1, %s7830_s25  }
 0x3a6   : > { %4462 = vrot.lane.b32.xlu0 %v4310_v59, %s7845_s29  ;;  %5428 = vst.msk [vmem:[#allocation3 + $0x7c] sm:$0xf] %vm5396_vm8, %v5291_v7  ;;  %4408 = vrot.lane.b32.xlu1 %v4283_v50, %s7845_s29  ;;  %v7669_v59 = vcvt.f32.s32 %v10775_v38  ;;  %v5091_v7 = vor.u32 %v5090_v29, %v10781_v34  ;;  %v10838_v62 = vmul.f32 %v10768_v43, %v410_v42  ;;  %v5605_v43 = vrot.slane %v5466_v41, 5  ;;  %s11447_s28 = scalar_lea.sflag [#allocation5], %s309_s19 }
 0x3a7   : > { %v5087_v19 = vsel %vm8095_vm11, %v10787_v49, %v10781_v34  ;;  %v5467_v49 = vld [vmem:[#allocation2 + $0x50] sm:$0xf] }
 0x3a8   : > { %v5793_v60 = vpop.permute.xlu0 %5792  ;;  %v5739_v55 = vpop.permute.xlu1 %5738  ;;  %v7688_v6 = vand.u32 2147483648, %v10838_v62 }
 0x3a9   : > { %5933 = vst.msk [vmem:[#allocation3 + $0x70] sm:$0xf] %vm5904_vm9, %v5793_v60  ;;  %5906 = vst.msk [vmem:[#allocation3 + $0x4] sm:$0xf] %vm5904_vm9, %v5739_v55  ;;  %v4824_v60 = vshll.u32 %v10783_v35, 16  ;;  %v7681_v55 = vor.u32 %v7680_v63, %v7679_v51 }
 0x3aa   : > { %4410 = vrot.lane.b32.xlu0 %v4284_v24, %s7845_s29  ;;  %4464 = vrot.lane.b32.xlu1 %v4311_v21, %s7845_s29  ;;  %v7670_v24 = vcvt.s32.f32 %v7669_v59  ;;  %v4821_v21 = vor.u32 %v4820_v56, %v4816_v48  ;;  %v7685_v59 = vcvt.f32.s32 %v10838_v62  ;;  %v5495_v51 = vld [vmem:[#allocation2 + $0xc0] sm:$0xf]  ;;  %v5468_v63 = vld [vmem:[#allocation2 + $0x54] sm:$0xf] }
 0x3ab   : > { %v7682_v26 = vsel %vm7676_vm12, %v7681_v55, %v10771_v33  ;;  %v10823_v16 = vrot.slane %v4824_v60, 5  ;;  %v5101_v33 = vor.u32 %v5100_v17, %v5096_v61  ;;  %v5692_v55 = vrot.slane %v5495_v51, 5 }
 0x3ac   : > { %v5741_v45 = vpop.permute.xlu0 %5740  ;;  %v5795_v36 = vpop.permute.xlu1 %5794  ;;  %v7671_v44 = vand.u32 2147483647, %v7670_v24  ;;  %v4822_v10 = vrot.slane %v4821_v21, 4  ;;  %v7686_v57 = vcvt.s32.f32 %v7685_v59  ;;  %v5608_v24 = vrot.slane %v5467_v49, 5 }
 0x3ad   : > { %5907 = vst.msk [vmem:[#allocation3 + $0x8] sm:$0xf] %vm5904_vm9, %v5741_v45  ;;  %5934 = vst.msk [vmem:[#allocation3 + $0x74] sm:$0xf] %vm5904_vm9, %v5795_v36  ;;  %v5092_v45 = vrot.slane %v5091_v7, 4  ;;  %v5104_v36 = vshll.u32 %v10805_v5, 16 }
 0x3ae   : > { %4466 = vrot.lane.b32.xlu0 %v4312_v46, %s7845_s29  ;;  %4412 = vrot.lane.b32.xlu1 %v4285_v53, %s7845_s29  ;;  %v7672_v46 = vand.u32 2147483648, %v10775_v38  ;;  %v10828_v53 = vld [vmem:[%s11488_s0] ss:$0 sm:$0xff]  ;;  %v4827_v4 = vsel %vm8095_vm11, %v4822_v10, %v10823_v16  ;;  %v5102_v3 = vrot.slane %v5101_v33, 4  ;;  %v7687_v60 = vand.u32 2147483647, %v7686_v57 }
 0x3af   : > { %v5097_v1 = vsel %vm8095_vm11, %v5092_v45, %v5096_v61  ;;  %v5610_v28 = vrot.slane %v5608_v24, 4  ;;  %v5496_v45 = vld [vmem:[#allocation2 + $0xc4] sm:$0xf] }
 0x3b0   : > { %v5797_v27 = vpop.permute.xlu0 %5796  ;;  %v5743_v50 = vpop.permute.xlu1 %5742  ;;  %v7741_v18 = vld [vmem:[#allocation3] sm:$0xff]   ;;  %v7673_v39 = vor.u32 %v7672_v46, %v7671_v44  ;;  %v7689_v61 = vor.u32 %v7688_v6, %v7687_v60  ;;  %v5611_v46 = vrot.slane %v5468_v63, 5 }
 0x3b1   : > { %5935 = vst.msk [vmem:[#allocation3 + $0x78] sm:$0xf] %vm5904_vm9, %v5797_v27  ;;  %5908 = vst.msk [vmem:[#allocation3 + $0xc] sm:$0xf] %vm5904_vm9, %v5743_v50  ;;  %7122 = vmatprep.mubr.msk.bf16.mxu0 %vm6177_vm10, %v7741_v18  ;;  %v5606_v18 = vsel %vm9463_vm13, %v5604_v22, %v5605_v43 }
 0x3b2   : > { %5252 = vrot.lane.b32.xlu0 %v4797_v11, %s7846_s8  ;;  %4468 = vrot.lane.b32.xlu1 %v4313_v12, %s7845_s29  ;;  %v612_v11 = vmul.f32 %v10828_v53, %v7682_v26  ;;  %v7674_v37 = vsel %vm10810_vm4, %v7673_v39, %v10775_v38  ;;  %v10854_v12 = vrot.slane %v5104_v36, 5  ;;  %v5612_v26 = vsel %vm9463_vm13, %v5610_v28, %v5611_v46  ;;  %v4653_v28 = vld [vmem:[#allocation2 + $0xd0] sm:$0xf] }
 0x3b3   : > { %v611_v48 = vmul.f32 %v10828_v53, %v7674_v37  ;;  %v5694_v39 = vrot.slane %v5692_v55, 4  ;;  %v5613_v33 = vrot.slane %v5611_v46, 4 }
 0x3b4   : > { %v4391_v54 = vpop.permute.xlu0 %4390  ;;  %v5799_v58 = vpop.permute.xlu1 %5798  ;;  %v7743_v47 = vld [vmem:[#allocation3 + $0x70] sm:$0xff]   ;;  %v7082_v34 = vpack.c.bf16 %v612_v11, %v612_v11  ;;  %v5107_v9 = vsel %vm8095_vm11, %v5102_v3, %v10854_v12  ;;  %v5695_v11 = vrot.slane %v5496_v45, 5  ;;  %v4314_v3 = vld [vmem:[#allocation2 + $0xc8] sm:$0xf] }
 0x3b5   : > { %4555 = vst.msk [vmem:[#allocation3 + $0x10] sm:$0xf] %vm4550_vm7, %v4391_v54  ;;  %7150 = vmatprep.mubr.msk.bf16.mxu1 %vm6177_vm10, %v7743_v47  ;;  %v7081_v38 = vpack.c.bf16 %v611_v48, %v611_v48  ;;  %v7683_v54 = vand.u32 2147483647, %v10838_v62 }
 0x3b6   : > { %5308 = vrot.lane.b32.xlu0 %v5077_v14, %s7846_s8  ;;  %5936 = vst.msk [vmem:[#allocation3 + $0x7c] sm:$0xf] %vm5904_vm9, %v5799_v58  ;;  %5254 = vrot.lane.b32.xlu1 %v4807_v32, %s7846_s8  ;;  %v5688_v14 = vrot.slane %v5686_v52, 4  ;;  %v5689_v32 = vrot.slane %v5494_v2, 5  ;;  %v5607_v52 = vrot.slane %v5605_v43, 4 }
 0x3b7   : > { %1105 = vst.msk [vmem:[#allocation2 + $0xf4] sm:$0xf] %vm1014_vm2, %v7082_v34  ;;  %1104 = vst.msk [vmem:[#allocation2 + $0xf0] sm:$0xf] %vm1014_vm2, %v7081_v38  ;;  %vm10874_vm14 = vcmp.lt.f32.partialorder %v7683_v54, 8388608.0  ;;  %v4828_v34 = vshrl.u32 %v10783_v35, 16 }
 0x3b8   : > { %v4447_v8 = vpop.permute.xlu0 %4446  ;;  %v4393_v29 = vpop.permute.xlu1 %4392  ;;  %v7744_v27 = vld [vmem:[#allocation3 + $0x8] sm:$0xff]   ;;  %v5690_v20 = vsel %vm9463_vm13, %v5688_v14, %v5689_v32  ;;  %v7690_v58 = vsel %vm10874_vm14, %v7689_v61, %v10838_v62  ;;  %v5609_v47 = vsel %vm9463_vm13, %v5607_v52, %v5608_v24  ;;  %v4624_v43 = vld [vmem:[#allocation2 + $0x5c] sm:$0xf]  ;;  %v4652_v14 = vld [vmem:[#allocation2 + $0xcc] sm:$0xf]  ;;  %v5128_v61 = vshrl.u32 %v4653_v28, 16 }
 0x3b9   : > { %4583 = vst.msk [vmem:[#allocation3 + $0x80] sm:$0xf] %vm4550_vm7, %v4447_v8  ;;  %4556 = vst.msk [vmem:[#allocation3 + $0x14] sm:$0xf] %vm4550_vm7, %v4393_v29  ;;  %7123 = vmatmul.mubr.msk.bf16.vlgmr.msra.gmra.mxu0 %vm6177_vm10, %v7744_v27  ;;  %v10887_v8 = vld [vmem:[#allocation2 + $0x58] sm:$0xf] }
 0x3ba   : > { %5256 = vrot.lane.b32.xlu0 %v4817_v0, %s7846_s8  ;;  %5310 = vrot.lane.b32.xlu1 %v5087_v19, %s7846_s8  ;;  %v5691_v0 = vrot.slane %v5689_v32, 4  ;;  %v613_v19 = vmul.f32 %v10828_v53, %v7690_v58  ;;  %v5614_v36 = vrot.slane %v10887_v8, 5  ;;  %v10899_v62 = vld [vmem:[#allocation2 + $0xc8] sm:$0xf]  ;;  %v5696_v53 = vsel %vm9463_vm13, %v5694_v39, %v5695_v11  ;;  %v4289_v39 = vld [vmem:[#allocation2 + $0x64] sm:$0xf] }
 0x3bb   : > { %v5698_v22 = vrot.slane %v10899_v62, 5  ;;  %v4830_v49 = vrot.slane %v4828_v34, 4  ;;  %v4834_v57 = vshll.u32 %v4624_v43, 16  ;;  %v5114_v51 = vshll.u32 %v4652_v14, 16  ;;  %v4317_v34 = vld [vmem:[#allocation2 + $0xd4] sm:$0xf] }
 0x3bc   : > { %v4395_v56 = vpop.permute.xlu0 %4394  ;;  %v4449_v23 = vpop.permute.xlu1 %4448  ;;  %v5693_v42 = vsel %vm9463_vm13, %v5691_v0, %v5692_v55  ;;  %v7083_v41 = vpack.c.bf16 %v613_v19, %v613_v19  ;;  %v5615_v27 = vsel %vm9463_vm13, %v5613_v33, %v5614_v36  ;;  %v5118_v63 = vshrl.u32 %v4652_v14, 16  ;;  %v4626_v55 = vld [vmem:[#allocation2 + $0x64] sm:$0xf]  ;;  %v5471_v8 = vld [vmem:[#allocation2 + $0x60] sm:$0xf] }
 0x3bd   : > { %4557 = vst.msk [vmem:[#allocation3 + $0x18] sm:$0xf] %vm4550_vm7, %v4395_v56  ;;  %v7745_v50 = vld [vmem:[#allocation3 + $0x78] sm:$0xff]   ;;  %4584 = vst.msk [vmem:[#allocation3 + $0x84] sm:$0xf] %vm4550_vm7, %v4449_v23  ;;  %v4838_v23 = vshrl.u32 %v4624_v43, 16  ;;  %v4831_v24 = vor.u32 %v4830_v49, %v10823_v16 }
 0x3be   : > { %5312 = vrot.lane.b32.xlu0 %v5097_v1, %s7846_s8  ;;  %5258 = vrot.lane.b32.xlu1 %v4827_v4, %s7846_s8  ;;  %1106 = vst.msk [vmem:[#allocation2 + $0xf8] sm:$0xf] %vm1014_vm2, %v7083_v41  ;;  %v5697_v1 = vrot.slane %v5695_v11, 4  ;;  %v4286_v56 = vld [vmem:[#allocation2 + $0x58] sm:$0xf]  ;;  %v5108_v4 = vshrl.u32 %v10805_v5, 16 }
 0x3bf   : > { %7151 = vmatmul.mubr.msk.bf16.vlgmr.msra.gmra.mxu1 %vm6177_vm10, %v7745_v50  ;;  %v4287_v50 = vld [vmem:[#allocation2 + $0x5c] sm:$0xf]  ;;  %v4836_v60 = vrot.slane %v4834_v57, 5  ;;  %v4832_v16 = vrot.slane %v4831_v24, 4  ;;  %v5116_v45 = vrot.slane %v5114_v51, 5  ;;  %v4854_v19 = vshll.u32 %v4626_v55, 16 }
 0x3c0   : > { %v4451_v7 = vpop.permute.xlu0 %4450  ;;  %v4397_v21 = vpop.permute.xlu1 %4396  ;;  %v5699_v38 = vsel %vm9463_vm13, %v5697_v1, %v5698_v22  ;;  %v5110_v32 = vrot.slane %v5108_v4, 4  ;;  %v4654_v41 = vld [vmem:[#allocation2 + $0xd4] sm:$0xf]  ;;  %v5499_v62 = vld [vmem:[#allocation2 + $0xd0] sm:$0xf] }
 0x3c1   : > { %4585 = vst.msk [vmem:[#allocation3 + $0x88] sm:$0xf] %vm4550_vm7, %v4451_v7  ;;  %4558 = vst.msk [vmem:[#allocation3 + $0x1c] sm:$0xf] %vm4550_vm7, %v4397_v21  ;;  %v4288_v7 = vld [vmem:[#allocation2 + $0x60] sm:$0xf]  ;;  %v4837_v11 = vsel %vm8095_vm11, %v4832_v16, %v4836_v60 }
 0x3c2   : > { %5760 = vrot.lane.b32.xlu0 %v5606_v18, %s7847_s14  ;;  %5314 = vrot.lane.b32.xlu1 %v5107_v9, %s7846_s8  ;;  %v4625_v18 = vld [vmem:[#allocation2 + $0x60] sm:$0xf]  ;;  %v4840_v9 = vrot.slane %v4838_v23, 4  ;;  %v4315_v21 = vld [vmem:[#allocation2 + $0xcc] sm:$0xf]  ;;  %v5138_v43 = vshrl.u32 %v4654_v41, 16 }
 0x3c3   : > { %v4848_v5 = vshrl.u32 %v4625_v18, 16  ;;  %v4844_v52 = vshll.u32 %v4625_v18, 16 }
 0x3c4   : > { %v5237_v17 = vpop.permute.xlu0 %5236  ;;  %v4453_v40 = vpop.permute.xlu1 %4452 }
 0x3c5   : > { %5401 = vst.msk [vmem:[#allocation3 + $0x10] sm:$0xf] %vm5396_vm8, %v5237_v17  ;;  %v5111_v17 = vor.u32 %v5110_v32, %v10854_v12  ;;  %v4850_v46 = vrot.slane %v4848_v5, 4  ;;  %v4846_v0 = vrot.slane %v4844_v52, 5 }
 0x3c6   : > { %5816 = vrot.lane.b32.xlu0 %v5690_v20, %s7847_s14  ;;  %4586 = vst.msk [vmem:[#allocation3 + $0x8c] sm:$0xf] %vm4550_vm7, %v4453_v40  ;;  %5762 = vrot.lane.b32.xlu1 %v5609_v47, %s7847_s14  ;;  %v4316_v20 = vld [vmem:[#allocation2 + $0xd0] sm:$0xf]  ;;  %v4841_v47 = vor.u32 %v4840_v9, %v4836_v60  ;;  %v5120_v40 = vrot.slane %v5118_v63, 4 }
 0x3c7   : > { %v4851_v33 = vor.u32 %v4850_v46, %v4846_v0 }
 0x3c8   : > { %v5293_v10 = vpop.permute.xlu0 %5292  ;;  %v5239_v37 = vpop.permute.xlu1 %5238 }
 0x3c9   : > { %5429 = vst.msk [vmem:[#allocation3 + $0x80] sm:$0xf] %vm5396_vm8, %v5293_v10  ;;  %5402 = vst.msk [vmem:[#allocation3 + $0x14] sm:$0xf] %vm5396_vm8, %v5239_v37  ;;  %v4858_v10 = vshrl.u32 %v4626_v55, 16  ;;  %v5130_v37 = vrot.slane %v5128_v61, 4 }
 0x3ca   : > { %5764 = vrot.lane.b32.xlu0 %v5612_v26, %s7847_s14  ;;  %5818 = vrot.lane.b32.xlu1 %v5693_v42, %s7847_s14  ;;  %v5124_v26 = vshll.u32 %v4653_v28, 16  ;;  %v5112_v42 = vrot.slane %v5111_v17, 4  ;;  %v4852_v49 = vrot.slane %v4851_v33, 4  ;;  %v5470_v28 = vld [vmem:[#allocation2 + $0x5c] sm:$0xf]  ;;  %v5616_v17 = vrot.slane %v5614_v36, 4 }
 0x3cb   : > { %v5617_v46 = vrot.slane %v5470_v28, 5  ;;  %v5498_v36 = vld [vmem:[#allocation2 + $0xcc] sm:$0xf] }
 0x3cc   : > { %v5241_v29 = vpop.permute.xlu0 %5240  ;;  %v5295_v48 = vpop.permute.xlu1 %5294  ;;  %v5126_v1 = vrot.slane %v5124_v26, 5 }
 0x3cd   : > { %5403 = vst.msk [vmem:[#allocation3 + $0x18] sm:$0xf] %vm5396_vm8, %v5241_v29  ;;  %5430 = vst.msk [vmem:[#allocation3 + $0x84] sm:$0xf] %vm5396_vm8, %v5295_v48  ;;  %v4842_v29 = vrot.slane %v4841_v47, 4  ;;  %v4856_v48 = vrot.slane %v4854_v19, 5  ;;  %v5618_v26 = vsel %vm9463_vm13, %v5616_v17, %v5617_v46 }
 0x3ce   : > { %5820 = vrot.lane.b32.xlu0 %v5696_v53, %s7847_s14  ;;  %5766 = vrot.lane.b32.xlu1 %v5615_v27, %s7847_s14  ;;  %v5121_v27 = vor.u32 %v5120_v40, %v5116_v45  ;;  %v4291_v17 = vld [vmem:[#allocation2 + $0x6c] sm:$0xf] }
 0x3cf   : > { %v4847_v23 = vsel %vm8095_vm11, %v4842_v29, %v4846_v0  ;;  %v4857_v32 = vsel %vm8095_vm11, %v4852_v49, %v4856_v48  ;;  %v5704_v29 = vrot.slane %v5499_v62, 5 }
 0x3d0   : > { %v5297_v59 = vpop.permute.xlu0 %5296  ;;  %v5243_v35 = vpop.permute.xlu1 %5242 }
 0x3d1   : > { %5431 = vst.msk [vmem:[#allocation3 + $0x88] sm:$0xf] %vm5396_vm8, %v5297_v59  ;;  %5404 = vst.msk [vmem:[#allocation3 + $0x1c] sm:$0xf] %vm5396_vm8, %v5243_v35  ;;  %v5134_v59 = vshll.u32 %v4654_v41, 16  ;;  %v5117_v35 = vsel %vm8095_vm11, %v5112_v42, %v5116_v45  ;;  %v5619_v42 = vrot.slane %v5617_v46, 4 }
 0x3d2   : > { %4414 = vrot.lane.b32.xlu0 %v4286_v56, %s7845_s29  ;;  %5822 = vrot.lane.b32.xlu1 %v5699_v38, %s7847_s14  ;;  %v4860_v56 = vrot.slane %v4858_v10, 4  ;;  %v5620_v10 = vrot.slane %v5471_v8, 5  ;;  %v4656_v46 = vld [vmem:[#allocation2 + $0xdc] sm:$0xf] }
 0x3d4   : > { %v5745_v2 = vpop.permute.xlu0 %5744  ;;  %v5299_v6 = vpop.permute.xlu1 %5298  ;;  %v4861_v18 = vor.u32 %v4860_v56, %v4856_v48  ;;  %v5500_v48 = vld [vmem:[#allocation2 + $0xd4] sm:$0xf] }
 0x3d5   : > { %5909 = vst.msk [vmem:[#allocation3 + $0x10] sm:$0xf] %vm5904_vm9, %v5745_v2  ;;  %v5131_v2 = vor.u32 %v5130_v37, %v5126_v1  ;;  %v5622_v37 = vrot.slane %v5620_v10, 4 }
 0x3d6   : > { %4470 = vrot.lane.b32.xlu0 %v4314_v3, %s7845_s29  ;;  %5432 = vst.msk [vmem:[#allocation3 + $0x8c] sm:$0xf] %vm5396_vm8, %v5299_v6  ;;  %4416 = vrot.lane.b32.xlu1 %v4287_v50, %s7845_s29  ;;  %v10945_v3 = vld [vmem:[#allocation2 + $0x68] sm:$0xf]  ;;  %v5122_v50 = vrot.slane %v5121_v27, 4  ;;  %v5136_v6 = vrot.slane %v5134_v59, 5 }
 0x3d7   : > { %v4864_v14 = vshll.u32 %v10945_v3, 16  ;;  %v5132_v60 = vrot.slane %v5131_v2, 4  ;;  %v4862_v51 = vrot.slane %v4861_v18, 4  ;;  %v11003_v59 = vld [vmem:[#allocation2 + $0x68] sm:$0xf] }
 0x3d8   : > { %v5801_v54 = vpop.permute.xlu0 %5800  ;;  %v5747_v44 = vpop.permute.xlu1 %5746  ;;  %v5127_v52 = vsel %vm8095_vm11, %v5122_v50, %v5126_v1  ;;  %v5621_v1 = vsel %vm9463_vm13, %v5619_v42, %v5620_v10  ;;  %v11014_v50 = vld [vmem:[#allocation2 + $0xd8] sm:$0xf]  ;;  %v5158_v10 = vshrl.u32 %v4656_v46, 16  ;;  %v4657_v42 = vld [vmem:[#allocation2 + $0xe0] sm:$0xf] }
 0x3d9   : > { %5937 = vst.msk [vmem:[#allocation3 + $0x80] sm:$0xf] %vm5904_vm9, %v5801_v54  ;;  %5910 = vst.msk [vmem:[#allocation3 + $0x14] sm:$0xf] %vm5904_vm9, %v5747_v44  ;;  %v10957_v54 = vld [vmem:[#allocation2 + $0xd8] sm:$0xf]  ;;  %v5137_v61 = vsel %vm8095_vm11, %v5132_v60, %v5136_v6 }
 0x3da   : > { %4418 = vrot.lane.b32.xlu0 %v4288_v7, %s7845_s29  ;;  %4472 = vrot.lane.b32.xlu1 %v4315_v21, %s7845_s29  ;;  %v5140_v7 = vrot.slane %v5138_v43, 4  ;;  %v10965_v63 = vrot.slane %v4864_v14, 5  ;;  %v4290_v60 = vld [vmem:[#allocation2 + $0x68] sm:$0xf] }
 0x3dc   : > { %v5749_v58 = vpop.permute.xlu0 %5748  ;;  %v5803_v12 = vpop.permute.xlu1 %5802  ;;  %v5141_v21 = vor.u32 %v5140_v7, %v5136_v6 }
 0x3dd   : > { %5911 = vst.msk [vmem:[#allocation3 + $0x18] sm:$0xf] %vm5904_vm9, %v5749_v58  ;;  %5938 = vst.msk [vmem:[#allocation3 + $0x84] sm:$0xf] %vm5904_vm9, %v5803_v12  ;;  %v4867_v58 = vsel %vm8095_vm11, %v4862_v51, %v10965_v63  ;;  %v5701_v12 = vrot.slane %v5498_v36, 5 }
 0x3de   : > { %4474 = vrot.lane.b32.xlu0 %v4316_v20, %s7845_s29  ;;  %4420 = vrot.lane.b32.xlu1 %v4289_v39, %s7845_s29  ;;  %v5144_v20 = vshll.u32 %v10957_v54, 16  ;;  %v5142_v47 = vrot.slane %v5141_v21, 4  ;;  %v5700_v39 = vrot.slane %v5698_v22, 4  ;;  %v5472_v22 = vld [vmem:[#allocation2 + $0x64] sm:$0xf]  ;;  %v5148_v21 = vshrl.u32 %v10957_v54, 16 }
 0x3df   : > { %v5623_v27 = vrot.slane %v5472_v22, 5  ;;  %v5168_v22 = vshrl.u32 %v4657_v42, 16 }
 0x3e0   : > { %v5805_v53 = vpop.permute.xlu0 %5804  ;;  %v5751_v38 = vpop.permute.xlu1 %5750  ;;  %v7746_v4 = vld [vmem:[#allocation3 + $0x10] sm:$0xff]   ;;  %v10980_v0 = vrot.slane %v5144_v20, 5  ;;  %v5702_v41 = vsel %vm9463_vm13, %v5700_v39, %v5701_v12  ;;  %v4318_v20 = vld [vmem:[#allocation2 + $0xd8] sm:$0xf]  ;;  %v5150_v36 = vrot.slane %v5148_v21, 4 }
 0x3e1   : > { %5939 = vst.msk [vmem:[#allocation3 + $0x88] sm:$0xf] %vm5904_vm9, %v5805_v53  ;;  %5912 = vst.msk [vmem:[#allocation3 + $0x1c] sm:$0xf] %vm5904_vm9, %v5751_v38  ;;  %7126 = vmatprep.mubr.msk.bf16.mxu0 %vm6177_vm10, %v7746_v4  ;;  %v5624_v43 = vsel %vm9463_vm13, %v5622_v37, %v5623_v27  ;;  %v5706_v38 = vrot.slane %v5704_v29, 4  ;;  %v5625_v2 = vrot.slane %v5623_v27, 4 }
 0x3e2   : > { %5260 = vrot.lane.b32.xlu0 %v4837_v11, %s7846_s8  ;;  %4476 = vrot.lane.b32.xlu1 %v4317_v34, %s7845_s29  ;;  %v5147_v11 = vsel %vm8095_vm11, %v5142_v47, %v10980_v0  ;;  %v5703_v34 = vrot.slane %v5701_v12, 4  ;;  %v4292_v47 = vld [vmem:[#allocation2 + $0x70] sm:$0xf]  ;;  %v4319_v12 = vld [vmem:[#allocation2 + $0xdc] sm:$0xf] }
 0x3e4   : > { %v4399_v57 = vpop.permute.xlu0 %4398  ;;  %v5807_v5 = vpop.permute.xlu1 %5806  ;;  %v7747_v24 = vld [vmem:[#allocation3 + $0x80] sm:$0xff]   ;;  %v5705_v49 = vsel %vm9463_vm13, %v5703_v34, %v5704_v29  ;;  %v5160_v34 = vrot.slane %v5158_v10, 4 }
 0x3e5   : > { %4559 = vst.msk [vmem:[#allocation3 + $0x20] sm:$0xf] %vm4550_vm7, %v4399_v57  ;;  %7154 = vmatprep.mubr.msk.bf16.mxu1 %vm6177_vm10, %v7747_v24  ;;  %v5626_v57 = vrot.slane %v11003_v59, 5  ;;  %v4868_v24 = vshrl.u32 %v10945_v3, 16  ;;  %v5475_v59 = vld [vmem:[#allocation2 + $0x70] sm:$0xf] }
 0x3e6   : > { %5316 = vrot.lane.b32.xlu0 %v5117_v35, %s7846_s8  ;;  %5940 = vst.msk [vmem:[#allocation3 + $0x8c] sm:$0xf] %vm5904_vm9, %v5807_v5  ;;  %5262 = vrot.lane.b32.xlu1 %v4847_v23, %s7846_s8  ;;  %v5707_v35 = vrot.slane %v5500_v48, 5  ;;  %v5710_v5 = vrot.slane %v11014_v50, 5  ;;  %v5164_v48 = vshll.u32 %v4657_v42, 16 }
 0x3e7   : > { %v5627_v6 = vsel %vm9463_vm13, %v5625_v2, %v5626_v57  ;;  %v4870_v28 = vrot.slane %v4868_v24, 4  ;;  %v4658_v2 = vld [vmem:[#allocation2 + $0xe4] sm:$0xf]  ;;  %v5474_v42 = vld [vmem:[#allocation2 + $0x6c] sm:$0xf] }
 0x3e8   : > { %v4455_v9 = vpop.permute.xlu0 %4454  ;;  %v4401_v44 = vpop.permute.xlu1 %4400  ;;  %v7748_v16 = vld [vmem:[#allocation3 + $0x18] sm:$0xff]   ;;  %v5708_v18 = vsel %vm9463_vm13, %v5706_v38, %v5707_v35  ;;  %v5709_v7 = vrot.slane %v5707_v35, 4  ;;  %v4321_v24 = vld [vmem:[#allocation2 + $0xe4] sm:$0xf]  ;;  %v5503_v50 = vld [vmem:[#allocation2 + $0xe0] sm:$0xf] }
 0x3e9   : > { %4587 = vst.msk [vmem:[#allocation3 + $0x90] sm:$0xf] %vm4550_vm7, %v4455_v9  ;;  %4560 = vst.msk [vmem:[#allocation3 + $0x24] sm:$0xf] %vm4550_vm7, %v4401_v44  ;;  %7127 = vmatmul.mubr.msk.bf16.gmra.mxu0 %vm6177_vm10, %v7748_v16  ;;  %v4871_v8 = vor.u32 %v4870_v28, %v10965_v63 }
 0x3ea   : > { %5264 = vrot.lane.b32.xlu0 %v4857_v32, %s7846_s8  ;;  %5318 = vrot.lane.b32.xlu1 %v5127_v52, %s7846_s8  ;;  %v4628_v52 = vld [vmem:[#allocation2 + $0x6c] sm:$0xf]  ;;  %v5711_v51 = vsel %vm9463_vm13, %v5709_v7, %v5710_v5  ;;  %v5166_v7 = vrot.slane %v5164_v48, 5 }
 0x3eb   : > { %v4874_v16 = vshll.u32 %v4628_v52, 16  ;;  %v4872_v63 = vrot.slane %v4871_v8, 4 }
 0x3ec   : > { %v4403_v55 = vpop.permute.xlu0 %4402  ;;  %v4457_v45 = vpop.permute.xlu1 %4456 }
 0x3ed   : > { %4561 = vst.msk [vmem:[#allocation3 + $0x28] sm:$0xf] %vm4550_vm7, %v4403_v55  ;;  %v7749_v40 = vld [vmem:[#allocation3 + $0x88] sm:$0xff]   ;;  %4588 = vst.msk [vmem:[#allocation3 + $0x94] sm:$0xf] %vm4550_vm7, %v4457_v45 }
 0x3ee   : > { %5320 = vrot.lane.b32.xlu0 %v5137_v61, %s7846_s8  ;;  %5266 = vrot.lane.b32.xlu1 %v4867_v58, %s7846_s8  ;;  %v4878_v61 = vshrl.u32 %v4628_v52, 16  ;;  %v4629_v55 = vld [vmem:[#allocation2 + $0x70] sm:$0xf]  ;;  %v5178_v52 = vshrl.u32 %v4658_v2, 16 }
 0x3ef   : > { %7155 = vmatmul.mubr.msk.bf16.gmra.mxu1 %vm6177_vm10, %v7749_v40  ;;  %v4888_v54 = vshrl.u32 %v4629_v55, 16  ;;  %v4876_v40 = vrot.slane %v4874_v16, 5  ;;  %v4884_v39 = vshll.u32 %v4629_v55, 16 }
 0x3f0   : > { %v4459_v19 = vpop.permute.xlu0 %4458  ;;  %v4405_v33 = vpop.permute.xlu1 %4404 }
 0x3f1   : > { %4589 = vst.msk [vmem:[#allocation3 + $0x98] sm:$0xf] %vm4550_vm7, %v4459_v19  ;;  %4562 = vst.msk [vmem:[#allocation3 + $0x2c] sm:$0xf] %vm4550_vm7, %v4405_v33  ;;  %v5154_v19 = vshll.u32 %v4656_v46, 16  ;;  %v5151_v33 = vor.u32 %v5150_v36, %v10980_v0  ;;  %v4890_v37 = vrot.slane %v4888_v54, 4 }
 0x3f2   : > { %5768 = vrot.lane.b32.xlu0 %v5618_v26, %s7847_s14  ;;  %5322 = vrot.lane.b32.xlu1 %v5147_v11, %s7846_s8  ;;  %v4880_v26 = vrot.slane %v4878_v61, 4  ;;  %v4320_v11 = vld [vmem:[#allocation2 + $0xe0] sm:$0xf]  ;;  %v4886_v27 = vrot.slane %v4884_v39, 5 }
 0x3f3   : > { %v5152_v35 = vrot.slane %v5151_v33, 4  ;;  %v5628_v33 = vrot.slane %v5626_v57, 4  ;;  %v5502_v57 = vld [vmem:[#allocation2 + $0xdc] sm:$0xf] }
 0x3f4   : > { %v5245_v53 = vpop.permute.xlu0 %5244  ;;  %v4461_v56 = vpop.permute.xlu1 %4460  ;;  %v4881_v29 = vor.u32 %v4880_v26, %v4876_v40 }
 0x3f5   : > { %5405 = vst.msk [vmem:[#allocation3 + $0x20] sm:$0xf] %vm5396_vm8, %v5245_v53 }
 0x3f6   : > { %5824 = vrot.lane.b32.xlu0 %v5702_v41, %s7847_s14  ;;  %4590 = vst.msk [vmem:[#allocation3 + $0x9c] sm:$0xf] %vm4550_vm7, %v4461_v56  ;;  %5770 = vrot.lane.b32.xlu1 %v5621_v1, %s7847_s14  ;;  %v4630_v41 = vld [vmem:[#allocation2 + $0x74] sm:$0xf]  ;;  %v5156_v1 = vrot.slane %v5154_v19, 5 }
 0x3f7   : > { %v4293_v56 = vld [vmem:[#allocation2 + $0x74] sm:$0xf]  ;;  %v4898_v38 = vshrl.u32 %v4630_v41, 16 }
 0x3f8   : > { %v5301_v4 = vpop.permute.xlu0 %5300  ;;  %v5247_v23 = vpop.permute.xlu1 %5246 }
 0x3f9   : > { %5433 = vst.msk [vmem:[#allocation3 + $0x90] sm:$0xf] %vm5396_vm8, %v5301_v4  ;;  %5406 = vst.msk [vmem:[#allocation3 + $0x24] sm:$0xf] %vm5396_vm8, %v5247_v23  ;;  %v4877_v4 = vsel %vm8095_vm11, %v4872_v63, %v4876_v40  ;;  %v5170_v23 = vrot.slane %v5168_v22, 4 }
 0x3fa   : > { %5772 = vrot.lane.b32.xlu0 %v5624_v43, %s7847_s14  ;;  %5826 = vrot.lane.b32.xlu1 %v5705_v49, %s7847_s14  ;;  %v4894_v43 = vshll.u32 %v4630_v41, 16  ;;  %v4891_v49 = vor.u32 %v4890_v37, %v4886_v27  ;;  %v5629_v37 = vrot.slane %v5474_v42, 5 }
 0x3fc   : > { %v5249_v14 = vpop.permute.xlu0 %5248  ;;  %v5303_v32 = vpop.permute.xlu1 %5302  ;;  %v4892_v28 = vrot.slane %v4891_v49, 4  ;;  %v5630_v48 = vsel %vm9463_vm13, %v5628_v33, %v5629_v37  ;;  %v4295_v33 = vld [vmem:[#allocation2 + $0x7c] sm:$0xf] }
 0x3fd   : > { %5407 = vst.msk [vmem:[#allocation3 + $0x28] sm:$0xf] %vm5396_vm8, %v5249_v14  ;;  %5434 = vst.msk [vmem:[#allocation3 + $0x94] sm:$0xf] %vm5396_vm8, %v5303_v32  ;;  %v4882_v14 = vrot.slane %v4881_v29, 4  ;;  %v4896_v32 = vrot.slane %v4894_v43, 5 }
 0x3fe   : > { %5828 = vrot.lane.b32.xlu0 %v5708_v18, %s7847_s14  ;;  %5774 = vrot.lane.b32.xlu1 %v5627_v6, %s7847_s14  ;;  %v5161_v6 = vor.u32 %v5160_v34, %v5156_v1 }
 0x3ff   : > { %v4887_v61 = vsel %vm8095_vm11, %v4882_v14, %v4886_v27  ;;  %v4897_v36 = vsel %vm8095_vm11, %v4892_v28, %v4896_v32  ;;  %v5716_v14 = vrot.slane %v5503_v50, 5 }
 0x400   : > { %v5305_v9 = vpop.permute.xlu0 %5304  ;;  %v5251_v3 = vpop.permute.xlu1 %5250 }
 0x401   : > { %5435 = vst.msk [vmem:[#allocation3 + $0x98] sm:$0xf] %vm5396_vm8, %v5305_v9  ;;  %5408 = vst.msk [vmem:[#allocation3 + $0x2c] sm:$0xf] %vm5396_vm8, %v5251_v3  ;;  %v5174_v9 = vshll.u32 %v4658_v2, 16  ;;  %v5157_v3 = vsel %vm8095_vm11, %v5152_v35, %v5156_v1  ;;  %v5631_v35 = vrot.slane %v5629_v37, 4 }
 0x402   : > { %4422 = vrot.lane.b32.xlu0 %v4290_v60, %s7845_s29  ;;  %5830 = vrot.lane.b32.xlu1 %v5711_v51, %s7847_s14  ;;  %v4900_v60 = vrot.slane %v4898_v38, 4  ;;  %v5632_v38 = vrot.slane %v5475_v59, 5  ;;  %v4660_v37 = vld [vmem:[#allocation2 + $0xec] sm:$0xf] }
 0x404   : > { %v5753_v44 = vpop.permute.xlu0 %5752  ;;  %v5307_v58 = vpop.permute.xlu1 %5306  ;;  %v4901_v55 = vor.u32 %v4900_v60, %v4896_v32  ;;  %v5504_v32 = vld [vmem:[#allocation2 + $0xe4] sm:$0xf] }
 0x405   : > { %5913 = vst.msk [vmem:[#allocation3 + $0x20] sm:$0xf] %vm5904_vm9, %v5753_v44  ;;  %v5171_v44 = vor.u32 %v5170_v23, %v5166_v7  ;;  %v5634_v23 = vrot.slane %v5632_v38, 4 }
 0x406   : > { %4478 = vrot.lane.b32.xlu0 %v4318_v20, %s7845_s29  ;;  %5436 = vst.msk [vmem:[#allocation3 + $0x9c] sm:$0xf] %vm5396_vm8, %v5307_v58  ;;  %4424 = vrot.lane.b32.xlu1 %v4291_v17, %s7845_s29  ;;  %v11059_v20 = vld [vmem:[#allocation2 + $0x78] sm:$0xf]  ;;  %v5162_v17 = vrot.slane %v5161_v6, 4  ;;  %v5176_v58 = vrot.slane %v5174_v9, 5 }
 0x407   : > { %v4904_v46 = vshll.u32 %v11059_v20, 16  ;;  %v5172_v40 = vrot.slane %v5171_v44, 4  ;;  %v4902_v19 = vrot.slane %v4901_v55, 4  ;;  %v11117_v9 = vld [vmem:[#allocation2 + $0x78] sm:$0xf] }
 0x408   : > { %v5809_v45 = vpop.permute.xlu0 %5808  ;;  %v5755_v62 = vpop.permute.xlu1 %5754  ;;  %v5167_v39 = vsel %vm8095_vm11, %v5162_v17, %v5166_v7  ;;  %v5633_v7 = vsel %vm9463_vm13, %v5631_v35, %v5632_v38  ;;  %v11128_v17 = vld [vmem:[#allocation2 + $0xe8] sm:$0xf]  ;;  %v5198_v38 = vshrl.u32 %v4660_v37, 16  ;;  %v4661_v35 = vld [vmem:[#allocation2 + $0xf0] sm:$0xf] }
 0x409   : > { %5941 = vst.msk [vmem:[#allocation3 + $0x90] sm:$0xf] %vm5904_vm9, %v5809_v45  ;;  %5914 = vst.msk [vmem:[#allocation3 + $0x24] sm:$0xf] %vm5904_vm9, %v5755_v62  ;;  %v11071_v45 = vld [vmem:[#allocation2 + $0xe8] sm:$0xf]  ;;  %v5177_v22 = vsel %vm8095_vm11, %v5172_v40, %v5176_v58 }
 0x40a   : > { %4426 = vrot.lane.b32.xlu0 %v4292_v47, %s7845_s29  ;;  %4480 = vrot.lane.b32.xlu1 %v4319_v12, %s7845_s29  ;;  %v5180_v47 = vrot.slane %v5178_v52, 4  ;;  %v11079_v10 = vrot.slane %v4904_v46, 5  ;;  %v4294_v40 = vld [vmem:[#allocation2 + $0x78] sm:$0xf] }
 0x40c   : > { %v5757_v53 = vpop.permute.xlu0 %5756  ;;  %v5811_v0 = vpop.permute.xlu1 %5810  ;;  %v5181_v12 = vor.u32 %v5180_v47, %v5176_v58 }
 0x40d   : > { %5915 = vst.msk [vmem:[#allocation3 + $0x28] sm:$0xf] %vm5904_vm9, %v5757_v53  ;;  %5942 = vst.msk [vmem:[#allocation3 + $0x94] sm:$0xf] %vm5904_vm9, %v5811_v0  ;;  %v4907_v53 = vsel %vm8095_vm11, %v4902_v19, %v11079_v10  ;;  %v5713_v0 = vrot.slane %v5502_v57, 5 }
 0x40e   : > { %4482 = vrot.lane.b32.xlu0 %v4320_v11, %s7845_s29  ;;  %4428 = vrot.lane.b32.xlu1 %v4293_v56, %s7845_s29  ;;  %v5184_v11 = vshll.u32 %v11071_v45, 16  ;;  %v5182_v29 = vrot.slane %v5181_v12, 4  ;;  %v5712_v56 = vrot.slane %v5710_v5, 4  ;;  %v5476_v5 = vld [vmem:[#allocation2 + $0x74] sm:$0xf]  ;;  %v5188_v12 = vshrl.u32 %v11071_v45, 16 }
 0x40f   : > { %v5635_v6 = vrot.slane %v5476_v5, 5  ;;  %v5208_v5 = vshrl.u32 %v4661_v35, 16 }
 0x410   : > { %v5813_v18 = vpop.permute.xlu0 %5812  ;;  %v5759_v51 = vpop.permute.xlu1 %5758  ;;  %v7750_v21 = vld [vmem:[#allocation3 + $0x20] sm:$0xff]   ;;  %v11094_v27 = vrot.slane %v5184_v11, 5  ;;  %v5714_v2 = vsel %vm9463_vm13, %v5712_v56, %v5713_v0  ;;  %v4322_v11 = vld [vmem:[#allocation2 + $0xe8] sm:$0xf]  ;;  %v5190_v57 = vrot.slane %v5188_v12, 4 }
 0x411   : > { %5943 = vst.msk [vmem:[#allocation3 + $0x98] sm:$0xf] %vm5904_vm9, %v5813_v18  ;;  %5916 = vst.msk [vmem:[#allocation3 + $0x2c] sm:$0xf] %vm5904_vm9, %v5759_v51  ;;  %7130 = vmatprep.mubr.msk.bf16.mxu0 %vm6177_vm10, %v7750_v21  ;;  %v5636_v52 = vsel %vm9463_vm13, %v5634_v23, %v5635_v6  ;;  %v5718_v51 = vrot.slane %v5716_v14, 4  ;;  %v5637_v44 = vrot.slane %v5635_v6, 4 }
 0x412   : > { %5268 = vrot.lane.b32.xlu0 %v4877_v4, %s7846_s8  ;;  %4484 = vrot.lane.b32.xlu1 %v4321_v24, %s7845_s29  ;;  %v5187_v4 = vsel %vm8095_vm11, %v5182_v29, %v11094_v27  ;;  %v5715_v24 = vrot.slane %v5713_v0, 4  ;;  %v4296_v29 = vld [vmem:[#allocation2 + $0x80] sm:$0xf]  ;;  %v4323_v0 = vld [vmem:[#allocation2 + $0xec] sm:$0xf] }
 0x414   : > { %v4407_v16 = vpop.permute.xlu0 %4406  ;;  %v5815_v54 = vpop.permute.xlu1 %5814  ;;  %v7751_v8 = vld [vmem:[#allocation3 + $0x90] sm:$0xff]   ;;  %v5717_v28 = vsel %vm9463_vm13, %v5715_v24, %v5716_v14  ;;  %v5200_v24 = vrot.slane %v5198_v38, 4  ;;  %v5478_v38 = vld [vmem:[#allocation2 + $0x7c] sm:$0xf] }
 0x415   : > { %4563 = vst.msk [vmem:[#allocation3 + $0x30] sm:$0xf] %vm4550_vm7, %v4407_v16  ;;  %7158 = vmatprep.mubr.msk.bf16.mxu1 %vm6177_vm10, %v7751_v8  ;;  %v5638_v16 = vrot.slane %v11117_v9, 5  ;;  %v4908_v8 = vshrl.u32 %v11059_v20, 16  ;;  %v5479_v9 = vld [vmem:[#allocation2 + $0x80] sm:$0xf] }
 0x416   : > { %5324 = vrot.lane.b32.xlu0 %v5157_v3, %s7846_s8  ;;  %5944 = vst.msk [vmem:[#allocation3 + $0x9c] sm:$0xf] %vm5904_vm9, %v5815_v54  ;;  %5270 = vrot.lane.b32.xlu1 %v4887_v61, %s7846_s8  ;;  %v5719_v3 = vrot.slane %v5504_v32, 5  ;;  %v5722_v54 = vrot.slane %v11128_v17, 5  ;;  %v5204_v32 = vshll.u32 %v4661_v35, 16 }
 0x417   : > { %v5639_v58 = vsel %vm9463_vm13, %v5637_v44, %v5638_v16  ;;  %v4910_v42 = vrot.slane %v4908_v8, 4  ;;  %v4662_v44 = vld [vmem:[#allocation2 + $0xf4] sm:$0xf]  ;;  %v5480_v17 = vld [vmem:[#allocation2 + $0x84] sm:$0xf] }
 0x418   : > { %v4463_v26 = vpop.permute.xlu0 %4462  ;;  %v4409_v62 = vpop.permute.xlu1 %4408  ;;  %v7752_v63 = vld [vmem:[#allocation3 + $0x28] sm:$0xff]   ;;  %v5720_v55 = vsel %vm9463_vm13, %v5718_v51, %v5719_v3  ;;  %v5721_v47 = vrot.slane %v5719_v3, 4  ;;  %v4325_v8 = vld [vmem:[#allocation2 + $0xf4] sm:$0xf]  ;;  %v5647_v13 = vrot.slane %v5480_v17, 5 }
 0x419   : > { %4591 = vst.msk [vmem:[#allocation3 + $0xa0] sm:$0xf] %vm4550_vm7, %v4463_v26  ;;  %4564 = vst.msk [vmem:[#allocation3 + $0x34] sm:$0xf] %vm4550_vm7, %v4409_v62  ;;  %7131 = vmatmul.mubr.msk.bf16.gmra.mxu0 %vm6177_vm10, %v7752_v63  ;;  %v4911_v59 = vor.u32 %v4910_v42, %v11079_v10 }
 0x41a   : > { %5272 = vrot.lane.b32.xlu0 %v4897_v36, %s7846_s8  ;;  %5326 = vrot.lane.b32.xlu1 %v5167_v39, %s7846_s8  ;;  %v4632_v39 = vld [vmem:[#allocation2 + $0x7c] sm:$0xf]  ;;  %v5723_v19 = vsel %vm9463_vm13, %v5721_v47, %v5722_v54  ;;  %v5206_v47 = vrot.slane %v5204_v32, 5 }
 0x41b   : > { %v4914_v63 = vshll.u32 %v4632_v39, 16  ;;  %v4912_v10 = vrot.slane %v4911_v59, 4  ;;  %v4663_v59 = vld [vmem:[#allocation2 + $0xf8] sm:$0x1] }
 0x41c   : > { %v4411_v41 = vpop.permute.xlu0 %4410  ;;  %v4465_v1 = vpop.permute.xlu1 %4464 }
 0x41d   : > { %4565 = vst.msk [vmem:[#allocation3 + $0x38] sm:$0xf] %vm4550_vm7, %v4411_v41  ;;  %v7753_v34 = vld [vmem:[#allocation3 + $0x98] sm:$0xff]   ;;  %4592 = vst.msk [vmem:[#allocation3 + $0xa4] sm:$0xf] %vm4550_vm7, %v4465_v1 }
 0x41e   : > { %5328 = vrot.lane.b32.xlu0 %v5177_v22, %s7846_s8  ;;  %5274 = vrot.lane.b32.xlu1 %v4907_v53, %s7846_s8  ;;  %v4918_v22 = vshrl.u32 %v4632_v39, 16  ;;  %v4633_v41 = vld [vmem:[#allocation2 + $0x80] sm:$0xf]  ;;  %v5218_v39 = vshrl.u32 %v4662_v44, 16 }
 0x41f   : > { %7159 = vmatmul.mubr.msk.bf16.gmra.mxu1 %vm6177_vm10, %v7753_v34  ;;  %v4928_v45 = vshrl.u32 %v4633_v41, 16  ;;  %v4916_v34 = vrot.slane %v4914_v63, 5  ;;  %v4924_v56 = vshll.u32 %v4633_v41, 16 }
 0x420   : > { %v4467_v43 = vpop.permute.xlu0 %4466  ;;  %v4413_v49 = vpop.permute.xlu1 %4412 }
 0x421   : > { %4593 = vst.msk [vmem:[#allocation3 + $0xa8] sm:$0xf] %vm4550_vm7, %v4467_v43  ;;  %4566 = vst.msk [vmem:[#allocation3 + $0x3c] sm:$0xf] %vm4550_vm7, %v4413_v49  ;;  %v5194_v43 = vshll.u32 %v4660_v37, 16  ;;  %v5191_v49 = vor.u32 %v5190_v57, %v11094_v27  ;;  %v4930_v23 = vrot.slane %v4928_v45, 4 }
 0x422   : > { %5776 = vrot.lane.b32.xlu0 %v5630_v48, %s7847_s14  ;;  %5330 = vrot.lane.b32.xlu1 %v5187_v4, %s7846_s8  ;;  %v4920_v48 = vrot.slane %v4918_v22, 4  ;;  %v4324_v4 = vld [vmem:[#allocation2 + $0xf0] sm:$0xf]  ;;  %v4926_v6 = vrot.slane %v4924_v56, 5  ;;  %v5220_v37 = vrot.slane %v5218_v39, 4 }
 0x423   : > { %v5192_v3 = vrot.slane %v5191_v49, 4 }
 0x424   : > { %v5253_v18 = vpop.permute.xlu0 %5252  ;;  %v4469_v60 = vpop.permute.xlu1 %4468  ;;  %v4921_v14 = vor.u32 %v4920_v48, %v4916_v34 }
 0x425   : > { %5409 = vst.msk [vmem:[#allocation3 + $0x30] sm:$0xf] %vm5396_vm8, %v5253_v18 }
 0x426   : > { %5832 = vrot.lane.b32.xlu0 %v5714_v2, %s7847_s14  ;;  %4594 = vst.msk [vmem:[#allocation3 + $0xac] sm:$0xf] %vm4550_vm7, %v4469_v60  ;;  %5778 = vrot.lane.b32.xlu1 %v5633_v7, %s7847_s14  ;;  %v4634_v2 = vld [vmem:[#allocation2 + $0x84] sm:$0xf]  ;;  %v5196_v7 = vrot.slane %v5194_v43, 5  ;;  %v5224_v43 = vshll.u32 %v4663_v59, 16 }
 0x427   : > { %v4297_v60 = vld [vmem:[#allocation2 + $0x84] sm:$0xf]  ;;  %v4938_v51 = vshrl.u32 %v4634_v2, 16 }
 0x428   : > { %v5309_v21 = vpop.permute.xlu0 %5308  ;;  %v5255_v61 = vpop.permute.xlu1 %5254 }
 0x429   : > { %5437 = vst.msk [vmem:[#allocation3 + $0xa0] sm:$0xf] %vm5396_vm8, %v5309_v21  ;;  %5410 = vst.msk [vmem:[#allocation3 + $0x34] sm:$0xf] %vm5396_vm8, %v5255_v61  ;;  %v4917_v21 = vsel %vm8095_vm11, %v4912_v10, %v4916_v34  ;;  %v5210_v61 = vrot.slane %v5208_v5, 4  ;;  %v5641_v5 = vrot.slane %v5478_v38, 5 }
 0x42a   : > { %5780 = vrot.lane.b32.xlu0 %v5636_v52, %s7847_s14  ;;  %5834 = vrot.lane.b32.xlu1 %v5717_v28, %s7847_s14  ;;  %v4934_v52 = vshll.u32 %v4634_v2, 16  ;;  %v4931_v28 = vor.u32 %v4930_v23, %v4926_v6  ;;  %v5226_v23 = vrot.slane %v5224_v43, 5  ;;  %v11264_v38 = vld [vmem:[%s11493_s5] ss:$0 sm:$0xff] }
 0x42b   : > { %v5211_v42 = vor.u32 %v5210_v61, %v5206_v47 }
 0x42c   : > { %v5257_v46 = vpop.permute.xlu0 %5256  ;;  %v5311_v36 = vpop.permute.xlu1 %5310 }
 0x42d   : > { %5411 = vst.msk [vmem:[#allocation3 + $0x38] sm:$0xf] %vm5396_vm8, %v5257_v46  ;;  %5438 = vst.msk [vmem:[#allocation3 + $0xa4] sm:$0xf] %vm5396_vm8, %v5311_v36  ;;  %v4922_v46 = vrot.slane %v4921_v14, 4  ;;  %v4936_v36 = vrot.slane %v4934_v52, 5 }
 0x42e   : > { %5836 = vrot.lane.b32.xlu0 %v5720_v55, %s7847_s14  ;;  %5782 = vrot.lane.b32.xlu1 %v5639_v58, %s7847_s14  ;;  %v5201_v58 = vor.u32 %v5200_v24, %v5196_v7  ;;  %v5212_v57 = vrot.slane %v5211_v42, 4  ;;  %v5643_v52 = vrot.slane %v5641_v5, 4 }
 0x42f   : > { %v4927_v63 = vsel %vm8095_vm11, %v4922_v46, %v4926_v6 }
 0x430   : > { %v5313_v26 = vpop.permute.xlu0 %5312  ;;  %v5259_v20 = vpop.permute.xlu1 %5258  ;;  %v5202_v22 = vrot.slane %v5201_v58, 4 }
 0x431   : > { %5439 = vst.msk [vmem:[#allocation3 + $0xa8] sm:$0xf] %vm5396_vm8, %v5313_v26  ;;  %5412 = vst.msk [vmem:[#allocation3 + $0x3c] sm:$0xf] %vm5396_vm8, %v5259_v20  ;;  %v5214_v26 = vshll.u32 %v4662_v44, 16  ;;  %v5197_v20 = vsel %vm8095_vm11, %v5192_v3, %v5196_v7  ;;  %v5724_v7 = vrot.slane %v5722_v54, 4 }
 0x432   : > { %4430 = vrot.lane.b32.xlu0 %v4294_v40, %s7845_s29  ;;  %5838 = vrot.lane.b32.xlu1 %v5723_v19, %s7847_s14  ;;  %v4940_v40 = vrot.slane %v4938_v51, 4  ;;  %v5207_v34 = vsel %vm8095_vm11, %v5202_v22, %v5206_v47  ;;  %v5507_v51 = vld [vmem:[#allocation2 + $0xf0] sm:$0xf] }
 0x433   : > { %v5216_v41 = vrot.slane %v5214_v26, 5  ;;  %v5649_v26 = vrot.slane %v5647_v13, 4 }
 0x434   : > { %v5761_v62 = vpop.permute.xlu0 %5760  ;;  %v5315_v53 = vpop.permute.xlu1 %5314 }
 0x435   : > { %5917 = vst.msk [vmem:[#allocation3 + $0x30] sm:$0xf] %vm5904_vm9, %v5761_v62  ;;  %v5221_v56 = vor.u32 %v5220_v37, %v5216_v41  ;;  %v5217_v35 = vsel %vm8095_vm11, %v5212_v57, %v5216_v41 }
 0x436   : > { %4486 = vrot.lane.b32.xlu0 %v4322_v11, %s7845_s29  ;;  %5440 = vst.msk [vmem:[#allocation3 + $0xac] sm:$0xf] %vm5396_vm8, %v5315_v53  ;;  %4432 = vrot.lane.b32.xlu1 %v4295_v33, %s7845_s29  ;;  %v4932_v11 = vrot.slane %v4931_v28, 4  ;;  %v4941_v33 = vor.u32 %v4940_v40, %v4936_v36  ;;  %v5728_v28 = vrot.slane %v5507_v51, 5 }
 0x437   : > { %v5222_v2 = vrot.slane %v5221_v56, 4 }
 0x438   : > { %v5817_v1 = vpop.permute.xlu0 %5816  ;;  %v5763_v50 = vpop.permute.xlu1 %5762  ;;  %v4937_v45 = vsel %vm8095_vm11, %v4932_v11, %v4936_v36  ;;  %v4942_v48 = vrot.slane %v4941_v33, 4  ;;  %v5730_v47 = vrot.slane %v5728_v28, 4  ;;  %v5651_v11 = vsel %vm9463_vm13, %v5649_v26, %v5650_v30 }
 0x439   : > { %5945 = vst.msk [vmem:[#allocation3 + $0xa0] sm:$0xf] %vm5904_vm9, %v5817_v1  ;;  %5918 = vst.msk [vmem:[#allocation3 + $0x34] sm:$0xf] %vm5904_vm9, %v5763_v50  ;;  %v5640_v50 = vrot.slane %v5638_v16, 4 }
 0x43a   : > { %4434 = vrot.lane.b32.xlu0 %v4296_v29, %s7845_s29  ;;  %4488 = vrot.lane.b32.xlu1 %v4323_v0, %s7845_s29  ;;  %v4947_v49 = vsel %vm8095_vm11, %v4942_v48, %v10402_v15  ;;  %v5506_v16 = vld [vmem:[#allocation2 + $0xec] sm:$0xf]  ;;  %v5644_v15 = vrot.slane %v5479_v9, 5 }
 0x43b   : > { %v5642_v6 = vsel %vm9463_vm13, %v5640_v50, %v5641_v5  ;;  %v5725_v32 = vrot.slane %v5506_v16, 5 }
 0x43c   : > { %v5765_v18 = vpop.permute.xlu0 %5764  ;;  %v5819_v27 = vpop.permute.xlu1 %5818  ;;  %v5645_v44 = vsel %vm9463_vm13, %v5643_v52, %v5644_v15 }
 0x43d   : > { %5919 = vst.msk [vmem:[#allocation3 + $0x38] sm:$0xf] %vm5904_vm9, %v5765_v18  ;;  %5946 = vst.msk [vmem:[#allocation3 + $0xa4] sm:$0xf] %vm5904_vm9, %v5819_v27  ;;  %v5726_v27 = vsel %vm9463_vm13, %v5724_v7, %v5725_v32  ;;  %v5727_v61 = vrot.slane %v5725_v32, 4 }
 0x43e   : > { %4490 = vrot.lane.b32.xlu0 %v4324_v4, %s7845_s29  ;;  %4436 = vrot.lane.b32.xlu1 %v4297_v60, %s7845_s29  ;;  %v5227_v60 = vsel %vm8095_vm11, %v5222_v2, %v5226_v23 }
 0x43f   : > { %v5729_v40 = vsel %vm9463_vm13, %v5727_v61, %v5728_v28 }
 0x440   : > { %v5821_v55 = vpop.permute.xlu0 %5820  ;;  %v5767_v19 = vpop.permute.xlu1 %5766  ;;  %v7754_v12 = vld [vmem:[#allocation3 + $0x30] sm:$0xff]  }
 0x441   : > { %5947 = vst.msk [vmem:[#allocation3 + $0xa8] sm:$0xf] %vm5904_vm9, %v5821_v55  ;;  %5920 = vst.msk [vmem:[#allocation3 + $0x3c] sm:$0xf] %vm5904_vm9, %v5767_v19  ;;  %7134 = vmatprep.mubr.msk.bf16.mxu0 %vm6177_vm10, %v7754_v12  ;;  %v5508_v55 = vld [vmem:[#allocation2 + $0xf4] sm:$0xf] }
 0x442   : > { %5276 = vrot.lane.b32.xlu0 %v4917_v21, %s7846_s8  ;;  %4492 = vrot.lane.b32.xlu1 %v4325_v8, %s7845_s29  ;;  %v5646_v21 = vrot.slane %v5644_v15, 4  ;;  %v5731_v36 = vrot.slane %v5508_v55, 5  ;;  %v5509_v19 = vld [vmem:[#allocation2 + $0xf8] sm:$0x1]  ;;  %s7186_s29 = smul.u32 448, %s309_s19 }
 0x444   : > { %v4415_v62 = vpop.permute.xlu0 %4414  ;;  %v5823_v53 = vpop.permute.xlu1 %5822  ;;  %v7755_v29 = vld [vmem:[#allocation3 + $0xa0] sm:$0xff]   ;;  %v5648_v58 = vsel %vm9463_vm13, %v5646_v21, %v5647_v13  ;;  %v5732_v12 = vsel %vm9463_vm13, %v5730_v47, %v5731_v36  ;;  %v5733_v42 = vrot.slane %v5731_v36, 4 }
 0x445   : > { %4567 = vst.msk [vmem:[#allocation3 + $0x40] sm:$0xf] %vm4550_vm7, %v4415_v62  ;;  %7162 = vmatprep.mubr.msk.bf16.mxu1 %vm6177_vm10, %v7755_v29  ;;  %v5734_v62 = vrot.slane %v5509_v19, 5 }
 0x446   : > { %5332 = vrot.lane.b32.xlu0 %v5197_v20, %s7846_s8  ;;  %5948 = vst.msk [vmem:[#allocation3 + $0xac] sm:$0xf] %vm5904_vm9, %v5823_v53  ;;  %5278 = vrot.lane.b32.xlu1 %v4927_v63, %s7846_s8 }
 0x447   : > { %v5735_v33 = vsel %vm9463_vm13, %v5733_v42, %v5734_v62 }
 0x448   : > { %v4471_v1 = vpop.permute.xlu0 %4470  ;;  %v4417_v0 = vpop.permute.xlu1 %4416  ;;  %v7756_v4 = vld [vmem:[#allocation3 + $0x38] sm:$0xff]  }
 0x449   : > { %4595 = vst.msk [vmem:[#allocation3 + $0xb0] sm:$0xf] %vm4550_vm7, %v4471_v1  ;;  %4568 = vst.msk [vmem:[#allocation3 + $0x44] sm:$0xf] %vm4550_vm7, %v4417_v0  ;;  %7135 = vmatmul.mubr.msk.bf16.gmra.mxu0 %vm6177_vm10, %v7756_v4 }
 0x44a   : > { %5280 = vrot.lane.b32.xlu0 %v4937_v45, %s7846_s8  ;;  %5334 = vrot.lane.b32.xlu1 %v5207_v34, %s7846_s8 }
 0x44c   : > { %v4419_v10 = vpop.permute.xlu0 %4418  ;;  %v4473_v18 = vpop.permute.xlu1 %4472 }
 0x44d   : > { %4569 = vst.msk [vmem:[#allocation3 + $0x48] sm:$0xf] %vm4550_vm7, %v4419_v10  ;;  %v7757_v14 = vld [vmem:[#allocation3 + $0xa8] sm:$0xff]   ;;  %4596 = vst.msk [vmem:[#allocation3 + $0xb4] sm:$0xf] %vm4550_vm7, %v4473_v18 }
 0x44e   : > { %5336 = vrot.lane.b32.xlu0 %v5217_v35, %s7846_s8  ;;  %5282 = vrot.lane.b32.xlu1 %v4947_v49, %s7846_s8 }
 0x44f   : > { %7163 = vmatmul.mubr.msk.bf16.gmra.mxu1 %vm6177_vm10, %v7757_v14 }
 0x450   : > { %v4475_v24 = vpop.permute.xlu0 %4474  ;;  %v4421_v54 = vpop.permute.xlu1 %4420 }
 0x451   : > { %4597 = vst.msk [vmem:[#allocation3 + $0xb8] sm:$0xf] %vm4550_vm7, %v4475_v24  ;;  %4570 = vst.msk [vmem:[#allocation3 + $0x4c] sm:$0xf] %vm4550_vm7, %v4421_v54 }
 0x452   : > { %5784 = vrot.lane.b32.xlu0 %v5642_v6, %s7847_s14  ;;  %5338 = vrot.lane.b32.xlu1 %v5227_v60, %s7846_s8 }
 0x454   : > { %v5261_v3 = vpop.permute.xlu0 %5260  ;;  %v4477_v46 = vpop.permute.xlu1 %4476 }
 0x455   : > { %5413 = vst.msk [vmem:[#allocation3 + $0x40] sm:$0xf] %vm5396_vm8, %v5261_v3 }
 0x456   : > { %5840 = vrot.lane.b32.xlu0 %v5726_v27, %s7847_s14  ;;  %4598 = vst.msk [vmem:[#allocation3 + $0xbc] sm:$0xf] %vm4550_vm7, %v4477_v46  ;;  %5786 = vrot.lane.b32.xlu1 %v5645_v44, %s7847_s14 }
 0x458   : > { %v5317_v8 = vpop.permute.xlu0 %5316  ;;  %v5263_v39 = vpop.permute.xlu1 %5262 }
 0x459   : > { %5441 = vst.msk [vmem:[#allocation3 + $0xb0] sm:$0xf] %vm5396_vm8, %v5317_v8  ;;  %5414 = vst.msk [vmem:[#allocation3 + $0x44] sm:$0xf] %vm5396_vm8, %v5263_v39 }
 0x45a   : > { %5788 = vrot.lane.b32.xlu0 %v5648_v58, %s7847_s14  ;;  %5842 = vrot.lane.b32.xlu1 %v5729_v40, %s7847_s14 }
 0x45c   : > { %v5265_v20 = vpop.permute.xlu0 %5264  ;;  %v5319_v63 = vpop.permute.xlu1 %5318 }
 0x45d   : > { %5415 = vst.msk [vmem:[#allocation3 + $0x48] sm:$0xf] %vm5396_vm8, %v5265_v20  ;;  %5442 = vst.msk [vmem:[#allocation3 + $0xb4] sm:$0xf] %vm5396_vm8, %v5319_v63 }
 0x45e   : > { %5844 = vrot.lane.b32.xlu0 %v5732_v12, %s7847_s14  ;;  %5790 = vrot.lane.b32.xlu1 %v5651_v11, %s7847_s14 }
 0x460   : > { %v5321_v22 = vpop.permute.xlu0 %5320  ;;  %v5267_v41 = vpop.permute.xlu1 %5266 }
 0x461   : > { %5443 = vst.msk [vmem:[#allocation3 + $0xb8] sm:$0xf] %vm5396_vm8, %v5321_v22  ;;  %5416 = vst.msk [vmem:[#allocation3 + $0x4c] sm:$0xf] %vm5396_vm8, %v5267_v41 }
 0x462   : > { %5846 = vrot.lane.b32.xlu1 %v5735_v33, %s7847_s14  ;;  %s11270_s14 = scalar_lea.vmem [#allocation4], %s7186_s29  ;;  %s7784_s29 = scalar_lea.vmem %s7783_s9, 14336 }
 0x463   : > { %s6772_s16 = sshll.u32 %s11270_s14, 4  ;;  %s11442_s16 = int_to_ptr.vmem [resolvable:$true] %s6772_s16 }
 0x464   : > { %v5769_v25 = vpop.permute.xlu0 %5768  ;;  %v5323_v30 = vpop.permute.xlu1 %5322  ;;  %s7778_s21 = scalar_lea.vmem %s11442_s16, 7168  ;;  %p7785_p2 = scmp.lt.s32.totalorder %s11442_s16, %s7783_s9 }
 0x465   : > { %5921 = vst.msk [vmem:[#allocation3 + $0x40] sm:$0xf] %vm5904_vm9, %v5769_v25  ;;  %p7779_p13 = scmp.ne.s32.totalorder %s11442_s16, %s7778_s21  ;;  %p7786_p3 = scmp.lt.s32.totalorder %s7784_s29, %s7778_s21 }
 0x466   : > { %5444 = vst.msk [vmem:[#allocation3 + $0xbc] sm:$0xf] %vm5396_vm8, %v5323_v30 }
 0x467   : > { %p7780_p0 = pnand %p7779_p13, %p7928_p5  ;;  %p7787_p4 = por %p7786_p3, %p7785_p2 }
 0x468   : > { %v5825_v37 = vpop.permute.xlu0 %5824  ;;  %v5771_v53 = vpop.permute.xlu1 %5770 }
 0x469   : > { %5949 = vst.msk [vmem:[#allocation3 + $0xb0] sm:$0xf] %vm5904_vm9, %v5825_v37  ;;  %5922 = vst.msk [vmem:[#allocation3 + $0x44] sm:$0xf] %vm5904_vm9, %v5771_v53  ;;  %p7781_p1 = pneg %p7780_p0 }
 0x46b   : > { %p7788_p7 = pnand %p7787_p4, %p7781_p1 }
 0x46c   : > { %v5773_v31 = vpop.permute.xlu0 %5772  ;;  %v5827_v29 = vpop.permute.xlu1 %5826 }
 0x46d   : > { %5923 = vst.msk [vmem:[#allocation3 + $0x48] sm:$0xf] %vm5904_vm9, %v5773_v31  ;;  %5950 = vst.msk [vmem:[#allocation3 + $0xb4] sm:$0xf] %vm5904_vm9, %v5827_v29 }
 0x470   : > { %v5829_v45 = vpop.permute.xlu0 %5828  ;;  %v5775_v59 = vpop.permute.xlu1 %5774  ;;  %v7758_v57 = vld [vmem:[#allocation3 + $0x40] sm:$0xff]  }
 0x471   : > { %5951 = vst.msk [vmem:[#allocation3 + $0xb8] sm:$0xf] %vm5904_vm9, %v5829_v45  ;;  %5924 = vst.msk [vmem:[#allocation3 + $0x4c] sm:$0xf] %vm5904_vm9, %v5775_v59  ;;  %7138 = vmatprep.mubr.msk.bf16.mxu0 %vm6177_vm10, %v7758_v57 }
 0x474   : > { %v4423_v1 = vpop.permute.xlu0 %4422  ;;  %v5831_v34 = vpop.permute.xlu1 %5830  ;;  %v7759_v48 = vld [vmem:[#allocation3 + $0xb0] sm:$0xff]  }
 0x475   : > { %4571 = vst.msk [vmem:[#allocation3 + $0x50] sm:$0xf] %vm4550_vm7, %v4423_v1  ;;  %7166 = vmatprep.mubr.msk.bf16.mxu1 %vm6177_vm10, %v7759_v48 }
 0x476   : > { %5952 = vst.msk [vmem:[#allocation3 + $0xbc] sm:$0xf] %vm5904_vm9, %v5831_v34 }
 0x478   : > { %v4479_v56 = vpop.permute.xlu0 %4478  ;;  %v4425_v43 = vpop.permute.xlu1 %4424  ;;  %v7760_v0 = vld [vmem:[#allocation3 + $0x48] sm:$0xff]  }
 0x479   : > { %4599 = vst.msk [vmem:[#allocation3 + $0xc0] sm:$0xf] %vm4550_vm7, %v4479_v56  ;;  %4572 = vst.msk [vmem:[#allocation3 + $0x54] sm:$0xf] %vm4550_vm7, %v4425_v43  ;;  %v7124_v35 = vpop.f32.mrf.mxu0  ;;  %7139 = vmatmul.mubr.msk.bf16.gmra.mxu0 %vm6177_vm10, %v7760_v0 }
 0x47a   : > { %v6644_v50 = vadd.f32 %v7124_v35, %v11264_v38 }
 0x47b   : > { %v6300_v5 = vpop.f32.mrf.mxu0 }
 0x47c   : > { %v4427_v4 = vpop.permute.xlu0 %4426  ;;  %v4481_v10 = vpop.permute.xlu1 %4480  ;;  %6700 = vst [vmem:[%s11270_s14 + $0x10] sm:$0xff] %v6644_v50  ;;  %v6642_v2 = vadd.f32 %v11264_v38, %v6300_v5 }
 0x47d   : > { %4573 = vst.msk [vmem:[#allocation3 + $0x58] sm:$0xf] %vm4550_vm7, %v4427_v4  ;;  %v7761_v49 = vld [vmem:[#allocation3 + $0xb8] sm:$0xff]   ;;  %4600 = vst.msk [vmem:[#allocation3 + $0xc4] sm:$0xf] %vm4550_vm7, %v4481_v10  ;;  %v7125_v9 = vpop.f32.mrf.mxu0 }
 0x47e   : > { %7167 = vmatmul.mubr.msk.bf16.gmra.mxu1 %vm6177_vm10, %v7761_v49  ;;  %6698 = vst [vmem:[%s11270_s14] sm:$0xff] %v6642_v2  ;;  %v6645_v18 = vadd.f32 %v7125_v9, %v11264_v38 }
 0x47f   : > { %v7152_v16 = vpop.f32.mrf.mxu1  ;;  %v6303_v7 = vpop.f32.mrf.mxu0 }
 0x480   : > { %v4483_v23 = vpop.permute.xlu0 %4482  ;;  %v6672_v14 = vadd.f32 %v7152_v16, %v11264_v38  ;;  %v4429_v6 = vpop.permute.xlu1 %4428  ;;  %6701 = vst [vmem:[%s11270_s14 + $0x18] sm:$0xff] %v6645_v18  ;;  %v6643_v24 = vadd.f32 %v11264_v38, %v6303_v7 }
 0x481   : > { %4601 = vst.msk [vmem:[#allocation3 + $0xc8] sm:$0xf] %vm4550_vm7, %v4483_v23  ;;  %4574 = vst.msk [vmem:[#allocation3 + $0x5c] sm:$0xf] %vm4550_vm7, %v4429_v6  ;;  %v6412_v15 = vpop.f32.mrf.mxu1 }
 0x482   : > { %6728 = vst [vmem:[%s11270_s14 + $0xf0] sm:$0xff] %v6672_v14  ;;  %v6670_v60 = vadd.f32 %v11264_v38, %v6412_v15  ;;  %6699 = vst [vmem:[%s11270_s14 + $0x8] sm:$0xff] %v6643_v24 }
 0x483   : > { %v7153_v52 = vpop.f32.mrf.mxu1 }
 0x484   : > { %v5269_v32 = vpop.permute.xlu0 %5268  ;;  %6726 = vst [vmem:[%s11270_s14 + $0xe0] sm:$0xff] %v6670_v60  ;;  %v6673_v51 = vadd.f32 %v7153_v52, %v11264_v38  ;;  %v4485_v17 = vpop.permute.xlu1 %4484 }
 0x485   : > { %5417 = vst.msk [vmem:[#allocation3 + $0x50] sm:$0xf] %vm5396_vm8, %v5269_v32  ;;  %v6415_v54 = vpop.f32.mrf.mxu1 }
 0x486   : > { %4602 = vst.msk [vmem:[#allocation3 + $0xcc] sm:$0xf] %vm4550_vm7, %v4485_v17  ;;  %6729 = vst [vmem:[%s11270_s14 + $0xf8] sm:$0xff] %v6673_v51  ;;  %v6671_v21 = vadd.f32 %v11264_v38, %v6415_v54 }
 0x488   : > { %v5325_v27 = vpop.permute.xlu0 %5324  ;;  %6727 = vst [vmem:[%s11270_s14 + $0xe8] sm:$0xff] %v6671_v21  ;;  %v5271_v3 = vpop.permute.xlu1 %5270 }
 0x489   : > { %5445 = vst.msk [vmem:[#allocation3 + $0xc0] sm:$0xf] %vm5396_vm8, %v5325_v27  ;;  %5418 = vst.msk [vmem:[#allocation3 + $0x54] sm:$0xf] %vm5396_vm8, %v5271_v3 }
 0x48c   : > { %v5273_v28 = vpop.permute.xlu0 %5272  ;;  %v5327_v13 = vpop.permute.xlu1 %5326 }
 0x48d   : > { %5419 = vst.msk [vmem:[#allocation3 + $0x58] sm:$0xf] %vm5396_vm8, %v5273_v28  ;;  %5446 = vst.msk [vmem:[#allocation3 + $0xc4] sm:$0xf] %vm5396_vm8, %v5327_v13 }
 0x490   : > { %v5329_v44 = vpop.permute.xlu0 %5328  ;;  %v5275_v61 = vpop.permute.xlu1 %5274 }
 0x491   : > { %5447 = vst.msk [vmem:[#allocation3 + $0xc8] sm:$0xf] %vm5396_vm8, %v5329_v44  ;;  %5420 = vst.msk [vmem:[#allocation3 + $0x5c] sm:$0xf] %vm5396_vm8, %v5275_v61 }
 0x494   : > { %v5777_v55 = vpop.permute.xlu0 %5776  ;;  %v5331_v46 = vpop.permute.xlu1 %5330 }
 0x495   : > { %5925 = vst.msk [vmem:[#allocation3 + $0x50] sm:$0xf] %vm5904_vm9, %v5777_v55 }
 0x496   : > { %5448 = vst.msk [vmem:[#allocation3 + $0xcc] sm:$0xf] %vm5396_vm8, %v5331_v46 }
 0x498   : > { %v5833_v58 = vpop.permute.xlu0 %5832  ;;  %v5779_v47 = vpop.permute.xlu1 %5778 }
 0x499   : > { %5953 = vst.msk [vmem:[#allocation3 + $0xc0] sm:$0xf] %vm5904_vm9, %v5833_v58  ;;  %5926 = vst.msk [vmem:[#allocation3 + $0x54] sm:$0xf] %vm5904_vm9, %v5779_v47 }
 0x49c   : > { %v5781_v8 = vpop.permute.xlu0 %5780  ;;  %v5835_v36 = vpop.permute.xlu1 %5834 }
 0x49d   : > { %5927 = vst.msk [vmem:[#allocation3 + $0x58] sm:$0xf] %vm5904_vm9, %v5781_v8  ;;  %5954 = vst.msk [vmem:[#allocation3 + $0xc4] sm:$0xf] %vm5904_vm9, %v5835_v36 }
 0x4a0   : > { %v5837_v40 = vpop.permute.xlu0 %5836  ;;  %v5783_v26 = vpop.permute.xlu1 %5782  ;;  %v7762_v39 = vld [vmem:[#allocation3 + $0x50] sm:$0xff]  }
 0x4a1   : > { %5955 = vst.msk [vmem:[#allocation3 + $0xc8] sm:$0xf] %vm5904_vm9, %v5837_v40  ;;  %5928 = vst.msk [vmem:[#allocation3 + $0x5c] sm:$0xf] %vm5904_vm9, %v5783_v26  ;;  %7142 = vmatprep.mubr.msk.bf16.mxu0 %vm6177_vm10, %v7762_v39 }
 0x4a4   : > { %v4431_v19 = vpop.permute.xlu0 %4430  ;;  %v5839_v12 = vpop.permute.xlu1 %5838  ;;  %v7763_v20 = vld [vmem:[#allocation3 + $0xc0] sm:$0xff]  }
 0x4a5   : > { %4575 = vst.msk [vmem:[#allocation3 + $0x60] sm:$0xf] %vm4550_vm7, %v4431_v19  ;;  %7170 = vmatprep.mubr.msk.bf16.mxu1 %vm6177_vm10, %v7763_v20 }
 0x4a6   : > { %5956 = vst.msk [vmem:[#allocation3 + $0xcc] sm:$0xf] %vm5904_vm9, %v5839_v12 }
 0x4a8   : > { %v4487_v11 = vpop.permute.xlu0 %4486  ;;  %v4433_v42 = vpop.permute.xlu1 %4432  ;;  %v7764_v62 = vld [vmem:[#allocation3 + $0x58] sm:$0xff]  }
 0x4a9   : > { %4603 = vst.msk [vmem:[#allocation3 + $0xd0] sm:$0xf] %vm4550_vm7, %v4487_v11  ;;  %4576 = vst.msk [vmem:[#allocation3 + $0x64] sm:$0xf] %vm4550_vm7, %v4433_v42  ;;  %v7128_v22 = vpop.f32.mrf.mxu0  ;;  %7143 = vmatmul.mubr.msk.bf16.gmra.mxu0 %vm6177_vm10, %v7764_v62 }
 0x4aa   : > { %v6648_v33 = vadd.f32 %v7128_v22, %v11264_v38 }
 0x4ab   : > { %v6316_v25 = vpop.f32.mrf.mxu0 }
 0x4ac   : > { %v4435_v63 = vpop.permute.xlu0 %4434  ;;  %v4489_v41 = vpop.permute.xlu1 %4488  ;;  %6704 = vst [vmem:[%s11270_s14 + $0x30] sm:$0xff] %v6648_v33  ;;  %v6646_v37 = vadd.f32 %v11264_v38, %v6316_v25 }
 0x4ad   : > { %4577 = vst.msk [vmem:[#allocation3 + $0x68] sm:$0xf] %vm4550_vm7, %v4435_v63  ;;  %v7765_v30 = vld [vmem:[#allocation3 + $0xc8] sm:$0xff]   ;;  %4604 = vst.msk [vmem:[#allocation3 + $0xd4] sm:$0xf] %vm4550_vm7, %v4489_v41  ;;  %v7129_v31 = vpop.f32.mrf.mxu0 }
 0x4ae   : > { %7171 = vmatmul.mubr.msk.bf16.gmra.mxu1 %vm6177_vm10, %v7765_v30  ;;  %6702 = vst [vmem:[%s11270_s14 + $0x20] sm:$0xff] %v6646_v37  ;;  %v6649_v45 = vadd.f32 %v7129_v31, %v11264_v38 }
 0x4af   : > { %v7156_v29 = vpop.f32.mrf.mxu1  ;;  %v6319_v1 = vpop.f32.mrf.mxu0 }
 0x4b0   : > { %v4491_v53 = vpop.permute.xlu0 %4490  ;;  %v6676_v59 = vadd.f32 %v7156_v29, %v11264_v38  ;;  %v4437_v57 = vpop.permute.xlu1 %4436  ;;  %6705 = vst [vmem:[%s11270_s14 + $0x38] sm:$0xff] %v6649_v45  ;;  %v6647_v34 = vadd.f32 %v11264_v38, %v6319_v1 }
 0x4b1   : > { %4605 = vst.msk [vmem:[#allocation3 + $0xd8] sm:$0xf] %vm4550_vm7, %v4491_v53  ;;  %4578 = vst.msk [vmem:[#allocation3 + $0x6c] sm:$0xf] %vm4550_vm7, %v4437_v57  ;;  %v6428_v48 = vpop.f32.mrf.mxu1 }
 0x4b2   : > { %6732 = vst [vmem:[%s11270_s14 + $0x110] sm:$0xff] %v6676_v59  ;;  %v6674_v43 = vadd.f32 %v11264_v38, %v6428_v48  ;;  %6703 = vst [vmem:[%s11270_s14 + $0x28] sm:$0xff] %v6647_v34 }
 0x4b3   : > { %v7157_v0 = vpop.f32.mrf.mxu1 }
 0x4b4   : > { %v5277_v56 = vpop.permute.xlu0 %5276  ;;  %6730 = vst [vmem:[%s11270_s14 + $0x100] sm:$0xff] %v6674_v43  ;;  %v6677_v4 = vadd.f32 %v7157_v0, %v11264_v38  ;;  %v4493_v35 = vpop.permute.xlu1 %4492 }
 0x4b5   : > { %5421 = vst.msk [vmem:[#allocation3 + $0x60] sm:$0xf] %vm5396_vm8, %v5277_v56  ;;  %v6431_v50 = vpop.f32.mrf.mxu1 }
 0x4b6   : > { %4606 = vst.msk [vmem:[#allocation3 + $0xdc] sm:$0xf] %vm4550_vm7, %v4493_v35  ;;  %6733 = vst [vmem:[%s11270_s14 + $0x118] sm:$0xff] %v6677_v4  ;;  %v6675_v5 = vadd.f32 %v11264_v38, %v6431_v50 }
 0x4b8   : > { %v5333_v10 = vpop.permute.xlu0 %5332  ;;  %6731 = vst [vmem:[%s11270_s14 + $0x108] sm:$0xff] %v6675_v5  ;;  %v5279_v49 = vpop.permute.xlu1 %5278 }
 0x4b9   : > { %5449 = vst.msk [vmem:[#allocation3 + $0xd0] sm:$0xf] %vm5396_vm8, %v5333_v10  ;;  %5422 = vst.msk [vmem:[#allocation3 + $0x64] sm:$0xf] %vm5396_vm8, %v5279_v49 }
 0x4bc   : > { %v5281_v2 = vpop.permute.xlu0 %5280  ;;  %v5335_v23 = vpop.permute.xlu1 %5334 }
 0x4bd   : > { %5423 = vst.msk [vmem:[#allocation3 + $0x68] sm:$0xf] %vm5396_vm8, %v5281_v2  ;;  %5450 = vst.msk [vmem:[#allocation3 + $0xd4] sm:$0xf] %vm5396_vm8, %v5335_v23 }
 0x4c0   : > { %v5337_v9 = vpop.permute.xlu0 %5336  ;;  %v5283_v16 = vpop.permute.xlu1 %5282 }
 0x4c1   : > { %5451 = vst.msk [vmem:[#allocation3 + $0xd8] sm:$0xf] %vm5396_vm8, %v5337_v9  ;;  %5424 = vst.msk [vmem:[#allocation3 + $0x6c] sm:$0xf] %vm5396_vm8, %v5283_v16 }
 0x4c4   : > { %v5785_v18 = vpop.permute.xlu0 %5784  ;;  %v5339_v14 = vpop.permute.xlu1 %5338 }
 0x4c5   : > { %5929 = vst.msk [vmem:[#allocation3 + $0x60] sm:$0xf] %vm5904_vm9, %v5785_v18 }
 0x4c6   : > { %5452 = vst.msk [vmem:[#allocation3 + $0xdc] sm:$0xf] %vm5396_vm8, %v5339_v14 }
 0x4c8   : > { %v5841_v6 = vpop.permute.xlu0 %5840  ;;  %v5787_v7 = vpop.permute.xlu1 %5786 }
 0x4c9   : > { %5957 = vst.msk [vmem:[#allocation3 + $0xd0] sm:$0xf] %vm5904_vm9, %v5841_v6  ;;  %5930 = vst.msk [vmem:[#allocation3 + $0x64] sm:$0xf] %vm5904_vm9, %v5787_v7 }
 0x4cc   : > { %v5789_v24 = vpop.permute.xlu0 %5788  ;;  %v5843_v15 = vpop.permute.xlu1 %5842 }
 0x4cd   : > { %5931 = vst.msk [vmem:[#allocation3 + $0x68] sm:$0xf] %vm5904_vm9, %v5789_v24  ;;  %5958 = vst.msk [vmem:[#allocation3 + $0xd4] sm:$0xf] %vm5904_vm9, %v5843_v15 }
 0x4d0   : > { %v5845_v32 = vpop.permute.xlu0 %5844  ;;  %v5791_v60 = vpop.permute.xlu1 %5790  ;;  %v7766_v52 = vld [vmem:[#allocation3 + $0x60] sm:$0xff]  }
 0x4d1   : > { %5959 = vst.msk [vmem:[#allocation3 + $0xd8] sm:$0xf] %vm5904_vm9, %v5845_v32  ;;  %5932 = vst.msk [vmem:[#allocation3 + $0x6c] sm:$0xf] %vm5904_vm9, %v5791_v60  ;;  %7146 = vmatprep.mubr.msk.bf16.mxu0 %vm6177_vm10, %v7766_v52 }
 0x4d4   : > { %v5847_v51 = vpop.permute.xlu1 %5846  ;;  %v7767_v17 = vld [vmem:[#allocation3 + $0xd0] sm:$0xff]  }
 0x4d5   : > { %5960 = vst.msk [vmem:[#allocation3 + $0xdc] sm:$0xf] %vm5904_vm9, %v5847_v51  ;;  %7174 = vmatprep.mubr.msk.bf16.mxu1 %vm6177_vm10, %v7767_v17 }
 0x4d8   : > { %v7768_v54 = vld [vmem:[#allocation3 + $0x68] sm:$0xff]  }
 0x4d9   : > { %v7132_v27 = vpop.f32.mrf.mxu0  ;;  %7147 = vmatmul.mubr.msk.bf16.gmra.mxu0 %vm6177_vm10, %v7768_v54 }
 0x4da   : > { %v6652_v21 = vadd.f32 %v7132_v27, %v11264_v38 }
 0x4db   : > { %v6332_v3 = vpop.f32.mrf.mxu0 }
 0x4dc   : > { %v7769_v28 = vld [vmem:[#allocation3 + $0xd8] sm:$0xff]   ;;  %6708 = vst [vmem:[%s11270_s14 + $0x50] sm:$0xff] %v6652_v21  ;;  %v6650_v13 = vadd.f32 %v11264_v38, %v6332_v3 }
 0x4dd   : > { %v7133_v44 = vpop.f32.mrf.mxu0  ;;  %7175 = vmatmul.mubr.msk.bf16.gmra.mxu1 %vm6177_vm10, %v7769_v28 }
 0x4de   : > { %6706 = vst [vmem:[%s11270_s14 + $0x40] sm:$0xff] %v6650_v13  ;;  %v6653_v55 = vadd.f32 %v7133_v44, %v11264_v38 }
 0x4df   : > { %v7160_v61 = vpop.f32.mrf.mxu1  ;;  %v6335_v58 = vpop.f32.mrf.mxu0 }
 0x4e0   : > { %v6680_v46 = vadd.f32 %v7160_v61, %v11264_v38  ;;  %6709 = vst [vmem:[%s11270_s14 + $0x58] sm:$0xff] %v6653_v55  ;;  %v6651_v8 = vadd.f32 %v11264_v38, %v6335_v58 }
 0x4e1   : > { %v6444_v47 = vpop.f32.mrf.mxu1 }
 0x4e2   : > { %6736 = vst [vmem:[%s11270_s14 + $0x130] sm:$0xff] %v6680_v46  ;;  %v6678_v36 = vadd.f32 %v11264_v38, %v6444_v47  ;;  %6707 = vst [vmem:[%s11270_s14 + $0x48] sm:$0xff] %v6651_v8 }
 0x4e3   : > { %v7161_v40 = vpop.f32.mrf.mxu1 }
 0x4e4   : > { %6734 = vst [vmem:[%s11270_s14 + $0x120] sm:$0xff] %v6678_v36  ;;  %v6681_v26 = vadd.f32 %v7161_v40, %v11264_v38 }
 0x4e5   : > { %v6447_v39 = vpop.f32.mrf.mxu1 }
 0x4e6   : > { %6737 = vst [vmem:[%s11270_s14 + $0x138] sm:$0xff] %v6681_v26  ;;  %v6679_v19 = vadd.f32 %v11264_v38, %v6447_v39 }
 0x4e8   : > { %6735 = vst [vmem:[%s11270_s14 + $0x128] sm:$0xff] %v6679_v19 }
 0x509   : > { %v7136_v12 = vpop.f32.mrf.mxu0 }
 0x50a   : > { %v6656_v20 = vadd.f32 %v7136_v12, %v11264_v38 }
 0x50b   : > { %v6348_v11 = vpop.f32.mrf.mxu0 }
 0x50c   : > { %6712 = vst [vmem:[%s11270_s14 + $0x70] sm:$0xff] %v6656_v20  ;;  %v6654_v42 = vadd.f32 %v11264_v38, %v6348_v11 }
 0x50d   : > { %v7137_v62 = vpop.f32.mrf.mxu0 }
 0x50e   : > { %6710 = vst [vmem:[%s11270_s14 + $0x60] sm:$0xff] %v6654_v42  ;;  %v6657_v22 = vadd.f32 %v7137_v62, %v11264_v38 }
 0x50f   : > { %v7164_v63 = vpop.f32.mrf.mxu1  ;;  %v6351_v41 = vpop.f32.mrf.mxu0 }
 0x510   : > { %v6684_v33 = vadd.f32 %v7164_v63, %v11264_v38  ;;  %6713 = vst [vmem:[%s11270_s14 + $0x78] sm:$0xff] %v6657_v22  ;;  %v6655_v30 = vadd.f32 %v11264_v38, %v6351_v41 }
 0x511   : > { %v6460_v25 = vpop.f32.mrf.mxu1 }
 0x512   : > { %6740 = vst [vmem:[%s11270_s14 + $0x150] sm:$0xff] %v6684_v33  ;;  %v6682_v37 = vadd.f32 %v11264_v38, %v6460_v25  ;;  %6711 = vst [vmem:[%s11270_s14 + $0x68] sm:$0xff] %v6655_v30 }
 0x513   : > { %v7165_v53 = vpop.f32.mrf.mxu1 }
 0x514   : > { %6738 = vst [vmem:[%s11270_s14 + $0x140] sm:$0xff] %v6682_v37  ;;  %v6685_v31 = vadd.f32 %v7165_v53, %v11264_v38 }
 0x515   : > { %v6463_v29 = vpop.f32.mrf.mxu1 }
 0x516   : > { %6741 = vst [vmem:[%s11270_s14 + $0x158] sm:$0xff] %v6685_v31  ;;  %v6683_v45 = vadd.f32 %v11264_v38, %v6463_v29 }
 0x518   : > { %6739 = vst [vmem:[%s11270_s14 + $0x148] sm:$0xff] %v6683_v45 }
 0x539   : > { %v7140_v59 = vpop.f32.mrf.mxu0 }
 0x53a   : > { %v6660_v57 = vadd.f32 %v7140_v59, %v11264_v38 }
 0x53b   : > { %v6364_v1 = vpop.f32.mrf.mxu0 }
 0x53c   : > { %6716 = vst [vmem:[%s11270_s14 + $0x90] sm:$0xff] %v6660_v57  ;;  %v6658_v34 = vadd.f32 %v11264_v38, %v6364_v1 }
 0x53d   : > { %v7141_v48 = vpop.f32.mrf.mxu0 }
 0x53e   : > { %v7168_v56 = vpop.f32.mrf.mxu1  ;;  %6714 = vst [vmem:[%s11270_s14 + $0x80] sm:$0xff] %v6658_v34  ;;  %v6661_v43 = vadd.f32 %v7141_v48, %v11264_v38 }
 0x53f   : > { %v6688_v0 = vadd.f32 %v7168_v56, %v11264_v38  ;;  %v6367_v4 = vpop.f32.mrf.mxu0 }
 0x540   : > { %v6476_v35 = vpop.f32.mrf.mxu1  ;;  %6717 = vst [vmem:[%s11270_s14 + $0x98] sm:$0xff] %v6661_v43  ;;  %v6659_v50 = vadd.f32 %v11264_v38, %v6367_v4 }
 0x541   : > { %6744 = vst [vmem:[%s11270_s14 + $0x170] sm:$0xff] %v6688_v0  ;;  %v6686_v10 = vadd.f32 %v11264_v38, %v6476_v35 }
 0x542   : > { %v7169_v5 = vpop.f32.mrf.mxu1  ;;  %6715 = vst [vmem:[%s11270_s14 + $0x88] sm:$0xff] %v6659_v50 }
 0x543   : > { %6742 = vst [vmem:[%s11270_s14 + $0x160] sm:$0xff] %v6686_v10  ;;  %v6689_v49 = vadd.f32 %v7169_v5, %v11264_v38 }
 0x544   : > { %v6479_v2 = vpop.f32.mrf.mxu1 }
 0x545   : > { %6745 = vst [vmem:[%s11270_s14 + $0x178] sm:$0xff] %v6689_v49  ;;  %v6687_v23 = vadd.f32 %v11264_v38, %v6479_v2 }
 0x547   : > { %6743 = vst [vmem:[%s11270_s14 + $0x168] sm:$0xff] %v6687_v23 }
 0x569   : > { %v7144_v9 = vpop.f32.mrf.mxu0 }
 0x56a   : > { %v6664_v16 = vadd.f32 %v7144_v9, %v11264_v38 }
 0x56b   : > { %v6380_v18 = vpop.f32.mrf.mxu0 }
 0x56c   : > { %6720 = vst [vmem:[%s11270_s14 + $0xb0] sm:$0xff] %v6664_v16  ;;  %v6662_v14 = vadd.f32 %v11264_v38, %v6380_v18 }
 0x56d   : > { %v7145_v6 = vpop.f32.mrf.mxu0 }
 0x56e   : > { %v7172_v7 = vpop.f32.mrf.mxu1  ;;  %6718 = vst [vmem:[%s11270_s14 + $0xa0] sm:$0xff] %v6662_v14  ;;  %v6665_v24 = vadd.f32 %v7145_v6, %v11264_v38 }
 0x56f   : > { %v6692_v15 = vadd.f32 %v7172_v7, %v11264_v38  ;;  %v6383_v32 = vpop.f32.mrf.mxu0 }
 0x570   : > { %v6492_v60 = vpop.f32.mrf.mxu1  ;;  %6721 = vst [vmem:[%s11270_s14 + $0xb8] sm:$0xff] %v6665_v24  ;;  %v6663_v52 = vadd.f32 %v11264_v38, %v6383_v32 }
 0x571   : > { %6748 = vst [vmem:[%s11270_s14 + $0x190] sm:$0xff] %v6692_v15  ;;  %v6690_v51 = vadd.f32 %v11264_v38, %v6492_v60 }
 0x572   : > { %v7173_v17 = vpop.f32.mrf.mxu1  ;;  %6719 = vst [vmem:[%s11270_s14 + $0xa8] sm:$0xff] %v6663_v52 }
 0x573   : > { %6746 = vst [vmem:[%s11270_s14 + $0x180] sm:$0xff] %v6690_v51  ;;  %v6693_v54 = vadd.f32 %v7173_v17, %v11264_v38 }
 0x574   : > { %v6495_v27 = vpop.f32.mrf.mxu1 }
 0x575   : > { %6749 = vst [vmem:[%s11270_s14 + $0x198] sm:$0xff] %v6693_v54  ;;  %v6691_v21 = vadd.f32 %v11264_v38, %v6495_v27 }
 0x577   : > { %6747 = vst [vmem:[%s11270_s14 + $0x188] sm:$0xff] %v6691_v21 }
 0x599   : > { %v7148_v3 = vpop.f32.mrf.mxu0 }
 0x59a   : > { %v6668_v28 = vadd.f32 %v7148_v3, %v11264_v38 }
 0x59b   : > { %v6396_v13 = vpop.f32.mrf.mxu0 }
 0x59c   : > { %6724 = vst [vmem:[%s11270_s14 + $0xd0] sm:$0xff] %v6668_v28  ;;  %v6666_v44 = vadd.f32 %v11264_v38, %v6396_v13 }
 0x59d   : > { %v7149_v61 = vpop.f32.mrf.mxu0  ;;  %v7176_v55 = vpop.f32.mrf.mxu1 }
 0x59e   : > { %6722 = vst [vmem:[%s11270_s14 + $0xc0] sm:$0xff] %v6666_v44  ;;  %v6669_v46 = vadd.f32 %v7149_v61, %v11264_v38  ;;  %v6696_v58 = vadd.f32 %v7176_v55, %v11264_v38 }
 0x59f   : > { %v6399_v47 = vpop.f32.mrf.mxu0  ;;  %v6508_v8 = vpop.f32.mrf.mxu1 }
 0x5a0   : > { %6725 = vst [vmem:[%s11270_s14 + $0xd8] sm:$0xff] %v6669_v46  ;;  %6752 = vst [vmem:[%s11270_s14 + $0x1b0] sm:$0xff] %v6696_v58  ;;  %v6667_v36 = vadd.f32 %v11264_v38, %v6399_v47  ;;  %v6694_v40 = vadd.f32 %v11264_v38, %v6508_v8 }
 0x5a1   : > { %v7177_v26 = vpop.f32.mrf.mxu1 }
 0x5a2   : > { %6723 = vst [vmem:[%s11270_s14 + $0xc8] sm:$0xff] %v6667_v36  ;;  %6750 = vst [vmem:[%s11270_s14 + $0x1a0] sm:$0xff] %v6694_v40  ;;  %v6697_v39 = vadd.f32 %v7177_v26, %v11264_v38 }
 0x5a3   : > { %v6511_v19 = vpop.f32.mrf.mxu1 }
 0x5a4   : > { %6753 = vst [vmem:[%s11270_s14 + $0x1b8] sm:$0xff] %v6697_v39  ;;  %v6695_v12 = vadd.f32 %v11264_v38, %v6511_v19 }
 0x5a6   : > { %6751 = vst [vmem:[%s11270_s14 + $0x1a8] sm:$0xff] %v6695_v12 }
 0x5a7   : > { %7791 = shalt.err (!%p7788_p7)
}
 0x5a8   : > { %s7792_s19 = scalar_lea.hbm %s11438_s20, 7168  ;;  %s7796_s14 = scalar_lea.hbm %s11494_s6, 14336 }
 0x5a9   : > { %p7793_p8 = scmp.ne.s32.totalorder %s11438_s20, %s7792_s19  ;;  %p7797_p11 = scmp.lt.s32.totalorder %s11438_s20, %s11494_s6 }
 0x5aa   : > { %p7798_p12 = scmp.lt.s32.totalorder %s7796_s14, %s7792_s19 }
 0x5ab   : > { %p7794_p9 = pnand %p7793_p8, %p7928_p5 }
 0x5ac   : > { %p7799_p13 = por %p7798_p12, %p7797_p11 }
 0x5ad   : > { %p7795_p10 = pneg %p7794_p9 }
 0x5af   : > { %p7800_p0 = pnand %p7799_p13, %p7795_p10 }
 0x5b1   : > { %7803 = shalt.err (!%p7800_p0)
}
 0x5b2   : > { %s7849_s18 = smov 128  }
 0x5b3   : > { %7691 = dma.vmem_to_hbm [thread:$0]  (%p7928_p5), %s11442_s16, 7168, %s11438_s20, %s11447_s28, %s7849_s18, %s7849_s18, %s7841_s15  }
 0x5b4 PF: > { %p7697_p1 = scmp.ge.s32.totalorder %s7838_s27, 2  ;;  %s6790_s21 = sand.u32 1, %s7826_s24  }
 0x5b5   : > { %s6791_s23 = scalar_lea.sflag [#allocation5], %s6790_s21 }
 0x5b6   : > { %p7694_p2 = pnand %p7697_p1, %p7932_p6 }
 0x5b8   : > { %p7695_p3 = pneg %p7694_p2 }
 0x5ba   : > { %7821 = dma.done.wait (%p7695_p3), %s6791_s23, 7168  }
 0x5bb   : > { %7823 = vsyncadd (%p7695_p3), %s6791_s23, 4294960128  ;;  %p18_p4 = scmp.ge.s32.totalorder %s7915_s30, 4   ;;  %s11624_s24 = smov %s7830_s25 }
 0x5bc   : > { %s11625_s25 = smov %s7834_s26  ;;  %s11626_s26 = smov %s7926_s10 }
 0x5bd   : > { %s11627_s27 = smov %s7915_s30  ;;  %20 = sbr.rel (!%p18_p4) target bundleno = 3 (0x3), region = 94 }
 0x5c2   :  { %6803 = vsyncpa [#allocation5], 1 }
 0x5c3   :  { %6805 = vsyncpa [#allocation5 + $0x1], 1 }

</bundles_post_ra>
